<compile_context>
chip_gen: v7x
topology: tpu7x:2x2x1
jax: 0.10.0
libtpu: 0.0.40
codegen_flags: <defaults>
</compile_context>

<pallas_src>
import functools

import jax
import jax.numpy as jnp
from jax import lax
from jax.experimental import pallas as pl
from jax.experimental.pallas import tpu as pltpu


def _round_up(x, m):
    return ((x + m - 1) // m) * m


# ---------------------------------------------------------------------------
# Fused  (patches @ W_scaled) + bias  [+ LeakyReLU]   Pallas kernel
# ---------------------------------------------------------------------------
def _conv_gemm_kernel(p_ref, w_ref, b_ref, o_ref, *, neg_slope, apply_act):
    # p_ref: (TM, Kp)  im2col patch rows for this tile
    # w_ref: (Kp, Cp)  conv weights (BN scale pre-folded), zero padded
    # b_ref: (1, Cp)   per-output-channel bias (BN shift or conv bias)
    acc = jnp.dot(p_ref[...], w_ref[...], preferred_element_type=jnp.float32)
    y = acc + b_ref[...]
    if apply_act:
        y = jnp.where(y >= 0.0, y, neg_slope * y)
    o_ref[...] = y.astype(o_ref.dtype)


def _pick_row_tile(M, Kp):
    """Row-tile size: big enough to amortize per-grid-step overhead, VMEM bounded."""
    bytes_per_row = Kp * 4
    tm = (1 << 20) // bytes_per_row          # target ~1 MiB of patch rows per step
    tm = max(128, min(512, tm))
    tm = (tm // 8) * 8                       # sublane multiple
    if M <= tm:
        tm = _round_up(max(M, 8), 8)
    return tm


def _fused_conv_gemm(patches_2d, w_2d, bias, *, apply_act, neg_slope=0.2):
    """patches_2d: (M, Kd) f32; w_2d: (Kd, Cout); bias: (Cout,) -> (M, Cout) f32."""
    M, Kd = patches_2d.shape
    Cout = w_2d.shape[1]

    # Lane-dense padding: contraction & output-channel dims -> multiples of 128.
    Kp = _round_up(Kd, 128)
    Cp = _round_up(Cout, 128)
    if Kp != Kd:
        patches_2d = jnp.pad(patches_2d, ((0, 0), (0, Kp - Kd)))
        w_2d = jnp.pad(w_2d, ((0, Kp - Kd), (0, 0)))
    if Cp != Cout:
        w_2d = jnp.pad(w_2d, ((0, 0), (0, Cp - Cout)))
        bias = jnp.pad(bias, (0, Cp - Cout))

    TM = _pick_row_tile(M, Kp)
    Mp = _round_up(M, TM)
    if Mp != M:
        patches_2d = jnp.pad(patches_2d, ((0, Mp - M), (0, 0)))

    kernel = functools.partial(_conv_gemm_kernel, neg_slope=neg_slope, apply_act=apply_act)

    out = pl.pallas_call(
        kernel,
        out_shape=jax.ShapeDtypeStruct((Mp, Cp), jnp.float32),
        grid_spec=pltpu.PrefetchScalarGridSpec(
            num_scalar_prefetch=0,
            grid=(Mp // TM,),
            in_specs=[
                pl.BlockSpec((TM, Kp), lambda i: (i, 0)),
                pl.BlockSpec((Kp, Cp), lambda i: (0, 0)),   # weights stay resident
                pl.BlockSpec((1, Cp), lambda i: (0, 0)),    # bias stays resident
            ],
            out_specs=pl.BlockSpec((TM, Cp), lambda i: (i, 0)),
        ),
        compiler_params=pltpu.CompilerParams(
            dimension_semantics=("parallel",),
            vmem_limit_bytes=32 * 1024 * 1024,
        ),
    )(patches_2d, w_2d, bias.reshape(1, Cp))

    return out[:M, :Cout]


# ---------------------------------------------------------------------------
# im2col (wrapper-side layout only) and full network forward
# ---------------------------------------------------------------------------
def _im2col_nhwc(x, k, stride, pad):
    """x: (B, H, W, C) -> patches (B, Ho, Wo, k*k*C); feature index = (kh*k+kw)*C + c."""
    B, H, W, C = x.shape
    xp = jnp.pad(x, ((0, 0), (pad, pad), (pad, pad), (0, 0)))
    Ho = (H + 2 * pad - k) // stride + 1
    Wo = (W + 2 * pad - k) // stride + 1
    cols = []
    for kh in range(k):
        for kw in range(k):
            cols.append(xp[:, kh:kh + stride * Ho:stride, kw:kw + stride * Wo:stride, :])
    patches = jnp.stack(cols, axis=3)                # (B, Ho, Wo, k*k, C)
    return patches.reshape(B, Ho, Wo, k * k * C), Ho, Wo


# (stride, use_batchnorm, apply_leaky_relu) per layer
_LAYER_CFG = (
    (2, False, True),
    (2, True, True),
    (2, True, True),
    (1, True, True),
    (1, False, False),
)
_BN_EPS = 1e-5


def custom_discriminator_forward(x_nchw, params):
    """Forward pass of CustomDiscriminator."""
    # TODO(synk): BatchNorm2d is implemented in inference mode (running stats folded
    # into the GEMM); training-mode batch statistics are not computed.
    x = jnp.transpose(x_nchw, (0, 2, 3, 1)).astype(jnp.float32)      # NHWC
    for i, (stride, use_bn, act) in enumerate(_LAYER_CFG):
        w = params[f"w{i}"]                                          # (Cout, Cin, 4, 4)
        cout = w.shape[0]
        wm = jnp.transpose(w, (2, 3, 1, 0)).reshape(-1, cout)        # (4*4*Cin, Cout)
        if use_bn:
            scale = params[f"bn{i}_gamma"] * lax.rsqrt(params[f"bn{i}_var"] + _BN_EPS)
            bias = params[f"bn{i}_beta"] - params[f"bn{i}_mean"] * scale
            wm = wm * scale[None, :]                                 # fold BN scale into W
        else:
            bias = params[f"b{i}"]
        patches, ho, wo = _im2col_nhwc(x, 4, stride, 1)
        b = x.shape[0]
        pm = patches.reshape(b * ho * wo, patches.shape[-1])
        y = _fused_conv_gemm(pm, wm, bias, apply_act=act)
        x = y.reshape(b, ho, wo, cout)
    return jnp.transpose(x, (0, 3, 1, 2))                            # back to NCHW


# ---------------------------------------------------------------------------
# Pure-JAX reference for correctness check
# ---------------------------------------------------------------------------
def _reference_forward(x_nchw, params):
    def conv(x, w, stride):
        return lax.conv_general_dilated(
            x, w, (stride, stride), ((1, 1), (1, 1)),
            dimension_numbers=("NCHW", "OIHW", "NCHW"),
            precision=lax.Precision.HIGHEST)

    y = x_nchw.astype(jnp.float32)
    for i, (stride, use_bn, act) in enumerate(_LAYER_CFG):
        y = conv(y, params[f"w{i}"], stride)
        if use_bn:
            scale = params[f"bn{i}_gamma"] * lax.rsqrt(params[f"bn{i}_var"] + _BN_EPS)
            bias = params[f"bn{i}_beta"] - params[f"bn{i}_mean"] * scale
        else:
            scale = jnp.ones((y.shape[1],), jnp.float32)
            bias = params[f"b{i}"]
        y = y * scale[None, :, None, None] + bias[None, :, None, None]
        if act:
            y = jnp.where(y >= 0.0, y, 0.2 * y)
    return y


if __name__ == "__main__":
    B, INPUT_NC, H, W = 2, 3, 64, 64
    chans = [INPUT_NC, 32, 64, 128, 256, 1]

    keys = iter(jax.random.split(jax.random.PRNGKey(0), 32))

    params = {}
    for i in range(5):
        cin, cout = chans[i], chans[i + 1]
        fan_in = float(cin * 16)
        params[f"w{i}"] = jax.random.normal(next(keys), (cout, cin, 4, 4), jnp.float32) / jnp.sqrt(fan_in)
        _, use_bn, _ = _LAYER_CFG[i]
        if use_bn:
            params[f"bn{i}_gamma"] = 1.0 + 0.1 * jax.random.normal(next(keys), (cout,), jnp.float32)
            params[f"bn{i}_beta"] = 0.1 * jax.random.normal(next(keys), (cout,), jnp.float32)
            params[f"bn{i}_mean"] = 0.1 * jax.random.normal(next(keys), (cout,), jnp.float32)
            params[f"bn{i}_var"] = 1.0 + 0.1 * jax.random.uniform(next(keys), (cout,), jnp.float32)
        else:
            params[f"b{i}"] = 0.1 * jax.random.normal(next(keys), (cout,), jnp.float32)

    x = jax.random.normal(next(keys), (B, INPUT_NC, H, W), jnp.float32)

    fwd = jax.jit(custom_discriminator_forward)
    out = jax.block_until_ready(fwd(x, params))

    ref = _reference_forward(x, params)
    assert out.shape == ref.shape == (B, 1, 6, 6), (out.shape, ref.shape)
    assert jnp.allclose(out, ref, atol=5e-3, rtol=5e-3), float(jnp.max(jnp.abs(out - ref)))

    print("KERNEL_OK")
</pallas_src>

<mosaic_0001>
module attributes {stable_mosaic.version = 11 : i64} {
  func.func @_conv_gemm_kernel(%arg0: i32, %arg1: memref<512x128xf32, #tpu.memory_space<vmem>>, %arg2: memref<128x128xf32, #tpu.memory_space<vmem>>, %arg3: memref<1x128xf32, #tpu.memory_space<vmem>>, %arg4: memref<512x128xf32, #tpu.memory_space<vmem>>) attributes {dimension_semantics = [#tpu.dimension_semantics<parallel>], iteration_bounds = array<i64: 4>, scalar_prefetch = 0 : i64, scratch_operands = 0 : i64, tpu.core_type = #tpu.core_type<tc>, window_params = [{transform_indices = @transform_0, window_bounds = array<i64: 512, 128>}, {pipeline_mode = #tpu.pipeline_mode<synchronous>, transform_indices = @transform_1, window_bounds = array<i64: 128, 128>}, {pipeline_mode = #tpu.pipeline_mode<synchronous>, transform_indices = @transform_2, window_bounds = array<i64: 1, 128>}, {transform_indices = @transform_3, window_bounds = array<i64: 512, 128>}]} {
    %c0 = arith.constant 0 : index
    %c0_0 = arith.constant 0 : index
    %0 = vector.load %arg1[%c0, %c0_0] : memref<512x128xf32, #tpu.memory_space<vmem>>, vector<512x128xf32>
    %c0_1 = arith.constant 0 : index
    %c0_2 = arith.constant 0 : index
    %1 = vector.load %arg2[%c0_1, %c0_2] : memref<128x128xf32, #tpu.memory_space<vmem>>, vector<128x128xf32>
    %cst = arith.constant dense<0.000000e+00> : vector<512x128xf32>
    %2 = tpu.matmul %0, %1, %cst {dimension_numbers = #tpu.dot_dimension_numbers<[1], [0], [0], [1], [0, 0, 1, 1], [], []>} : vector<512x128xf32>, vector<128x128xf32>, vector<512x128xf32> -> vector<512x128xf32>
    %c0_3 = arith.constant 0 : index
    %c0_4 = arith.constant 0 : index
    %3 = vector.load %arg3[%c0_3, %c0_4] : memref<1x128xf32, #tpu.memory_space<vmem>>, vector<1x128xf32>
    %4 = vector.broadcast %3 : vector<1x128xf32> to vector<512x128xf32>
    %5 = arith.addf %2, %4 : vector<512x128xf32>
    %cst_5 = arith.constant 0.000000e+00 : f32
    %6 = vector.broadcast %cst_5 : f32 to vector<512x128xf32>
    %7 = arith.cmpf oge, %5, %6 : vector<512x128xf32>
    %cst_6 = arith.constant 2.000000e-01 : f32
    %8 = vector.broadcast %cst_6 : f32 to vector<512x128xf32>
    %9 = arith.mulf %8, %5 : vector<512x128xf32>
    %10 = arith.select %7, %5, %9 : vector<512x128xi1>, vector<512x128xf32>
    %c0_7 = arith.constant 0 : index
    %c0_8 = arith.constant 0 : index
    %11 = vector.load %arg4[%c0_7, %c0_8] : memref<512x128xf32, #tpu.memory_space<vmem>>, vector<512x128xf32>
    tpu.vector_store %arg4[%c0_7, %c0_8], %10 {strides = array<i32>} : memref<512x128xf32, #tpu.memory_space<vmem>>, vector<512x128xf32>,
    return
  }
  func.func @transform_0(%arg0: i32) -> (i32, i32) {
    %c0_i32 = arith.constant 0 : i32
    %c0_i32_0 = arith.constant 0 : i32
    return %arg0, %c0_i32 : i32, i32
  }
  func.func @transform_1(%arg0: i32) -> (i32, i32) {
    %c0_i32 = arith.constant 0 : i32
    %c0_i32_0 = arith.constant 0 : i32
    %c0_i32_1 = arith.constant 0 : i32
    return %c0_i32, %c0_i32_0 : i32, i32
  }
  func.func @transform_2(%arg0: i32) -> (i32, i32) {
    %c0_i32 = arith.constant 0 : i32
    %c0_i32_0 = arith.constant 0 : i32
    %c0_i32_1 = arith.constant 0 : i32
    return %c0_i32, %c0_i32_0 : i32, i32
  }
  func.func @transform_3(%arg0: i32) -> (i32, i32) {
    %c0_i32 = arith.constant 0 : i32
    %c0_i32_0 = arith.constant 0 : i32
    return %arg0, %c0_i32 : i32, i32
  }
}

module attributes {stable_mosaic.version = 11 : i64} {
  func.func @_conv_gemm_kernel(%arg0: i32, %arg1: memref<512x512xf32, #tpu.memory_space<vmem>>, %arg2: memref<512x128xf32, #tpu.memory_space<vmem>>, %arg3: memref<1x128xf32, #tpu.memory_space<vmem>>, %arg4: memref<512x128xf32, #tpu.memory_space<vmem>>) attributes {dimension_semantics = [#tpu.dimension_semantics<parallel>], iteration_bounds = array<i64: 1>, scalar_prefetch = 0 : i64, scratch_operands = 0 : i64, tpu.core_type = #tpu.core_type<tc>, window_params = [{transform_indices = @transform_0, window_bounds = array<i64: 512, 512>}, {pipeline_mode = #tpu.pipeline_mode<synchronous>, transform_indices = @transform_1, window_bounds = array<i64: 512, 128>}, {pipeline_mode = #tpu.pipeline_mode<synchronous>, transform_indices = @transform_2, window_bounds = array<i64: 1, 128>}, {transform_indices = @transform_3, window_bounds = array<i64: 512, 128>}]} {
    %c0 = arith.constant 0 : index
    %c0_0 = arith.constant 0 : index
    %0 = vector.load %arg1[%c0, %c0_0] : memref<512x512xf32, #tpu.memory_space<vmem>>, vector<512x512xf32>
    %c0_1 = arith.constant 0 : index
    %c0_2 = arith.constant 0 : index
    %1 = vector.load %arg2[%c0_1, %c0_2] : memref<512x128xf32, #tpu.memory_space<vmem>>, vector<512x128xf32>
    %cst = arith.constant dense<0.000000e+00> : vector<512x128xf32>
    %2 = tpu.matmul %0, %1, %cst {dimension_numbers = #tpu.dot_dimension_numbers<[1], [0], [0], [1], [0, 0, 1, 1], [], []>} : vector<512x512xf32>, vector<512x128xf32>, vector<512x128xf32> -> vector<512x128xf32>
    %c0_3 = arith.constant 0 : index
    %c0_4 = arith.constant 0 : index
    %3 = vector.load %arg3[%c0_3, %c0_4] : memref<1x128xf32, #tpu.memory_space<vmem>>, vector<1x128xf32>
    %4 = vector.broadcast %3 : vector<1x128xf32> to vector<512x128xf32>
    %5 = arith.addf %2, %4 : vector<512x128xf32>
    %cst_5 = arith.constant 0.000000e+00 : f32
    %6 = vector.broadcast %cst_5 : f32 to vector<512x128xf32>
    %7 = arith.cmpf oge, %5, %6 : vector<512x128xf32>
    %cst_6 = arith.constant 2.000000e-01 : f32
    %8 = vector.broadcast %cst_6 : f32 to vector<512x128xf32>
    %9 = arith.mulf %8, %5 : vector<512x128xf32>
    %10 = arith.select %7, %5, %9 : vector<512x128xi1>, vector<512x128xf32>
    %c0_7 = arith.constant 0 : index
    %c0_8 = arith.constant 0 : index
    %11 = vector.load %arg4[%c0_7, %c0_8] : memref<512x128xf32, #tpu.memory_space<vmem>>, vector<512x128xf32>
    tpu.vector_store %arg4[%c0_7, %c0_8], %10 {strides = array<i32>} : memref<512x128xf32, #tpu.memory_space<vmem>>, vector<512x128xf32>,
    return
  }
  func.func @transform_0(%arg0: i32) -> (i32, i32) {
    %c0_i32 = arith.constant 0 : i32
    %c0_i32_0 = arith.constant 0 : i32
    return %arg0, %c0_i32 : i32, i32
  }
  func.func @transform_1(%arg0: i32) -> (i32, i32) {
    %c0_i32 = arith.constant 0 : i32
    %c0_i32_0 = arith.constant 0 : i32
    %c0_i32_1 = arith.constant 0 : i32
    return %c0_i32, %c0_i32_0 : i32, i32
  }
  func.func @transform_2(%arg0: i32) -> (i32, i32) {
    %c0_i32 = arith.constant 0 : i32
    %c0_i32_0 = arith.constant 0 : i32
    %c0_i32_1 = arith.constant 0 : i32
    return %c0_i32, %c0_i32_0 : i32, i32
  }
  func.func @transform_3(%arg0: i32) -> (i32, i32) {
    %c0_i32 = arith.constant 0 : i32
    %c0_i32_0 = arith.constant 0 : i32
    return %arg0, %c0_i32 : i32, i32
  }
}

module attributes {stable_mosaic.version = 11 : i64} {
  func.func @_conv_gemm_kernel(%arg0: i32, %arg1: memref<128x1024xf32, #tpu.memory_space<vmem>>, %arg2: memref<1024x128xf32, #tpu.memory_space<vmem>>, %arg3: memref<1x128xf32, #tpu.memory_space<vmem>>, %arg4: memref<128x128xf32, #tpu.memory_space<vmem>>) attributes {dimension_semantics = [#tpu.dimension_semantics<parallel>], iteration_bounds = array<i64: 1>, scalar_prefetch = 0 : i64, scratch_operands = 0 : i64, tpu.core_type = #tpu.core_type<tc>, window_params = [{transform_indices = @transform_0, window_bounds = array<i64: 128, 1024>}, {pipeline_mode = #tpu.pipeline_mode<synchronous>, transform_indices = @transform_1, window_bounds = array<i64: 1024, 128>}, {pipeline_mode = #tpu.pipeline_mode<synchronous>, transform_indices = @transform_2, window_bounds = array<i64: 1, 128>}, {transform_indices = @transform_3, window_bounds = array<i64: 128, 128>}]} {
    %c0 = arith.constant 0 : index
    %c0_0 = arith.constant 0 : index
    %0 = vector.load %arg1[%c0, %c0_0] : memref<128x1024xf32, #tpu.memory_space<vmem>>, vector<128x1024xf32>
    %c0_1 = arith.constant 0 : index
    %c0_2 = arith.constant 0 : index
    %1 = vector.load %arg2[%c0_1, %c0_2] : memref<1024x128xf32, #tpu.memory_space<vmem>>, vector<1024x128xf32>
    %cst = arith.constant dense<0.000000e+00> : vector<128x128xf32>
    %2 = tpu.matmul %0, %1, %cst {dimension_numbers = #tpu.dot_dimension_numbers<[1], [0], [0], [1], [0, 0, 1, 1], [], []>} : vector<128x1024xf32>, vector<1024x128xf32>, vector<128x128xf32> -> vector<128x128xf32>
    %c0_3 = arith.constant 0 : index
    %c0_4 = arith.constant 0 : index
    %3 = vector.load %arg3[%c0_3, %c0_4] : memref<1x128xf32, #tpu.memory_space<vmem>>, vector<1x128xf32>
    %4 = vector.broadcast %3 : vector<1x128xf32> to vector<128x128xf32>
    %5 = arith.addf %2, %4 : vector<128x128xf32>
    %cst_5 = arith.constant 0.000000e+00 : f32
    %6 = vector.broadcast %cst_5 : f32 to vector<128x128xf32>
    %7 = arith.cmpf oge, %5, %6 : vector<128x128xf32>
    %cst_6 = arith.constant 2.000000e-01 : f32
    %8 = vector.broadcast %cst_6 : f32 to vector<128x128xf32>
    %9 = arith.mulf %8, %5 : vector<128x128xf32>
    %10 = arith.select %7, %5, %9 : vector<128x128xi1>, vector<128x128xf32>
    %c0_7 = arith.constant 0 : index
    %c0_8 = arith.constant 0 : index
    %11 = vector.load %arg4[%c0_7, %c0_8] : memref<128x128xf32, #tpu.memory_space<vmem>>, vector<128x128xf32>
    tpu.vector_store %arg4[%c0_7, %c0_8], %10 {strides = array<i32>} : memref<128x128xf32, #tpu.memory_space<vmem>>, vector<128x128xf32>,
    return
  }
  func.func @transform_0(%arg0: i32) -> (i32, i32) {
    %c0_i32 = arith.constant 0 : i32
    %c0_i32_0 = arith.constant 0 : i32
    return %arg0, %c0_i32 : i32, i32
  }
  func.func @transform_1(%arg0: i32) -> (i32, i32) {
    %c0_i32 = arith.constant 0 : i32
    %c0_i32_0 = arith.constant 0 : i32
    %c0_i32_1 = arith.constant 0 : i32
    return %c0_i32, %c0_i32_0 : i32, i32
  }
  func.func @transform_2(%arg0: i32) -> (i32, i32) {
    %c0_i32 = arith.constant 0 : i32
    %c0_i32_0 = arith.constant 0 : i32
    %c0_i32_1 = arith.constant 0 : i32
    return %c0_i32, %c0_i32_0 : i32, i32
  }
  func.func @transform_3(%arg0: i32) -> (i32, i32) {
    %c0_i32 = arith.constant 0 : i32
    %c0_i32_0 = arith.constant 0 : i32
    return %arg0, %c0_i32 : i32, i32
  }
}

module attributes {stable_mosaic.version = 11 : i64} {
  func.func @_conv_gemm_kernel(%arg0: i32, %arg1: memref<104x2048xf32, #tpu.memory_space<vmem>>, %arg2: memref<2048x256xf32, #tpu.memory_space<vmem>>, %arg3: memref<1x256xf32, #tpu.memory_space<vmem>>, %arg4: memref<104x256xf32, #tpu.memory_space<vmem>>) attributes {dimension_semantics = [#tpu.dimension_semantics<parallel>], iteration_bounds = array<i64: 1>, scalar_prefetch = 0 : i64, scratch_operands = 0 : i64, tpu.core_type = #tpu.core_type<tc>, window_params = [{transform_indices = @transform_0, window_bounds = array<i64: 104, 2048>}, {pipeline_mode = #tpu.pipeline_mode<synchronous>, transform_indices = @transform_1, window_bounds = array<i64: 2048, 256>}, {pipeline_mode = #tpu.pipeline_mode<synchronous>, transform_indices = @transform_2, window_bounds = array<i64: 1, 256>}, {transform_indices = @transform_3, window_bounds = array<i64: 104, 256>}]} {
    %c0 = arith.constant 0 : index
    %c0_0 = arith.constant 0 : index
    %0 = vector.load %arg1[%c0, %c0_0] : memref<104x2048xf32, #tpu.memory_space<vmem>>, vector<104x2048xf32>
    %c0_1 = arith.constant 0 : index
    %c0_2 = arith.constant 0 : index
    %1 = vector.load %arg2[%c0_1, %c0_2] : memref<2048x256xf32, #tpu.memory_space<vmem>>, vector<2048x256xf32>
    %cst = arith.constant dense<0.000000e+00> : vector<104x256xf32>
    %2 = tpu.matmul %0, %1, %cst {dimension_numbers = #tpu.dot_dimension_numbers<[1], [0], [0], [1], [0, 0, 1, 1], [], []>} : vector<104x2048xf32>, vector<2048x256xf32>, vector<104x256xf32> -> vector<104x256xf32>
    %c0_3 = arith.constant 0 : index
    %c0_4 = arith.constant 0 : index
    %3 = vector.load %arg3[%c0_3, %c0_4] : memref<1x256xf32, #tpu.memory_space<vmem>>, vector<1x256xf32>
    %4 = vector.broadcast %3 : vector<1x256xf32> to vector<104x256xf32>
    %5 = arith.addf %2, %4 : vector<104x256xf32>
    %cst_5 = arith.constant 0.000000e+00 : f32
    %6 = vector.broadcast %cst_5 : f32 to vector<104x256xf32>
    %7 = arith.cmpf oge, %5, %6 : vector<104x256xf32>
    %cst_6 = arith.constant 2.000000e-01 : f32
    %8 = vector.broadcast %cst_6 : f32 to vector<104x256xf32>
    %9 = arith.mulf %8, %5 : vector<104x256xf32>
    %10 = arith.select %7, %5, %9 : vector<104x256xi1>, vector<104x256xf32>
    %c0_7 = arith.constant 0 : index
    %c0_8 = arith.constant 0 : index
    %11 = vector.load %arg4[%c0_7, %c0_8] : memref<104x256xf32, #tpu.memory_space<vmem>>, vector<104x256xf32>
    tpu.vector_store %arg4[%c0_7, %c0_8], %10 {strides = array<i32>} : memref<104x256xf32, #tpu.memory_space<vmem>>, vector<104x256xf32>,
    return
  }
  func.func @transform_0(%arg0: i32) -> (i32, i32) {
    %c0_i32 = arith.constant 0 : i32
    %c0_i32_0 = arith.constant 0 : i32
    return %arg0, %c0_i32 : i32, i32
  }
  func.func @transform_1(%arg0: i32) -> (i32, i32) {
    %c0_i32 = arith.constant 0 : i32
    %c0_i32_0 = arith.constant 0 : i32
    %c0_i32_1 = arith.constant 0 : i32
    return %c0_i32, %c0_i32_0 : i32, i32
  }
  func.func @transform_2(%arg0: i32) -> (i32, i32) {
    %c0_i32 = arith.constant 0 : i32
    %c0_i32_0 = arith.constant 0 : i32
    %c0_i32_1 = arith.constant 0 : i32
    return %c0_i32, %c0_i32_0 : i32, i32
  }
  func.func @transform_3(%arg0: i32) -> (i32, i32) {
    %c0_i32 = arith.constant 0 : i32
    %c0_i32_0 = arith.constant 0 : i32
    return %arg0, %c0_i32 : i32, i32
  }
}

module attributes {stable_mosaic.version = 11 : i64} {
  func.func @_conv_gemm_kernel(%arg0: i32, %arg1: memref<72x4096xf32, #tpu.memory_space<vmem>>, %arg2: memref<4096x128xf32, #tpu.memory_space<vmem>>, %arg3: memref<1x128xf32, #tpu.memory_space<vmem>>, %arg4: memref<72x128xf32, #tpu.memory_space<vmem>>) attributes {dimension_semantics = [#tpu.dimension_semantics<parallel>], iteration_bounds = array<i64: 1>, scalar_prefetch = 0 : i64, scratch_operands = 0 : i64, tpu.core_type = #tpu.core_type<tc>, window_params = [{transform_indices = @transform_0, window_bounds = array<i64: 72, 4096>}, {pipeline_mode = #tpu.pipeline_mode<synchronous>, transform_indices = @transform_1, window_bounds = array<i64: 4096, 128>}, {pipeline_mode = #tpu.pipeline_mode<synchronous>, transform_indices = @transform_2, window_bounds = array<i64: 1, 128>}, {transform_indices = @transform_3, window_bounds = array<i64: 72, 128>}]} {
    %c0 = arith.constant 0 : index
    %c0_0 = arith.constant 0 : index
    %0 = vector.load %arg1[%c0, %c0_0] : memref<72x4096xf32, #tpu.memory_space<vmem>>, vector<72x4096xf32>
    %c0_1 = arith.constant 0 : index
    %c0_2 = arith.constant 0 : index
    %1 = vector.load %arg2[%c0_1, %c0_2] : memref<4096x128xf32, #tpu.memory_space<vmem>>, vector<4096x128xf32>
    %cst = arith.constant dense<0.000000e+00> : vector<72x128xf32>
    %2 = tpu.matmul %0, %1, %cst {dimension_numbers = #tpu.dot_dimension_numbers<[1], [0], [0], [1], [0, 0, 1, 1], [], []>} : vector<72x4096xf32>, vector<4096x128xf32>, vector<72x128xf32> -> vector<72x128xf32>
    %c0_3 = arith.constant 0 : index
    %c0_4 = arith.constant 0 : index
    %3 = vector.load %arg3[%c0_3, %c0_4] : memref<1x128xf32, #tpu.memory_space<vmem>>, vector<1x128xf32>
    %4 = vector.broadcast %3 : vector<1x128xf32> to vector<72x128xf32>
    %5 = arith.addf %2, %4 : vector<72x128xf32>
    %c0_5 = arith.constant 0 : index
    %c0_6 = arith.constant 0 : index
    %6 = vector.load %arg4[%c0_5, %c0_6] : memref<72x128xf32, #tpu.memory_space<vmem>>, vector<72x128xf32>
    tpu.vector_store %arg4[%c0_5, %c0_6], %5 {strides = array<i32>} : memref<72x128xf32, #tpu.memory_space<vmem>>, vector<72x128xf32>,
    return
  }
  func.func @transform_0(%arg0: i32) -> (i32, i32) {
    %c0_i32 = arith.constant 0 : i32
    %c0_i32_0 = arith.constant 0 : i32
    return %arg0, %c0_i32 : i32, i32
  }
  func.func @transform_1(%arg0: i32) -> (i32, i32) {
    %c0_i32 = arith.constant 0 : i32
    %c0_i32_0 = arith.constant 0 : i32
    %c0_i32_1 = arith.constant 0 : i32
    return %c0_i32, %c0_i32_0 : i32, i32
  }
  func.func @transform_2(%arg0: i32) -> (i32, i32) {
    %c0_i32 = arith.constant 0 : i32
    %c0_i32_0 = arith.constant 0 : i32
    %c0_i32_1 = arith.constant 0 : i32
    return %c0_i32, %c0_i32_0 : i32, i32
  }
  func.func @transform_3(%arg0: i32) -> (i32, i32) {
    %c0_i32 = arith.constant 0 : i32
    %c0_i32_0 = arith.constant 0 : i32
    return %arg0, %c0_i32 : i32, i32
  }
}

</mosaic_0001>

<bundles_post_ra>
// kernel: custom_discriminator_forward.5
= control target key start
LH: loop header
LB: loop body
LE: loop exit
PB: predicated region body
PF: predicated region fallthrough
CT: control target
= control target key end

     0   :  { %s1262_s12 = smov 0   ;;  %s1535_s0 = inlined_call_operand.vmem [shape: f32[2048,128], index: 0, kind: input, shape index: {}]   ;;  %s1536_s1 = inlined_call_operand.vmem [shape: f32[128,128], index: 1, kind: input, shape index: {}]   ;;  %s1537_s2 = inlined_call_operand.vmem [shape: f32[1,128], index: 2, kind: input, shape index: {}]   ;;  %s1538_s3 = inlined_call_operand.vmem [shape: f32[2048,128], index: 3, kind: output, shape index: {}]  }
   0x1 LB: > { %s958_s13 = sadd.s32 4294967295, %s1240_s12   ;;  %p962_p0 = scmp.ge.s32.totalorder %s1240_s12, 1  ;;  %s1240_s12 = sphi %s1262_s12, %s13_s12  }
   0x2   : > { %p138_p1 = scmp.lt.s32.totalorder %s1240_s12, 5 }
   0x4   : > { %p139_p2 = pnand %p962_p0, %p138_p1 }
   0x5   : > { %v238_v0 = vld [vmem:[%s1536_s1] sm:$0xff] (!%p139_p2)  ;;  %v239_v1 = vld [vmem:[%s1536_s1 + $0x8] sm:$0xff] (!%p139_p2)  ;;  %v240_v2 = vld [vmem:[%s1536_s1 + $0x10] sm:$0xff] (!%p139_p2)  ;;  %s963_s20 = sshll.u32 (!%p139_p2), %s958_s13, 6 }
   0x6   : > { %142 = sbr.rel (%p139_p2) target bundleno = 322 (0x142), region = 32  ;;  %v1178_v3 = vpack.c.bf16 (!%p139_p2), %v239_v1, %v238_v0  ;;  %v241_v4 = vld [vmem:[%s1536_s1 + $0x18] sm:$0xff] (!%p139_p2)  ;;  %p163_p3 = scmp.lt.s32.totalorder (!%p139_p2), %s963_s20, 255  ;;  %v242_v6 = vld [vmem:[%s1536_s1 + $0x20] sm:$0xff] (!%p139_p2)  ;;  %v243_v7 = vld [vmem:[%s1536_s1 + $0x28] sm:$0xff] (!%p139_p2) }
   0x7   : > { %v1182_v5 = vpack.c.bf16 (!%p139_p2), %v241_v4, %v240_v2  ;;  %v1186_v8 = vpack.c.bf16 (!%p139_p2), %v243_v7, %v242_v6  ;;  %v244_v9 = vld [vmem:[%s1536_s1 + $0x30] sm:$0xff] (!%p139_p2)  ;;  %v245_v10 = vld [vmem:[%s1536_s1 + $0x38] sm:$0xff] (!%p139_p2)  ;;  %v246_v14 = vld [vmem:[%s1536_s1 + $0x40] sm:$0xff] (!%p139_p2) }
   0x8   : > { %1179 = vmatprep.subr.bf16.mxu0 (!%p139_p2), %v1178_v3  ;;  %1210 = vmatprep.subr.bf16.mxu1 (!%p139_p2), %v1178_v3  ;;  %v1190_v13 = vpack.c.bf16 (!%p139_p2), %v245_v10, %v244_v9  ;;  %v247_v15 = vld [vmem:[%s1536_s1 + $0x48] sm:$0xff] (!%p139_p2)  ;;  %v248_v17 = vld [vmem:[%s1536_s1 + $0x50] sm:$0xff] (!%p139_p2)  ;;  %v249_v18 = vld [vmem:[%s1536_s1 + $0x58] sm:$0xff] (!%p139_p2) }
   0x9   : > { %1181 = vmatpush3.bf16.msra.mxu0 (!%p139_p2), %v1178_v3  ;;  %1218 = vmatpush3.bf16.msra.mxu1 (!%p139_p2), %v1178_v3  ;;  %v1194_v16 = vpack.c.bf16 (!%p139_p2), %v247_v15, %v246_v14  ;;  %v1198_v19 = vpack.c.bf16 (!%p139_p2), %v249_v18, %v248_v17  ;;  %v250_v20 = vld [vmem:[%s1536_s1 + $0x60] sm:$0xff] (!%p139_p2)  ;;  %v251_v21 = vld [vmem:[%s1536_s1 + $0x68] sm:$0xff] (!%p139_p2)  ;;  %v252_v23 = vld [vmem:[%s1536_s1 + $0x70] sm:$0xff] (!%p139_p2) }
   0xa   : > { %1183 = vmatprep.subr.bf16.mxu0 (!%p139_p2), %v1182_v5  ;;  %1211 = vmatprep.subr.bf16.mxu1 (!%p139_p2), %v1182_v5  ;;  %v1202_v22 = vpack.c.bf16 (!%p139_p2), %v251_v21, %v250_v20  ;;  %v253_v24 = vld [vmem:[%s1536_s1 + $0x78] sm:$0xff] (!%p139_p2) }
   0xb   : > { %v1206_v25 = vpack.c.bf16 (!%p139_p2), %v253_v24, %v252_v23  ;;  %v1395_v24 = vld [vmem:[%s1537_s2] ss:$0 sm:$0xff] (!%p139_p2) }
   0xd   : > { %s1540_s20 = smov (!%p163_p3, %s963_s20), 255  ;;  %1185 = vmatpush3.bf16.msra.mxu0 %v1182_v5  ;;  %1219 = vmatpush3.bf16.msra.mxu1 %v1182_v5 }
   0xe   : > { %s964_s27 = sshll.u32 %s1540_s20, 3  ;;  %1187 = vmatprep.subr.bf16.mxu0 %v1186_v8  ;;  %1212 = vmatprep.subr.bf16.mxu1 %v1186_v8 }
   0xf   : > { %s1302_s7 = scalar_lea.vmem %s1535_s0, %s964_s27  ;;  %s1406_s4 = scalar_lea.vmem %s1538_s3, %s964_s27 }
  0x10   : > { %v174_v11 = vld [vmem:[%s1302_s7] sm:$0xff]  ;;  %v175_v26 = vld [vmem:[%s1302_s7 + $0x8] sm:$0xff]  ;;  %v176_v28 = vld [vmem:[%s1302_s7 + $0x10] sm:$0xff] }
  0x11   : > { %v206_v12 = vld [vmem:[%s1302_s7 + $0x100] sm:$0xff]  ;;  %1082 = vmatprep.mubr.f32.mxu0 %v174_v11  ;;  %1189 = vmatpush3.bf16.msra.mxu0 %v1186_v8  ;;  %v207_v27 = vld [vmem:[%s1302_s7 + $0x108] sm:$0xff]  ;;  %v208_v29 = vld [vmem:[%s1302_s7 + $0x110] sm:$0xff] }
  0x12   : > { %1130 = vmatprep.mubr.f32.mxu1 %v206_v12  ;;  %1220 = vmatpush3.bf16.msra.mxu1 %v1186_v8  ;;  %v177_v30 = vld [vmem:[%s1302_s7 + $0x18] sm:$0xff]  ;;  %v178_v32 = vld [vmem:[%s1302_s7 + $0x20] sm:$0xff]  ;;  %v179_v34 = vld [vmem:[%s1302_s7 + $0x28] sm:$0xff] }
  0x13   : > { %1191 = vmatprep.subr.bf16.mxu0 %v1190_v13  ;;  %1213 = vmatprep.subr.bf16.mxu1 %v1190_v13  ;;  %v209_v31 = vld [vmem:[%s1302_s7 + $0x118] sm:$0xff]  ;;  %v210_v33 = vld [vmem:[%s1302_s7 + $0x120] sm:$0xff]  ;;  %v211_v35 = vld [vmem:[%s1302_s7 + $0x128] sm:$0xff] }
  0x14   : > { %v180_v36 = vld [vmem:[%s1302_s7 + $0x30] sm:$0xff]  ;;  %v181_v38 = vld [vmem:[%s1302_s7 + $0x38] sm:$0xff]  ;;  %v182_v40 = vld [vmem:[%s1302_s7 + $0x40] sm:$0xff] }
  0x15   : > { %1193 = vmatpush3.bf16.msra.mxu0 %v1190_v13  ;;  %v212_v37 = vld [vmem:[%s1302_s7 + $0x130] sm:$0xff]  ;;  %v213_v39 = vld [vmem:[%s1302_s7 + $0x138] sm:$0xff]  ;;  %v214_v41 = vld [vmem:[%s1302_s7 + $0x140] sm:$0xff] }
  0x16   : > { %1221 = vmatpush3.bf16.msra.mxu1 %v1190_v13  ;;  %1195 = vmatprep.subr.bf16.mxu0 %v1194_v16  ;;  %v183_v42 = vld [vmem:[%s1302_s7 + $0x48] sm:$0xff]  ;;  %v184_v44 = vld [vmem:[%s1302_s7 + $0x50] sm:$0xff]  ;;  %v185_v46 = vld [vmem:[%s1302_s7 + $0x58] sm:$0xff] }
  0x17   : > { %1214 = vmatprep.subr.bf16.mxu1 %v1194_v16  ;;  %v215_v43 = vld [vmem:[%s1302_s7 + $0x148] sm:$0xff]  ;;  %v216_v45 = vld [vmem:[%s1302_s7 + $0x150] sm:$0xff]  ;;  %v217_v47 = vld [vmem:[%s1302_s7 + $0x158] sm:$0xff] }
  0x18   : > { %v186_v48 = vld [vmem:[%s1302_s7 + $0x60] sm:$0xff]  ;;  %v187_v50 = vld [vmem:[%s1302_s7 + $0x68] sm:$0xff]  ;;  %v188_v52 = vld [vmem:[%s1302_s7 + $0x70] sm:$0xff] }
  0x19   : > { %1197 = vmatpush3.bf16.msra.mxu0 %v1194_v16  ;;  %v218_v49 = vld [vmem:[%s1302_s7 + $0x160] sm:$0xff]  ;;  %v219_v51 = vld [vmem:[%s1302_s7 + $0x168] sm:$0xff]  ;;  %v220_v53 = vld [vmem:[%s1302_s7 + $0x170] sm:$0xff] }
  0x1a   : > { %1222 = vmatpush3.bf16.msra.mxu1 %v1194_v16  ;;  %1199 = vmatprep.subr.bf16.mxu0 %v1198_v19  ;;  %v189_v54 = vld [vmem:[%s1302_s7 + $0x78] sm:$0xff]  ;;  %v190_v56 = vld [vmem:[%s1302_s7 + $0x80] sm:$0xff]  ;;  %v191_v58 = vld [vmem:[%s1302_s7 + $0x88] sm:$0xff] }
  0x1b   : > { %1215 = vmatprep.subr.bf16.mxu1 %v1198_v19  ;;  %v221_v55 = vld [vmem:[%s1302_s7 + $0x178] sm:$0xff]  ;;  %v222_v57 = vld [vmem:[%s1302_s7 + $0x180] sm:$0xff]  ;;  %v223_v59 = vld [vmem:[%s1302_s7 + $0x188] sm:$0xff] }
  0x1c   : > { %v192_v60 = vld [vmem:[%s1302_s7 + $0x90] sm:$0xff]  ;;  %v193_v62 = vld [vmem:[%s1302_s7 + $0x98] sm:$0xff]  ;;  %v194_v0 = vld [vmem:[%s1302_s7 + $0xa0] sm:$0xff] }
  0x1d   : > { %1201 = vmatpush3.bf16.msra.mxu0 %v1198_v19  ;;  %v224_v61 = vld [vmem:[%s1302_s7 + $0x190] sm:$0xff]  ;;  %v225_v63 = vld [vmem:[%s1302_s7 + $0x198] sm:$0xff]  ;;  %v226_v1 = vld [vmem:[%s1302_s7 + $0x1a0] sm:$0xff] }
  0x1e   : > { %1223 = vmatpush3.bf16.msra.mxu1 %v1198_v19  ;;  %1203 = vmatprep.subr.bf16.mxu0 %v1202_v22  ;;  %v195_v2 = vld [vmem:[%s1302_s7 + $0xa8] sm:$0xff]  ;;  %v196_v4 = vld [vmem:[%s1302_s7 + $0xb0] sm:$0xff]  ;;  %v197_v6 = vld [vmem:[%s1302_s7 + $0xb8] sm:$0xff] }
  0x1f   : > { %1216 = vmatprep.subr.bf16.mxu1 %v1202_v22  ;;  %v227_v3 = vld [vmem:[%s1302_s7 + $0x1a8] sm:$0xff]  ;;  %v228_v5 = vld [vmem:[%s1302_s7 + $0x1b0] sm:$0xff]  ;;  %v229_v7 = vld [vmem:[%s1302_s7 + $0x1b8] sm:$0xff] }
  0x20   : > { %v198_v8 = vld [vmem:[%s1302_s7 + $0xc0] sm:$0xff]  ;;  %v199_v10 = vld [vmem:[%s1302_s7 + $0xc8] sm:$0xff]  ;;  %v200_v12 = vld [vmem:[%s1302_s7 + $0xd0] sm:$0xff] }
  0x21   : > { %1205 = vmatpush3.bf16.msra.mxu0 %v1202_v22  ;;  %v230_v9 = vld [vmem:[%s1302_s7 + $0x1c0] sm:$0xff]  ;;  %v231_v11 = vld [vmem:[%s1302_s7 + $0x1c8] sm:$0xff]  ;;  %v232_v13 = vld [vmem:[%s1302_s7 + $0x1d0] sm:$0xff] }
  0x22   : > { %1224 = vmatpush3.bf16.msra.mxu1 %v1202_v22  ;;  %1207 = vmatprep.subr.bf16.mxu0 %v1206_v25  ;;  %v201_v14 = vld [vmem:[%s1302_s7 + $0xd8] sm:$0xff]  ;;  %v202_v16 = vld [vmem:[%s1302_s7 + $0xe0] sm:$0xff]  ;;  %v203_v18 = vld [vmem:[%s1302_s7 + $0xe8] sm:$0xff] }
  0x23   : > { %1217 = vmatprep.subr.bf16.mxu1 %v1206_v25  ;;  %v233_v15 = vld [vmem:[%s1302_s7 + $0x1d8] sm:$0xff]  ;;  %v234_v17 = vld [vmem:[%s1302_s7 + $0x1e0] sm:$0xff]  ;;  %v235_v19 = vld [vmem:[%s1302_s7 + $0x1e8] sm:$0xff] }
  0x24   : > { %v204_v20 = vld [vmem:[%s1302_s7 + $0xf0] sm:$0xff]  ;;  %v205_v22 = vld [vmem:[%s1302_s7 + $0xf8] sm:$0xff] }
  0x25   : > { %1209 = vmatpush3.bf16.msra.mxu0 %v1206_v25  ;;  %v236_v21 = vld [vmem:[%s1302_s7 + $0x1f0] sm:$0xff]  ;;  %v237_v23 = vld [vmem:[%s1302_s7 + $0x1f8] sm:$0xff] }
  0x26   : > { %1225 = vmatpush3.bf16.msra.mxu1 %v1206_v25 }
  0x28   : > { %1083 = vmatmul.mubr.f32.vlgmr.msra.gmra.mrb[0].mxu0 %v175_v26 }
  0x29   : > { %1131 = vmatmul.mubr.f32.vlgmr.msra.gmra.mrb[0].mxu1 %v207_v27  ;;  %1085 = vmatprep.mubr.f32.mxu0 %v176_v28 }
  0x2a   : > { %1133 = vmatprep.mubr.f32.mxu1 %v208_v29 }
  0x2c   : > { %1086 = vmatmul.mubr.f32.gmra.mrb[2].mxu0 %v177_v30 }
  0x2d   : > { %1134 = vmatmul.mubr.f32.gmra.mrb[2].mxu1 %v209_v31  ;;  %1088 = vmatprep.mubr.f32.mxu0 %v178_v32 }
  0x2e   : > { %1136 = vmatprep.mubr.f32.mxu1 %v210_v33 }
  0x30   : > { %1089 = vmatmul.mubr.f32.gmra.mrb[4].mxu0 %v179_v34 }
  0x31   : > { %1137 = vmatmul.mubr.f32.gmra.mrb[4].mxu1 %v211_v35  ;;  %1091 = vmatprep.mubr.f32.mxu0 %v180_v36 }
  0x32   : > { %1139 = vmatprep.mubr.f32.mxu1 %v212_v37 }
  0x34   : > { %1092 = vmatmul.mubr.f32.gmra.mrb[6].mxu0 %v181_v38 }
  0x35   : > { %1140 = vmatmul.mubr.f32.gmra.mrb[6].mxu1 %v213_v39  ;;  %1094 = vmatprep.mubr.f32.mxu0 %v182_v40 }
  0x36   : > { %1142 = vmatprep.mubr.f32.mxu1 %v214_v41 }
  0x38   : > { %1095 = vmatmul.mubr.f32.gmra.mrb[8].mxu0 %v183_v42 }
  0x39   : > { %1143 = vmatmul.mubr.f32.gmra.mrb[8].mxu1 %v215_v43  ;;  %1097 = vmatprep.mubr.f32.mxu0 %v184_v44 }
  0x3a   : > { %1145 = vmatprep.mubr.f32.mxu1 %v216_v45 }
  0x3c   : > { %1098 = vmatmul.mubr.f32.gmra.mrb[10].mxu0 %v185_v46 }
  0x3d   : > { %1146 = vmatmul.mubr.f32.gmra.mrb[10].mxu1 %v217_v47  ;;  %1100 = vmatprep.mubr.f32.mxu0 %v186_v48 }
  0x3e   : > { %1148 = vmatprep.mubr.f32.mxu1 %v218_v49 }
  0x40   : > { %1101 = vmatmul.mubr.f32.gmra.mrb[12].mxu0 %v187_v50 }
  0x41   : > { %1149 = vmatmul.mubr.f32.gmra.mrb[12].mxu1 %v219_v51  ;;  %1103 = vmatprep.mubr.f32.mxu0 %v188_v52 }
  0x42   : > { %1151 = vmatprep.mubr.f32.mxu1 %v220_v53 }
  0x44   : > { %1104 = vmatmul.mubr.f32.gmra.mrb[14].mxu0 %v189_v54 }
  0x45   : > { %1152 = vmatmul.mubr.f32.gmra.mrb[14].mxu1 %v221_v55  ;;  %1106 = vmatprep.mubr.f32.mxu0 %v190_v56 }
  0x46   : > { %1154 = vmatprep.mubr.f32.mxu1 %v222_v57 }
  0x48   : > { %1107 = vmatmul.mubr.f32.gmra.mrb[16].mxu0 %v191_v58 }
  0x49   : > { %1155 = vmatmul.mubr.f32.gmra.mrb[16].mxu1 %v223_v59  ;;  %1109 = vmatprep.mubr.f32.mxu0 %v192_v60 }
  0x4a   : > { %1157 = vmatprep.mubr.f32.mxu1 %v224_v61 }
  0x4c   : > { %1110 = vmatmul.mubr.f32.gmra.mrb[18].mxu0 %v193_v62 }
  0x4d   : > { %1158 = vmatmul.mubr.f32.gmra.mrb[18].mxu1 %v225_v63  ;;  %1112 = vmatprep.mubr.f32.mxu0 %v194_v0 }
  0x4e   : > { %1160 = vmatprep.mubr.f32.mxu1 %v226_v1 }
  0x50   : > { %1113 = vmatmul.mubr.f32.gmra.mrb[20].mxu0 %v195_v2 }
  0x51   : > { %1161 = vmatmul.mubr.f32.gmra.mrb[20].mxu1 %v227_v3  ;;  %1115 = vmatprep.mubr.f32.mxu0 %v196_v4 }
  0x52   : > { %1163 = vmatprep.mubr.f32.mxu1 %v228_v5 }
  0x54   : > { %1116 = vmatmul.mubr.f32.gmra.mrb[22].mxu0 %v197_v6 }
  0x55   : > { %1164 = vmatmul.mubr.f32.gmra.mrb[22].mxu1 %v229_v7  ;;  %1118 = vmatprep.mubr.f32.mxu0 %v198_v8 }
  0x56   : > { %1166 = vmatprep.mubr.f32.mxu1 %v230_v9 }
  0x58   : > { %1119 = vmatmul.mubr.f32.gmra.mrb[24].mxu0 %v199_v10 }
  0x59   : > { %1167 = vmatmul.mubr.f32.gmra.mrb[24].mxu1 %v231_v11  ;;  %1121 = vmatprep.mubr.f32.mxu0 %v200_v12 }
  0x5a   : > { %1169 = vmatprep.mubr.f32.mxu1 %v232_v13 }
  0x5c   : > { %1122 = vmatmul.mubr.f32.gmra.mrb[26].mxu0 %v201_v14 }
  0x5d   : > { %1170 = vmatmul.mubr.f32.gmra.mrb[26].mxu1 %v233_v15  ;;  %1124 = vmatprep.mubr.f32.mxu0 %v202_v16 }
  0x5e   : > { %1172 = vmatprep.mubr.f32.mxu1 %v234_v17 }
  0x60   : > { %1125 = vmatmul.mubr.f32.gmra.mrb[28].mxu0 %v203_v18 }
  0x61   : > { %1173 = vmatmul.mubr.f32.gmra.mrb[28].mxu1 %v235_v19  ;;  %1127 = vmatprep.mubr.f32.mxu0 %v204_v20 }
  0x62   : > { %1175 = vmatprep.mubr.f32.mxu1 %v236_v21 }
  0x64   : > { %1128 = vmatmul.mubr.f32.gmra.mrb[30].mxu0 %v205_v22 }
  0x65   : > { %1176 = vmatmul.mubr.f32.gmra.mrb[30].mxu1 %v237_v23 }
  0xfb   : > { %v1084_v25 = vpop.f32.mrb[0].mxu0 }
  0xfc   : > { %v1132_v26 = vpop.f32.mrb[0].mxu1  ;;  %v333_v27 = vadd.f32 %v1084_v25, %v1395_v24  ;;  %v327_v29 = vpop.f32.mrb[1].mxu0 }
  0xfd   : > { %v493_v28 = vadd.f32 %v1132_v26, %v1395_v24  ;;  %v487_v30 = vpop.f32.mrb[1].mxu1  ;;  %v328_v31 = vadd.f32 %v1395_v24, %v327_v29 }
  0xfe   : > { %v488_v32 = vadd.f32 %v1395_v24, %v487_v30  ;;  %vm647_vm0 = vcmp.ge.f32.partialorder %v333_v27, 0.0  ;;  %v711_v33 = vmul.f32 0.2, %v333_v27 }
  0xff   : > { %vm679_vm1 = vcmp.ge.f32.partialorder %v493_v28, 0.0  ;;  %v743_v34 = vmul.f32 0.2, %v493_v28  ;;  %vm646_vm2 = vcmp.ge.f32.partialorder %v328_v31, 0.0  ;;  %v710_v35 = vmul.f32 0.2, %v328_v31 }
 0x100   : > { %vm678_vm3 = vcmp.ge.f32.partialorder %v488_v32, 0.0  ;;  %v742_v36 = vmul.f32 0.2, %v488_v32  ;;  %v775_v37 = vsel %vm647_vm0, %v333_v27, %v711_v33  ;;  %v1087_v39 = vpop.f32.mrb[2].mxu0  ;;  %v1135_v40 = vpop.f32.mrb[2].mxu1 }
 0x101   : > { %v807_v38 = vsel %vm679_vm1, %v493_v28, %v743_v34  ;;  %839 = vst [vmem:[%s1406_s4 + $0x8] sm:$0xff] %v775_v37  ;;  %v774_v41 = vsel %vm646_vm2, %v328_v31, %v710_v35  ;;  %v343_v43 = vadd.f32 %v1087_v39, %v1395_v24  ;;  %v503_v44 = vadd.f32 %v1135_v40, %v1395_v24  ;;  %v337_v45 = vpop.f32.mrb[3].mxu0  ;;  %v497_v46 = vpop.f32.mrb[3].mxu1 }
 0x102   : > { %871 = vst [vmem:[%s1406_s4 + $0x108] sm:$0xff] %v807_v38  ;;  %v806_v42 = vsel %vm678_vm3, %v488_v32, %v742_v36  ;;  %838 = vst [vmem:[%s1406_s4] sm:$0xff] %v774_v41  ;;  %v338_v47 = vadd.f32 %v1395_v24, %v337_v45  ;;  %v498_v48 = vadd.f32 %v1395_v24, %v497_v46 }
 0x103   : > { %870 = vst [vmem:[%s1406_s4 + $0x100] sm:$0xff] %v806_v42  ;;  %vm649_vm4 = vcmp.ge.f32.partialorder %v343_v43, 0.0  ;;  %v713_v49 = vmul.f32 0.2, %v343_v43  ;;  %vm681_vm5 = vcmp.ge.f32.partialorder %v503_v44, 0.0  ;;  %v1090_v55 = vpop.f32.mrb[4].mxu0 }
 0x104   : > { %v745_v50 = vmul.f32 0.2, %v503_v44  ;;  %vm648_vm6 = vcmp.ge.f32.partialorder %v338_v47, 0.0  ;;  %v712_v51 = vmul.f32 0.2, %v338_v47  ;;  %vm680_vm7 = vcmp.ge.f32.partialorder %v498_v48, 0.0 }
 0x105   : > { %v744_v52 = vmul.f32 0.2, %v498_v48  ;;  %v777_v53 = vsel %vm649_vm4, %v343_v43, %v713_v49  ;;  %v1138_v56 = vpop.f32.mrb[4].mxu1  ;;  %v353_v59 = vadd.f32 %v1090_v55, %v1395_v24  ;;  %v347_v61 = vpop.f32.mrb[5].mxu0 }
 0x106   : > { %v809_v54 = vsel %vm681_vm5, %v503_v44, %v745_v50  ;;  %841 = vst [vmem:[%s1406_s4 + $0x18] sm:$0xff] %v777_v53  ;;  %v776_v57 = vsel %vm648_vm6, %v338_v47, %v712_v51  ;;  %v513_v60 = vadd.f32 %v1138_v56, %v1395_v24  ;;  %v507_v62 = vpop.f32.mrb[5].mxu1  ;;  %v348_v63 = vadd.f32 %v1395_v24, %v347_v61 }
 0x107   : > { %873 = vst [vmem:[%s1406_s4 + $0x118] sm:$0xff] %v809_v54  ;;  %v808_v58 = vsel %vm680_vm7, %v498_v48, %v744_v52  ;;  %840 = vst [vmem:[%s1406_s4 + $0x10] sm:$0xff] %v776_v57  ;;  %v508_v0 = vadd.f32 %v1395_v24, %v507_v62  ;;  %v1093_v1 = vpop.f32.mrb[6].mxu0  ;;  %vm651_vm8 = vcmp.ge.f32.partialorder %v353_v59, 0.0  ;;  %v715_v3 = vmul.f32 0.2, %v353_v59 }
 0x108   : > { %872 = vst [vmem:[%s1406_s4 + $0x110] sm:$0xff] %v808_v58  ;;  %v1141_v2 = vpop.f32.mrb[6].mxu1  ;;  %vm683_vm9 = vcmp.ge.f32.partialorder %v513_v60, 0.0  ;;  %v747_v4 = vmul.f32 0.2, %v513_v60  ;;  %vm650_vm10 = vcmp.ge.f32.partialorder %v348_v63, 0.0  ;;  %v363_v9 = vadd.f32 %v1093_v1, %v1395_v24 }
 0x109   : > { %v714_v5 = vmul.f32 0.2, %v348_v63  ;;  %vm682_vm11 = vcmp.ge.f32.partialorder %v508_v0, 0.0  ;;  %v746_v6 = vmul.f32 0.2, %v508_v0  ;;  %v779_v7 = vsel %vm651_vm8, %v353_v59, %v715_v3  ;;  %v357_v11 = vpop.f32.mrb[7].mxu0 }
 0x10a   : > { %v811_v8 = vsel %vm683_vm9, %v513_v60, %v747_v4  ;;  %v523_v10 = vadd.f32 %v1141_v2, %v1395_v24  ;;  %v517_v12 = vpop.f32.mrb[7].mxu1  ;;  %843 = vst [vmem:[%s1406_s4 + $0x28] sm:$0xff] %v779_v7  ;;  %v358_v15 = vadd.f32 %v1395_v24, %v357_v11  ;;  %vm653_vm12 = vcmp.ge.f32.partialorder %v363_v9, 0.0 }
 0x10b   : > { %875 = vst [vmem:[%s1406_s4 + $0x128] sm:$0xff] %v811_v8  ;;  %v778_v13 = vsel %vm650_vm10, %v348_v63, %v714_v5  ;;  %v810_v14 = vsel %vm682_vm11, %v508_v0, %v746_v6  ;;  %v518_v16 = vadd.f32 %v1395_v24, %v517_v12  ;;  %v1096_v17 = vpop.f32.mrb[8].mxu0  ;;  %v717_v19 = vmul.f32 0.2, %v363_v9 }
 0x10c   : > { %v1144_v18 = vpop.f32.mrb[8].mxu1  ;;  %842 = vst [vmem:[%s1406_s4 + $0x20] sm:$0xff] %v778_v13  ;;  %874 = vst [vmem:[%s1406_s4 + $0x120] sm:$0xff] %v810_v14  ;;  %vm685_vm13 = vcmp.ge.f32.partialorder %v523_v10, 0.0  ;;  %v749_v20 = vmul.f32 0.2, %v523_v10  ;;  %v373_v26 = vadd.f32 %v1096_v17, %v1395_v24 }
 0x10d   : > { %vm652_vm14 = vcmp.ge.f32.partialorder %v358_v15, 0.0  ;;  %v716_v21 = vmul.f32 0.2, %v358_v15  ;;  %vm684_vm15 = vcmp.ge.f32.partialorder %v518_v16, 0.0  ;;  %v748_v22 = vmul.f32 0.2, %v518_v16 }
 0x10e   : > { %v781_v23 = vsel %vm653_vm12, %v363_v9, %v717_v19  ;;  %v813_v25 = vsel %vm685_vm13, %v523_v10, %v749_v20  ;;  %v533_v27 = vadd.f32 %v1144_v18, %v1395_v24  ;;  %v367_v28 = vpop.f32.mrb[9].mxu0  ;;  %v527_v29 = vpop.f32.mrb[9].mxu1  ;;  %vm655_vm0 = vcmp.ge.f32.partialorder %v373_v26, 0.0 }
 0x10f   : > { %845 = vst [vmem:[%s1406_s4 + $0x38] sm:$0xff] %v781_v23  ;;  %877 = vst [vmem:[%s1406_s4 + $0x138] sm:$0xff] %v813_v25  ;;  %v780_v30 = vsel %vm652_vm14, %v358_v15, %v716_v21  ;;  %v812_v31 = vsel %vm684_vm15, %v518_v16, %v748_v22  ;;  %v368_v32 = vadd.f32 %v1395_v24, %v367_v28  ;;  %v1099_v34 = vpop.f32.mrb[10].mxu0  ;;  %v719_v36 = vmul.f32 0.2, %v373_v26 }
 0x110   : > { %v528_v33 = vadd.f32 %v1395_v24, %v527_v29  ;;  %v1147_v35 = vpop.f32.mrb[10].mxu1  ;;  %844 = vst [vmem:[%s1406_s4 + $0x30] sm:$0xff] %v780_v30  ;;  %876 = vst [vmem:[%s1406_s4 + $0x130] sm:$0xff] %v812_v31  ;;  %vm687_vm1 = vcmp.ge.f32.partialorder %v533_v27, 0.0  ;;  %v751_v37 = vmul.f32 0.2, %v533_v27  ;;  %v383_v42 = vadd.f32 %v1099_v34, %v1395_v24 }
 0x111   : > { %vm654_vm2 = vcmp.ge.f32.partialorder %v368_v32, 0.0  ;;  %v718_v38 = vmul.f32 0.2, %v368_v32  ;;  %v783_v40 = vsel %vm655_vm0, %v373_v26, %v719_v36  ;;  %v543_v43 = vadd.f32 %v1147_v35, %v1395_v24  ;;  %v377_v44 = vpop.f32.mrb[11].mxu0  ;;  %v537_v45 = vpop.f32.mrb[11].mxu1 }
 0x112   : > { %vm686_vm3 = vcmp.ge.f32.partialorder %v528_v33, 0.0  ;;  %v750_v39 = vmul.f32 0.2, %v528_v33  ;;  %v815_v41 = vsel %vm687_vm1, %v533_v27, %v751_v37  ;;  %847 = vst [vmem:[%s1406_s4 + $0x48] sm:$0xff] %v783_v40  ;;  %v378_v48 = vadd.f32 %v1395_v24, %v377_v44 }
 0x113   : > { %879 = vst [vmem:[%s1406_s4 + $0x148] sm:$0xff] %v815_v41  ;;  %v782_v46 = vsel %vm654_vm2, %v368_v32, %v718_v38  ;;  %v538_v49 = vadd.f32 %v1395_v24, %v537_v45  ;;  %v1102_v50 = vpop.f32.mrb[12].mxu0  ;;  %vm657_vm4 = vcmp.ge.f32.partialorder %v383_v42, 0.0  ;;  %v721_v52 = vmul.f32 0.2, %v383_v42 }
 0x114   : > { %v814_v47 = vsel %vm686_vm3, %v528_v33, %v750_v39  ;;  %v1150_v51 = vpop.f32.mrb[12].mxu1  ;;  %846 = vst [vmem:[%s1406_s4 + $0x40] sm:$0xff] %v782_v46  ;;  %vm689_vm5 = vcmp.ge.f32.partialorder %v543_v43, 0.0  ;;  %v753_v53 = vmul.f32 0.2, %v543_v43  ;;  %vm656_vm6 = vcmp.ge.f32.partialorder %v378_v48, 0.0 }
 0x115   : > { %878 = vst [vmem:[%s1406_s4 + $0x140] sm:$0xff] %v814_v47  ;;  %v720_v54 = vmul.f32 0.2, %v378_v48  ;;  %vm688_vm7 = vcmp.ge.f32.partialorder %v538_v49, 0.0  ;;  %v752_v55 = vmul.f32 0.2, %v538_v49  ;;  %v785_v56 = vsel %vm657_vm4, %v383_v42, %v721_v52 }
 0x116   : > { %v817_v57 = vsel %vm689_vm5, %v543_v43, %v753_v53  ;;  %v393_v58 = vadd.f32 %v1102_v50, %v1395_v24  ;;  %v553_v59 = vadd.f32 %v1150_v51, %v1395_v24  ;;  %v387_v60 = vpop.f32.mrb[13].mxu0  ;;  %v547_v61 = vpop.f32.mrb[13].mxu1  ;;  %849 = vst [vmem:[%s1406_s4 + $0x58] sm:$0xff] %v785_v56 }
 0x117   : > { %881 = vst [vmem:[%s1406_s4 + $0x158] sm:$0xff] %v817_v57  ;;  %v784_v62 = vsel %vm656_vm6, %v378_v48, %v720_v54  ;;  %v816_v63 = vsel %vm688_vm7, %v538_v49, %v752_v55  ;;  %v388_v0 = vadd.f32 %v1395_v24, %v387_v60  ;;  %v548_v1 = vadd.f32 %v1395_v24, %v547_v61  ;;  %v1105_v2 = vpop.f32.mrb[14].mxu0 }
 0x118   : > { %v1153_v3 = vpop.f32.mrb[14].mxu1  ;;  %848 = vst [vmem:[%s1406_s4 + $0x50] sm:$0xff] %v784_v62  ;;  %880 = vst [vmem:[%s1406_s4 + $0x150] sm:$0xff] %v816_v63  ;;  %vm659_vm8 = vcmp.ge.f32.partialorder %v393_v58, 0.0  ;;  %v723_v4 = vmul.f32 0.2, %v393_v58  ;;  %v403_v10 = vadd.f32 %v1105_v2, %v1395_v24 }
 0x119   : > { %vm691_vm9 = vcmp.ge.f32.partialorder %v553_v59, 0.0  ;;  %v755_v5 = vmul.f32 0.2, %v553_v59  ;;  %vm658_vm10 = vcmp.ge.f32.partialorder %v388_v0, 0.0  ;;  %v722_v6 = vmul.f32 0.2, %v388_v0 }
 0x11a   : > { %vm690_vm11 = vcmp.ge.f32.partialorder %v548_v1, 0.0  ;;  %v754_v7 = vmul.f32 0.2, %v548_v1  ;;  %v787_v8 = vsel %vm659_vm8, %v393_v58, %v723_v4  ;;  %v563_v11 = vadd.f32 %v1153_v3, %v1395_v24  ;;  %v397_v12 = vpop.f32.mrb[15].mxu0  ;;  %v557_v13 = vpop.f32.mrb[15].mxu1 }
 0x11b   : > { %v819_v9 = vsel %vm691_vm9, %v553_v59, %v755_v5  ;;  %851 = vst [vmem:[%s1406_s4 + $0x68] sm:$0xff] %v787_v8  ;;  %v786_v14 = vsel %vm658_vm10, %v388_v0, %v722_v6  ;;  %v398_v16 = vadd.f32 %v1395_v24, %v397_v12  ;;  %v558_v17 = vadd.f32 %v1395_v24, %v557_v13  ;;  %v1108_v18 = vpop.f32.mrb[16].mxu0 }
 0x11c   : > { %883 = vst [vmem:[%s1406_s4 + $0x168] sm:$0xff] %v819_v9  ;;  %v818_v15 = vsel %vm690_vm11, %v548_v1, %v754_v7  ;;  %v1156_v19 = vpop.f32.mrb[16].mxu1  ;;  %850 = vst [vmem:[%s1406_s4 + $0x60] sm:$0xff] %v786_v14  ;;  %vm661_vm12 = vcmp.ge.f32.partialorder %v403_v10, 0.0  ;;  %v725_v20 = vmul.f32 0.2, %v403_v10  ;;  %v413_v27 = vadd.f32 %v1108_v18, %v1395_v24 }
 0x11d   : > { %882 = vst [vmem:[%s1406_s4 + $0x160] sm:$0xff] %v818_v15  ;;  %vm693_vm13 = vcmp.ge.f32.partialorder %v563_v11, 0.0  ;;  %v757_v21 = vmul.f32 0.2, %v563_v11  ;;  %vm660_vm14 = vcmp.ge.f32.partialorder %v398_v16, 0.0  ;;  %vm692_vm15 = vcmp.ge.f32.partialorder %v558_v17, 0.0 }
 0x11e   : > { %v724_v22 = vmul.f32 0.2, %v398_v16  ;;  %v756_v23 = vmul.f32 0.2, %v558_v17  ;;  %v789_v25 = vsel %vm661_vm12, %v403_v10, %v725_v20  ;;  %v573_v28 = vadd.f32 %v1156_v19, %v1395_v24  ;;  %v407_v29 = vpop.f32.mrb[17].mxu0  ;;  %v567_v30 = vpop.f32.mrb[17].mxu1 }
 0x11f   : > { %v821_v26 = vsel %vm693_vm13, %v563_v11, %v757_v21  ;;  %853 = vst [vmem:[%s1406_s4 + $0x78] sm:$0xff] %v789_v25  ;;  %v408_v33 = vadd.f32 %v1395_v24, %v407_v29  ;;  %v568_v34 = vadd.f32 %v1395_v24, %v567_v30  ;;  %v1111_v35 = vpop.f32.mrb[18].mxu0  ;;  %vm663_vm0 = vcmp.ge.f32.partialorder %v413_v27, 0.0 }
 0x120   : > { %885 = vst [vmem:[%s1406_s4 + $0x178] sm:$0xff] %v821_v26  ;;  %v788_v31 = vsel %vm660_vm14, %v398_v16, %v724_v22  ;;  %v820_v32 = vsel %vm692_vm15, %v558_v17, %v756_v23  ;;  %v1159_v36 = vpop.f32.mrb[18].mxu1  ;;  %v727_v37 = vmul.f32 0.2, %v413_v27  ;;  %vm695_vm1 = vcmp.ge.f32.partialorder %v573_v28, 0.0  ;;  %v417_v45 = vpop.f32.mrb[19].mxu0 }
 0x121   : > { %852 = vst [vmem:[%s1406_s4 + $0x70] sm:$0xff] %v788_v31  ;;  %884 = vst [vmem:[%s1406_s4 + $0x170] sm:$0xff] %v820_v32  ;;  %v759_v38 = vmul.f32 0.2, %v573_v28  ;;  %vm662_vm2 = vcmp.ge.f32.partialorder %v408_v33, 0.0  ;;  %vm694_vm3 = vcmp.ge.f32.partialorder %v568_v34, 0.0  ;;  %v423_v43 = vadd.f32 %v1111_v35, %v1395_v24 }
 0x122   : > { %v726_v39 = vmul.f32 0.2, %v408_v33  ;;  %v758_v40 = vmul.f32 0.2, %v568_v34  ;;  %v791_v41 = vsel %vm663_vm0, %v413_v27, %v727_v37  ;;  %v583_v44 = vadd.f32 %v1159_v36, %v1395_v24  ;;  %v577_v46 = vpop.f32.mrb[19].mxu1 }
 0x123   : > { %v823_v42 = vsel %vm695_vm1, %v573_v28, %v759_v38  ;;  %855 = vst [vmem:[%s1406_s4 + $0x88] sm:$0xff] %v791_v41  ;;  %v418_v49 = vadd.f32 %v1395_v24, %v417_v45  ;;  %v578_v50 = vadd.f32 %v1395_v24, %v577_v46  ;;  %v1114_v51 = vpop.f32.mrb[20].mxu0  ;;  %vm665_vm4 = vcmp.ge.f32.partialorder %v423_v43, 0.0 }
 0x124   : > { %887 = vst [vmem:[%s1406_s4 + $0x188] sm:$0xff] %v823_v42  ;;  %v790_v47 = vsel %vm662_vm2, %v408_v33, %v726_v39  ;;  %v822_v48 = vsel %vm694_vm3, %v568_v34, %v758_v40  ;;  %v1162_v52 = vpop.f32.mrb[20].mxu1  ;;  %v729_v53 = vmul.f32 0.2, %v423_v43  ;;  %vm697_vm5 = vcmp.ge.f32.partialorder %v583_v44, 0.0  ;;  %v427_v61 = vpop.f32.mrb[21].mxu0 }
 0x125   : > { %854 = vst [vmem:[%s1406_s4 + $0x80] sm:$0xff] %v790_v47  ;;  %886 = vst [vmem:[%s1406_s4 + $0x180] sm:$0xff] %v822_v48  ;;  %v761_v54 = vmul.f32 0.2, %v583_v44  ;;  %vm664_vm6 = vcmp.ge.f32.partialorder %v418_v49, 0.0  ;;  %vm696_vm7 = vcmp.ge.f32.partialorder %v578_v50, 0.0  ;;  %v433_v59 = vadd.f32 %v1114_v51, %v1395_v24 }
 0x126   : > { %v728_v55 = vmul.f32 0.2, %v418_v49  ;;  %v760_v56 = vmul.f32 0.2, %v578_v50  ;;  %v793_v57 = vsel %vm665_vm4, %v423_v43, %v729_v53  ;;  %v593_v60 = vadd.f32 %v1162_v52, %v1395_v24  ;;  %v587_v62 = vpop.f32.mrb[21].mxu1 }
 0x127   : > { %v825_v58 = vsel %vm697_vm5, %v583_v44, %v761_v54  ;;  %857 = vst [vmem:[%s1406_s4 + $0x98] sm:$0xff] %v793_v57  ;;  %v428_v1 = vadd.f32 %v1395_v24, %v427_v61  ;;  %v588_v2 = vadd.f32 %v1395_v24, %v587_v62  ;;  %v1117_v3 = vpop.f32.mrb[22].mxu0  ;;  %vm667_vm8 = vcmp.ge.f32.partialorder %v433_v59, 0.0 }
 0x128   : > { %889 = vst [vmem:[%s1406_s4 + $0x198] sm:$0xff] %v825_v58  ;;  %v792_v63 = vsel %vm664_vm6, %v418_v49, %v728_v55  ;;  %v824_v0 = vsel %vm696_vm7, %v578_v50, %v760_v56  ;;  %v1165_v4 = vpop.f32.mrb[22].mxu1  ;;  %v731_v5 = vmul.f32 0.2, %v433_v59  ;;  %vm699_vm9 = vcmp.ge.f32.partialorder %v593_v60, 0.0  ;;  %v437_v13 = vpop.f32.mrb[23].mxu0 }
 0x129   : > { %856 = vst [vmem:[%s1406_s4 + $0x90] sm:$0xff] %v792_v63  ;;  %888 = vst [vmem:[%s1406_s4 + $0x190] sm:$0xff] %v824_v0  ;;  %v763_v6 = vmul.f32 0.2, %v593_v60  ;;  %vm666_vm10 = vcmp.ge.f32.partialorder %v428_v1, 0.0  ;;  %vm698_vm11 = vcmp.ge.f32.partialorder %v588_v2, 0.0  ;;  %v443_v11 = vadd.f32 %v1117_v3, %v1395_v24 }
 0x12a   : > { %v730_v7 = vmul.f32 0.2, %v428_v1  ;;  %v762_v8 = vmul.f32 0.2, %v588_v2  ;;  %v795_v9 = vsel %vm667_vm8, %v433_v59, %v731_v5  ;;  %v603_v12 = vadd.f32 %v1165_v4, %v1395_v24  ;;  %v597_v14 = vpop.f32.mrb[23].mxu1 }
 0x12b   : > { %v827_v10 = vsel %vm699_vm9, %v593_v60, %v763_v6  ;;  %859 = vst [vmem:[%s1406_s4 + $0xa8] sm:$0xff] %v795_v9  ;;  %v438_v17 = vadd.f32 %v1395_v24, %v437_v13  ;;  %v598_v18 = vadd.f32 %v1395_v24, %v597_v14  ;;  %v1120_v19 = vpop.f32.mrb[24].mxu0  ;;  %vm669_vm12 = vcmp.ge.f32.partialorder %v443_v11, 0.0 }
 0x12c   : > { %891 = vst [vmem:[%s1406_s4 + $0x1a8] sm:$0xff] %v827_v10  ;;  %v794_v15 = vsel %vm666_vm10, %v428_v1, %v730_v7  ;;  %v826_v16 = vsel %vm698_vm11, %v588_v2, %v762_v8  ;;  %v1168_v20 = vpop.f32.mrb[24].mxu1  ;;  %v733_v21 = vmul.f32 0.2, %v443_v11  ;;  %vm701_vm13 = vcmp.ge.f32.partialorder %v603_v12, 0.0  ;;  %v447_v30 = vpop.f32.mrb[25].mxu0 }
 0x12d   : > { %858 = vst [vmem:[%s1406_s4 + $0xa0] sm:$0xff] %v794_v15  ;;  %890 = vst [vmem:[%s1406_s4 + $0x1a0] sm:$0xff] %v826_v16  ;;  %v765_v22 = vmul.f32 0.2, %v603_v12  ;;  %vm668_vm14 = vcmp.ge.f32.partialorder %v438_v17, 0.0  ;;  %vm700_vm15 = vcmp.ge.f32.partialorder %v598_v18, 0.0  ;;  %v453_v28 = vadd.f32 %v1120_v19, %v1395_v24 }
 0x12e   : > { %v732_v23 = vmul.f32 0.2, %v438_v17  ;;  %v764_v25 = vmul.f32 0.2, %v598_v18  ;;  %v797_v26 = vsel %vm669_vm12, %v443_v11, %v733_v21  ;;  %v613_v29 = vadd.f32 %v1168_v20, %v1395_v24  ;;  %v607_v31 = vpop.f32.mrb[25].mxu1 }
 0x12f   : > { %v829_v27 = vsel %vm701_vm13, %v603_v12, %v765_v22  ;;  %861 = vst [vmem:[%s1406_s4 + $0xb8] sm:$0xff] %v797_v26  ;;  %v448_v34 = vadd.f32 %v1395_v24, %v447_v30  ;;  %v608_v35 = vadd.f32 %v1395_v24, %v607_v31  ;;  %v1123_v36 = vpop.f32.mrb[26].mxu0  ;;  %vm671_vm0 = vcmp.ge.f32.partialorder %v453_v28, 0.0 }
 0x130   : > { %893 = vst [vmem:[%s1406_s4 + $0x1b8] sm:$0xff] %v829_v27  ;;  %v796_v32 = vsel %vm668_vm14, %v438_v17, %v732_v23  ;;  %v828_v33 = vsel %vm700_vm15, %v598_v18, %v764_v25  ;;  %v1171_v37 = vpop.f32.mrb[26].mxu1  ;;  %v735_v38 = vmul.f32 0.2, %v453_v28  ;;  %vm703_vm1 = vcmp.ge.f32.partialorder %v613_v29, 0.0  ;;  %v457_v46 = vpop.f32.mrb[27].mxu0 }
 0x131   : > { %860 = vst [vmem:[%s1406_s4 + $0xb0] sm:$0xff] %v796_v32  ;;  %892 = vst [vmem:[%s1406_s4 + $0x1b0] sm:$0xff] %v828_v33  ;;  %v767_v39 = vmul.f32 0.2, %v613_v29  ;;  %vm670_vm2 = vcmp.ge.f32.partialorder %v448_v34, 0.0  ;;  %vm702_vm3 = vcmp.ge.f32.partialorder %v608_v35, 0.0  ;;  %v463_v44 = vadd.f32 %v1123_v36, %v1395_v24 }
 0x132   : > { %v734_v40 = vmul.f32 0.2, %v448_v34  ;;  %v766_v41 = vmul.f32 0.2, %v608_v35  ;;  %v799_v42 = vsel %vm671_vm0, %v453_v28, %v735_v38  ;;  %v623_v45 = vadd.f32 %v1171_v37, %v1395_v24  ;;  %v617_v47 = vpop.f32.mrb[27].mxu1 }
 0x133   : > { %v831_v43 = vsel %vm703_vm1, %v613_v29, %v767_v39  ;;  %863 = vst [vmem:[%s1406_s4 + $0xc8] sm:$0xff] %v799_v42  ;;  %v458_v50 = vadd.f32 %v1395_v24, %v457_v46  ;;  %v618_v51 = vadd.f32 %v1395_v24, %v617_v47  ;;  %v1126_v52 = vpop.f32.mrb[28].mxu0  ;;  %vm673_vm4 = vcmp.ge.f32.partialorder %v463_v44, 0.0 }
 0x134   : > { %895 = vst [vmem:[%s1406_s4 + $0x1c8] sm:$0xff] %v831_v43  ;;  %v798_v48 = vsel %vm670_vm2, %v448_v34, %v734_v40  ;;  %v830_v49 = vsel %vm702_vm3, %v608_v35, %v766_v41  ;;  %v1174_v53 = vpop.f32.mrb[28].mxu1  ;;  %v737_v54 = vmul.f32 0.2, %v463_v44  ;;  %vm705_vm5 = vcmp.ge.f32.partialorder %v623_v45, 0.0  ;;  %v467_v62 = vpop.f32.mrb[29].mxu0 }
 0x135   : > { %862 = vst [vmem:[%s1406_s4 + $0xc0] sm:$0xff] %v798_v48  ;;  %894 = vst [vmem:[%s1406_s4 + $0x1c0] sm:$0xff] %v830_v49  ;;  %v769_v55 = vmul.f32 0.2, %v623_v45  ;;  %vm672_vm6 = vcmp.ge.f32.partialorder %v458_v50, 0.0  ;;  %vm704_vm7 = vcmp.ge.f32.partialorder %v618_v51, 0.0  ;;  %v473_v60 = vadd.f32 %v1126_v52, %v1395_v24 }
 0x136   : > { %v736_v56 = vmul.f32 0.2, %v458_v50  ;;  %v768_v57 = vmul.f32 0.2, %v618_v51  ;;  %v801_v58 = vsel %vm673_vm4, %v463_v44, %v737_v54  ;;  %v633_v61 = vadd.f32 %v1174_v53, %v1395_v24  ;;  %v627_v63 = vpop.f32.mrb[29].mxu1 }
 0x137   : > { %v833_v59 = vsel %vm705_vm5, %v623_v45, %v769_v55  ;;  %865 = vst [vmem:[%s1406_s4 + $0xd8] sm:$0xff] %v801_v58  ;;  %v468_v2 = vadd.f32 %v1395_v24, %v467_v62  ;;  %v628_v3 = vadd.f32 %v1395_v24, %v627_v63  ;;  %v1129_v4 = vpop.f32.mrb[30].mxu0  ;;  %vm675_vm8 = vcmp.ge.f32.partialorder %v473_v60, 0.0 }
 0x138   : > { %897 = vst [vmem:[%s1406_s4 + $0x1d8] sm:$0xff] %v833_v59  ;;  %v800_v0 = vsel %vm672_vm6, %v458_v50, %v736_v56  ;;  %v832_v1 = vsel %vm704_vm7, %v618_v51, %v768_v57  ;;  %v1177_v5 = vpop.f32.mrb[30].mxu1  ;;  %v739_v6 = vmul.f32 0.2, %v473_v60  ;;  %vm707_vm9 = vcmp.ge.f32.partialorder %v633_v61, 0.0  ;;  %v477_v14 = vpop.f32.mrb[31].mxu0 }
 0x139   : > { %864 = vst [vmem:[%s1406_s4 + $0xd0] sm:$0xff] %v800_v0  ;;  %896 = vst [vmem:[%s1406_s4 + $0x1d0] sm:$0xff] %v832_v1  ;;  %v771_v7 = vmul.f32 0.2, %v633_v61  ;;  %vm674_vm10 = vcmp.ge.f32.partialorder %v468_v2, 0.0  ;;  %vm706_vm11 = vcmp.ge.f32.partialorder %v628_v3, 0.0  ;;  %v483_v12 = vadd.f32 %v1129_v4, %v1395_v24 }
 0x13a   : > { %v738_v8 = vmul.f32 0.2, %v468_v2  ;;  %v770_v9 = vmul.f32 0.2, %v628_v3  ;;  %v803_v10 = vsel %vm675_vm8, %v473_v60, %v739_v6  ;;  %v643_v13 = vadd.f32 %v1177_v5, %v1395_v24  ;;  %v637_v15 = vpop.f32.mrb[31].mxu1 }
 0x13b   : > { %v835_v11 = vsel %vm707_vm9, %v633_v61, %v771_v7  ;;  %867 = vst [vmem:[%s1406_s4 + $0xe8] sm:$0xff] %v803_v10  ;;  %v478_v18 = vadd.f32 %v1395_v24, %v477_v14  ;;  %v638_v19 = vadd.f32 %v1395_v24, %v637_v15  ;;  %vm677_vm12 = vcmp.ge.f32.partialorder %v483_v12, 0.0 }
 0x13c   : > { %899 = vst [vmem:[%s1406_s4 + $0x1e8] sm:$0xff] %v835_v11  ;;  %v802_v16 = vsel %vm674_vm10, %v468_v2, %v738_v8  ;;  %v834_v17 = vsel %vm706_vm11, %v628_v3, %v770_v9  ;;  %v741_v20 = vmul.f32 0.2, %v483_v12  ;;  %vm709_vm13 = vcmp.ge.f32.partialorder %v643_v13, 0.0 }
 0x13d   : > { %866 = vst [vmem:[%s1406_s4 + $0xe0] sm:$0xff] %v802_v16  ;;  %898 = vst [vmem:[%s1406_s4 + $0x1e0] sm:$0xff] %v834_v17  ;;  %v773_v21 = vmul.f32 0.2, %v643_v13  ;;  %vm676_vm14 = vcmp.ge.f32.partialorder %v478_v18, 0.0  ;;  %vm708_vm15 = vcmp.ge.f32.partialorder %v638_v19, 0.0 }
 0x13e   : > { %v740_v22 = vmul.f32 0.2, %v478_v18  ;;  %v772_v23 = vmul.f32 0.2, %v638_v19  ;;  %v805_v25 = vsel %vm677_vm12, %v483_v12, %v741_v20 }
 0x13f   : > { %v837_v26 = vsel %vm709_vm13, %v643_v13, %v773_v21  ;;  %869 = vst [vmem:[%s1406_s4 + $0xf8] sm:$0xff] %v805_v25 }
 0x140   : > { %901 = vst [vmem:[%s1406_s4 + $0x1f8] sm:$0xff] %v837_v26  ;;  %v804_v27 = vsel %vm676_vm14, %v478_v18, %v740_v22  ;;  %v836_v28 = vsel %vm708_vm15, %v638_v19, %v772_v23 }
 0x141   : > { %868 = vst [vmem:[%s1406_s4 + $0xf0] sm:$0xff] %v804_v27  ;;  %900 = vst [vmem:[%s1406_s4 + $0x1f0] sm:$0xff] %v836_v28 }
 0x142 PF: > { %s13_s12 = sadd.s32 1, %s1240_s12  }
 0x143   : > { %p10_p4 = scmp.ge.s32.totalorder %s13_s12, 6  }
 0x145   :  { %12 = sbr.rel (!%p10_p4) target bundleno = 1 (0x1), region = 62 }

// kernel: custom_discriminator_forward.6
= control target key start
LH: loop header
LB: loop body
LE: loop exit
PB: predicated region body
PF: predicated region fallthrough
CT: control target
= control target key end

     0   :  { %v1598_v0 = vmov 0.0|0.0   ;;  %s2877_s1 = inlined_call_operand.vmem [shape: f32[512,128], index: 1, kind: input, shape index: {}]   ;;  %s2878_s0 = inlined_call_operand.vmem [shape: f32[512,512], index: 0, kind: input, shape index: {}]   ;;  %s2879_s2 = inlined_call_operand.vmem [shape: f32[1,128], index: 2, kind: input, shape index: {}]   ;;  %s2880_s3 = inlined_call_operand.vmem [shape: f32[512,128], index: 3, kind: output, shape index: {}]  }
   0x1   :  { %1372 = vmatprep.subr.bf16.mxu1 %v1598_v0  ;;  %v270_v1 = vld [vmem:[%s2877_s1] sm:$0xff]  ;;  %v271_v2 = vld [vmem:[%s2877_s1 + $0x8] sm:$0xff]  ;;  %1420 = vmatprep.subr.bf16.mxu0 %v1598_v0  ;;  %v272_v6 = vld [vmem:[%s2877_s1 + $0x10] sm:$0xff] }
   0x2   :  { %v302_v3 = vld [vmem:[%s2877_s1 + $0x100] sm:$0xff]  ;;  %v1373_v4 = vpack.c.bf16 %v271_v2, %v270_v1  ;;  %v303_v5 = vld [vmem:[%s2877_s1 + $0x108] sm:$0xff]  ;;  %v273_v7 = vld [vmem:[%s2877_s1 + $0x18] sm:$0xff] }
   0x3   :  { %v1421_v8 = vpack.c.bf16 %v303_v5, %v302_v3  ;;  %v304_v9 = vld [vmem:[%s2877_s1 + $0x110] sm:$0xff]  ;;  %v305_v10 = vld [vmem:[%s2877_s1 + $0x118] sm:$0xff]  ;;  %v1376_v11 = vpack.c.bf16 %v273_v7, %v272_v6  ;;  %v274_v13 = vld [vmem:[%s2877_s1 + $0x20] sm:$0xff] }
   0x4   :  { %1374 = vmatpush1.bf16.msra.mxu1 %v1373_v4  ;;  %v1424_v12 = vpack.c.bf16 %v305_v10, %v304_v9  ;;  %v275_v14 = vld [vmem:[%s2877_s1 + $0x28] sm:$0xff]  ;;  %v306_v15 = vld [vmem:[%s2877_s1 + $0x120] sm:$0xff]  ;;  %v276_v19 = vld [vmem:[%s2877_s1 + $0x30] sm:$0xff] }
   0x5   :  { %1422 = vmatpush1.bf16.msra.mxu0 %v1421_v8  ;;  %1375 = vmatprep.subr.bf16.mxu1 %v1598_v0  ;;  %v307_v16 = vld [vmem:[%s2877_s1 + $0x128] sm:$0xff]  ;;  %v1379_v17 = vpack.c.bf16 %v275_v14, %v274_v13  ;;  %v277_v20 = vld [vmem:[%s2877_s1 + $0x38] sm:$0xff]  ;;  %v308_v21 = vld [vmem:[%s2877_s1 + $0x130] sm:$0xff] }
   0x6   :  { %1423 = vmatprep.subr.bf16.mxu0 %v1598_v0  ;;  %v1427_v18 = vpack.c.bf16 %v307_v16, %v306_v15  ;;  %v309_v22 = vld [vmem:[%s2877_s1 + $0x138] sm:$0xff]  ;;  %v1382_v23 = vpack.c.bf16 %v277_v20, %v276_v19  ;;  %v278_v25 = vld [vmem:[%s2877_s1 + $0x40] sm:$0xff]  ;;  %v279_v26 = vld [vmem:[%s2877_s1 + $0x48] sm:$0xff] }
   0x7   :  { %v1430_v24 = vpack.c.bf16 %v309_v22, %v308_v21  ;;  %v310_v27 = vld [vmem:[%s2877_s1 + $0x140] sm:$0xff]  ;;  %v311_v28 = vld [vmem:[%s2877_s1 + $0x148] sm:$0xff]  ;;  %v1385_v29 = vpack.c.bf16 %v279_v26, %v278_v25  ;;  %v280_v31 = vld [vmem:[%s2877_s1 + $0x50] sm:$0xff] }
   0x8   :  { %1377 = vmatpush1.bf16.msra.mxu1 %v1376_v11  ;;  %v1433_v30 = vpack.c.bf16 %v311_v28, %v310_v27  ;;  %v281_v32 = vld [vmem:[%s2877_s1 + $0x58] sm:$0xff]  ;;  %v312_v33 = vld [vmem:[%s2877_s1 + $0x150] sm:$0xff]  ;;  %v282_v37 = vld [vmem:[%s2877_s1 + $0x60] sm:$0xff] }
   0x9   :  { %1425 = vmatpush1.bf16.msra.mxu0 %v1424_v12  ;;  %1378 = vmatprep.subr.bf16.mxu1 %v1598_v0  ;;  %v313_v34 = vld [vmem:[%s2877_s1 + $0x158] sm:$0xff]  ;;  %v1388_v35 = vpack.c.bf16 %v281_v32, %v280_v31  ;;  %v283_v38 = vld [vmem:[%s2877_s1 + $0x68] sm:$0xff]  ;;  %v314_v39 = vld [vmem:[%s2877_s1 + $0x160] sm:$0xff] }
   0xa   :  { %1426 = vmatprep.subr.bf16.mxu0 %v1598_v0  ;;  %v1436_v36 = vpack.c.bf16 %v313_v34, %v312_v33  ;;  %v315_v40 = vld [vmem:[%s2877_s1 + $0x168] sm:$0xff]  ;;  %v17_v42 = vld [vmem:[%s2878_s0 + $0x18] sm:$0xff]  ;;  %v1391_v43 = vpack.c.bf16 %v283_v38, %v282_v37  ;;  %v284_v45 = vld [vmem:[%s2877_s1 + $0x70] sm:$0xff] }
   0xb   :  { %v15_v41 = vld [vmem:[%s2878_s0 + $0x8] sm:$0xff]  ;;  %790 = vmatprep.mubr.f32.mxu0 %v17_v42  ;;  %v1439_v44 = vpack.c.bf16 %v315_v40, %v314_v39  ;;  %v285_v46 = vld [vmem:[%s2877_s1 + $0x78] sm:$0xff]  ;;  %v316_v47 = vld [vmem:[%s2877_s1 + $0x170] sm:$0xff] }
   0xc   :  { %1380 = vmatpush1.bf16.msra.mxu1 %v1379_v17  ;;  %405 = vmatprep.mubr.f32.mxu1 %v15_v41  ;;  %v317_v48 = vld [vmem:[%s2877_s1 + $0x178] sm:$0xff]  ;;  %v1394_v49 = vpack.c.bf16 %v285_v46, %v284_v45  ;;  %v286_v51 = vld [vmem:[%s2877_s1 + $0x80] sm:$0xff]  ;;  %v287_v52 = vld [vmem:[%s2877_s1 + $0x88] sm:$0xff] }
   0xd   :  { %1428 = vmatpush1.bf16.msra.mxu0 %v1427_v18  ;;  %1381 = vmatprep.subr.bf16.mxu1 %v1598_v0  ;;  %v1442_v50 = vpack.c.bf16 %v317_v48, %v316_v47  ;;  %v318_v53 = vld [vmem:[%s2877_s1 + $0x180] sm:$0xff]  ;;  %v319_v54 = vld [vmem:[%s2877_s1 + $0x188] sm:$0xff]  ;;  %v1397_v55 = vpack.c.bf16 %v287_v52, %v286_v51  ;;  %v288_v57 = vld [vmem:[%s2877_s1 + $0x90] sm:$0xff] }
   0xe   :  { %1429 = vmatprep.subr.bf16.mxu0 %v1598_v0  ;;  %v1445_v56 = vpack.c.bf16 %v319_v54, %v318_v53  ;;  %v289_v58 = vld [vmem:[%s2877_s1 + $0x98] sm:$0xff]  ;;  %v320_v59 = vld [vmem:[%s2877_s1 + $0x190] sm:$0xff]  ;;  %v290_v63 = vld [vmem:[%s2877_s1 + $0xa0] sm:$0xff] }
   0xf   :  { %v321_v60 = vld [vmem:[%s2877_s1 + $0x198] sm:$0xff]  ;;  %v1400_v61 = vpack.c.bf16 %v289_v58, %v288_v57  ;;  %v291_v1 = vld [vmem:[%s2877_s1 + $0xa8] sm:$0xff]  ;;  %v322_v2 = vld [vmem:[%s2877_s1 + $0x1a0] sm:$0xff] }
  0x10   :  { %1383 = vmatpush1.bf16.msra.mxu1 %v1382_v23  ;;  %v1448_v62 = vpack.c.bf16 %v321_v60, %v320_v59  ;;  %v323_v3 = vld [vmem:[%s2877_s1 + $0x1a8] sm:$0xff]  ;;  %v1403_v4 = vpack.c.bf16 %v291_v1, %v290_v63  ;;  %v292_v6 = vld [vmem:[%s2877_s1 + $0xb0] sm:$0xff]  ;;  %v293_v7 = vld [vmem:[%s2877_s1 + $0xb8] sm:$0xff] }
  0x11   :  { %1431 = vmatpush1.bf16.msra.mxu0 %v1430_v24  ;;  %1384 = vmatprep.subr.bf16.mxu1 %v1598_v0  ;;  %v1451_v5 = vpack.c.bf16 %v323_v3, %v322_v2  ;;  %v324_v8 = vld [vmem:[%s2877_s1 + $0x1b0] sm:$0xff]  ;;  %v325_v9 = vld [vmem:[%s2877_s1 + $0x1b8] sm:$0xff]  ;;  %v1406_v10 = vpack.c.bf16 %v293_v7, %v292_v6  ;;  %v294_v12 = vld [vmem:[%s2877_s1 + $0xc0] sm:$0xff] }
  0x12   :  { %1432 = vmatprep.subr.bf16.mxu0 %v1598_v0  ;;  %v1454_v11 = vpack.c.bf16 %v325_v9, %v324_v8  ;;  %v295_v13 = vld [vmem:[%s2877_s1 + $0xc8] sm:$0xff]  ;;  %v326_v14 = vld [vmem:[%s2877_s1 + $0x1c0] sm:$0xff]  ;;  %v296_v18 = vld [vmem:[%s2877_s1 + $0xd0] sm:$0xff] }
  0x13   :  { %v327_v15 = vld [vmem:[%s2877_s1 + $0x1c8] sm:$0xff]  ;;  %v1409_v16 = vpack.c.bf16 %v295_v13, %v294_v12  ;;  %v297_v19 = vld [vmem:[%s2877_s1 + $0xd8] sm:$0xff]  ;;  %v328_v20 = vld [vmem:[%s2877_s1 + $0x1d0] sm:$0xff] }
  0x14   :  { %1386 = vmatpush1.bf16.msra.mxu1 %v1385_v29  ;;  %v1457_v17 = vpack.c.bf16 %v327_v15, %v326_v14  ;;  %v329_v21 = vld [vmem:[%s2877_s1 + $0x1d8] sm:$0xff]  ;;  %v1412_v22 = vpack.c.bf16 %v297_v19, %v296_v18  ;;  %v298_v24 = vld [vmem:[%s2877_s1 + $0xe0] sm:$0xff]  ;;  %v299_v25 = vld [vmem:[%s2877_s1 + $0xe8] sm:$0xff] }
  0x15   :  { %1434 = vmatpush1.bf16.msra.mxu0 %v1433_v30  ;;  %1387 = vmatprep.subr.bf16.mxu1 %v1598_v0  ;;  %v1460_v23 = vpack.c.bf16 %v329_v21, %v328_v20  ;;  %v330_v26 = vld [vmem:[%s2877_s1 + $0x1e0] sm:$0xff]  ;;  %v331_v27 = vld [vmem:[%s2877_s1 + $0x1e8] sm:$0xff]  ;;  %v1415_v28 = vpack.c.bf16 %v299_v25, %v298_v24  ;;  %v300_v30 = vld [vmem:[%s2877_s1 + $0xf0] sm:$0xff] }
  0x16   :  { %1435 = vmatprep.subr.bf16.mxu0 %v1598_v0  ;;  %v1463_v29 = vpack.c.bf16 %v331_v27, %v330_v26  ;;  %v301_v31 = vld [vmem:[%s2877_s1 + $0xf8] sm:$0xff]  ;;  %v332_v32 = vld [vmem:[%s2877_s1 + $0x1f0] sm:$0xff]  ;;  %v19_v38 = vld [vmem:[%s2878_s0 + $0x28] sm:$0xff] }
  0x17   :  { %v333_v33 = vld [vmem:[%s2877_s1 + $0x1f8] sm:$0xff]  ;;  %v1418_v34 = vpack.c.bf16 %v301_v31, %v300_v30  ;;  %v16_v37 = vld [vmem:[%s2878_s0 + $0x10] sm:$0xff]  ;;  %v23_v41 = vld [vmem:[%s2878_s0 + $0x48] sm:$0xff] }
  0x18   :  { %1389 = vmatpush1.bf16.msra.mxu1 %v1388_v35  ;;  %v1466_v35 = vpack.c.bf16 %v333_v33, %v332_v32  ;;  %v21_v39 = vld [vmem:[%s2878_s0 + $0x38] sm:$0xff]  ;;  %v20_v40 = vld [vmem:[%s2878_s0 + $0x30] sm:$0xff]  ;;  %v27_v45 = vld [vmem:[%s2878_s0 + $0x68] sm:$0xff] }
  0x19   :  { %1437 = vmatpush1.bf16.msra.mxu0 %v1436_v36  ;;  %1390 = vmatprep.subr.bf16.mxu1 %v1598_v0  ;;  %v14_v36 = vld [vmem:[%s2878_s0] sm:$0xff]  ;;  %v25_v42 = vld [vmem:[%s2878_s0 + $0x58] sm:$0xff]  ;;  %v28_v48 = vld [vmem:[%s2878_s0 + $0x70] sm:$0xff] }
  0x1a   :  { %1438 = vmatprep.subr.bf16.mxu0 %v1598_v0  ;;  %v29_v46 = vld [vmem:[%s2878_s0 + $0x78] sm:$0xff]  ;;  %v26_v47 = vld [vmem:[%s2878_s0 + $0x60] sm:$0xff]  ;;  %v32_v52 = vld [vmem:[%s2878_s0 + $0x90] sm:$0xff] }
  0x1b   :  { %v30_v51 = vld [vmem:[%s2878_s0 + $0x80] sm:$0xff]  ;;  %v35_v53 = vld [vmem:[%s2878_s0 + $0xa8] sm:$0xff]  ;;  %v37_v54 = vld [vmem:[%s2878_s0 + $0xb8] sm:$0xff] }
  0x1c   :  { %1392 = vmatpush1.bf16.msra.mxu1 %v1391_v43  ;;  %v22_v43 = vld [vmem:[%s2878_s0 + $0x40] sm:$0xff]  ;;  %v39_v57 = vld [vmem:[%s2878_s0 + $0xc8] sm:$0xff]  ;;  %v41_v58 = vld [vmem:[%s2878_s0 + $0xd8] sm:$0xff] }
  0x1d   :  { %1440 = vmatpush1.bf16.msra.mxu0 %v1439_v44  ;;  %1393 = vmatprep.subr.bf16.mxu1 %v1598_v0  ;;  %v24_v44 = vld [vmem:[%s2878_s0 + $0x50] sm:$0xff]  ;;  %v38_v59 = vld [vmem:[%s2878_s0 + $0xc0] sm:$0xff]  ;;  %v47_v2 = vld [vmem:[%s2878_s0 + $0x108] sm:$0xff] }
  0x1e   :  { %1441 = vmatprep.subr.bf16.mxu0 %v1598_v0  ;;  %v40_v60 = vld [vmem:[%s2878_s0 + $0xd0] sm:$0xff]  ;;  %v42_v63 = vld [vmem:[%s2878_s0 + $0xe0] sm:$0xff]  ;;  %v49_v3 = vld [vmem:[%s2878_s0 + $0x118] sm:$0xff] }
  0x1f   :  { %v44_v1 = vld [vmem:[%s2878_s0 + $0xf0] sm:$0xff]  ;;  %v51_v6 = vld [vmem:[%s2878_s0 + $0x128] sm:$0xff]  ;;  %v53_v7 = vld [vmem:[%s2878_s0 + $0x138] sm:$0xff] }
  0x20   :  { %1395 = vmatpush1.bf16.msra.mxu1 %v1394_v49  ;;  %v31_v49 = vld [vmem:[%s2878_s0 + $0x88] sm:$0xff]  ;;  %v50_v8 = vld [vmem:[%s2878_s0 + $0x120] sm:$0xff]  ;;  %v52_v9 = vld [vmem:[%s2878_s0 + $0x130] sm:$0xff] }
  0x21   :  { %1443 = vmatpush1.bf16.msra.mxu0 %v1442_v50  ;;  %1396 = vmatprep.subr.bf16.mxu1 %v1598_v0  ;;  %v33_v50 = vld [vmem:[%s2878_s0 + $0x98] sm:$0xff]  ;;  %v54_v12 = vld [vmem:[%s2878_s0 + $0x140] sm:$0xff]  ;;  %v56_v13 = vld [vmem:[%s2878_s0 + $0x150] sm:$0xff] }
  0x22   :  { %1444 = vmatprep.subr.bf16.mxu0 %v1598_v0  ;;  %v59_v14 = vld [vmem:[%s2878_s0 + $0x168] sm:$0xff]  ;;  %v61_v15 = vld [vmem:[%s2878_s0 + $0x178] sm:$0xff]  ;;  %v62_v20 = vld [vmem:[%s2878_s0 + $0x180] sm:$0xff] }
  0x23   :  { %v63_v18 = vld [vmem:[%s2878_s0 + $0x188] sm:$0xff]  ;;  %v65_v19 = vld [vmem:[%s2878_s0 + $0x198] sm:$0xff]  ;;  %v64_v21 = vld [vmem:[%s2878_s0 + $0x190] sm:$0xff] }
  0x24   :  { %1398 = vmatpush1.bf16.msra.mxu1 %v1397_v55  ;;  %v34_v55 = vld [vmem:[%s2878_s0 + $0xa0] sm:$0xff]  ;;  %v68_v25 = vld [vmem:[%s2878_s0 + $0x1b0] sm:$0xff]  ;;  %v71_v26 = vld [vmem:[%s2878_s0 + $0x1c8] sm:$0xff] }
  0x25   :  { %1446 = vmatpush1.bf16.msra.mxu0 %v1445_v56  ;;  %1399 = vmatprep.subr.bf16.mxu1 %v1598_v0  ;;  %v36_v56 = vld [vmem:[%s2878_s0 + $0xb0] sm:$0xff]  ;;  %v66_v24 = vld [vmem:[%s2878_s0 + $0x1a0] sm:$0xff]  ;;  %v73_v27 = vld [vmem:[%s2878_s0 + $0x1d8] sm:$0xff] }
  0x26   :  { %1447 = vmatprep.subr.bf16.mxu0 %v1598_v0  ;;  %v75_v30 = vld [vmem:[%s2878_s0 + $0x1e8] sm:$0xff]  ;;  %v77_v31 = vld [vmem:[%s2878_s0 + $0x1f8] sm:$0xff]  ;;  %v74_v32 = vld [vmem:[%s2878_s0 + $0x1e0] sm:$0xff] }
  0x27   :  { %v76_v33 = vld [vmem:[%s2878_s0 + $0x1f0] sm:$0xff] }
  0x28   :  { %1401 = vmatpush1.bf16.msra.mxu1 %v1400_v61  ;;  %v43_v61 = vld [vmem:[%s2878_s0 + $0xe8] sm:$0xff] }
  0x29   :  { %1449 = vmatpush1.bf16.msra.mxu0 %v1448_v62  ;;  %1402 = vmatprep.subr.bf16.mxu1 %v1598_v0  ;;  %v45_v62 = vld [vmem:[%s2878_s0 + $0xf8] sm:$0xff] }
  0x2a   :  { %1450 = vmatprep.subr.bf16.mxu0 %v1598_v0 }
  0x2c   :  { %1404 = vmatpush1.bf16.msra.mxu1 %v1403_v4  ;;  %v46_v4 = vld [vmem:[%s2878_s0 + $0x100] sm:$0xff] }
  0x2d   :  { %1452 = vmatpush1.bf16.msra.mxu0 %v1451_v5  ;;  %1405 = vmatprep.subr.bf16.mxu1 %v1598_v0  ;;  %v48_v5 = vld [vmem:[%s2878_s0 + $0x110] sm:$0xff] }
  0x2e   :  { %1453 = vmatprep.subr.bf16.mxu0 %v1598_v0 }
  0x30   :  { %1407 = vmatpush1.bf16.msra.mxu1 %v1406_v10  ;;  %v55_v10 = vld [vmem:[%s2878_s0 + $0x148] sm:$0xff] }
  0x31   :  { %1455 = vmatpush1.bf16.msra.mxu0 %v1454_v11  ;;  %1408 = vmatprep.subr.bf16.mxu1 %v1598_v0  ;;  %v57_v11 = vld [vmem:[%s2878_s0 + $0x158] sm:$0xff] }
  0x32   :  { %1456 = vmatprep.subr.bf16.mxu0 %v1598_v0 }
  0x34   :  { %1410 = vmatpush1.bf16.msra.mxu1 %v1409_v16  ;;  %v58_v16 = vld [vmem:[%s2878_s0 + $0x160] sm:$0xff] }
  0x35   :  { %1458 = vmatpush1.bf16.msra.mxu0 %v1457_v17  ;;  %1411 = vmatprep.subr.bf16.mxu1 %v1598_v0  ;;  %v60_v17 = vld [vmem:[%s2878_s0 + $0x170] sm:$0xff] }
  0x36   :  { %1459 = vmatprep.subr.bf16.mxu0 %v1598_v0 }
  0x38   :  { %1413 = vmatpush1.bf16.msra.mxu1 %v1412_v22  ;;  %v67_v22 = vld [vmem:[%s2878_s0 + $0x1a8] sm:$0xff] }
  0x39   :  { %1461 = vmatpush1.bf16.msra.mxu0 %v1460_v23  ;;  %1414 = vmatprep.subr.bf16.mxu1 %v1598_v0  ;;  %v69_v23 = vld [vmem:[%s2878_s0 + $0x1b8] sm:$0xff] }
  0x3a   :  { %1462 = vmatprep.subr.bf16.mxu0 %v1598_v0 }
  0x3c   :  { %1416 = vmatpush1.bf16.msra.mxu1 %v1415_v28  ;;  %v70_v28 = vld [vmem:[%s2878_s0 + $0x1c0] sm:$0xff] }
  0x3d   :  { %1464 = vmatpush1.bf16.msra.mxu0 %v1463_v29  ;;  %1417 = vmatprep.subr.bf16.mxu1 %v1598_v0  ;;  %v72_v29 = vld [vmem:[%s2878_s0 + $0x1d0] sm:$0xff] }
  0x3e   :  { %1465 = vmatprep.subr.bf16.mxu0 %v1598_v0  ;;  %v18_v0 = vld [vmem:[%s2878_s0 + $0x20] sm:$0xff] }
  0x40   :  { %1419 = vmatpush1.bf16.msra.mxu1 %v1418_v34  ;;  %v79_v34 = vld [vmem:[%s2878_s0 + $0x208] sm:$0xff] }
  0x41   :  { %1467 = vmatpush1.bf16.msra.mxu0 %v1466_v35  ;;  %v81_v35 = vld [vmem:[%s2878_s0 + $0x218] sm:$0xff] }
  0x43   :  { %406 = vmatmul.mubr.f32.vlgmr.msra.gmra.mrb[0].mxu1 %v14_v36  ;;  %v78_v36 = vld [vmem:[%s2878_s0 + $0x200] sm:$0xff] }
  0x44   :  { %791 = vmatmul.mubr.f32.vlgmr.msra.gmra.mrb[0].mxu0 %v16_v37  ;;  %410 = vmatprep.mubr.f32.mxu1 %v19_v38  ;;  %v80_v37 = vld [vmem:[%s2878_s0 + $0x210] sm:$0xff]  ;;  %v83_v38 = vld [vmem:[%s2878_s0 + $0x228] sm:$0xff] }
  0x45   :  { %795 = vmatprep.mubr.f32.mxu0 %v21_v39  ;;  %v85_v39 = vld [vmem:[%s2878_s0 + $0x238] sm:$0xff] }
  0x47   :  { %411 = vmatmul.mubr.f32.gmra.mrb[2].mxu1 %v18_v0  ;;  %v82_v0 = vld [vmem:[%s2878_s0 + $0x220] sm:$0xff] }
  0x48   :  { %796 = vmatmul.mubr.f32.gmra.mrb[2].mxu0 %v20_v40  ;;  %415 = vmatprep.mubr.f32.mxu1 %v23_v41  ;;  %v84_v40 = vld [vmem:[%s2878_s0 + $0x230] sm:$0xff]  ;;  %v87_v41 = vld [vmem:[%s2878_s0 + $0x248] sm:$0xff] }
  0x49   :  { %800 = vmatprep.mubr.f32.mxu0 %v25_v42  ;;  %v89_v42 = vld [vmem:[%s2878_s0 + $0x258] sm:$0xff] }
  0x4b   :  { %416 = vmatmul.mubr.f32.gmra.mrb[4].mxu1 %v22_v43  ;;  %v86_v43 = vld [vmem:[%s2878_s0 + $0x240] sm:$0xff] }
  0x4c   :  { %801 = vmatmul.mubr.f32.gmra.mrb[4].mxu0 %v24_v44  ;;  %420 = vmatprep.mubr.f32.mxu1 %v27_v45  ;;  %v88_v44 = vld [vmem:[%s2878_s0 + $0x250] sm:$0xff]  ;;  %v91_v45 = vld [vmem:[%s2878_s0 + $0x268] sm:$0xff] }
  0x4d   :  { %805 = vmatprep.mubr.f32.mxu0 %v29_v46  ;;  %v93_v46 = vld [vmem:[%s2878_s0 + $0x278] sm:$0xff] }
  0x4f   :  { %421 = vmatmul.mubr.f32.gmra.mrb[6].mxu1 %v26_v47  ;;  %v90_v47 = vld [vmem:[%s2878_s0 + $0x260] sm:$0xff] }
  0x50   :  { %806 = vmatmul.mubr.f32.gmra.mrb[6].mxu0 %v28_v48  ;;  %425 = vmatprep.mubr.f32.mxu1 %v31_v49  ;;  %v92_v48 = vld [vmem:[%s2878_s0 + $0x270] sm:$0xff]  ;;  %v95_v49 = vld [vmem:[%s2878_s0 + $0x288] sm:$0xff] }
  0x51   :  { %810 = vmatprep.mubr.f32.mxu0 %v33_v50  ;;  %v97_v50 = vld [vmem:[%s2878_s0 + $0x298] sm:$0xff] }
  0x53   :  { %426 = vmatmul.mubr.f32.gmra.mrb[8].mxu1 %v30_v51  ;;  %v94_v51 = vld [vmem:[%s2878_s0 + $0x280] sm:$0xff] }
  0x54   :  { %811 = vmatmul.mubr.f32.gmra.mrb[8].mxu0 %v32_v52  ;;  %430 = vmatprep.mubr.f32.mxu1 %v35_v53  ;;  %v96_v52 = vld [vmem:[%s2878_s0 + $0x290] sm:$0xff]  ;;  %v99_v53 = vld [vmem:[%s2878_s0 + $0x2a8] sm:$0xff] }
  0x55   :  { %815 = vmatprep.mubr.f32.mxu0 %v37_v54  ;;  %v101_v54 = vld [vmem:[%s2878_s0 + $0x2b8] sm:$0xff] }
  0x57   :  { %431 = vmatmul.mubr.f32.gmra.mrb[10].mxu1 %v34_v55  ;;  %v98_v55 = vld [vmem:[%s2878_s0 + $0x2a0] sm:$0xff] }
  0x58   :  { %816 = vmatmul.mubr.f32.gmra.mrb[10].mxu0 %v36_v56  ;;  %435 = vmatprep.mubr.f32.mxu1 %v39_v57  ;;  %v100_v56 = vld [vmem:[%s2878_s0 + $0x2b0] sm:$0xff]  ;;  %v103_v57 = vld [vmem:[%s2878_s0 + $0x2c8] sm:$0xff] }
  0x59   :  { %820 = vmatprep.mubr.f32.mxu0 %v41_v58  ;;  %v105_v58 = vld [vmem:[%s2878_s0 + $0x2d8] sm:$0xff] }
  0x5b   :  { %436 = vmatmul.mubr.f32.gmra.mrb[12].mxu1 %v38_v59  ;;  %v102_v59 = vld [vmem:[%s2878_s0 + $0x2c0] sm:$0xff] }
  0x5c   :  { %821 = vmatmul.mubr.f32.gmra.mrb[12].mxu0 %v40_v60  ;;  %440 = vmatprep.mubr.f32.mxu1 %v43_v61  ;;  %v104_v60 = vld [vmem:[%s2878_s0 + $0x2d0] sm:$0xff]  ;;  %v107_v61 = vld [vmem:[%s2878_s0 + $0x2e8] sm:$0xff] }
  0x5d   :  { %825 = vmatprep.mubr.f32.mxu0 %v45_v62  ;;  %v109_v62 = vld [vmem:[%s2878_s0 + $0x2f8] sm:$0xff] }
  0x5f   :  { %441 = vmatmul.mubr.f32.gmra.mrb[14].mxu1 %v42_v63  ;;  %v106_v63 = vld [vmem:[%s2878_s0 + $0x2e0] sm:$0xff] }
  0x60   :  { %826 = vmatmul.mubr.f32.gmra.mrb[14].mxu0 %v44_v1  ;;  %445 = vmatprep.mubr.f32.mxu1 %v47_v2  ;;  %v108_v1 = vld [vmem:[%s2878_s0 + $0x2f0] sm:$0xff]  ;;  %v111_v2 = vld [vmem:[%s2878_s0 + $0x308] sm:$0xff] }
  0x61   :  { %830 = vmatprep.mubr.f32.mxu0 %v49_v3  ;;  %v113_v3 = vld [vmem:[%s2878_s0 + $0x318] sm:$0xff] }
  0x63   :  { %446 = vmatmul.mubr.f32.gmra.mrb[16].mxu1 %v46_v4  ;;  %v110_v4 = vld [vmem:[%s2878_s0 + $0x300] sm:$0xff] }
  0x64   :  { %831 = vmatmul.mubr.f32.gmra.mrb[16].mxu0 %v48_v5  ;;  %450 = vmatprep.mubr.f32.mxu1 %v51_v6  ;;  %v112_v5 = vld [vmem:[%s2878_s0 + $0x310] sm:$0xff]  ;;  %v115_v6 = vld [vmem:[%s2878_s0 + $0x328] sm:$0xff] }
  0x65   :  { %835 = vmatprep.mubr.f32.mxu0 %v53_v7  ;;  %v117_v7 = vld [vmem:[%s2878_s0 + $0x338] sm:$0xff] }
  0x67   :  { %451 = vmatmul.mubr.f32.gmra.mrb[18].mxu1 %v50_v8  ;;  %v114_v8 = vld [vmem:[%s2878_s0 + $0x320] sm:$0xff] }
  0x68   :  { %836 = vmatmul.mubr.f32.gmra.mrb[18].mxu0 %v52_v9  ;;  %455 = vmatprep.mubr.f32.mxu1 %v55_v10  ;;  %v116_v9 = vld [vmem:[%s2878_s0 + $0x330] sm:$0xff]  ;;  %v119_v10 = vld [vmem:[%s2878_s0 + $0x348] sm:$0xff] }
  0x69   :  { %840 = vmatprep.mubr.f32.mxu0 %v57_v11  ;;  %v121_v11 = vld [vmem:[%s2878_s0 + $0x358] sm:$0xff] }
  0x6b   :  { %456 = vmatmul.mubr.f32.gmra.mrb[20].mxu1 %v54_v12  ;;  %v118_v12 = vld [vmem:[%s2878_s0 + $0x340] sm:$0xff] }
  0x6c   :  { %841 = vmatmul.mubr.f32.gmra.mrb[20].mxu0 %v56_v13  ;;  %460 = vmatprep.mubr.f32.mxu1 %v59_v14  ;;  %v120_v13 = vld [vmem:[%s2878_s0 + $0x350] sm:$0xff]  ;;  %v123_v14 = vld [vmem:[%s2878_s0 + $0x368] sm:$0xff] }
  0x6d   :  { %845 = vmatprep.mubr.f32.mxu0 %v61_v15  ;;  %v125_v15 = vld [vmem:[%s2878_s0 + $0x378] sm:$0xff] }
  0x6f   :  { %461 = vmatmul.mubr.f32.gmra.mrb[22].mxu1 %v58_v16  ;;  %v122_v16 = vld [vmem:[%s2878_s0 + $0x360] sm:$0xff] }
  0x70   :  { %846 = vmatmul.mubr.f32.gmra.mrb[22].mxu0 %v60_v17  ;;  %465 = vmatprep.mubr.f32.mxu1 %v63_v18  ;;  %v124_v17 = vld [vmem:[%s2878_s0 + $0x370] sm:$0xff]  ;;  %v127_v18 = vld [vmem:[%s2878_s0 + $0x388] sm:$0xff] }
  0x71   :  { %850 = vmatprep.mubr.f32.mxu0 %v65_v19  ;;  %v129_v19 = vld [vmem:[%s2878_s0 + $0x398] sm:$0xff] }
  0x73   :  { %466 = vmatmul.mubr.f32.gmra.mrb[24].mxu1 %v62_v20  ;;  %v126_v20 = vld [vmem:[%s2878_s0 + $0x380] sm:$0xff] }
  0x74   :  { %851 = vmatmul.mubr.f32.gmra.mrb[24].mxu0 %v64_v21  ;;  %470 = vmatprep.mubr.f32.mxu1 %v67_v22  ;;  %v128_v21 = vld [vmem:[%s2878_s0 + $0x390] sm:$0xff]  ;;  %v131_v22 = vld [vmem:[%s2878_s0 + $0x3a8] sm:$0xff] }
  0x75   :  { %855 = vmatprep.mubr.f32.mxu0 %v69_v23  ;;  %v133_v23 = vld [vmem:[%s2878_s0 + $0x3b8] sm:$0xff] }
  0x77   :  { %471 = vmatmul.mubr.f32.gmra.mrb[26].mxu1 %v66_v24  ;;  %v130_v24 = vld [vmem:[%s2878_s0 + $0x3a0] sm:$0xff] }
  0x78   :  { %856 = vmatmul.mubr.f32.gmra.mrb[26].mxu0 %v68_v25  ;;  %475 = vmatprep.mubr.f32.mxu1 %v71_v26  ;;  %v132_v25 = vld [vmem:[%s2878_s0 + $0x3b0] sm:$0xff]  ;;  %v135_v26 = vld [vmem:[%s2878_s0 + $0x3c8] sm:$0xff] }
  0x79   :  { %860 = vmatprep.mubr.f32.mxu0 %v73_v27  ;;  %v137_v27 = vld [vmem:[%s2878_s0 + $0x3d8] sm:$0xff] }
  0x7b   :  { %476 = vmatmul.mubr.f32.gmra.mrb[28].mxu1 %v70_v28  ;;  %v134_v28 = vld [vmem:[%s2878_s0 + $0x3c0] sm:$0xff] }
  0x7c   :  { %861 = vmatmul.mubr.f32.gmra.mrb[28].mxu0 %v72_v29  ;;  %480 = vmatprep.mubr.f32.mxu1 %v75_v30  ;;  %v136_v29 = vld [vmem:[%s2878_s0 + $0x3d0] sm:$0xff]  ;;  %v139_v30 = vld [vmem:[%s2878_s0 + $0x3e8] sm:$0xff] }
  0x7d   :  { %865 = vmatprep.mubr.f32.mxu0 %v77_v31  ;;  %v141_v31 = vld [vmem:[%s2878_s0 + $0x3f8] sm:$0xff] }
  0x7f   :  { %481 = vmatmul.mubr.f32.gmra.mrb[30].mxu1 %v74_v32  ;;  %v138_v32 = vld [vmem:[%s2878_s0 + $0x3e0] sm:$0xff] }
  0x80   :  { %866 = vmatmul.mubr.f32.gmra.mrb[30].mxu0 %v76_v33  ;;  %485 = vmatprep.mubr.f32.mxu1 %v79_v34  ;;  %v140_v33 = vld [vmem:[%s2878_s0 + $0x3f0] sm:$0xff]  ;;  %v143_v34 = vld [vmem:[%s2878_s0 + $0x408] sm:$0xff] }
  0x81   :  { %870 = vmatprep.mubr.f32.mxu0 %v81_v35  ;;  %v145_v35 = vld [vmem:[%s2878_s0 + $0x418] sm:$0xff] }
  0x83   :  { %486 = vmatmul.mubr.f32.gmra.mrb[32].mxu1 %v78_v36  ;;  %v142_v36 = vld [vmem:[%s2878_s0 + $0x400] sm:$0xff] }
  0x84   :  { %871 = vmatmul.mubr.f32.gmra.mrb[32].mxu0 %v80_v37  ;;  %490 = vmatprep.mubr.f32.mxu1 %v83_v38  ;;  %v144_v37 = vld [vmem:[%s2878_s0 + $0x410] sm:$0xff]  ;;  %v147_v38 = vld [vmem:[%s2878_s0 + $0x428] sm:$0xff] }
  0x85   :  { %875 = vmatprep.mubr.f32.mxu0 %v85_v39  ;;  %v149_v39 = vld [vmem:[%s2878_s0 + $0x438] sm:$0xff] }
  0x87   :  { %491 = vmatmul.mubr.f32.gmra.mrb[34].mxu1 %v82_v0  ;;  %v146_v0 = vld [vmem:[%s2878_s0 + $0x420] sm:$0xff] }
  0x88   :  { %876 = vmatmul.mubr.f32.gmra.mrb[34].mxu0 %v84_v40  ;;  %495 = vmatprep.mubr.f32.mxu1 %v87_v41  ;;  %v148_v40 = vld [vmem:[%s2878_s0 + $0x430] sm:$0xff]  ;;  %v151_v41 = vld [vmem:[%s2878_s0 + $0x448] sm:$0xff] }
  0x89   :  { %880 = vmatprep.mubr.f32.mxu0 %v89_v42  ;;  %v153_v42 = vld [vmem:[%s2878_s0 + $0x458] sm:$0xff] }
  0x8b   :  { %496 = vmatmul.mubr.f32.gmra.mrb[36].mxu1 %v86_v43  ;;  %v150_v43 = vld [vmem:[%s2878_s0 + $0x440] sm:$0xff] }
  0x8c   :  { %881 = vmatmul.mubr.f32.gmra.mrb[36].mxu0 %v88_v44  ;;  %500 = vmatprep.mubr.f32.mxu1 %v91_v45  ;;  %v152_v44 = vld [vmem:[%s2878_s0 + $0x450] sm:$0xff]  ;;  %v155_v45 = vld [vmem:[%s2878_s0 + $0x468] sm:$0xff] }
  0x8d   :  { %885 = vmatprep.mubr.f32.mxu0 %v93_v46  ;;  %v157_v46 = vld [vmem:[%s2878_s0 + $0x478] sm:$0xff] }
  0x8f   :  { %501 = vmatmul.mubr.f32.gmra.mrb[38].mxu1 %v90_v47  ;;  %v154_v47 = vld [vmem:[%s2878_s0 + $0x460] sm:$0xff] }
  0x90   :  { %886 = vmatmul.mubr.f32.gmra.mrb[38].mxu0 %v92_v48  ;;  %505 = vmatprep.mubr.f32.mxu1 %v95_v49  ;;  %v156_v48 = vld [vmem:[%s2878_s0 + $0x470] sm:$0xff]  ;;  %v159_v49 = vld [vmem:[%s2878_s0 + $0x488] sm:$0xff] }
  0x91   :  { %890 = vmatprep.mubr.f32.mxu0 %v97_v50  ;;  %v161_v50 = vld [vmem:[%s2878_s0 + $0x498] sm:$0xff] }
  0x93   :  { %506 = vmatmul.mubr.f32.gmra.mrb[40].mxu1 %v94_v51  ;;  %v158_v51 = vld [vmem:[%s2878_s0 + $0x480] sm:$0xff] }
  0x94   :  { %891 = vmatmul.mubr.f32.gmra.mrb[40].mxu0 %v96_v52  ;;  %510 = vmatprep.mubr.f32.mxu1 %v99_v53  ;;  %v160_v52 = vld [vmem:[%s2878_s0 + $0x490] sm:$0xff]  ;;  %v163_v53 = vld [vmem:[%s2878_s0 + $0x4a8] sm:$0xff] }
  0x95   :  { %895 = vmatprep.mubr.f32.mxu0 %v101_v54  ;;  %v165_v54 = vld [vmem:[%s2878_s0 + $0x4b8] sm:$0xff] }
  0x97   :  { %511 = vmatmul.mubr.f32.gmra.mrb[42].mxu1 %v98_v55  ;;  %v162_v55 = vld [vmem:[%s2878_s0 + $0x4a0] sm:$0xff] }
  0x98   :  { %896 = vmatmul.mubr.f32.gmra.mrb[42].mxu0 %v100_v56  ;;  %515 = vmatprep.mubr.f32.mxu1 %v103_v57  ;;  %v164_v56 = vld [vmem:[%s2878_s0 + $0x4b0] sm:$0xff]  ;;  %v167_v57 = vld [vmem:[%s2878_s0 + $0x4c8] sm:$0xff] }
  0x99   :  { %900 = vmatprep.mubr.f32.mxu0 %v105_v58  ;;  %v169_v58 = vld [vmem:[%s2878_s0 + $0x4d8] sm:$0xff] }
  0x9b   :  { %516 = vmatmul.mubr.f32.gmra.mrb[44].mxu1 %v102_v59  ;;  %v166_v59 = vld [vmem:[%s2878_s0 + $0x4c0] sm:$0xff] }
  0x9c   :  { %901 = vmatmul.mubr.f32.gmra.mrb[44].mxu0 %v104_v60  ;;  %520 = vmatprep.mubr.f32.mxu1 %v107_v61  ;;  %v168_v60 = vld [vmem:[%s2878_s0 + $0x4d0] sm:$0xff]  ;;  %v171_v61 = vld [vmem:[%s2878_s0 + $0x4e8] sm:$0xff] }
  0x9d   :  { %905 = vmatprep.mubr.f32.mxu0 %v109_v62  ;;  %v173_v62 = vld [vmem:[%s2878_s0 + $0x4f8] sm:$0xff] }
  0x9f   :  { %521 = vmatmul.mubr.f32.gmra.mrb[46].mxu1 %v106_v63  ;;  %v170_v63 = vld [vmem:[%s2878_s0 + $0x4e0] sm:$0xff] }
  0xa0   :  { %906 = vmatmul.mubr.f32.gmra.mrb[46].mxu0 %v108_v1  ;;  %525 = vmatprep.mubr.f32.mxu1 %v111_v2  ;;  %v172_v1 = vld [vmem:[%s2878_s0 + $0x4f0] sm:$0xff]  ;;  %v175_v2 = vld [vmem:[%s2878_s0 + $0x508] sm:$0xff] }
  0xa1   :  { %910 = vmatprep.mubr.f32.mxu0 %v113_v3  ;;  %v177_v3 = vld [vmem:[%s2878_s0 + $0x518] sm:$0xff] }
  0xa3   :  { %526 = vmatmul.mubr.f32.gmra.mrb[48].mxu1 %v110_v4  ;;  %v174_v4 = vld [vmem:[%s2878_s0 + $0x500] sm:$0xff] }
  0xa4   :  { %911 = vmatmul.mubr.f32.gmra.mrb[48].mxu0 %v112_v5  ;;  %530 = vmatprep.mubr.f32.mxu1 %v115_v6  ;;  %v176_v5 = vld [vmem:[%s2878_s0 + $0x510] sm:$0xff]  ;;  %v179_v6 = vld [vmem:[%s2878_s0 + $0x528] sm:$0xff] }
  0xa5   :  { %915 = vmatprep.mubr.f32.mxu0 %v117_v7  ;;  %v181_v7 = vld [vmem:[%s2878_s0 + $0x538] sm:$0xff] }
  0xa7   :  { %531 = vmatmul.mubr.f32.gmra.mrb[50].mxu1 %v114_v8  ;;  %v178_v8 = vld [vmem:[%s2878_s0 + $0x520] sm:$0xff] }
  0xa8   :  { %916 = vmatmul.mubr.f32.gmra.mrb[50].mxu0 %v116_v9  ;;  %535 = vmatprep.mubr.f32.mxu1 %v119_v10  ;;  %v180_v9 = vld [vmem:[%s2878_s0 + $0x530] sm:$0xff]  ;;  %v183_v10 = vld [vmem:[%s2878_s0 + $0x548] sm:$0xff] }
  0xa9   :  { %920 = vmatprep.mubr.f32.mxu0 %v121_v11  ;;  %v185_v11 = vld [vmem:[%s2878_s0 + $0x558] sm:$0xff] }
  0xab   :  { %536 = vmatmul.mubr.f32.gmra.mrb[52].mxu1 %v118_v12  ;;  %v182_v12 = vld [vmem:[%s2878_s0 + $0x540] sm:$0xff] }
  0xac   :  { %921 = vmatmul.mubr.f32.gmra.mrb[52].mxu0 %v120_v13  ;;  %540 = vmatprep.mubr.f32.mxu1 %v123_v14  ;;  %v184_v13 = vld [vmem:[%s2878_s0 + $0x550] sm:$0xff]  ;;  %v187_v14 = vld [vmem:[%s2878_s0 + $0x568] sm:$0xff] }
  0xad   :  { %925 = vmatprep.mubr.f32.mxu0 %v125_v15  ;;  %v189_v15 = vld [vmem:[%s2878_s0 + $0x578] sm:$0xff] }
  0xaf   :  { %541 = vmatmul.mubr.f32.gmra.mrb[54].mxu1 %v122_v16  ;;  %v186_v16 = vld [vmem:[%s2878_s0 + $0x560] sm:$0xff] }
  0xb0   :  { %926 = vmatmul.mubr.f32.gmra.mrb[54].mxu0 %v124_v17  ;;  %545 = vmatprep.mubr.f32.mxu1 %v127_v18  ;;  %v188_v17 = vld [vmem:[%s2878_s0 + $0x570] sm:$0xff]  ;;  %v191_v18 = vld [vmem:[%s2878_s0 + $0x588] sm:$0xff] }
  0xb1   :  { %930 = vmatprep.mubr.f32.mxu0 %v129_v19  ;;  %v193_v19 = vld [vmem:[%s2878_s0 + $0x598] sm:$0xff] }
  0xb3   :  { %546 = vmatmul.mubr.f32.gmra.mrb[56].mxu1 %v126_v20  ;;  %v190_v20 = vld [vmem:[%s2878_s0 + $0x580] sm:$0xff] }
  0xb4   :  { %931 = vmatmul.mubr.f32.gmra.mrb[56].mxu0 %v128_v21  ;;  %550 = vmatprep.mubr.f32.mxu1 %v131_v22  ;;  %v192_v21 = vld [vmem:[%s2878_s0 + $0x590] sm:$0xff]  ;;  %v195_v22 = vld [vmem:[%s2878_s0 + $0x5a8] sm:$0xff] }
  0xb5   :  { %935 = vmatprep.mubr.f32.mxu0 %v133_v23  ;;  %v197_v23 = vld [vmem:[%s2878_s0 + $0x5b8] sm:$0xff] }
  0xb7   :  { %551 = vmatmul.mubr.f32.gmra.mrb[58].mxu1 %v130_v24  ;;  %v194_v24 = vld [vmem:[%s2878_s0 + $0x5a0] sm:$0xff] }
  0xb8   :  { %936 = vmatmul.mubr.f32.gmra.mrb[58].mxu0 %v132_v25  ;;  %555 = vmatprep.mubr.f32.mxu1 %v135_v26  ;;  %v196_v25 = vld [vmem:[%s2878_s0 + $0x5b0] sm:$0xff]  ;;  %v199_v26 = vld [vmem:[%s2878_s0 + $0x5c8] sm:$0xff] }
  0xb9   :  { %940 = vmatprep.mubr.f32.mxu0 %v137_v27  ;;  %v201_v27 = vld [vmem:[%s2878_s0 + $0x5d8] sm:$0xff] }
  0xbb   :  { %556 = vmatmul.mubr.f32.gmra.mrb[60].mxu1 %v134_v28  ;;  %v198_v28 = vld [vmem:[%s2878_s0 + $0x5c0] sm:$0xff] }
  0xbc   :  { %941 = vmatmul.mubr.f32.gmra.mrb[60].mxu0 %v136_v29  ;;  %560 = vmatprep.mubr.f32.mxu1 %v139_v30  ;;  %v200_v29 = vld [vmem:[%s2878_s0 + $0x5d0] sm:$0xff]  ;;  %v203_v30 = vld [vmem:[%s2878_s0 + $0x5e8] sm:$0xff] }
  0xbd   :  { %945 = vmatprep.mubr.f32.mxu0 %v141_v31  ;;  %v205_v31 = vld [vmem:[%s2878_s0 + $0x5f8] sm:$0xff] }
  0xbf   :  { %561 = vmatmul.mubr.f32.gmra.mrb[62].mxu1 %v138_v32  ;;  %v202_v32 = vld [vmem:[%s2878_s0 + $0x5e0] sm:$0xff] }
  0xc0   :  { %946 = vmatmul.mubr.f32.gmra.mrb[62].mxu0 %v140_v33  ;;  %565 = vmatprep.mubr.f32.mxu1 %v143_v34  ;;  %v204_v33 = vld [vmem:[%s2878_s0 + $0x5f0] sm:$0xff]  ;;  %v207_v34 = vld [vmem:[%s2878_s0 + $0x608] sm:$0xff] }
  0xc1   :  { %950 = vmatprep.mubr.f32.mxu0 %v145_v35  ;;  %v209_v35 = vld [vmem:[%s2878_s0 + $0x618] sm:$0xff] }
  0xc3   :  { %566 = vmatmul.mubr.f32.gmra.mrb[64].mxu1 %v142_v36  ;;  %v206_v36 = vld [vmem:[%s2878_s0 + $0x600] sm:$0xff] }
  0xc4   :  { %951 = vmatmul.mubr.f32.gmra.mrb[64].mxu0 %v144_v37  ;;  %570 = vmatprep.mubr.f32.mxu1 %v147_v38  ;;  %v208_v37 = vld [vmem:[%s2878_s0 + $0x610] sm:$0xff]  ;;  %v211_v38 = vld [vmem:[%s2878_s0 + $0x628] sm:$0xff] }
  0xc5   :  { %955 = vmatprep.mubr.f32.mxu0 %v149_v39  ;;  %v213_v39 = vld [vmem:[%s2878_s0 + $0x638] sm:$0xff] }
  0xc7   :  { %571 = vmatmul.mubr.f32.gmra.mrb[66].mxu1 %v146_v0  ;;  %v210_v0 = vld [vmem:[%s2878_s0 + $0x620] sm:$0xff] }
  0xc8   :  { %956 = vmatmul.mubr.f32.gmra.mrb[66].mxu0 %v148_v40  ;;  %575 = vmatprep.mubr.f32.mxu1 %v151_v41  ;;  %v212_v40 = vld [vmem:[%s2878_s0 + $0x630] sm:$0xff]  ;;  %v215_v41 = vld [vmem:[%s2878_s0 + $0x648] sm:$0xff] }
  0xc9   :  { %960 = vmatprep.mubr.f32.mxu0 %v153_v42  ;;  %v217_v42 = vld [vmem:[%s2878_s0 + $0x658] sm:$0xff] }
  0xcb   :  { %576 = vmatmul.mubr.f32.gmra.mrb[68].mxu1 %v150_v43  ;;  %v214_v43 = vld [vmem:[%s2878_s0 + $0x640] sm:$0xff] }
  0xcc   :  { %961 = vmatmul.mubr.f32.gmra.mrb[68].mxu0 %v152_v44  ;;  %580 = vmatprep.mubr.f32.mxu1 %v155_v45  ;;  %v216_v44 = vld [vmem:[%s2878_s0 + $0x650] sm:$0xff]  ;;  %v219_v45 = vld [vmem:[%s2878_s0 + $0x668] sm:$0xff] }
  0xcd   :  { %965 = vmatprep.mubr.f32.mxu0 %v157_v46  ;;  %v221_v46 = vld [vmem:[%s2878_s0 + $0x678] sm:$0xff] }
  0xcf   :  { %581 = vmatmul.mubr.f32.gmra.mrb[70].mxu1 %v154_v47  ;;  %v218_v47 = vld [vmem:[%s2878_s0 + $0x660] sm:$0xff] }
  0xd0   :  { %966 = vmatmul.mubr.f32.gmra.mrb[70].mxu0 %v156_v48  ;;  %585 = vmatprep.mubr.f32.mxu1 %v159_v49  ;;  %v220_v48 = vld [vmem:[%s2878_s0 + $0x670] sm:$0xff]  ;;  %v223_v49 = vld [vmem:[%s2878_s0 + $0x688] sm:$0xff] }
  0xd1   :  { %970 = vmatprep.mubr.f32.mxu0 %v161_v50  ;;  %v225_v50 = vld [vmem:[%s2878_s0 + $0x698] sm:$0xff] }
  0xd3   :  { %586 = vmatmul.mubr.f32.gmra.mrb[72].mxu1 %v158_v51  ;;  %v222_v51 = vld [vmem:[%s2878_s0 + $0x680] sm:$0xff] }
  0xd4   :  { %971 = vmatmul.mubr.f32.gmra.mrb[72].mxu0 %v160_v52  ;;  %590 = vmatprep.mubr.f32.mxu1 %v163_v53  ;;  %v224_v52 = vld [vmem:[%s2878_s0 + $0x690] sm:$0xff]  ;;  %v227_v53 = vld [vmem:[%s2878_s0 + $0x6a8] sm:$0xff] }
  0xd5   :  { %975 = vmatprep.mubr.f32.mxu0 %v165_v54  ;;  %v229_v54 = vld [vmem:[%s2878_s0 + $0x6b8] sm:$0xff] }
  0xd7   :  { %591 = vmatmul.mubr.f32.gmra.mrb[74].mxu1 %v162_v55  ;;  %v2488_v55 = vld [vmem:[%s2879_s2] ss:$0 sm:$0xff] }
  0xd8   :  { %976 = vmatmul.mubr.f32.gmra.mrb[74].mxu0 %v164_v56  ;;  %595 = vmatprep.mubr.f32.mxu1 %v167_v57  ;;  %v226_v56 = vld [vmem:[%s2878_s0 + $0x6a0] sm:$0xff]  ;;  %v228_v57 = vld [vmem:[%s2878_s0 + $0x6b0] sm:$0xff] }
  0xd9   :  { %980 = vmatprep.mubr.f32.mxu0 %v169_v58  ;;  %v231_v58 = vld [vmem:[%s2878_s0 + $0x6c8] sm:$0xff] }
  0xdb   :  { %596 = vmatmul.mubr.f32.gmra.mrb[76].mxu1 %v166_v59 }
  0xdc   :  { %981 = vmatmul.mubr.f32.gmra.mrb[76].mxu0 %v168_v60  ;;  %600 = vmatprep.mubr.f32.mxu1 %v171_v61  ;;  %v233_v60 = vld [vmem:[%s2878_s0 + $0x6d8] sm:$0xff] }
  0xdd   :  { %985 = vmatprep.mubr.f32.mxu0 %v173_v62 }
  0xdf   :  { %601 = vmatmul.mubr.f32.gmra.mrb[78].mxu1 %v170_v63 }
  0xe0   :  { %986 = vmatmul.mubr.f32.gmra.mrb[78].mxu0 %v172_v1  ;;  %605 = vmatprep.mubr.f32.mxu1 %v175_v2  ;;  %v230_v2 = vld [vmem:[%s2878_s0 + $0x6c0] sm:$0xff] }
  0xe1   :  { %990 = vmatprep.mubr.f32.mxu0 %v177_v3 }
  0xe3   :  { %606 = vmatmul.mubr.f32.gmra.mrb[80].mxu1 %v174_v4  ;;  %v232_v4 = vld [vmem:[%s2878_s0 + $0x6d0] sm:$0xff] }
  0xe4   :  { %991 = vmatmul.mubr.f32.gmra.mrb[80].mxu0 %v176_v5  ;;  %610 = vmatprep.mubr.f32.mxu1 %v179_v6  ;;  %v235_v5 = vld [vmem:[%s2878_s0 + $0x6e8] sm:$0xff] }
  0xe5   :  { %995 = vmatprep.mubr.f32.mxu0 %v181_v7  ;;  %v237_v7 = vld [vmem:[%s2878_s0 + $0x6f8] sm:$0xff] }
  0xe7   :  { %611 = vmatmul.mubr.f32.gmra.mrb[82].mxu1 %v178_v8 }
  0xe8   :  { %996 = vmatmul.mubr.f32.gmra.mrb[82].mxu0 %v180_v9  ;;  %615 = vmatprep.mubr.f32.mxu1 %v183_v10 }
  0xe9   :  { %1000 = vmatprep.mubr.f32.mxu0 %v185_v11 }
  0xeb   :  { %616 = vmatmul.mubr.f32.gmra.mrb[84].mxu1 %v182_v12 }
  0xec   :  { %1001 = vmatmul.mubr.f32.gmra.mrb[84].mxu0 %v184_v13  ;;  %620 = vmatprep.mubr.f32.mxu1 %v187_v14  ;;  %v234_v13 = vld [vmem:[%s2878_s0 + $0x6e0] sm:$0xff] }
  0xed   :  { %1005 = vmatprep.mubr.f32.mxu0 %v189_v15 }
  0xef   :  { %621 = vmatmul.mubr.f32.gmra.mrb[86].mxu1 %v186_v16  ;;  %v236_v16 = vld [vmem:[%s2878_s0 + $0x6f0] sm:$0xff] }
  0xf0   :  { %1006 = vmatmul.mubr.f32.gmra.mrb[86].mxu0 %v188_v17  ;;  %625 = vmatprep.mubr.f32.mxu1 %v191_v18  ;;  %v239_v17 = vld [vmem:[%s2878_s0 + $0x708] sm:$0xff] }
  0xf1   :  { %1010 = vmatprep.mubr.f32.mxu0 %v193_v19  ;;  %v241_v19 = vld [vmem:[%s2878_s0 + $0x718] sm:$0xff] }
  0xf3   :  { %626 = vmatmul.mubr.f32.gmra.mrb[88].mxu1 %v190_v20 }
  0xf4   :  { %1011 = vmatmul.mubr.f32.gmra.mrb[88].mxu0 %v192_v21  ;;  %630 = vmatprep.mubr.f32.mxu1 %v195_v22 }
  0xf5   :  { %1015 = vmatprep.mubr.f32.mxu0 %v197_v23 }
  0xf7   :  { %631 = vmatmul.mubr.f32.gmra.mrb[90].mxu1 %v194_v24 }
  0xf8   :  { %1016 = vmatmul.mubr.f32.gmra.mrb[90].mxu0 %v196_v25  ;;  %635 = vmatprep.mubr.f32.mxu1 %v199_v26  ;;  %v238_v25 = vld [vmem:[%s2878_s0 + $0x700] sm:$0xff] }
  0xf9   :  { %1020 = vmatprep.mubr.f32.mxu0 %v201_v27 }
  0xfb   :  { %636 = vmatmul.mubr.f32.gmra.mrb[92].mxu1 %v198_v28  ;;  %v240_v28 = vld [vmem:[%s2878_s0 + $0x710] sm:$0xff] }
  0xfc   :  { %1021 = vmatmul.mubr.f32.gmra.mrb[92].mxu0 %v200_v29  ;;  %640 = vmatprep.mubr.f32.mxu1 %v203_v30  ;;  %v243_v29 = vld [vmem:[%s2878_s0 + $0x728] sm:$0xff] }
  0xfd   :  { %1025 = vmatprep.mubr.f32.mxu0 %v205_v31  ;;  %v245_v31 = vld [vmem:[%s2878_s0 + $0x738] sm:$0xff] }
  0xff   :  { %641 = vmatmul.mubr.f32.gmra.mrb[94].mxu1 %v202_v32 }
 0x100   :  { %1026 = vmatmul.mubr.f32.gmra.mrb[94].mxu0 %v204_v33  ;;  %645 = vmatprep.mubr.f32.mxu1 %v207_v34 }
 0x101   :  { %1030 = vmatprep.mubr.f32.mxu0 %v209_v35 }
 0x103   :  { %646 = vmatmul.mubr.f32.gmra.mrb[96].mxu1 %v206_v36 }
 0x104   :  { %1031 = vmatmul.mubr.f32.gmra.mrb[96].mxu0 %v208_v37  ;;  %650 = vmatprep.mubr.f32.mxu1 %v211_v38  ;;  %v242_v37 = vld [vmem:[%s2878_s0 + $0x720] sm:$0xff] }
 0x105   :  { %1035 = vmatprep.mubr.f32.mxu0 %v213_v39 }
 0x107   :  { %651 = vmatmul.mubr.f32.gmra.mrb[98].mxu1 %v210_v0  ;;  %v244_v0 = vld [vmem:[%s2878_s0 + $0x730] sm:$0xff] }
 0x108   :  { %1036 = vmatmul.mubr.f32.gmra.mrb[98].mxu0 %v212_v40  ;;  %655 = vmatprep.mubr.f32.mxu1 %v215_v41  ;;  %v247_v40 = vld [vmem:[%s2878_s0 + $0x748] sm:$0xff] }
 0x109   :  { %1040 = vmatprep.mubr.f32.mxu0 %v217_v42  ;;  %v249_v42 = vld [vmem:[%s2878_s0 + $0x758] sm:$0xff] }
 0x10b   :  { %656 = vmatmul.mubr.f32.gmra.mrb[100].mxu1 %v214_v43 }
 0x10c   :  { %1041 = vmatmul.mubr.f32.gmra.mrb[100].mxu0 %v216_v44  ;;  %660 = vmatprep.mubr.f32.mxu1 %v219_v45 }
 0x10d   :  { %1045 = vmatprep.mubr.f32.mxu0 %v221_v46 }
 0x10f   :  { %661 = vmatmul.mubr.f32.gmra.mrb[102].mxu1 %v218_v47 }
 0x110   :  { %1046 = vmatmul.mubr.f32.gmra.mrb[102].mxu0 %v220_v48  ;;  %665 = vmatprep.mubr.f32.mxu1 %v223_v49  ;;  %v246_v48 = vld [vmem:[%s2878_s0 + $0x740] sm:$0xff] }
 0x111   :  { %1050 = vmatprep.mubr.f32.mxu0 %v225_v50 }
 0x113   :  { %666 = vmatmul.mubr.f32.gmra.mrb[104].mxu1 %v222_v51  ;;  %v248_v51 = vld [vmem:[%s2878_s0 + $0x750] sm:$0xff] }
 0x114   :  { %1051 = vmatmul.mubr.f32.gmra.mrb[104].mxu0 %v224_v52  ;;  %670 = vmatprep.mubr.f32.mxu1 %v227_v53  ;;  %v251_v52 = vld [vmem:[%s2878_s0 + $0x768] sm:$0xff] }
 0x115   :  { %1055 = vmatprep.mubr.f32.mxu0 %v229_v54  ;;  %v253_v54 = vld [vmem:[%s2878_s0 + $0x778] sm:$0xff] }
 0x116   :  { %v407_v59 = vpop.f32.mrb[0].mxu1 }
 0x117   :  { %v408_v61 = vadd.f32 %v2488_v55, %v407_v59  ;;  %v409_v62 = vpop.f32.mrb[1].mxu1  ;;  %671 = vmatmul.mubr.f32.gmra.mrb[106].mxu1 %v226_v56  ;;  %v792_v63 = vpop.f32.mrb[0].mxu0 }
 0x118   :  { %v794_v1 = vpop.f32.mrb[1].mxu0  ;;  %1056 = vmatmul.mubr.f32.gmra.mrb[106].mxu0 %v228_v57  ;;  %675 = vmatprep.mubr.f32.mxu1 %v231_v58 }
 0x119   :  { %v793_v3 = vadd.f32 %v792_v63, %v408_v61  ;;  %1060 = vmatprep.mubr.f32.mxu0 %v233_v60  ;;  %v250_v61 = vld [vmem:[%s2878_s0 + $0x760] sm:$0xff]  ;;  %v252_v1 = vld [vmem:[%s2878_s0 + $0x770] sm:$0xff] }
 0x11a   :  { %v412_v6 = vpop.f32.mrb[2].mxu1 }
 0x11b   :  { %vm1111_vm0 = vcmp.ge.f32.partialorder %v793_v3, 0.0  ;;  %v1175_v8 = vmul.f32 0.2, %v793_v3  ;;  %v413_v9 = vadd.f32 %v2488_v55, %v412_v6  ;;  %v414_v10 = vpop.f32.mrb[3].mxu1  ;;  %676 = vmatmul.mubr.f32.gmra.mrb[108].mxu1 %v230_v2  ;;  %v797_v11 = vpop.f32.mrb[2].mxu0  ;;  %v255_v2 = vld [vmem:[%s2878_s0 + $0x788] sm:$0xff] }
 0x11c   :  { %v799_v12 = vpop.f32.mrb[3].mxu0  ;;  %1061 = vmatmul.mubr.f32.gmra.mrb[108].mxu0 %v232_v4  ;;  %680 = vmatprep.mubr.f32.mxu1 %v235_v5  ;;  %v257_v4 = vld [vmem:[%s2878_s0 + $0x798] sm:$0xff]  ;;  %v254_v10 = vld [vmem:[%s2878_s0 + $0x780] sm:$0xff] }
 0x11d   :  { %v1239_v14 = vsel %vm1111_vm0, %v793_v3, %v1175_v8  ;;  %v798_v15 = vadd.f32 %v797_v11, %v413_v9  ;;  %1065 = vmatprep.mubr.f32.mxu0 %v237_v7 }
 0x11e   :  { %1303 = vst [vmem:[%s2880_s3] sm:$0xff] %v1239_v14  ;;  %v417_v18 = vpop.f32.mrb[4].mxu1  ;;  %v259_v14 = vld [vmem:[%s2878_s0 + $0x7a8] sm:$0xff] }
 0x11f   :  { %vm1112_vm1 = vcmp.ge.f32.partialorder %v798_v15, 0.0  ;;  %v1176_v20 = vmul.f32 0.2, %v798_v15  ;;  %v418_v21 = vadd.f32 %v2488_v55, %v417_v18  ;;  %v419_v22 = vpop.f32.mrb[5].mxu1  ;;  %681 = vmatmul.mubr.f32.gmra.mrb[110].mxu1 %v234_v13  ;;  %v802_v23 = vpop.f32.mrb[4].mxu0  ;;  %v256_v13 = vld [vmem:[%s2878_s0 + $0x790] sm:$0xff] }
 0x120   :  { %v804_v24 = vpop.f32.mrb[5].mxu0  ;;  %1066 = vmatmul.mubr.f32.gmra.mrb[110].mxu0 %v236_v16  ;;  %685 = vmatprep.mubr.f32.mxu1 %v239_v17  ;;  %v261_v16 = vld [vmem:[%s2878_s0 + $0x7b8] sm:$0xff]  ;;  %v258_v22 = vld [vmem:[%s2878_s0 + $0x7a0] sm:$0xff] }
 0x121   :  { %v1240_v26 = vsel %vm1112_vm1, %v798_v15, %v1176_v20  ;;  %v803_v27 = vadd.f32 %v802_v23, %v418_v21  ;;  %1070 = vmatprep.mubr.f32.mxu0 %v241_v19 }
 0x122   :  { %1304 = vst [vmem:[%s2880_s3 + $0x8] sm:$0xff] %v1240_v26  ;;  %v422_v30 = vpop.f32.mrb[6].mxu1  ;;  %v263_v26 = vld [vmem:[%s2878_s0 + $0x7c8] sm:$0xff] }
 0x123   :  { %vm1113_vm2 = vcmp.ge.f32.partialorder %v803_v27, 0.0  ;;  %v1177_v32 = vmul.f32 0.2, %v803_v27  ;;  %v423_v33 = vadd.f32 %v2488_v55, %v422_v30  ;;  %v424_v34 = vpop.f32.mrb[7].mxu1  ;;  %686 = vmatmul.mubr.f32.gmra.mrb[112].mxu1 %v238_v25  ;;  %v807_v35 = vpop.f32.mrb[6].mxu0  ;;  %v260_v25 = vld [vmem:[%s2878_s0 + $0x7b0] sm:$0xff] }
 0x124   :  { %v809_v36 = vpop.f32.mrb[7].mxu0  ;;  %1071 = vmatmul.mubr.f32.gmra.mrb[112].mxu0 %v240_v28  ;;  %690 = vmatprep.mubr.f32.mxu1 %v243_v29  ;;  %v265_v28 = vld [vmem:[%s2878_s0 + $0x7d8] sm:$0xff]  ;;  %v262_v34 = vld [vmem:[%s2878_s0 + $0x7c0] sm:$0xff] }
 0x125   :  { %v1241_v38 = vsel %vm1113_vm2, %v803_v27, %v1177_v32  ;;  %v808_v39 = vadd.f32 %v807_v35, %v423_v33  ;;  %1075 = vmatprep.mubr.f32.mxu0 %v245_v31 }
 0x126   :  { %1305 = vst [vmem:[%s2880_s3 + $0x10] sm:$0xff] %v1241_v38  ;;  %v427_v41 = vpop.f32.mrb[8].mxu1  ;;  %v267_v38 = vld [vmem:[%s2878_s0 + $0x7e8] sm:$0xff] }
 0x127   :  { %vm1114_vm3 = vcmp.ge.f32.partialorder %v808_v39, 0.0  ;;  %v1178_v43 = vmul.f32 0.2, %v808_v39  ;;  %v428_v44 = vadd.f32 %v2488_v55, %v427_v41  ;;  %v429_v45 = vpop.f32.mrb[9].mxu1  ;;  %691 = vmatmul.mubr.f32.gmra.mrb[114].mxu1 %v242_v37  ;;  %v812_v46 = vpop.f32.mrb[8].mxu0  ;;  %v264_v37 = vld [vmem:[%s2878_s0 + $0x7d0] sm:$0xff] }
 0x128   :  { %v814_v47 = vpop.f32.mrb[9].mxu0  ;;  %1076 = vmatmul.mubr.f32.gmra.mrb[114].mxu0 %v244_v0  ;;  %695 = vmatprep.mubr.f32.mxu1 %v247_v40  ;;  %v269_v0 = vld [vmem:[%s2878_s0 + $0x7f8] sm:$0xff]  ;;  %v266_v45 = vld [vmem:[%s2878_s0 + $0x7e0] sm:$0xff] }
 0x129   :  { %v1242_v49 = vsel %vm1114_vm3, %v808_v39, %v1178_v43  ;;  %v813_v50 = vadd.f32 %v812_v46, %v428_v44  ;;  %1080 = vmatprep.mubr.f32.mxu0 %v249_v42 }
 0x12a   :  { %1306 = vst [vmem:[%s2880_s3 + $0x18] sm:$0xff] %v1242_v49  ;;  %v432_v53 = vpop.f32.mrb[10].mxu1 }
 0x12b   :  { %vm1115_vm4 = vcmp.ge.f32.partialorder %v813_v50, 0.0  ;;  %v1179_v56 = vmul.f32 0.2, %v813_v50  ;;  %v433_v57 = vadd.f32 %v2488_v55, %v432_v53  ;;  %v434_v58 = vpop.f32.mrb[11].mxu1  ;;  %696 = vmatmul.mubr.f32.gmra.mrb[116].mxu1 %v246_v48  ;;  %v817_v59 = vpop.f32.mrb[10].mxu0  ;;  %v268_v48 = vld [vmem:[%s2878_s0 + $0x7f0] sm:$0xff] }
 0x12c   :  { %v819_v60 = vpop.f32.mrb[11].mxu0  ;;  %1081 = vmatmul.mubr.f32.gmra.mrb[116].mxu0 %v248_v51  ;;  %700 = vmatprep.mubr.f32.mxu1 %v251_v52 }
 0x12d   :  { %v1243_v62 = vsel %vm1115_vm4, %v813_v50, %v1179_v56  ;;  %v818_v63 = vadd.f32 %v817_v59, %v433_v57  ;;  %1085 = vmatprep.mubr.f32.mxu0 %v253_v54 }
 0x12e   :  { %1307 = vst [vmem:[%s2880_s3 + $0x20] sm:$0xff] %v1243_v62  ;;  %v437_v3 = vpop.f32.mrb[12].mxu1 }
 0x12f   :  { %vm1116_vm5 = vcmp.ge.f32.partialorder %v818_v63, 0.0  ;;  %v1180_v5 = vmul.f32 0.2, %v818_v63  ;;  %v438_v6 = vadd.f32 %v2488_v55, %v437_v3  ;;  %v439_v7 = vpop.f32.mrb[13].mxu1  ;;  %701 = vmatmul.mubr.f32.gmra.mrb[118].mxu1 %v250_v61  ;;  %v822_v8 = vpop.f32.mrb[12].mxu0 }
 0x130   :  { %v824_v9 = vpop.f32.mrb[13].mxu0  ;;  %1086 = vmatmul.mubr.f32.gmra.mrb[118].mxu0 %v252_v1  ;;  %705 = vmatprep.mubr.f32.mxu1 %v255_v2 }
 0x131   :  { %v1244_v11 = vsel %vm1116_vm5, %v818_v63, %v1180_v5  ;;  %v823_v12 = vadd.f32 %v822_v8, %v438_v6  ;;  %1090 = vmatprep.mubr.f32.mxu0 %v257_v4 }
 0x132   :  { %1308 = vst [vmem:[%s2880_s3 + $0x28] sm:$0xff] %v1244_v11  ;;  %v442_v15 = vpop.f32.mrb[14].mxu1 }
 0x133   :  { %vm1117_vm6 = vcmp.ge.f32.partialorder %v823_v12, 0.0  ;;  %v1181_v17 = vmul.f32 0.2, %v823_v12  ;;  %v443_v18 = vadd.f32 %v2488_v55, %v442_v15  ;;  %v444_v19 = vpop.f32.mrb[15].mxu1  ;;  %706 = vmatmul.mubr.f32.gmra.mrb[120].mxu1 %v254_v10  ;;  %v827_v20 = vpop.f32.mrb[14].mxu0 }
 0x134   :  { %v829_v21 = vpop.f32.mrb[15].mxu0  ;;  %1091 = vmatmul.mubr.f32.gmra.mrb[120].mxu0 %v256_v13  ;;  %710 = vmatprep.mubr.f32.mxu1 %v259_v14 }
 0x135   :  { %v1245_v23 = vsel %vm1117_vm6, %v823_v12, %v1181_v17  ;;  %v828_v24 = vadd.f32 %v827_v20, %v443_v18  ;;  %1095 = vmatprep.mubr.f32.mxu0 %v261_v16 }
 0x136   :  { %1309 = vst [vmem:[%s2880_s3 + $0x30] sm:$0xff] %v1245_v23  ;;  %v447_v27 = vpop.f32.mrb[16].mxu1 }
 0x137   :  { %vm1118_vm7 = vcmp.ge.f32.partialorder %v828_v24, 0.0  ;;  %v1182_v29 = vmul.f32 0.2, %v828_v24  ;;  %v448_v30 = vadd.f32 %v2488_v55, %v447_v27  ;;  %v449_v31 = vpop.f32.mrb[17].mxu1  ;;  %711 = vmatmul.mubr.f32.gmra.mrb[122].mxu1 %v258_v22  ;;  %v832_v32 = vpop.f32.mrb[16].mxu0 }
 0x138   :  { %v834_v33 = vpop.f32.mrb[17].mxu0  ;;  %1096 = vmatmul.mubr.f32.gmra.mrb[122].mxu0 %v260_v25  ;;  %715 = vmatprep.mubr.f32.mxu1 %v263_v26 }
 0x139   :  { %v1246_v35 = vsel %vm1118_vm7, %v828_v24, %v1182_v29  ;;  %v833_v36 = vadd.f32 %v832_v32, %v448_v30  ;;  %1100 = vmatprep.mubr.f32.mxu0 %v265_v28 }
 0x13a   :  { %1310 = vst [vmem:[%s2880_s3 + $0x38] sm:$0xff] %v1246_v35  ;;  %v452_v39 = vpop.f32.mrb[18].mxu1 }
 0x13b   :  { %vm1119_vm8 = vcmp.ge.f32.partialorder %v833_v36, 0.0  ;;  %v1183_v40 = vmul.f32 0.2, %v833_v36  ;;  %v453_v41 = vadd.f32 %v2488_v55, %v452_v39  ;;  %v454_v42 = vpop.f32.mrb[19].mxu1  ;;  %716 = vmatmul.mubr.f32.gmra.mrb[124].mxu1 %v262_v34  ;;  %v837_v43 = vpop.f32.mrb[18].mxu0 }
 0x13c   :  { %v839_v44 = vpop.f32.mrb[19].mxu0  ;;  %1101 = vmatmul.mubr.f32.gmra.mrb[124].mxu0 %v264_v37  ;;  %720 = vmatprep.mubr.f32.mxu1 %v267_v38 }
 0x13d   :  { %v1247_v46 = vsel %vm1119_vm8, %v833_v36, %v1183_v40  ;;  %v838_v47 = vadd.f32 %v837_v43, %v453_v41  ;;  %1105 = vmatprep.mubr.f32.mxu0 %v269_v0 }
 0x13e   :  { %1311 = vst [vmem:[%s2880_s3 + $0x40] sm:$0xff] %v1247_v46  ;;  %v457_v49 = vpop.f32.mrb[20].mxu1 }
 0x13f   :  { %vm1120_vm9 = vcmp.ge.f32.partialorder %v838_v47, 0.0  ;;  %v1184_v50 = vmul.f32 0.2, %v838_v47  ;;  %v458_v51 = vadd.f32 %v2488_v55, %v457_v49  ;;  %v459_v52 = vpop.f32.mrb[21].mxu1  ;;  %721 = vmatmul.mubr.f32.gmra.mrb[126].mxu1 %v266_v45  ;;  %v842_v53 = vpop.f32.mrb[20].mxu0 }
 0x140   :  { %v844_v54 = vpop.f32.mrb[21].mxu0  ;;  %1106 = vmatmul.mubr.f32.gmra.mrb[126].mxu0 %v268_v48 }
 0x141   :  { %v1248_v56 = vsel %vm1120_vm9, %v838_v47, %v1184_v50  ;;  %v843_v57 = vadd.f32 %v842_v53, %v458_v51 }
 0x142   :  { %1312 = vst [vmem:[%s2880_s3 + $0x48] sm:$0xff] %v1248_v56  ;;  %v462_v58 = vpop.f32.mrb[22].mxu1 }
 0x143   :  { %vm1121_vm10 = vcmp.ge.f32.partialorder %v843_v57, 0.0  ;;  %v1185_v59 = vmul.f32 0.2, %v843_v57  ;;  %v463_v60 = vadd.f32 %v2488_v55, %v462_v58  ;;  %v464_v61 = vpop.f32.mrb[23].mxu1  ;;  %v847_v62 = vpop.f32.mrb[22].mxu0 }
 0x144   :  { %v849_v63 = vpop.f32.mrb[23].mxu0 }
 0x145   :  { %v1249_v1 = vsel %vm1121_vm10, %v843_v57, %v1185_v59  ;;  %v848_v2 = vadd.f32 %v847_v62, %v463_v60 }
 0x146   :  { %1313 = vst [vmem:[%s2880_s3 + $0x50] sm:$0xff] %v1249_v1  ;;  %v467_v3 = vpop.f32.mrb[24].mxu1 }
 0x147   :  { %vm1122_vm11 = vcmp.ge.f32.partialorder %v848_v2, 0.0  ;;  %v1186_v4 = vmul.f32 0.2, %v848_v2  ;;  %v468_v5 = vadd.f32 %v2488_v55, %v467_v3  ;;  %v469_v6 = vpop.f32.mrb[25].mxu1  ;;  %v852_v7 = vpop.f32.mrb[24].mxu0 }
 0x148   :  { %v854_v8 = vpop.f32.mrb[25].mxu0 }
 0x149   :  { %v1250_v9 = vsel %vm1122_vm11, %v848_v2, %v1186_v4  ;;  %v853_v10 = vadd.f32 %v852_v7, %v468_v5 }
 0x14a   :  { %1314 = vst [vmem:[%s2880_s3 + $0x58] sm:$0xff] %v1250_v9  ;;  %v472_v11 = vpop.f32.mrb[26].mxu1 }
 0x14b   :  { %vm1123_vm12 = vcmp.ge.f32.partialorder %v853_v10, 0.0  ;;  %v1187_v12 = vmul.f32 0.2, %v853_v10  ;;  %v473_v13 = vadd.f32 %v2488_v55, %v472_v11  ;;  %v474_v14 = vpop.f32.mrb[27].mxu1  ;;  %v857_v15 = vpop.f32.mrb[26].mxu0 }
 0x14c   :  { %v859_v16 = vpop.f32.mrb[27].mxu0 }
 0x14d   :  { %v1251_v17 = vsel %vm1123_vm12, %v853_v10, %v1187_v12  ;;  %v858_v18 = vadd.f32 %v857_v15, %v473_v13 }
 0x14e   :  { %1315 = vst [vmem:[%s2880_s3 + $0x60] sm:$0xff] %v1251_v17  ;;  %v477_v19 = vpop.f32.mrb[28].mxu1 }
 0x14f   :  { %vm1124_vm13 = vcmp.ge.f32.partialorder %v858_v18, 0.0  ;;  %v1188_v20 = vmul.f32 0.2, %v858_v18  ;;  %v478_v21 = vadd.f32 %v2488_v55, %v477_v19  ;;  %v479_v22 = vpop.f32.mrb[29].mxu1  ;;  %v862_v23 = vpop.f32.mrb[28].mxu0 }
 0x150   :  { %v864_v24 = vpop.f32.mrb[29].mxu0 }
 0x151   :  { %v1252_v25 = vsel %vm1124_vm13, %v858_v18, %v1188_v20  ;;  %v863_v26 = vadd.f32 %v862_v23, %v478_v21 }
 0x152   :  { %1316 = vst [vmem:[%s2880_s3 + $0x68] sm:$0xff] %v1252_v25  ;;  %v482_v27 = vpop.f32.mrb[30].mxu1 }
 0x153   :  { %vm1125_vm14 = vcmp.ge.f32.partialorder %v863_v26, 0.0  ;;  %v1189_v28 = vmul.f32 0.2, %v863_v26  ;;  %v483_v29 = vadd.f32 %v2488_v55, %v482_v27  ;;  %v484_v30 = vpop.f32.mrb[31].mxu1  ;;  %v867_v31 = vpop.f32.mrb[30].mxu0 }
 0x154   :  { %v869_v32 = vpop.f32.mrb[31].mxu0 }
 0x155   :  { %v1253_v33 = vsel %vm1125_vm14, %v863_v26, %v1189_v28  ;;  %v868_v34 = vadd.f32 %v867_v31, %v483_v29 }
 0x156   :  { %1317 = vst [vmem:[%s2880_s3 + $0x70] sm:$0xff] %v1253_v33  ;;  %v487_v35 = vpop.f32.mrb[32].mxu1 }
 0x157   :  { %vm1126_vm15 = vcmp.ge.f32.partialorder %v868_v34, 0.0  ;;  %v1190_v36 = vmul.f32 0.2, %v868_v34  ;;  %v488_v37 = vadd.f32 %v2488_v55, %v487_v35  ;;  %v489_v38 = vpop.f32.mrb[33].mxu1  ;;  %v872_v39 = vpop.f32.mrb[32].mxu0 }
 0x158   :  { %v874_v0 = vpop.f32.mrb[33].mxu0 }
 0x159   :  { %v1254_v40 = vsel %vm1126_vm15, %v868_v34, %v1190_v36  ;;  %v873_v41 = vadd.f32 %v872_v39, %v488_v37 }
 0x15a   :  { %1318 = vst [vmem:[%s2880_s3 + $0x78] sm:$0xff] %v1254_v40  ;;  %v492_v42 = vpop.f32.mrb[34].mxu1 }
 0x15b   :  { %vm1127_vm0 = vcmp.ge.f32.partialorder %v873_v41, 0.0  ;;  %v1191_v43 = vmul.f32 0.2, %v873_v41  ;;  %v493_v44 = vadd.f32 %v2488_v55, %v492_v42  ;;  %v494_v45 = vpop.f32.mrb[35].mxu1  ;;  %v877_v46 = vpop.f32.mrb[34].mxu0 }
 0x15c   :  { %v879_v47 = vpop.f32.mrb[35].mxu0 }
 0x15d   :  { %v1255_v48 = vsel %vm1127_vm0, %v873_v41, %v1191_v43  ;;  %v878_v49 = vadd.f32 %v877_v46, %v493_v44 }
 0x15e   :  { %1319 = vst [vmem:[%s2880_s3 + $0x80] sm:$0xff] %v1255_v48  ;;  %v497_v50 = vpop.f32.mrb[36].mxu1 }
 0x15f   :  { %vm1128_vm1 = vcmp.ge.f32.partialorder %v878_v49, 0.0  ;;  %v1192_v51 = vmul.f32 0.2, %v878_v49  ;;  %v498_v52 = vadd.f32 %v2488_v55, %v497_v50  ;;  %v499_v53 = vpop.f32.mrb[37].mxu1  ;;  %v882_v54 = vpop.f32.mrb[36].mxu0 }
 0x160   :  { %v884_v56 = vpop.f32.mrb[37].mxu0 }
 0x161   :  { %v1256_v57 = vsel %vm1128_vm1, %v878_v49, %v1192_v51  ;;  %v883_v58 = vadd.f32 %v882_v54, %v498_v52 }
 0x162   :  { %1320 = vst [vmem:[%s2880_s3 + $0x88] sm:$0xff] %v1256_v57  ;;  %v502_v59 = vpop.f32.mrb[38].mxu1 }
 0x163   :  { %vm1129_vm2 = vcmp.ge.f32.partialorder %v883_v58, 0.0  ;;  %v1193_v60 = vmul.f32 0.2, %v883_v58  ;;  %v503_v61 = vadd.f32 %v2488_v55, %v502_v59  ;;  %v504_v62 = vpop.f32.mrb[39].mxu1  ;;  %v887_v63 = vpop.f32.mrb[38].mxu0 }
 0x164   :  { %v889_v1 = vpop.f32.mrb[39].mxu0 }
 0x165   :  { %v1257_v2 = vsel %vm1129_vm2, %v883_v58, %v1193_v60  ;;  %v888_v3 = vadd.f32 %v887_v63, %v503_v61 }
 0x166   :  { %1321 = vst [vmem:[%s2880_s3 + $0x90] sm:$0xff] %v1257_v2  ;;  %v507_v4 = vpop.f32.mrb[40].mxu1 }
 0x167   :  { %vm1130_vm3 = vcmp.ge.f32.partialorder %v888_v3, 0.0  ;;  %v1194_v5 = vmul.f32 0.2, %v888_v3  ;;  %v508_v6 = vadd.f32 %v2488_v55, %v507_v4  ;;  %v509_v7 = vpop.f32.mrb[41].mxu1  ;;  %v892_v8 = vpop.f32.mrb[40].mxu0 }
 0x168   :  { %v894_v9 = vpop.f32.mrb[41].mxu0 }
 0x169   :  { %v1258_v10 = vsel %vm1130_vm3, %v888_v3, %v1194_v5  ;;  %v893_v11 = vadd.f32 %v892_v8, %v508_v6 }
 0x16a   :  { %1322 = vst [vmem:[%s2880_s3 + $0x98] sm:$0xff] %v1258_v10  ;;  %v512_v12 = vpop.f32.mrb[42].mxu1 }
 0x16b   :  { %vm1131_vm4 = vcmp.ge.f32.partialorder %v893_v11, 0.0  ;;  %v1195_v13 = vmul.f32 0.2, %v893_v11  ;;  %v513_v14 = vadd.f32 %v2488_v55, %v512_v12  ;;  %v514_v15 = vpop.f32.mrb[43].mxu1  ;;  %v897_v16 = vpop.f32.mrb[42].mxu0 }
 0x16c   :  { %v899_v17 = vpop.f32.mrb[43].mxu0 }
 0x16d   :  { %v1259_v18 = vsel %vm1131_vm4, %v893_v11, %v1195_v13  ;;  %v898_v19 = vadd.f32 %v897_v16, %v513_v14 }
 0x16e   :  { %1323 = vst [vmem:[%s2880_s3 + $0xa0] sm:$0xff] %v1259_v18  ;;  %v517_v20 = vpop.f32.mrb[44].mxu1 }
 0x16f   :  { %vm1132_vm5 = vcmp.ge.f32.partialorder %v898_v19, 0.0  ;;  %v1196_v21 = vmul.f32 0.2, %v898_v19  ;;  %v518_v22 = vadd.f32 %v2488_v55, %v517_v20  ;;  %v519_v23 = vpop.f32.mrb[45].mxu1  ;;  %v902_v24 = vpop.f32.mrb[44].mxu0 }
 0x170   :  { %v904_v25 = vpop.f32.mrb[45].mxu0 }
 0x171   :  { %v1260_v26 = vsel %vm1132_vm5, %v898_v19, %v1196_v21  ;;  %v903_v27 = vadd.f32 %v902_v24, %v518_v22 }
 0x172   :  { %1324 = vst [vmem:[%s2880_s3 + $0xa8] sm:$0xff] %v1260_v26  ;;  %v522_v28 = vpop.f32.mrb[46].mxu1 }
 0x173   :  { %vm1133_vm6 = vcmp.ge.f32.partialorder %v903_v27, 0.0  ;;  %v1197_v29 = vmul.f32 0.2, %v903_v27  ;;  %v523_v30 = vadd.f32 %v2488_v55, %v522_v28  ;;  %v524_v31 = vpop.f32.mrb[47].mxu1  ;;  %v907_v32 = vpop.f32.mrb[46].mxu0 }
 0x174   :  { %v909_v33 = vpop.f32.mrb[47].mxu0 }
 0x175   :  { %v1261_v34 = vsel %vm1133_vm6, %v903_v27, %v1197_v29  ;;  %v908_v35 = vadd.f32 %v907_v32, %v523_v30 }
 0x176   :  { %1325 = vst [vmem:[%s2880_s3 + $0xb0] sm:$0xff] %v1261_v34  ;;  %v527_v36 = vpop.f32.mrb[48].mxu1 }
 0x177   :  { %vm1134_vm7 = vcmp.ge.f32.partialorder %v908_v35, 0.0  ;;  %v1198_v37 = vmul.f32 0.2, %v908_v35  ;;  %v528_v38 = vadd.f32 %v2488_v55, %v527_v36  ;;  %v529_v39 = vpop.f32.mrb[49].mxu1  ;;  %v912_v0 = vpop.f32.mrb[48].mxu0 }
 0x178   :  { %v914_v40 = vpop.f32.mrb[49].mxu0 }
 0x179   :  { %v1262_v41 = vsel %vm1134_vm7, %v908_v35, %v1198_v37  ;;  %v913_v42 = vadd.f32 %v912_v0, %v528_v38 }
 0x17a   :  { %1326 = vst [vmem:[%s2880_s3 + $0xb8] sm:$0xff] %v1262_v41  ;;  %v532_v43 = vpop.f32.mrb[50].mxu1 }
 0x17b   :  { %vm1135_vm8 = vcmp.ge.f32.partialorder %v913_v42, 0.0  ;;  %v1199_v44 = vmul.f32 0.2, %v913_v42  ;;  %v533_v45 = vadd.f32 %v2488_v55, %v532_v43  ;;  %v534_v46 = vpop.f32.mrb[51].mxu1  ;;  %v917_v47 = vpop.f32.mrb[50].mxu0 }
 0x17c   :  { %v919_v48 = vpop.f32.mrb[51].mxu0 }
 0x17d   :  { %v1263_v49 = vsel %vm1135_vm8, %v913_v42, %v1199_v44  ;;  %v918_v50 = vadd.f32 %v917_v47, %v533_v45 }
 0x17e   :  { %1327 = vst [vmem:[%s2880_s3 + $0xc0] sm:$0xff] %v1263_v49  ;;  %v537_v51 = vpop.f32.mrb[52].mxu1 }
 0x17f   :  { %vm1136_vm9 = vcmp.ge.f32.partialorder %v918_v50, 0.0  ;;  %v1200_v52 = vmul.f32 0.2, %v918_v50  ;;  %v538_v53 = vadd.f32 %v2488_v55, %v537_v51  ;;  %v539_v54 = vpop.f32.mrb[53].mxu1  ;;  %v922_v56 = vpop.f32.mrb[52].mxu0 }
 0x180   :  { %v924_v57 = vpop.f32.mrb[53].mxu0 }
 0x181   :  { %v1264_v58 = vsel %vm1136_vm9, %v918_v50, %v1200_v52  ;;  %v923_v59 = vadd.f32 %v922_v56, %v538_v53 }
 0x182   :  { %1328 = vst [vmem:[%s2880_s3 + $0xc8] sm:$0xff] %v1264_v58  ;;  %v542_v60 = vpop.f32.mrb[54].mxu1 }
 0x183   :  { %vm1137_vm10 = vcmp.ge.f32.partialorder %v923_v59, 0.0  ;;  %v1201_v61 = vmul.f32 0.2, %v923_v59  ;;  %v543_v62 = vadd.f32 %v2488_v55, %v542_v60  ;;  %v544_v63 = vpop.f32.mrb[55].mxu1  ;;  %v927_v1 = vpop.f32.mrb[54].mxu0 }
 0x184   :  { %v929_v2 = vpop.f32.mrb[55].mxu0 }
 0x185   :  { %v1265_v3 = vsel %vm1137_vm10, %v923_v59, %v1201_v61  ;;  %v928_v4 = vadd.f32 %v927_v1, %v543_v62 }
 0x186   :  { %1329 = vst [vmem:[%s2880_s3 + $0xd0] sm:$0xff] %v1265_v3  ;;  %v547_v5 = vpop.f32.mrb[56].mxu1 }
 0x187   :  { %vm1138_vm11 = vcmp.ge.f32.partialorder %v928_v4, 0.0  ;;  %v1202_v6 = vmul.f32 0.2, %v928_v4  ;;  %v548_v7 = vadd.f32 %v2488_v55, %v547_v5  ;;  %v549_v8 = vpop.f32.mrb[57].mxu1  ;;  %v932_v9 = vpop.f32.mrb[56].mxu0 }
 0x188   :  { %v934_v10 = vpop.f32.mrb[57].mxu0 }
 0x189   :  { %v1266_v11 = vsel %vm1138_vm11, %v928_v4, %v1202_v6  ;;  %v933_v12 = vadd.f32 %v932_v9, %v548_v7 }
 0x18a   :  { %1330 = vst [vmem:[%s2880_s3 + $0xd8] sm:$0xff] %v1266_v11  ;;  %v552_v13 = vpop.f32.mrb[58].mxu1 }
 0x18b   :  { %vm1139_vm12 = vcmp.ge.f32.partialorder %v933_v12, 0.0  ;;  %v1203_v14 = vmul.f32 0.2, %v933_v12  ;;  %v553_v15 = vadd.f32 %v2488_v55, %v552_v13  ;;  %v554_v16 = vpop.f32.mrb[59].mxu1  ;;  %v937_v17 = vpop.f32.mrb[58].mxu0 }
 0x18c   :  { %v939_v18 = vpop.f32.mrb[59].mxu0 }
 0x18d   :  { %v1267_v19 = vsel %vm1139_vm12, %v933_v12, %v1203_v14  ;;  %v938_v20 = vadd.f32 %v937_v17, %v553_v15 }
 0x18e   :  { %1331 = vst [vmem:[%s2880_s3 + $0xe0] sm:$0xff] %v1267_v19  ;;  %v557_v21 = vpop.f32.mrb[60].mxu1 }
 0x18f   :  { %vm1140_vm13 = vcmp.ge.f32.partialorder %v938_v20, 0.0  ;;  %v1204_v22 = vmul.f32 0.2, %v938_v20  ;;  %v558_v23 = vadd.f32 %v2488_v55, %v557_v21  ;;  %v559_v24 = vpop.f32.mrb[61].mxu1  ;;  %v942_v25 = vpop.f32.mrb[60].mxu0 }
 0x190   :  { %v944_v26 = vpop.f32.mrb[61].mxu0 }
 0x191   :  { %v1268_v27 = vsel %vm1140_vm13, %v938_v20, %v1204_v22  ;;  %v943_v28 = vadd.f32 %v942_v25, %v558_v23 }
 0x192   :  { %1332 = vst [vmem:[%s2880_s3 + $0xe8] sm:$0xff] %v1268_v27  ;;  %v562_v29 = vpop.f32.mrb[62].mxu1 }
 0x193   :  { %vm1141_vm14 = vcmp.ge.f32.partialorder %v943_v28, 0.0  ;;  %v1205_v30 = vmul.f32 0.2, %v943_v28  ;;  %v563_v31 = vadd.f32 %v2488_v55, %v562_v29  ;;  %v564_v32 = vpop.f32.mrb[63].mxu1  ;;  %v947_v33 = vpop.f32.mrb[62].mxu0 }
 0x194   :  { %v949_v34 = vpop.f32.mrb[63].mxu0 }
 0x195   :  { %v1269_v35 = vsel %vm1141_vm14, %v943_v28, %v1205_v30  ;;  %v948_v36 = vadd.f32 %v947_v33, %v563_v31 }
 0x196   :  { %1333 = vst [vmem:[%s2880_s3 + $0xf0] sm:$0xff] %v1269_v35  ;;  %v567_v37 = vpop.f32.mrb[64].mxu1 }
 0x197   :  { %vm1142_vm15 = vcmp.ge.f32.partialorder %v948_v36, 0.0  ;;  %v1206_v38 = vmul.f32 0.2, %v948_v36  ;;  %v568_v39 = vadd.f32 %v2488_v55, %v567_v37  ;;  %v569_v0 = vpop.f32.mrb[65].mxu1  ;;  %v952_v40 = vpop.f32.mrb[64].mxu0 }
 0x198   :  { %v954_v41 = vpop.f32.mrb[65].mxu0 }
 0x199   :  { %v1270_v42 = vsel %vm1142_vm15, %v948_v36, %v1206_v38  ;;  %v953_v43 = vadd.f32 %v952_v40, %v568_v39 }
 0x19a   :  { %1334 = vst [vmem:[%s2880_s3 + $0xf8] sm:$0xff] %v1270_v42  ;;  %v572_v44 = vpop.f32.mrb[66].mxu1 }
 0x19b   :  { %vm1143_vm0 = vcmp.ge.f32.partialorder %v953_v43, 0.0  ;;  %v1207_v45 = vmul.f32 0.2, %v953_v43  ;;  %v573_v46 = vadd.f32 %v2488_v55, %v572_v44  ;;  %v574_v47 = vpop.f32.mrb[67].mxu1  ;;  %v957_v48 = vpop.f32.mrb[66].mxu0 }
 0x19c   :  { %v959_v49 = vpop.f32.mrb[67].mxu0 }
 0x19d   :  { %v1271_v50 = vsel %vm1143_vm0, %v953_v43, %v1207_v45  ;;  %v958_v51 = vadd.f32 %v957_v48, %v573_v46 }
 0x19e   :  { %1335 = vst [vmem:[%s2880_s3 + $0x100] sm:$0xff] %v1271_v50  ;;  %v577_v52 = vpop.f32.mrb[68].mxu1 }
 0x19f   :  { %vm1144_vm1 = vcmp.ge.f32.partialorder %v958_v51, 0.0  ;;  %v1208_v53 = vmul.f32 0.2, %v958_v51  ;;  %v578_v54 = vadd.f32 %v2488_v55, %v577_v52  ;;  %v579_v56 = vpop.f32.mrb[69].mxu1  ;;  %v962_v57 = vpop.f32.mrb[68].mxu0 }
 0x1a0   :  { %v964_v58 = vpop.f32.mrb[69].mxu0 }
 0x1a1   :  { %v1272_v59 = vsel %vm1144_vm1, %v958_v51, %v1208_v53  ;;  %v963_v60 = vadd.f32 %v962_v57, %v578_v54 }
 0x1a2   :  { %1336 = vst [vmem:[%s2880_s3 + $0x108] sm:$0xff] %v1272_v59  ;;  %v582_v61 = vpop.f32.mrb[70].mxu1 }
 0x1a3   :  { %vm1145_vm2 = vcmp.ge.f32.partialorder %v963_v60, 0.0  ;;  %v1209_v62 = vmul.f32 0.2, %v963_v60  ;;  %v583_v63 = vadd.f32 %v2488_v55, %v582_v61  ;;  %v584_v1 = vpop.f32.mrb[71].mxu1  ;;  %v967_v2 = vpop.f32.mrb[70].mxu0 }
 0x1a4   :  { %v969_v3 = vpop.f32.mrb[71].mxu0  ;;  %v2788_v1 = vld [vmem:[%s2879_s2] ss:$0 sm:$0xff] }
 0x1a5   :  { %v1273_v4 = vsel %vm1145_vm2, %v963_v60, %v1209_v62  ;;  %v968_v5 = vadd.f32 %v967_v2, %v583_v63 }
 0x1a6   :  { %1337 = vst [vmem:[%s2880_s3 + $0x110] sm:$0xff] %v1273_v4  ;;  %v587_v6 = vpop.f32.mrb[72].mxu1 }
 0x1a7   :  { %vm1146_vm3 = vcmp.ge.f32.partialorder %v968_v5, 0.0  ;;  %v1210_v7 = vmul.f32 0.2, %v968_v5  ;;  %v588_v8 = vadd.f32 %v2488_v55, %v587_v6  ;;  %v589_v9 = vpop.f32.mrb[73].mxu1  ;;  %v972_v10 = vpop.f32.mrb[72].mxu0 }
 0x1a8   :  { %v974_v11 = vpop.f32.mrb[73].mxu0 }
 0x1a9   :  { %v1274_v12 = vsel %vm1146_vm3, %v968_v5, %v1210_v7  ;;  %v973_v13 = vadd.f32 %v972_v10, %v588_v8 }
 0x1aa   :  { %1338 = vst [vmem:[%s2880_s3 + $0x118] sm:$0xff] %v1274_v12  ;;  %v592_v14 = vpop.f32.mrb[74].mxu1 }
 0x1ab   :  { %vm1147_vm4 = vcmp.ge.f32.partialorder %v973_v13, 0.0  ;;  %v1211_v15 = vmul.f32 0.2, %v973_v13  ;;  %v593_v16 = vadd.f32 %v2488_v55, %v592_v14  ;;  %v594_v17 = vpop.f32.mrb[75].mxu1  ;;  %v977_v18 = vpop.f32.mrb[74].mxu0 }
 0x1ac   :  { %v979_v19 = vpop.f32.mrb[75].mxu0 }
 0x1ad   :  { %v1275_v20 = vsel %vm1147_vm4, %v973_v13, %v1211_v15  ;;  %v978_v21 = vadd.f32 %v977_v18, %v593_v16 }
 0x1ae   :  { %1339 = vst [vmem:[%s2880_s3 + $0x120] sm:$0xff] %v1275_v20  ;;  %v597_v22 = vpop.f32.mrb[76].mxu1 }
 0x1af   :  { %vm1148_vm5 = vcmp.ge.f32.partialorder %v978_v21, 0.0  ;;  %v1212_v23 = vmul.f32 0.2, %v978_v21  ;;  %v598_v24 = vadd.f32 %v2488_v55, %v597_v22  ;;  %v599_v25 = vpop.f32.mrb[77].mxu1  ;;  %v982_v26 = vpop.f32.mrb[76].mxu0 }
 0x1b0   :  { %v984_v27 = vpop.f32.mrb[77].mxu0 }
 0x1b1   :  { %v1276_v28 = vsel %vm1148_vm5, %v978_v21, %v1212_v23  ;;  %v983_v29 = vadd.f32 %v982_v26, %v598_v24 }
 0x1b2   :  { %1340 = vst [vmem:[%s2880_s3 + $0x128] sm:$0xff] %v1276_v28  ;;  %v602_v30 = vpop.f32.mrb[78].mxu1 }
 0x1b3   :  { %vm1149_vm6 = vcmp.ge.f32.partialorder %v983_v29, 0.0  ;;  %v1213_v31 = vmul.f32 0.2, %v983_v29  ;;  %v603_v32 = vadd.f32 %v2488_v55, %v602_v30  ;;  %v604_v33 = vpop.f32.mrb[79].mxu1  ;;  %v987_v34 = vpop.f32.mrb[78].mxu0 }
 0x1b4   :  { %v989_v35 = vpop.f32.mrb[79].mxu0 }
 0x1b5   :  { %v1277_v36 = vsel %vm1149_vm6, %v983_v29, %v1213_v31  ;;  %v988_v37 = vadd.f32 %v987_v34, %v603_v32 }
 0x1b6   :  { %1341 = vst [vmem:[%s2880_s3 + $0x130] sm:$0xff] %v1277_v36  ;;  %v607_v38 = vpop.f32.mrb[80].mxu1 }
 0x1b7   :  { %vm1150_vm7 = vcmp.ge.f32.partialorder %v988_v37, 0.0  ;;  %v1214_v39 = vmul.f32 0.2, %v988_v37  ;;  %v608_v0 = vadd.f32 %v2488_v55, %v607_v38  ;;  %v609_v40 = vpop.f32.mrb[81].mxu1  ;;  %v992_v41 = vpop.f32.mrb[80].mxu0 }
 0x1b8   :  { %v994_v42 = vpop.f32.mrb[81].mxu0 }
 0x1b9   :  { %v1278_v43 = vsel %vm1150_vm7, %v988_v37, %v1214_v39  ;;  %v993_v44 = vadd.f32 %v992_v41, %v608_v0 }
 0x1ba   :  { %1342 = vst [vmem:[%s2880_s3 + $0x138] sm:$0xff] %v1278_v43  ;;  %v612_v45 = vpop.f32.mrb[82].mxu1 }
 0x1bb   :  { %vm1151_vm8 = vcmp.ge.f32.partialorder %v993_v44, 0.0  ;;  %v1215_v46 = vmul.f32 0.2, %v993_v44  ;;  %v613_v47 = vadd.f32 %v2488_v55, %v612_v45  ;;  %v614_v48 = vpop.f32.mrb[83].mxu1  ;;  %v997_v49 = vpop.f32.mrb[82].mxu0 }
 0x1bc   :  { %v999_v50 = vpop.f32.mrb[83].mxu0 }
 0x1bd   :  { %v1279_v51 = vsel %vm1151_vm8, %v993_v44, %v1215_v46  ;;  %v998_v52 = vadd.f32 %v997_v49, %v613_v47 }
 0x1be   :  { %1343 = vst [vmem:[%s2880_s3 + $0x140] sm:$0xff] %v1279_v51  ;;  %v617_v53 = vpop.f32.mrb[84].mxu1 }
 0x1bf   :  { %vm1152_vm9 = vcmp.ge.f32.partialorder %v998_v52, 0.0  ;;  %v1216_v54 = vmul.f32 0.2, %v998_v52  ;;  %v618_v56 = vadd.f32 %v2488_v55, %v617_v53  ;;  %v619_v57 = vpop.f32.mrb[85].mxu1  ;;  %v1002_v58 = vpop.f32.mrb[84].mxu0 }
 0x1c0   :  { %v1004_v59 = vpop.f32.mrb[85].mxu0 }
 0x1c1   :  { %v1280_v60 = vsel %vm1152_vm9, %v998_v52, %v1216_v54  ;;  %v1003_v61 = vadd.f32 %v1002_v58, %v618_v56 }
 0x1c2   :  { %1344 = vst [vmem:[%s2880_s3 + $0x148] sm:$0xff] %v1280_v60  ;;  %v622_v62 = vpop.f32.mrb[86].mxu1 }
 0x1c3   :  { %vm1153_vm10 = vcmp.ge.f32.partialorder %v1003_v61, 0.0  ;;  %v1217_v63 = vmul.f32 0.2, %v1003_v61  ;;  %v623_v2 = vadd.f32 %v2788_v1, %v622_v62  ;;  %v624_v55 = vpop.f32.mrb[87].mxu1  ;;  %v1007_v3 = vpop.f32.mrb[86].mxu0 }
 0x1c4   :  { %v1009_v4 = vpop.f32.mrb[87].mxu0 }
 0x1c5   :  { %v1281_v5 = vsel %vm1153_vm10, %v1003_v61, %v1217_v63  ;;  %v1008_v6 = vadd.f32 %v1007_v3, %v623_v2 }
 0x1c6   :  { %1345 = vst [vmem:[%s2880_s3 + $0x150] sm:$0xff] %v1281_v5  ;;  %v627_v7 = vpop.f32.mrb[88].mxu1 }
 0x1c7   :  { %vm1154_vm11 = vcmp.ge.f32.partialorder %v1008_v6, 0.0  ;;  %v1218_v8 = vmul.f32 0.2, %v1008_v6  ;;  %v628_v9 = vadd.f32 %v2788_v1, %v627_v7  ;;  %v629_v10 = vpop.f32.mrb[89].mxu1  ;;  %v1012_v11 = vpop.f32.mrb[88].mxu0 }
 0x1c8   :  { %v1014_v12 = vpop.f32.mrb[89].mxu0 }
 0x1c9   :  { %v1282_v13 = vsel %vm1154_vm11, %v1008_v6, %v1218_v8  ;;  %v1013_v14 = vadd.f32 %v1012_v11, %v628_v9 }
 0x1ca   :  { %1346 = vst [vmem:[%s2880_s3 + $0x158] sm:$0xff] %v1282_v13  ;;  %v632_v15 = vpop.f32.mrb[90].mxu1 }
 0x1cb   :  { %vm1155_vm12 = vcmp.ge.f32.partialorder %v1013_v14, 0.0  ;;  %v1219_v16 = vmul.f32 0.2, %v1013_v14  ;;  %v633_v17 = vadd.f32 %v2788_v1, %v632_v15  ;;  %v634_v18 = vpop.f32.mrb[91].mxu1  ;;  %v1017_v19 = vpop.f32.mrb[90].mxu0 }
 0x1cc   :  { %v1019_v20 = vpop.f32.mrb[91].mxu0 }
 0x1cd   :  { %v1283_v21 = vsel %vm1155_vm12, %v1013_v14, %v1219_v16  ;;  %v1018_v22 = vadd.f32 %v1017_v19, %v633_v17 }
 0x1ce   :  { %1347 = vst [vmem:[%s2880_s3 + $0x160] sm:$0xff] %v1283_v21  ;;  %v637_v23 = vpop.f32.mrb[92].mxu1 }
 0x1cf   :  { %vm1156_vm13 = vcmp.ge.f32.partialorder %v1018_v22, 0.0  ;;  %v1220_v24 = vmul.f32 0.2, %v1018_v22  ;;  %v638_v25 = vadd.f32 %v2788_v1, %v637_v23  ;;  %v639_v26 = vpop.f32.mrb[93].mxu1  ;;  %v1022_v27 = vpop.f32.mrb[92].mxu0 }
 0x1d0   :  { %v1024_v28 = vpop.f32.mrb[93].mxu0 }
 0x1d1   :  { %v1284_v29 = vsel %vm1156_vm13, %v1018_v22, %v1220_v24  ;;  %v1023_v30 = vadd.f32 %v1022_v27, %v638_v25 }
 0x1d2   :  { %1348 = vst [vmem:[%s2880_s3 + $0x168] sm:$0xff] %v1284_v29  ;;  %v642_v31 = vpop.f32.mrb[94].mxu1 }
 0x1d3   :  { %vm1157_vm14 = vcmp.ge.f32.partialorder %v1023_v30, 0.0  ;;  %v1221_v32 = vmul.f32 0.2, %v1023_v30  ;;  %v643_v33 = vadd.f32 %v2788_v1, %v642_v31  ;;  %v644_v34 = vpop.f32.mrb[95].mxu1  ;;  %v1027_v35 = vpop.f32.mrb[94].mxu0 }
 0x1d4   :  { %v1029_v36 = vpop.f32.mrb[95].mxu0 }
 0x1d5   :  { %v1285_v37 = vsel %vm1157_vm14, %v1023_v30, %v1221_v32  ;;  %v1028_v38 = vadd.f32 %v1027_v35, %v643_v33 }
 0x1d6   :  { %1349 = vst [vmem:[%s2880_s3 + $0x170] sm:$0xff] %v1285_v37  ;;  %v647_v39 = vpop.f32.mrb[96].mxu1 }
 0x1d7   :  { %vm1158_vm15 = vcmp.ge.f32.partialorder %v1028_v38, 0.0  ;;  %v1222_v0 = vmul.f32 0.2, %v1028_v38  ;;  %v648_v40 = vadd.f32 %v2788_v1, %v647_v39  ;;  %v649_v41 = vpop.f32.mrb[97].mxu1  ;;  %v1032_v42 = vpop.f32.mrb[96].mxu0 }
 0x1d8   :  { %v1034_v43 = vpop.f32.mrb[97].mxu0 }
 0x1d9   :  { %v1286_v44 = vsel %vm1158_vm15, %v1028_v38, %v1222_v0  ;;  %v1033_v45 = vadd.f32 %v1032_v42, %v648_v40 }
 0x1da   :  { %1350 = vst [vmem:[%s2880_s3 + $0x178] sm:$0xff] %v1286_v44  ;;  %v652_v46 = vpop.f32.mrb[98].mxu1 }
 0x1db   :  { %vm1159_vm0 = vcmp.ge.f32.partialorder %v1033_v45, 0.0  ;;  %v1223_v47 = vmul.f32 0.2, %v1033_v45  ;;  %v653_v48 = vadd.f32 %v2788_v1, %v652_v46  ;;  %v654_v49 = vpop.f32.mrb[99].mxu1  ;;  %v1037_v50 = vpop.f32.mrb[98].mxu0 }
 0x1dc   :  { %v1039_v51 = vpop.f32.mrb[99].mxu0 }
 0x1dd   :  { %v1287_v52 = vsel %vm1159_vm0, %v1033_v45, %v1223_v47  ;;  %v1038_v53 = vadd.f32 %v1037_v50, %v653_v48 }
 0x1de   :  { %1351 = vst [vmem:[%s2880_s3 + $0x180] sm:$0xff] %v1287_v52  ;;  %v657_v54 = vpop.f32.mrb[100].mxu1 }
 0x1df   :  { %vm1160_vm1 = vcmp.ge.f32.partialorder %v1038_v53, 0.0  ;;  %v1224_v56 = vmul.f32 0.2, %v1038_v53  ;;  %v658_v57 = vadd.f32 %v2788_v1, %v657_v54  ;;  %v659_v58 = vpop.f32.mrb[101].mxu1  ;;  %v1042_v59 = vpop.f32.mrb[100].mxu0 }
 0x1e0   :  { %v1044_v60 = vpop.f32.mrb[101].mxu0 }
 0x1e1   :  { %v1288_v61 = vsel %vm1160_vm1, %v1038_v53, %v1224_v56  ;;  %v1043_v62 = vadd.f32 %v1042_v59, %v658_v57 }
 0x1e2   :  { %1352 = vst [vmem:[%s2880_s3 + $0x188] sm:$0xff] %v1288_v61  ;;  %v662_v63 = vpop.f32.mrb[102].mxu1 }
 0x1e3   :  { %vm1161_vm2 = vcmp.ge.f32.partialorder %v1043_v62, 0.0  ;;  %v1225_v2 = vmul.f32 0.2, %v1043_v62  ;;  %v663_v55 = vadd.f32 %v2788_v1, %v662_v63  ;;  %v664_v3 = vpop.f32.mrb[103].mxu1  ;;  %v1047_v4 = vpop.f32.mrb[102].mxu0 }
 0x1e4   :  { %v1049_v5 = vpop.f32.mrb[103].mxu0 }
 0x1e5   :  { %v1289_v6 = vsel %vm1161_vm2, %v1043_v62, %v1225_v2  ;;  %v1048_v7 = vadd.f32 %v1047_v4, %v663_v55 }
 0x1e6   :  { %1353 = vst [vmem:[%s2880_s3 + $0x190] sm:$0xff] %v1289_v6  ;;  %v667_v8 = vpop.f32.mrb[104].mxu1 }
 0x1e7   :  { %vm1162_vm3 = vcmp.ge.f32.partialorder %v1048_v7, 0.0  ;;  %v1226_v9 = vmul.f32 0.2, %v1048_v7  ;;  %v668_v10 = vadd.f32 %v2788_v1, %v667_v8  ;;  %v669_v11 = vpop.f32.mrb[105].mxu1  ;;  %v1052_v12 = vpop.f32.mrb[104].mxu0 }
 0x1e8   :  { %v1054_v13 = vpop.f32.mrb[105].mxu0 }
 0x1e9   :  { %v1290_v14 = vsel %vm1162_vm3, %v1048_v7, %v1226_v9  ;;  %v1053_v15 = vadd.f32 %v1052_v12, %v668_v10 }
 0x1ea   :  { %1354 = vst [vmem:[%s2880_s3 + $0x198] sm:$0xff] %v1290_v14  ;;  %v672_v16 = vpop.f32.mrb[106].mxu1 }
 0x1eb   :  { %vm1163_vm4 = vcmp.ge.f32.partialorder %v1053_v15, 0.0  ;;  %v1227_v17 = vmul.f32 0.2, %v1053_v15  ;;  %v673_v18 = vadd.f32 %v2788_v1, %v672_v16  ;;  %v674_v19 = vpop.f32.mrb[107].mxu1  ;;  %v1057_v20 = vpop.f32.mrb[106].mxu0 }
 0x1ec   :  { %v1059_v21 = vpop.f32.mrb[107].mxu0 }
 0x1ed   :  { %v1291_v22 = vsel %vm1163_vm4, %v1053_v15, %v1227_v17  ;;  %v1058_v23 = vadd.f32 %v1057_v20, %v673_v18 }
 0x1ee   :  { %1355 = vst [vmem:[%s2880_s3 + $0x1a0] sm:$0xff] %v1291_v22  ;;  %v677_v24 = vpop.f32.mrb[108].mxu1 }
 0x1ef   :  { %vm1164_vm5 = vcmp.ge.f32.partialorder %v1058_v23, 0.0  ;;  %v1228_v25 = vmul.f32 0.2, %v1058_v23  ;;  %v678_v26 = vadd.f32 %v2788_v1, %v677_v24  ;;  %v679_v27 = vpop.f32.mrb[109].mxu1  ;;  %v1062_v28 = vpop.f32.mrb[108].mxu0 }
 0x1f0   :  { %v1064_v29 = vpop.f32.mrb[109].mxu0 }
 0x1f1   :  { %v1292_v30 = vsel %vm1164_vm5, %v1058_v23, %v1228_v25  ;;  %v1063_v31 = vadd.f32 %v1062_v28, %v678_v26 }
 0x1f2   :  { %1356 = vst [vmem:[%s2880_s3 + $0x1a8] sm:$0xff] %v1292_v30  ;;  %v682_v32 = vpop.f32.mrb[110].mxu1 }
 0x1f3   :  { %vm1165_vm6 = vcmp.ge.f32.partialorder %v1063_v31, 0.0  ;;  %v1229_v33 = vmul.f32 0.2, %v1063_v31  ;;  %v683_v34 = vadd.f32 %v2788_v1, %v682_v32  ;;  %v684_v35 = vpop.f32.mrb[111].mxu1  ;;  %v1067_v36 = vpop.f32.mrb[110].mxu0 }
 0x1f4   :  { %v1069_v37 = vpop.f32.mrb[111].mxu0 }
 0x1f5   :  { %v1293_v38 = vsel %vm1165_vm6, %v1063_v31, %v1229_v33  ;;  %v1068_v39 = vadd.f32 %v1067_v36, %v683_v34 }
 0x1f6   :  { %1357 = vst [vmem:[%s2880_s3 + $0x1b0] sm:$0xff] %v1293_v38  ;;  %v687_v0 = vpop.f32.mrb[112].mxu1 }
 0x1f7   :  { %vm1166_vm7 = vcmp.ge.f32.partialorder %v1068_v39, 0.0  ;;  %v1230_v40 = vmul.f32 0.2, %v1068_v39  ;;  %v688_v41 = vadd.f32 %v2788_v1, %v687_v0  ;;  %v689_v42 = vpop.f32.mrb[113].mxu1  ;;  %v1072_v43 = vpop.f32.mrb[112].mxu0 }
 0x1f8   :  { %v1074_v44 = vpop.f32.mrb[113].mxu0 }
 0x1f9   :  { %v1294_v45 = vsel %vm1166_vm7, %v1068_v39, %v1230_v40  ;;  %v1073_v46 = vadd.f32 %v1072_v43, %v688_v41 }
 0x1fa   :  { %1358 = vst [vmem:[%s2880_s3 + $0x1b8] sm:$0xff] %v1294_v45  ;;  %v692_v47 = vpop.f32.mrb[114].mxu1 }
 0x1fb   :  { %vm1167_vm8 = vcmp.ge.f32.partialorder %v1073_v46, 0.0  ;;  %v1231_v48 = vmul.f32 0.2, %v1073_v46  ;;  %v693_v49 = vadd.f32 %v2788_v1, %v692_v47  ;;  %v694_v50 = vpop.f32.mrb[115].mxu1  ;;  %v1077_v51 = vpop.f32.mrb[114].mxu0 }
 0x1fc   :  { %v1079_v52 = vpop.f32.mrb[115].mxu0 }
 0x1fd   :  { %v1295_v53 = vsel %vm1167_vm8, %v1073_v46, %v1231_v48  ;;  %v1078_v54 = vadd.f32 %v1077_v51, %v693_v49 }
 0x1fe   :  { %1359 = vst [vmem:[%s2880_s3 + $0x1c0] sm:$0xff] %v1295_v53  ;;  %v697_v56 = vpop.f32.mrb[116].mxu1 }
 0x1ff   :  { %vm1168_vm9 = vcmp.ge.f32.partialorder %v1078_v54, 0.0  ;;  %v1232_v57 = vmul.f32 0.2, %v1078_v54  ;;  %v698_v58 = vadd.f32 %v2788_v1, %v697_v56  ;;  %v699_v59 = vpop.f32.mrb[117].mxu1  ;;  %v1082_v60 = vpop.f32.mrb[116].mxu0 }
 0x200   :  { %v1084_v61 = vpop.f32.mrb[117].mxu0 }
 0x201   :  { %v1296_v62 = vsel %vm1168_vm9, %v1078_v54, %v1232_v57  ;;  %v1083_v63 = vadd.f32 %v1082_v60, %v698_v58 }
 0x202   :  { %1360 = vst [vmem:[%s2880_s3 + $0x1c8] sm:$0xff] %v1296_v62  ;;  %v702_v2 = vpop.f32.mrb[118].mxu1 }
 0x203   :  { %vm1169_vm10 = vcmp.ge.f32.partialorder %v1083_v63, 0.0  ;;  %v1233_v55 = vmul.f32 0.2, %v1083_v63  ;;  %v703_v3 = vadd.f32 %v2788_v1, %v702_v2  ;;  %v704_v4 = vpop.f32.mrb[119].mxu1  ;;  %v1087_v5 = vpop.f32.mrb[118].mxu0 }
 0x204   :  { %v1089_v6 = vpop.f32.mrb[119].mxu0 }
 0x205   :  { %v1297_v7 = vsel %vm1169_vm10, %v1083_v63, %v1233_v55  ;;  %v1088_v8 = vadd.f32 %v1087_v5, %v703_v3 }
 0x206   :  { %1361 = vst [vmem:[%s2880_s3 + $0x1d0] sm:$0xff] %v1297_v7  ;;  %v707_v9 = vpop.f32.mrb[120].mxu1 }
 0x207   :  { %vm1170_vm11 = vcmp.ge.f32.partialorder %v1088_v8, 0.0  ;;  %v1234_v10 = vmul.f32 0.2, %v1088_v8  ;;  %v708_v11 = vadd.f32 %v2788_v1, %v707_v9  ;;  %v709_v12 = vpop.f32.mrb[121].mxu1  ;;  %v1092_v13 = vpop.f32.mrb[120].mxu0 }
 0x208   :  { %v1094_v14 = vpop.f32.mrb[121].mxu0 }
 0x209   :  { %v1298_v15 = vsel %vm1170_vm11, %v1088_v8, %v1234_v10  ;;  %v1093_v16 = vadd.f32 %v1092_v13, %v708_v11 }
 0x20a   :  { %1362 = vst [vmem:[%s2880_s3 + $0x1d8] sm:$0xff] %v1298_v15  ;;  %v712_v17 = vpop.f32.mrb[122].mxu1 }
 0x20b   :  { %vm1171_vm12 = vcmp.ge.f32.partialorder %v1093_v16, 0.0  ;;  %v1235_v18 = vmul.f32 0.2, %v1093_v16  ;;  %v713_v19 = vadd.f32 %v2788_v1, %v712_v17  ;;  %v714_v20 = vpop.f32.mrb[123].mxu1  ;;  %v1097_v21 = vpop.f32.mrb[122].mxu0 }
 0x20c   :  { %v1099_v22 = vpop.f32.mrb[123].mxu0 }
 0x20d   :  { %v1299_v23 = vsel %vm1171_vm12, %v1093_v16, %v1235_v18  ;;  %v1098_v24 = vadd.f32 %v1097_v21, %v713_v19 }
 0x20e   :  { %1363 = vst [vmem:[%s2880_s3 + $0x1e0] sm:$0xff] %v1299_v23  ;;  %v717_v25 = vpop.f32.mrb[124].mxu1 }
 0x20f   :  { %vm1172_vm13 = vcmp.ge.f32.partialorder %v1098_v24, 0.0  ;;  %v1236_v26 = vmul.f32 0.2, %v1098_v24  ;;  %v718_v27 = vadd.f32 %v2788_v1, %v717_v25  ;;  %v719_v28 = vpop.f32.mrb[125].mxu1  ;;  %v1102_v29 = vpop.f32.mrb[124].mxu0 }
 0x210   :  { %v1104_v30 = vpop.f32.mrb[125].mxu0 }
 0x211   :  { %v1300_v31 = vsel %vm1172_vm13, %v1098_v24, %v1236_v26  ;;  %v1103_v32 = vadd.f32 %v1102_v29, %v718_v27 }
 0x212   :  { %1364 = vst [vmem:[%s2880_s3 + $0x1e8] sm:$0xff] %v1300_v31  ;;  %v722_v33 = vpop.f32.mrb[126].mxu1 }
 0x213   :  { %vm1173_vm14 = vcmp.ge.f32.partialorder %v1103_v32, 0.0  ;;  %v1237_v34 = vmul.f32 0.2, %v1103_v32  ;;  %v723_v35 = vadd.f32 %v2788_v1, %v722_v33  ;;  %v724_v36 = vpop.f32.mrb[127].mxu1  ;;  %v1107_v37 = vpop.f32.mrb[126].mxu0 }
 0x214   :  { %v1109_v38 = vpop.f32.mrb[127].mxu0 }
 0x215   :  { %v1301_v39 = vsel %vm1173_vm14, %v1103_v32, %v1237_v34  ;;  %v1108_v0 = vadd.f32 %v1107_v37, %v723_v35 }
 0x216   :  { %1365 = vst [vmem:[%s2880_s3 + $0x1f0] sm:$0xff] %v1301_v39 }
 0x217   :  { %vm1174_vm15 = vcmp.ge.f32.partialorder %v1108_v0, 0.0  ;;  %v1238_v40 = vmul.f32 0.2, %v1108_v0 }
 0x219   :  { %v1302_v41 = vsel %vm1174_vm15, %v1108_v0, %v1238_v40 }
 0x21a   :  { %1366 = vst [vmem:[%s2880_s3 + $0x1f8] sm:$0xff] %v1302_v41 }

// kernel: custom_discriminator_forward.7
= control target key start
LH: loop header
LB: loop body
LE: loop exit
PB: predicated region body
PF: predicated region fallthrough
CT: control target
= control target key end

     0   :  { %s2279_s1 = inlined_call_operand.vmem [shape: f32[1024,128], index: 1, kind: input, shape index: {}]   ;;  %s2280_s0 = inlined_call_operand.vmem [shape: f32[128,1024], index: 0, kind: input, shape index: {}]   ;;  %s2281_s2 = inlined_call_operand.vmem [shape: f32[1,128], index: 2, kind: input, shape index: {}]   ;;  %s2282_s3 = inlined_call_operand.vmem [shape: f32[128,128], index: 3, kind: output, shape index: {}]  }
   0x1   :  { %v158_v0 = vld [vmem:[%s2279_s1 + $0x80] sm:$0xff]  ;;  %v159_v1 = vld [vmem:[%s2279_s1 + $0x88] sm:$0xff]  ;;  %v160_v11 = vld [vmem:[%s2279_s1 + $0x90] sm:$0xff] }
   0x2   :  { %v142_v2 = vld [vmem:[%s2279_s1] sm:$0xff]  ;;  %v1246_v3 = vpack.c.bf16 %v159_v1, %v158_v0  ;;  %v143_v4 = vld [vmem:[%s2279_s1 + $0x8] sm:$0xff]  ;;  %v161_v13 = vld [vmem:[%s2279_s1 + $0x98] sm:$0xff] }
   0x3   :  { %v190_v5 = vld [vmem:[%s2279_s1 + $0x180] sm:$0xff]  ;;  %v191_v6 = vld [vmem:[%s2279_s1 + $0x188] sm:$0xff]  ;;  %v1248_v7 = vpack.c.bf16 %v143_v4, %v142_v2  ;;  %v144_v14 = vld [vmem:[%s2279_s1 + $0x10] sm:$0xff]  ;;  %v1250_v16 = vpack.c.bf16 %v161_v13, %v160_v11 }
   0x4   :  { %v1278_v8 = vpack.c.bf16 %v191_v6, %v190_v5  ;;  %v174_v9 = vld [vmem:[%s2279_s1 + $0x100] sm:$0xff]  ;;  %v175_v10 = vld [vmem:[%s2279_s1 + $0x108] sm:$0xff]  ;;  %1247 = vmatprep.subr.bf16.mxu0 %v1246_v3  ;;  %v145_v15 = vld [vmem:[%s2279_s1 + $0x18] sm:$0xff] }
   0x5   :  { %v1280_v12 = vpack.c.bf16 %v175_v10, %v174_v9  ;;  %1249 = vmatpush3.bf16.msra.mxu0 %v1248_v7  ;;  %v1252_v17 = vpack.c.bf16 %v145_v15, %v144_v14  ;;  %v192_v18 = vld [vmem:[%s2279_s1 + $0x190] sm:$0xff]  ;;  %v193_v19 = vld [vmem:[%s2279_s1 + $0x198] sm:$0xff]  ;;  %v162_v23 = vld [vmem:[%s2279_s1 + $0xa0] sm:$0xff] }
   0x6   :  { %1279 = vmatprep.subr.bf16.mxu1 %v1278_v8  ;;  %v176_v20 = vld [vmem:[%s2279_s1 + $0x110] sm:$0xff]  ;;  %v1282_v21 = vpack.c.bf16 %v193_v19, %v192_v18  ;;  %v177_v22 = vld [vmem:[%s2279_s1 + $0x118] sm:$0xff]  ;;  %v163_v24 = vld [vmem:[%s2279_s1 + $0xa8] sm:$0xff]  ;;  %1251 = vmatprep.subr.bf16.mxu0 %v1250_v16 }
   0x7   :  { %1281 = vmatpush3.bf16.msra.mxu1 %v1280_v12  ;;  %v1284_v25 = vpack.c.bf16 %v177_v22, %v176_v20  ;;  %v1254_v26 = vpack.c.bf16 %v163_v24, %v162_v23  ;;  %v146_v27 = vld [vmem:[%s2279_s1 + $0x20] sm:$0xff]  ;;  %v147_v28 = vld [vmem:[%s2279_s1 + $0x28] sm:$0xff]  ;;  %v164_v35 = vld [vmem:[%s2279_s1 + $0xb0] sm:$0xff] }
   0x8   :  { %v194_v29 = vld [vmem:[%s2279_s1 + $0x1a0] sm:$0xff]  ;;  %1283 = vmatprep.subr.bf16.mxu1 %v1282_v21  ;;  %v195_v30 = vld [vmem:[%s2279_s1 + $0x1a8] sm:$0xff]  ;;  %v1256_v33 = vpack.c.bf16 %v147_v28, %v146_v27  ;;  %v165_v36 = vld [vmem:[%s2279_s1 + $0xb8] sm:$0xff] }
   0x9   :  { %v178_v31 = vld [vmem:[%s2279_s1 + $0x120] sm:$0xff]  ;;  %v179_v32 = vld [vmem:[%s2279_s1 + $0x128] sm:$0xff]  ;;  %1253 = vmatpush3.bf16.msra.mxu0 %v1252_v17  ;;  %v1286_v34 = vpack.c.bf16 %v195_v30, %v194_v29  ;;  %v148_v37 = vld [vmem:[%s2279_s1 + $0x30] sm:$0xff]  ;;  %v1258_v39 = vpack.c.bf16 %v165_v36, %v164_v35 }
   0xa   :  { %1255 = vmatprep.subr.bf16.mxu0 %v1254_v26  ;;  %v1288_v38 = vpack.c.bf16 %v179_v32, %v178_v31  ;;  %v149_v40 = vld [vmem:[%s2279_s1 + $0x38] sm:$0xff]  ;;  %v196_v41 = vld [vmem:[%s2279_s1 + $0x1b0] sm:$0xff]  ;;  %v166_v46 = vld [vmem:[%s2279_s1 + $0xc0] sm:$0xff] }
   0xb   :  { %1285 = vmatpush3.bf16.msra.mxu1 %v1284_v25  ;;  %v197_v42 = vld [vmem:[%s2279_s1 + $0x1b8] sm:$0xff]  ;;  %v180_v44 = vld [vmem:[%s2279_s1 + $0x130] sm:$0xff]  ;;  %v167_v47 = vld [vmem:[%s2279_s1 + $0xc8] sm:$0xff]  ;;  %v1260_v48 = vpack.c.bf16 %v149_v40, %v148_v37 }
   0xc   :  { %1287 = vmatprep.subr.bf16.mxu1 %v1286_v34  ;;  %v1290_v43 = vpack.c.bf16 %v197_v42, %v196_v41  ;;  %v181_v45 = vld [vmem:[%s2279_s1 + $0x138] sm:$0xff]  ;;  %v198_v49 = vld [vmem:[%s2279_s1 + $0x1c0] sm:$0xff]  ;;  %v199_v50 = vld [vmem:[%s2279_s1 + $0x1c8] sm:$0xff]  ;;  %v1262_v52 = vpack.c.bf16 %v167_v47, %v166_v46 }
   0xd   :  { %1257 = vmatpush3.bf16.msra.mxu0 %v1256_v33  ;;  %v1292_v51 = vpack.c.bf16 %v181_v45, %v180_v44  ;;  %v150_v53 = vld [vmem:[%s2279_s1 + $0x40] sm:$0xff]  ;;  %v151_v54 = vld [vmem:[%s2279_s1 + $0x48] sm:$0xff]  ;;  %v1294_v56 = vpack.c.bf16 %v199_v50, %v198_v49  ;;  %v168_v58 = vld [vmem:[%s2279_s1 + $0xd0] sm:$0xff] }
   0xe   :  { %1259 = vmatprep.subr.bf16.mxu0 %v1258_v39  ;;  %v182_v55 = vld [vmem:[%s2279_s1 + $0x140] sm:$0xff]  ;;  %v183_v57 = vld [vmem:[%s2279_s1 + $0x148] sm:$0xff]  ;;  %v169_v59 = vld [vmem:[%s2279_s1 + $0xd8] sm:$0xff]  ;;  %v1264_v62 = vpack.c.bf16 %v151_v54, %v150_v53 }
   0xf   :  { %1289 = vmatpush3.bf16.msra.mxu1 %v1288_v38  ;;  %v200_v60 = vld [vmem:[%s2279_s1 + $0x1d0] sm:$0xff]  ;;  %v201_v61 = vld [vmem:[%s2279_s1 + $0x1d8] sm:$0xff]  ;;  %v1296_v63 = vpack.c.bf16 %v183_v57, %v182_v55  ;;  %v1266_v0 = vpack.c.bf16 %v169_v59, %v168_v58  ;;  %v170_v6 = vld [vmem:[%s2279_s1 + $0xe0] sm:$0xff] }
  0x10   :  { %1291 = vmatprep.subr.bf16.mxu1 %v1290_v43  ;;  %v152_v1 = vld [vmem:[%s2279_s1 + $0x50] sm:$0xff]  ;;  %v153_v2 = vld [vmem:[%s2279_s1 + $0x58] sm:$0xff]  ;;  %v1298_v4 = vpack.c.bf16 %v201_v61, %v200_v60  ;;  %v171_v7 = vld [vmem:[%s2279_s1 + $0xe8] sm:$0xff] }
  0x11   :  { %1261 = vmatpush3.bf16.msra.mxu0 %v1260_v48  ;;  %v184_v3 = vld [vmem:[%s2279_s1 + $0x150] sm:$0xff]  ;;  %v185_v5 = vld [vmem:[%s2279_s1 + $0x158] sm:$0xff]  ;;  %v202_v8 = vld [vmem:[%s2279_s1 + $0x1e0] sm:$0xff]  ;;  %v1268_v10 = vpack.c.bf16 %v153_v2, %v152_v1  ;;  %v1270_v14 = vpack.c.bf16 %v171_v7, %v170_v6 }
  0x12   :  { %1263 = vmatprep.subr.bf16.mxu0 %v1262_v52  ;;  %v203_v9 = vld [vmem:[%s2279_s1 + $0x1e8] sm:$0xff]  ;;  %v154_v11 = vld [vmem:[%s2279_s1 + $0x60] sm:$0xff]  ;;  %v1300_v13 = vpack.c.bf16 %v185_v5, %v184_v3  ;;  %v172_v19 = vld [vmem:[%s2279_s1 + $0xf0] sm:$0xff] }
  0x13   :  { %1293 = vmatpush3.bf16.msra.mxu1 %v1292_v51  ;;  %v15_v12 = vld [vmem:[%s2280_s0 + $0x8] sm:$0xff]  ;;  %v186_v16 = vld [vmem:[%s2279_s1 + $0x160] sm:$0xff]  ;;  %v1302_v18 = vpack.c.bf16 %v203_v9, %v202_v8  ;;  %v173_v20 = vld [vmem:[%s2279_s1 + $0xf8] sm:$0xff] }
  0x14   :  { %1295 = vmatprep.subr.bf16.mxu1 %v1294_v56  ;;  %v155_v15 = vld [vmem:[%s2279_s1 + $0x68] sm:$0xff]  ;;  %341 = vmatprep.mubr.f32.mxu0 %v15_v12  ;;  %v17_v21 = vld [vmem:[%s2280_s0 + $0x18] sm:$0xff]  ;;  %v204_v22 = vld [vmem:[%s2279_s1 + $0x1f0] sm:$0xff]  ;;  %v1274_v26 = vpack.c.bf16 %v173_v20, %v172_v19 }
  0x15   :  { %1265 = vmatpush3.bf16.msra.mxu0 %v1264_v62  ;;  %v187_v17 = vld [vmem:[%s2279_s1 + $0x168] sm:$0xff]  ;;  %v205_v23 = vld [vmem:[%s2279_s1 + $0x1f8] sm:$0xff]  ;;  %486 = vmatprep.mubr.f32.mxu1 %v17_v21  ;;  %v1272_v24 = vpack.c.bf16 %v155_v15, %v154_v11  ;;  %v156_v27 = vld [vmem:[%s2279_s1 + $0x70] sm:$0xff] }
  0x16   :  { %1267 = vmatprep.subr.bf16.mxu0 %v1266_v0  ;;  %v1304_v25 = vpack.c.bf16 %v187_v17, %v186_v16  ;;  %v157_v28 = vld [vmem:[%s2279_s1 + $0x78] sm:$0xff]  ;;  %v188_v29 = vld [vmem:[%s2279_s1 + $0x170] sm:$0xff]  ;;  %v1306_v30 = vpack.c.bf16 %v205_v23, %v204_v22  ;;  %v222_v32 = vld [vmem:[%s2279_s1 + $0x280] sm:$0xff] }
  0x17   :  { %1297 = vmatpush3.bf16.msra.mxu1 %v1296_v63  ;;  %v189_v31 = vld [vmem:[%s2279_s1 + $0x178] sm:$0xff]  ;;  %v223_v33 = vld [vmem:[%s2279_s1 + $0x288] sm:$0xff]  ;;  %v254_v34 = vld [vmem:[%s2279_s1 + $0x380] sm:$0xff]  ;;  %v1276_v36 = vpack.c.bf16 %v157_v28, %v156_v27 }
  0x18   :  { %1299 = vmatprep.subr.bf16.mxu1 %v1298_v4  ;;  %v255_v35 = vld [vmem:[%s2279_s1 + $0x388] sm:$0xff]  ;;  %v1308_v37 = vpack.c.bf16 %v189_v31, %v188_v29  ;;  %v1310_v38 = vpack.c.bf16 %v223_v33, %v222_v32  ;;  %v206_v39 = vld [vmem:[%s2279_s1 + $0x200] sm:$0xff]  ;;  %v224_v44 = vld [vmem:[%s2279_s1 + $0x290] sm:$0xff] }
  0x19   :  { %1269 = vmatpush3.bf16.msra.mxu0 %v1268_v10  ;;  %v207_v40 = vld [vmem:[%s2279_s1 + $0x208] sm:$0xff]  ;;  %v1342_v41 = vpack.c.bf16 %v255_v35, %v254_v34  ;;  %v238_v42 = vld [vmem:[%s2279_s1 + $0x300] sm:$0xff]  ;;  %v225_v45 = vld [vmem:[%s2279_s1 + $0x298] sm:$0xff] }
  0x1a   :  { %1271 = vmatprep.subr.bf16.mxu0 %v1270_v14  ;;  %v239_v43 = vld [vmem:[%s2279_s1 + $0x308] sm:$0xff]  ;;  %v14_v46 = vld [vmem:[%s2280_s0] sm:$0xff]  ;;  %v1312_v47 = vpack.c.bf16 %v207_v40, %v206_v39  ;;  %v256_v48 = vld [vmem:[%s2279_s1 + $0x390] sm:$0xff]  ;;  %v1314_v54 = vpack.c.bf16 %v225_v45, %v224_v44 }
  0x1b   :  { %1301 = vmatpush3.bf16.msra.mxu1 %v1300_v13  ;;  %v257_v49 = vld [vmem:[%s2279_s1 + $0x398] sm:$0xff]  ;;  %v16_v50 = vld [vmem:[%s2280_s0 + $0x10] sm:$0xff]  ;;  %v23_v51 = vld [vmem:[%s2280_s0 + $0x48] sm:$0xff]  ;;  %v1344_v52 = vpack.c.bf16 %v239_v43, %v238_v42 }
  0x1c   :  { %1303 = vmatprep.subr.bf16.mxu1 %v1302_v18  ;;  %v25_v53 = vld [vmem:[%s2280_s0 + $0x58] sm:$0xff]  ;;  %v208_v55 = vld [vmem:[%s2279_s1 + $0x210] sm:$0xff]  ;;  %v1346_v58 = vpack.c.bf16 %v257_v49, %v256_v48  ;;  %v226_v60 = vld [vmem:[%s2279_s1 + $0x2a0] sm:$0xff] }
  0x1d   :  { %1273 = vmatpush3.bf16.msra.mxu0 %v1272_v24  ;;  %v209_v56 = vld [vmem:[%s2279_s1 + $0x218] sm:$0xff]  ;;  %v240_v57 = vld [vmem:[%s2279_s1 + $0x310] sm:$0xff]  ;;  %v227_v61 = vld [vmem:[%s2279_s1 + $0x2a8] sm:$0xff] }
  0x1e   :  { %1275 = vmatprep.subr.bf16.mxu0 %v1274_v26  ;;  %v241_v59 = vld [vmem:[%s2279_s1 + $0x318] sm:$0xff]  ;;  %v22_v62 = vld [vmem:[%s2280_s0 + $0x40] sm:$0xff]  ;;  %v259_v0 = vld [vmem:[%s2279_s1 + $0x3a8] sm:$0xff]  ;;  %v1316_v4 = vpack.c.bf16 %v209_v56, %v208_v55  ;;  %v1318_v6 = vpack.c.bf16 %v227_v61, %v226_v60 }
  0x1f   :  { %1305 = vmatpush3.bf16.msra.mxu1 %v1304_v25  ;;  %v258_v63 = vld [vmem:[%s2279_s1 + $0x3a0] sm:$0xff]  ;;  %v24_v1 = vld [vmem:[%s2280_s0 + $0x50] sm:$0xff]  ;;  %v31_v2 = vld [vmem:[%s2280_s0 + $0x88] sm:$0xff]  ;;  %v1348_v5 = vpack.c.bf16 %v241_v59, %v240_v57 }
  0x20   :  { %1307 = vmatprep.subr.bf16.mxu1 %v1306_v30  ;;  %v33_v3 = vld [vmem:[%s2280_s0 + $0x98] sm:$0xff]  ;;  %v210_v7 = vld [vmem:[%s2279_s1 + $0x220] sm:$0xff]  ;;  %v211_v8 = vld [vmem:[%s2279_s1 + $0x228] sm:$0xff]  ;;  %v1350_v10 = vpack.c.bf16 %v259_v0, %v258_v63 }
  0x21   :  { %1277 = vmatpush3.bf16.msra.mxu0 %v1276_v36  ;;  %v242_v9 = vld [vmem:[%s2279_s1 + $0x320] sm:$0xff]  ;;  %v243_v11 = vld [vmem:[%s2279_s1 + $0x328] sm:$0xff]  ;;  %v228_v12 = vld [vmem:[%s2279_s1 + $0x2b0] sm:$0xff]  ;;  %v1320_v20 = vpack.c.bf16 %v211_v8, %v210_v7 }
  0x22   :  { %1311 = vmatprep.subr.bf16.mxu0 %v1310_v38  ;;  %v229_v13 = vld [vmem:[%s2279_s1 + $0x2b8] sm:$0xff]  ;;  %v30_v14 = vld [vmem:[%s2280_s0 + $0x80] sm:$0xff]  ;;  %v260_v15 = vld [vmem:[%s2279_s1 + $0x3b0] sm:$0xff]  ;;  %v1352_v21 = vpack.c.bf16 %v243_v11, %v242_v9 }
  0x23   :  { %1309 = vmatpush3.bf16.msra.mxu1 %v1308_v37  ;;  %v261_v16 = vld [vmem:[%s2279_s1 + $0x3b8] sm:$0xff]  ;;  %v32_v17 = vld [vmem:[%s2280_s0 + $0x90] sm:$0xff]  ;;  %v39_v18 = vld [vmem:[%s2280_s0 + $0xc8] sm:$0xff]  ;;  %v1322_v22 = vpack.c.bf16 %v229_v13, %v228_v12 }
  0x24   :  { %1343 = vmatprep.subr.bf16.mxu1 %v1342_v41  ;;  %342 = vmatmul.mubr.f32.vlgmr.msra.gmra.mrb[0].mxu0 %v14_v46  ;;  %v41_v19 = vld [vmem:[%s2280_s0 + $0xd8] sm:$0xff]  ;;  %v212_v23 = vld [vmem:[%s2279_s1 + $0x230] sm:$0xff]  ;;  %v1354_v26 = vpack.c.bf16 %v261_v16, %v260_v15  ;;  %v230_v28 = vld [vmem:[%s2279_s1 + $0x2c0] sm:$0xff] }
  0x25   :  { %1313 = vmatpush3.bf16.msra.mxu0 %v1312_v47  ;;  %346 = vmatprep.mubr.f32.mxu0 %v23_v51  ;;  %v213_v24 = vld [vmem:[%s2279_s1 + $0x238] sm:$0xff]  ;;  %v244_v25 = vld [vmem:[%s2279_s1 + $0x330] sm:$0xff]  ;;  %v231_v29 = vld [vmem:[%s2279_s1 + $0x2c8] sm:$0xff] }
  0x26   :  { %487 = vmatmul.mubr.f32.vlgmr.msra.gmra.mrb[0].mxu1 %v16_v50  ;;  %1315 = vmatprep.subr.bf16.mxu0 %v1314_v54  ;;  %v245_v27 = vld [vmem:[%s2279_s1 + $0x338] sm:$0xff]  ;;  %v38_v30 = vld [vmem:[%s2280_s0 + $0xc0] sm:$0xff]  ;;  %v40_v31 = vld [vmem:[%s2280_s0 + $0xd0] sm:$0xff]  ;;  %v1324_v33 = vpack.c.bf16 %v213_v24, %v212_v23  ;;  %v1326_v38 = vpack.c.bf16 %v231_v29, %v230_v28 }
  0x27   :  { %1345 = vmatpush3.bf16.msra.mxu1 %v1344_v52  ;;  %491 = vmatprep.mubr.f32.mxu1 %v25_v53  ;;  %v47_v32 = vld [vmem:[%s2280_s0 + $0x108] sm:$0xff]  ;;  %v262_v34 = vld [vmem:[%s2279_s1 + $0x3c0] sm:$0xff]  ;;  %v49_v36 = vld [vmem:[%s2280_s0 + $0x118] sm:$0xff]  ;;  %v1356_v37 = vpack.c.bf16 %v245_v27, %v244_v25 }
  0x28   :  { %347 = vmatmul.mubr.f32.gmra.mrb[2].mxu0 %v22_v62  ;;  %1347 = vmatprep.subr.bf16.mxu1 %v1346_v58  ;;  %v263_v35 = vld [vmem:[%s2279_s1 + $0x3c8] sm:$0xff]  ;;  %v214_v39 = vld [vmem:[%s2279_s1 + $0x240] sm:$0xff]  ;;  %v48_v45 = vld [vmem:[%s2280_s0 + $0x110] sm:$0xff] }
  0x29   :  { %351 = vmatprep.mubr.f32.mxu0 %v31_v2  ;;  %1317 = vmatpush3.bf16.msra.mxu0 %v1316_v4  ;;  %v215_v40 = vld [vmem:[%s2279_s1 + $0x248] sm:$0xff]  ;;  %v1358_v41 = vpack.c.bf16 %v263_v35, %v262_v34  ;;  %v246_v42 = vld [vmem:[%s2279_s1 + $0x340] sm:$0xff]  ;;  %v232_v46 = vld [vmem:[%s2279_s1 + $0x2d0] sm:$0xff] }
  0x2a   :  { %492 = vmatmul.mubr.f32.gmra.mrb[2].mxu1 %v24_v1  ;;  %1319 = vmatprep.subr.bf16.mxu0 %v1318_v6  ;;  %v247_v43 = vld [vmem:[%s2279_s1 + $0x348] sm:$0xff]  ;;  %v46_v44 = vld [vmem:[%s2280_s0 + $0x100] sm:$0xff]  ;;  %v57_v48 = vld [vmem:[%s2280_s0 + $0x158] sm:$0xff]  ;;  %v1328_v49 = vpack.c.bf16 %v215_v40, %v214_v39 }
  0x2b   :  { %496 = vmatprep.mubr.f32.mxu1 %v33_v3  ;;  %1349 = vmatpush3.bf16.msra.mxu1 %v1348_v5  ;;  %v55_v47 = vld [vmem:[%s2280_s0 + $0x148] sm:$0xff]  ;;  %v233_v50 = vld [vmem:[%s2279_s1 + $0x2d8] sm:$0xff]  ;;  %v1360_v51 = vpack.c.bf16 %v247_v43, %v246_v42  ;;  %v216_v53 = vld [vmem:[%s2279_s1 + $0x250] sm:$0xff] }
  0x2c   :  { %352 = vmatmul.mubr.f32.gmra.mrb[4].mxu0 %v30_v14  ;;  %1351 = vmatprep.subr.bf16.mxu1 %v1350_v10  ;;  %v1330_v52 = vpack.c.bf16 %v233_v50, %v232_v46  ;;  %v217_v54 = vld [vmem:[%s2279_s1 + $0x258] sm:$0xff]  ;;  %v264_v55 = vld [vmem:[%s2279_s1 + $0x3d0] sm:$0xff]  ;;  %v54_v58 = vld [vmem:[%s2280_s0 + $0x140] sm:$0xff] }
  0x2d   :  { %356 = vmatprep.mubr.f32.mxu0 %v39_v18  ;;  %1321 = vmatpush3.bf16.msra.mxu0 %v1320_v20  ;;  %v265_v56 = vld [vmem:[%s2279_s1 + $0x3d8] sm:$0xff]  ;;  %v248_v57 = vld [vmem:[%s2279_s1 + $0x350] sm:$0xff]  ;;  %v63_v62 = vld [vmem:[%s2280_s0 + $0x188] sm:$0xff]  ;;  %v1332_v63 = vpack.c.bf16 %v217_v54, %v216_v53 }
  0x2e   :  { %497 = vmatmul.mubr.f32.gmra.mrb[4].mxu1 %v32_v17  ;;  %1323 = vmatprep.subr.bf16.mxu0 %v1322_v22  ;;  %v1362_v59 = vpack.c.bf16 %v265_v56, %v264_v55  ;;  %v249_v60 = vld [vmem:[%s2279_s1 + $0x358] sm:$0xff]  ;;  %v56_v61 = vld [vmem:[%s2280_s0 + $0x150] sm:$0xff]  ;;  %v234_v2 = vld [vmem:[%s2279_s1 + $0x2e0] sm:$0xff] }
  0x2f   :  { %501 = vmatprep.mubr.f32.mxu1 %v41_v19  ;;  %1353 = vmatpush3.bf16.msra.mxu1 %v1352_v21  ;;  %v65_v0 = vld [vmem:[%s2280_s0 + $0x198] sm:$0xff]  ;;  %v1364_v1 = vpack.c.bf16 %v249_v60, %v248_v57  ;;  %v235_v3 = vld [vmem:[%s2279_s1 + $0x2e8] sm:$0xff]  ;;  %v62_v4 = vld [vmem:[%s2280_s0 + $0x180] sm:$0xff] }
  0x30   :  { %357 = vmatmul.mubr.f32.gmra.mrb[6].mxu0 %v38_v30  ;;  %1355 = vmatprep.subr.bf16.mxu1 %v1354_v26  ;;  %v1334_v5 = vpack.c.bf16 %v235_v3, %v234_v2  ;;  %v218_v6 = vld [vmem:[%s2279_s1 + $0x260] sm:$0xff]  ;;  %v219_v7 = vld [vmem:[%s2279_s1 + $0x268] sm:$0xff]  ;;  %v64_v8 = vld [vmem:[%s2280_s0 + $0x190] sm:$0xff] }
  0x31   :  { %361 = vmatprep.mubr.f32.mxu0 %v47_v32  ;;  %1325 = vmatpush3.bf16.msra.mxu0 %v1324_v33  ;;  %v266_v9 = vld [vmem:[%s2279_s1 + $0x3e0] sm:$0xff]  ;;  %v267_v10 = vld [vmem:[%s2279_s1 + $0x3e8] sm:$0xff]  ;;  %v1336_v12 = vpack.c.bf16 %v219_v7, %v218_v6  ;;  %v73_v16 = vld [vmem:[%s2280_s0 + $0x1d8] sm:$0xff] }
  0x32   :  { %502 = vmatmul.mubr.f32.gmra.mrb[6].mxu1 %v40_v31  ;;  %1327 = vmatprep.subr.bf16.mxu0 %v1326_v38  ;;  %v71_v11 = vld [vmem:[%s2280_s0 + $0x1c8] sm:$0xff]  ;;  %v1366_v13 = vpack.c.bf16 %v267_v10, %v266_v9  ;;  %v250_v14 = vld [vmem:[%s2279_s1 + $0x360] sm:$0xff]  ;;  %v236_v19 = vld [vmem:[%s2279_s1 + $0x2f0] sm:$0xff] }
  0x33   :  { %506 = vmatprep.mubr.f32.mxu1 %v49_v36  ;;  %1357 = vmatpush3.bf16.msra.mxu1 %v1356_v37  ;;  %v251_v15 = vld [vmem:[%s2279_s1 + $0x368] sm:$0xff]  ;;  %v70_v18 = vld [vmem:[%s2280_s0 + $0x1c0] sm:$0xff]  ;;  %v237_v20 = vld [vmem:[%s2279_s1 + $0x2f8] sm:$0xff] }
  0x34   :  { %362 = vmatmul.mubr.f32.gmra.mrb[8].mxu0 %v46_v44  ;;  %1359 = vmatprep.subr.bf16.mxu1 %v1358_v41  ;;  %v1368_v17 = vpack.c.bf16 %v251_v15, %v250_v14  ;;  %v72_v21 = vld [vmem:[%s2280_s0 + $0x1d0] sm:$0xff]  ;;  %v1338_v22 = vpack.c.bf16 %v237_v20, %v236_v19  ;;  %v221_v24 = vld [vmem:[%s2279_s1 + $0x278] sm:$0xff]  ;;  %v79_v25 = vld [vmem:[%s2280_s0 + $0x208] sm:$0xff] }
  0x35   :  { %366 = vmatprep.mubr.f32.mxu0 %v55_v47  ;;  %1329 = vmatpush3.bf16.msra.mxu0 %v1328_v49  ;;  %v220_v23 = vld [vmem:[%s2279_s1 + $0x270] sm:$0xff]  ;;  %v269_v28 = vld [vmem:[%s2279_s1 + $0x3f8] sm:$0xff]  ;;  %v78_v34 = vld [vmem:[%s2280_s0 + $0x200] sm:$0xff] }
  0x36   :  { %507 = vmatmul.mubr.f32.gmra.mrb[8].mxu1 %v48_v45  ;;  %1331 = vmatprep.subr.bf16.mxu0 %v1330_v52  ;;  %v1340_v26 = vpack.c.bf16 %v221_v24, %v220_v23  ;;  %v268_v27 = vld [vmem:[%s2279_s1 + $0x3f0] sm:$0xff]  ;;  %v81_v29 = vld [vmem:[%s2280_s0 + $0x218] sm:$0xff]  ;;  %v87_v36 = vld [vmem:[%s2280_s0 + $0x248] sm:$0xff] }
  0x37   :  { %511 = vmatprep.mubr.f32.mxu1 %v57_v48  ;;  %1361 = vmatpush3.bf16.msra.mxu1 %v1360_v51  ;;  %v1370_v30 = vpack.c.bf16 %v269_v28, %v268_v27  ;;  %v252_v31 = vld [vmem:[%s2279_s1 + $0x370] sm:$0xff]  ;;  %v253_v32 = vld [vmem:[%s2279_s1 + $0x378] sm:$0xff]  ;;  %v86_v38 = vld [vmem:[%s2280_s0 + $0x240] sm:$0xff] }
  0x38   :  { %367 = vmatmul.mubr.f32.gmra.mrb[10].mxu0 %v54_v58  ;;  %1363 = vmatprep.subr.bf16.mxu1 %v1362_v59  ;;  %v1372_v33 = vpack.c.bf16 %v253_v32, %v252_v31  ;;  %v80_v35 = vld [vmem:[%s2280_s0 + $0x210] sm:$0xff]  ;;  %v89_v37 = vld [vmem:[%s2280_s0 + $0x258] sm:$0xff]  ;;  %v95_v40 = vld [vmem:[%s2280_s0 + $0x288] sm:$0xff] }
  0x39   :  { %371 = vmatprep.mubr.f32.mxu0 %v63_v62  ;;  %1333 = vmatpush3.bf16.msra.mxu0 %v1332_v63  ;;  %v88_v39 = vld [vmem:[%s2280_s0 + $0x250] sm:$0xff]  ;;  %v97_v41 = vld [vmem:[%s2280_s0 + $0x298] sm:$0xff]  ;;  %v94_v42 = vld [vmem:[%s2280_s0 + $0x280] sm:$0xff] }
  0x3a   :  { %512 = vmatmul.mubr.f32.gmra.mrb[10].mxu1 %v56_v61  ;;  %1335 = vmatprep.subr.bf16.mxu0 %v1334_v5  ;;  %v96_v43 = vld [vmem:[%s2280_s0 + $0x290] sm:$0xff]  ;;  %v103_v44 = vld [vmem:[%s2280_s0 + $0x2c8] sm:$0xff]  ;;  %v105_v45 = vld [vmem:[%s2280_s0 + $0x2d8] sm:$0xff] }
  0x3b   :  { %516 = vmatprep.mubr.f32.mxu1 %v65_v0  ;;  %1365 = vmatpush3.bf16.msra.mxu1 %v1364_v1  ;;  %v102_v46 = vld [vmem:[%s2280_s0 + $0x2c0] sm:$0xff]  ;;  %v104_v47 = vld [vmem:[%s2280_s0 + $0x2d0] sm:$0xff]  ;;  %v111_v48 = vld [vmem:[%s2280_s0 + $0x308] sm:$0xff] }
  0x3c   :  { %372 = vmatmul.mubr.f32.gmra.mrb[12].mxu0 %v62_v4  ;;  %1367 = vmatprep.subr.bf16.mxu1 %v1366_v13  ;;  %v113_v49 = vld [vmem:[%s2280_s0 + $0x318] sm:$0xff]  ;;  %v110_v50 = vld [vmem:[%s2280_s0 + $0x300] sm:$0xff]  ;;  %v112_v51 = vld [vmem:[%s2280_s0 + $0x310] sm:$0xff] }
  0x3d   :  { %376 = vmatprep.mubr.f32.mxu0 %v71_v11  ;;  %1337 = vmatpush3.bf16.msra.mxu0 %v1336_v12  ;;  %v119_v52 = vld [vmem:[%s2280_s0 + $0x348] sm:$0xff]  ;;  %v121_v53 = vld [vmem:[%s2280_s0 + $0x358] sm:$0xff]  ;;  %v118_v54 = vld [vmem:[%s2280_s0 + $0x340] sm:$0xff] }
  0x3e   :  { %517 = vmatmul.mubr.f32.gmra.mrb[12].mxu1 %v64_v8  ;;  %1339 = vmatprep.subr.bf16.mxu0 %v1338_v22  ;;  %v120_v55 = vld [vmem:[%s2280_s0 + $0x350] sm:$0xff]  ;;  %v127_v56 = vld [vmem:[%s2280_s0 + $0x388] sm:$0xff]  ;;  %v129_v57 = vld [vmem:[%s2280_s0 + $0x398] sm:$0xff] }
  0x3f   :  { %521 = vmatprep.mubr.f32.mxu1 %v73_v16  ;;  %1369 = vmatpush3.bf16.msra.mxu1 %v1368_v17  ;;  %v126_v58 = vld [vmem:[%s2280_s0 + $0x380] sm:$0xff]  ;;  %v128_v59 = vld [vmem:[%s2280_s0 + $0x390] sm:$0xff]  ;;  %v135_v60 = vld [vmem:[%s2280_s0 + $0x3c8] sm:$0xff] }
  0x40   :  { %377 = vmatmul.mubr.f32.gmra.mrb[14].mxu0 %v70_v18  ;;  %1371 = vmatprep.subr.bf16.mxu1 %v1370_v30  ;;  %v137_v61 = vld [vmem:[%s2280_s0 + $0x3d8] sm:$0xff]  ;;  %v134_v62 = vld [vmem:[%s2280_s0 + $0x3c0] sm:$0xff]  ;;  %v136_v63 = vld [vmem:[%s2280_s0 + $0x3d0] sm:$0xff] }
  0x41   :  { %381 = vmatprep.mubr.f32.mxu0 %v79_v25  ;;  %1341 = vmatpush3.bf16.msra.mxu0 %v1340_v26  ;;  %v19_v0 = vld [vmem:[%s2280_s0 + $0x28] sm:$0xff]  ;;  %v21_v1 = vld [vmem:[%s2280_s0 + $0x38] sm:$0xff]  ;;  %v18_v2 = vld [vmem:[%s2280_s0 + $0x20] sm:$0xff] }
  0x42   :  { %522 = vmatmul.mubr.f32.gmra.mrb[14].mxu1 %v72_v21  ;;  %v20_v3 = vld [vmem:[%s2280_s0 + $0x30] sm:$0xff]  ;;  %v27_v4 = vld [vmem:[%s2280_s0 + $0x68] sm:$0xff]  ;;  %v29_v5 = vld [vmem:[%s2280_s0 + $0x78] sm:$0xff] }
  0x43   :  { %526 = vmatprep.mubr.f32.mxu1 %v81_v29  ;;  %1373 = vmatpush3.bf16.msra.mxu1 %v1372_v33  ;;  %v26_v6 = vld [vmem:[%s2280_s0 + $0x60] sm:$0xff]  ;;  %v28_v7 = vld [vmem:[%s2280_s0 + $0x70] sm:$0xff]  ;;  %v35_v8 = vld [vmem:[%s2280_s0 + $0xa8] sm:$0xff] }
  0x44   :  { %382 = vmatmul.mubr.f32.gmra.mrb[16].mxu0 %v78_v34  ;;  %v37_v9 = vld [vmem:[%s2280_s0 + $0xb8] sm:$0xff]  ;;  %v34_v10 = vld [vmem:[%s2280_s0 + $0xa0] sm:$0xff]  ;;  %v36_v11 = vld [vmem:[%s2280_s0 + $0xb0] sm:$0xff] }
  0x45   :  { %386 = vmatprep.mubr.f32.mxu0 %v87_v36  ;;  %v43_v12 = vld [vmem:[%s2280_s0 + $0xe8] sm:$0xff]  ;;  %v45_v13 = vld [vmem:[%s2280_s0 + $0xf8] sm:$0xff]  ;;  %v42_v14 = vld [vmem:[%s2280_s0 + $0xe0] sm:$0xff] }
  0x46   :  { %527 = vmatmul.mubr.f32.gmra.mrb[16].mxu1 %v80_v35  ;;  %v44_v15 = vld [vmem:[%s2280_s0 + $0xf0] sm:$0xff]  ;;  %v51_v16 = vld [vmem:[%s2280_s0 + $0x128] sm:$0xff]  ;;  %v53_v17 = vld [vmem:[%s2280_s0 + $0x138] sm:$0xff] }
  0x47   :  { %531 = vmatprep.mubr.f32.mxu1 %v89_v37  ;;  %v50_v18 = vld [vmem:[%s2280_s0 + $0x120] sm:$0xff]  ;;  %v52_v19 = vld [vmem:[%s2280_s0 + $0x130] sm:$0xff]  ;;  %v59_v20 = vld [vmem:[%s2280_s0 + $0x168] sm:$0xff] }
  0x48   :  { %387 = vmatmul.mubr.f32.gmra.mrb[18].mxu0 %v86_v38  ;;  %v61_v21 = vld [vmem:[%s2280_s0 + $0x178] sm:$0xff]  ;;  %v58_v22 = vld [vmem:[%s2280_s0 + $0x160] sm:$0xff]  ;;  %v60_v23 = vld [vmem:[%s2280_s0 + $0x170] sm:$0xff] }
  0x49   :  { %391 = vmatprep.mubr.f32.mxu0 %v95_v40  ;;  %v67_v24 = vld [vmem:[%s2280_s0 + $0x1a8] sm:$0xff]  ;;  %v69_v25 = vld [vmem:[%s2280_s0 + $0x1b8] sm:$0xff]  ;;  %v66_v26 = vld [vmem:[%s2280_s0 + $0x1a0] sm:$0xff] }
  0x4a   :  { %532 = vmatmul.mubr.f32.gmra.mrb[18].mxu1 %v88_v39  ;;  %v68_v27 = vld [vmem:[%s2280_s0 + $0x1b0] sm:$0xff]  ;;  %v75_v28 = vld [vmem:[%s2280_s0 + $0x1e8] sm:$0xff]  ;;  %v77_v29 = vld [vmem:[%s2280_s0 + $0x1f8] sm:$0xff] }
  0x4b   :  { %536 = vmatprep.mubr.f32.mxu1 %v97_v41  ;;  %v74_v30 = vld [vmem:[%s2280_s0 + $0x1e0] sm:$0xff]  ;;  %v76_v31 = vld [vmem:[%s2280_s0 + $0x1f0] sm:$0xff]  ;;  %v83_v32 = vld [vmem:[%s2280_s0 + $0x228] sm:$0xff] }
  0x4c   :  { %392 = vmatmul.mubr.f32.gmra.mrb[20].mxu0 %v94_v42  ;;  %v85_v33 = vld [vmem:[%s2280_s0 + $0x238] sm:$0xff]  ;;  %v82_v34 = vld [vmem:[%s2280_s0 + $0x220] sm:$0xff]  ;;  %v84_v35 = vld [vmem:[%s2280_s0 + $0x230] sm:$0xff] }
  0x4d   :  { %396 = vmatprep.mubr.f32.mxu0 %v103_v44  ;;  %v91_v36 = vld [vmem:[%s2280_s0 + $0x268] sm:$0xff]  ;;  %v93_v37 = vld [vmem:[%s2280_s0 + $0x278] sm:$0xff]  ;;  %v90_v38 = vld [vmem:[%s2280_s0 + $0x260] sm:$0xff] }
  0x4e   :  { %537 = vmatmul.mubr.f32.gmra.mrb[20].mxu1 %v96_v43  ;;  %v92_v39 = vld [vmem:[%s2280_s0 + $0x270] sm:$0xff]  ;;  %v99_v40 = vld [vmem:[%s2280_s0 + $0x2a8] sm:$0xff]  ;;  %v101_v41 = vld [vmem:[%s2280_s0 + $0x2b8] sm:$0xff] }
  0x4f   :  { %541 = vmatprep.mubr.f32.mxu1 %v105_v45  ;;  %v98_v42 = vld [vmem:[%s2280_s0 + $0x2a0] sm:$0xff]  ;;  %v100_v43 = vld [vmem:[%s2280_s0 + $0x2b0] sm:$0xff]  ;;  %v107_v44 = vld [vmem:[%s2280_s0 + $0x2e8] sm:$0xff] }
  0x50   :  { %397 = vmatmul.mubr.f32.gmra.mrb[22].mxu0 %v102_v46  ;;  %v109_v45 = vld [vmem:[%s2280_s0 + $0x2f8] sm:$0xff]  ;;  %v106_v46 = vld [vmem:[%s2280_s0 + $0x2e0] sm:$0xff] }
  0x51   :  { %401 = vmatprep.mubr.f32.mxu0 %v111_v48  ;;  %v115_v48 = vld [vmem:[%s2280_s0 + $0x328] sm:$0xff] }
  0x52   :  { %542 = vmatmul.mubr.f32.gmra.mrb[22].mxu1 %v104_v47  ;;  %v108_v47 = vld [vmem:[%s2280_s0 + $0x2f0] sm:$0xff] }
  0x53   :  { %546 = vmatprep.mubr.f32.mxu1 %v113_v49  ;;  %v117_v49 = vld [vmem:[%s2280_s0 + $0x338] sm:$0xff] }
  0x54   :  { %402 = vmatmul.mubr.f32.gmra.mrb[24].mxu0 %v110_v50  ;;  %v114_v50 = vld [vmem:[%s2280_s0 + $0x320] sm:$0xff] }
  0x55   :  { %406 = vmatprep.mubr.f32.mxu0 %v119_v52  ;;  %v123_v52 = vld [vmem:[%s2280_s0 + $0x368] sm:$0xff] }
  0x56   :  { %547 = vmatmul.mubr.f32.gmra.mrb[24].mxu1 %v112_v51  ;;  %v116_v51 = vld [vmem:[%s2280_s0 + $0x330] sm:$0xff] }
  0x57   :  { %551 = vmatprep.mubr.f32.mxu1 %v121_v53  ;;  %v125_v53 = vld [vmem:[%s2280_s0 + $0x378] sm:$0xff] }
  0x58   :  { %407 = vmatmul.mubr.f32.gmra.mrb[26].mxu0 %v118_v54  ;;  %v122_v54 = vld [vmem:[%s2280_s0 + $0x360] sm:$0xff] }
  0x59   :  { %411 = vmatprep.mubr.f32.mxu0 %v127_v56  ;;  %v131_v56 = vld [vmem:[%s2280_s0 + $0x3a8] sm:$0xff] }
  0x5a   :  { %552 = vmatmul.mubr.f32.gmra.mrb[26].mxu1 %v120_v55  ;;  %v124_v55 = vld [vmem:[%s2280_s0 + $0x370] sm:$0xff] }
  0x5b   :  { %556 = vmatprep.mubr.f32.mxu1 %v129_v57  ;;  %v133_v57 = vld [vmem:[%s2280_s0 + $0x3b8] sm:$0xff] }
  0x5c   :  { %412 = vmatmul.mubr.f32.gmra.mrb[28].mxu0 %v126_v58  ;;  %v130_v58 = vld [vmem:[%s2280_s0 + $0x3a0] sm:$0xff] }
  0x5d   :  { %416 = vmatprep.mubr.f32.mxu0 %v135_v60  ;;  %v139_v60 = vld [vmem:[%s2280_s0 + $0x3e8] sm:$0xff] }
  0x5e   :  { %557 = vmatmul.mubr.f32.gmra.mrb[28].mxu1 %v128_v59  ;;  %v132_v59 = vld [vmem:[%s2280_s0 + $0x3b0] sm:$0xff] }
  0x5f   :  { %561 = vmatprep.mubr.f32.mxu1 %v137_v61  ;;  %v141_v61 = vld [vmem:[%s2280_s0 + $0x3f8] sm:$0xff] }
  0x60   :  { %417 = vmatmul.mubr.f32.gmra.mrb[30].mxu0 %v134_v62  ;;  %v138_v62 = vld [vmem:[%s2280_s0 + $0x3e0] sm:$0xff] }
  0x61   :  { %631 = vmatprep.mubr.f32.mxu0 %v19_v0 }
  0x62   :  { %562 = vmatmul.mubr.f32.gmra.mrb[30].mxu1 %v136_v63  ;;  %v140_v63 = vld [vmem:[%s2280_s0 + $0x3f0] sm:$0xff] }
  0x63   :  { %776 = vmatprep.mubr.f32.mxu1 %v21_v1  ;;  %v2165_v1 = vld [vmem:[%s2281_s2] ss:$0 sm:$0xff] }
  0x64   :  { %632 = vmatmul.mubr.f32.vlgmr.msra.gmra.mrb[32].mxu0 %v18_v2 }
  0x65   :  { %636 = vmatprep.mubr.f32.mxu0 %v27_v4 }
  0x66   :  { %777 = vmatmul.mubr.f32.vlgmr.msra.gmra.mrb[32].mxu1 %v20_v3 }
  0x67   :  { %781 = vmatprep.mubr.f32.mxu1 %v29_v5 }
  0x68   :  { %637 = vmatmul.mubr.f32.gmra.mrb[34].mxu0 %v26_v6 }
  0x69   :  { %641 = vmatprep.mubr.f32.mxu0 %v35_v8 }
  0x6a   :  { %782 = vmatmul.mubr.f32.gmra.mrb[34].mxu1 %v28_v7 }
  0x6b   :  { %786 = vmatprep.mubr.f32.mxu1 %v37_v9 }
  0x6c   :  { %642 = vmatmul.mubr.f32.gmra.mrb[36].mxu0 %v34_v10 }
  0x6d   :  { %646 = vmatprep.mubr.f32.mxu0 %v43_v12 }
  0x6e   :  { %787 = vmatmul.mubr.f32.gmra.mrb[36].mxu1 %v36_v11 }
  0x6f   :  { %791 = vmatprep.mubr.f32.mxu1 %v45_v13 }
  0x70   :  { %647 = vmatmul.mubr.f32.gmra.mrb[38].mxu0 %v42_v14 }
  0x71   :  { %651 = vmatprep.mubr.f32.mxu0 %v51_v16 }
  0x72   :  { %792 = vmatmul.mubr.f32.gmra.mrb[38].mxu1 %v44_v15 }
  0x73   :  { %796 = vmatprep.mubr.f32.mxu1 %v53_v17 }
  0x74   :  { %652 = vmatmul.mubr.f32.gmra.mrb[40].mxu0 %v50_v18 }
  0x75   :  { %656 = vmatprep.mubr.f32.mxu0 %v59_v20 }
  0x76   :  { %797 = vmatmul.mubr.f32.gmra.mrb[40].mxu1 %v52_v19 }
  0x77   :  { %801 = vmatprep.mubr.f32.mxu1 %v61_v21 }
  0x78   :  { %657 = vmatmul.mubr.f32.gmra.mrb[42].mxu0 %v58_v22 }
  0x79   :  { %661 = vmatprep.mubr.f32.mxu0 %v67_v24 }
  0x7a   :  { %802 = vmatmul.mubr.f32.gmra.mrb[42].mxu1 %v60_v23 }
  0x7b   :  { %806 = vmatprep.mubr.f32.mxu1 %v69_v25 }
  0x7c   :  { %662 = vmatmul.mubr.f32.gmra.mrb[44].mxu0 %v66_v26 }
  0x7d   :  { %666 = vmatprep.mubr.f32.mxu0 %v75_v28 }
  0x7e   :  { %807 = vmatmul.mubr.f32.gmra.mrb[44].mxu1 %v68_v27 }
  0x7f   :  { %811 = vmatprep.mubr.f32.mxu1 %v77_v29 }
  0x80   :  { %667 = vmatmul.mubr.f32.gmra.mrb[46].mxu0 %v74_v30 }
  0x81   :  { %671 = vmatprep.mubr.f32.mxu0 %v83_v32 }
  0x82   :  { %812 = vmatmul.mubr.f32.gmra.mrb[46].mxu1 %v76_v31 }
  0x83   :  { %816 = vmatprep.mubr.f32.mxu1 %v85_v33 }
  0x84   :  { %672 = vmatmul.mubr.f32.gmra.mrb[48].mxu0 %v82_v34 }
  0x85   :  { %676 = vmatprep.mubr.f32.mxu0 %v91_v36 }
  0x86   :  { %817 = vmatmul.mubr.f32.gmra.mrb[48].mxu1 %v84_v35 }
  0x87   :  { %821 = vmatprep.mubr.f32.mxu1 %v93_v37 }
  0x88   :  { %677 = vmatmul.mubr.f32.gmra.mrb[50].mxu0 %v90_v38 }
  0x89   :  { %681 = vmatprep.mubr.f32.mxu0 %v99_v40 }
  0x8a   :  { %822 = vmatmul.mubr.f32.gmra.mrb[50].mxu1 %v92_v39 }
  0x8b   :  { %826 = vmatprep.mubr.f32.mxu1 %v101_v41 }
  0x8c   :  { %682 = vmatmul.mubr.f32.gmra.mrb[52].mxu0 %v98_v42 }
  0x8d   :  { %686 = vmatprep.mubr.f32.mxu0 %v107_v44 }
  0x8e   :  { %827 = vmatmul.mubr.f32.gmra.mrb[52].mxu1 %v100_v43 }
  0x8f   :  { %831 = vmatprep.mubr.f32.mxu1 %v109_v45 }
  0x90   :  { %687 = vmatmul.mubr.f32.gmra.mrb[54].mxu0 %v106_v46 }
  0x91   :  { %691 = vmatprep.mubr.f32.mxu0 %v115_v48 }
  0x92   :  { %832 = vmatmul.mubr.f32.gmra.mrb[54].mxu1 %v108_v47 }
  0x93   :  { %836 = vmatprep.mubr.f32.mxu1 %v117_v49 }
  0x94   :  { %692 = vmatmul.mubr.f32.gmra.mrb[56].mxu0 %v114_v50 }
  0x95   :  { %696 = vmatprep.mubr.f32.mxu0 %v123_v52 }
  0x96   :  { %837 = vmatmul.mubr.f32.gmra.mrb[56].mxu1 %v116_v51 }
  0x97   :  { %841 = vmatprep.mubr.f32.mxu1 %v125_v53 }
  0x98   :  { %697 = vmatmul.mubr.f32.gmra.mrb[58].mxu0 %v122_v54 }
  0x99   :  { %701 = vmatprep.mubr.f32.mxu0 %v131_v56 }
  0x9a   :  { %842 = vmatmul.mubr.f32.gmra.mrb[58].mxu1 %v124_v55 }
  0x9b   :  { %846 = vmatprep.mubr.f32.mxu1 %v133_v57 }
  0x9c   :  { %702 = vmatmul.mubr.f32.gmra.mrb[60].mxu0 %v130_v58 }
  0x9d   :  { %706 = vmatprep.mubr.f32.mxu0 %v139_v60 }
  0x9e   :  { %847 = vmatmul.mubr.f32.gmra.mrb[60].mxu1 %v132_v59 }
  0x9f   :  { %851 = vmatprep.mubr.f32.mxu1 %v141_v61 }
  0xa0   :  { %707 = vmatmul.mubr.f32.gmra.mrb[62].mxu0 %v138_v62 }
  0xa2   :  { %852 = vmatmul.mubr.f32.gmra.mrb[62].mxu1 %v140_v63 }
  0xf7   :  { %v958_v0 = vpop.f32.mrb[0].mxu0 }
  0xf8   :  { %v959_v2 = vpop.f32.mrb[1].mxu0 }
  0xf9   :  { %v1038_v3 = vpop.f32.mrb[0].mxu1  ;;  %v960_v4 = vadd.f32 %v959_v2, %v958_v0 }
  0xfa   :  { %v1039_v5 = vpop.f32.mrb[1].mxu1 }
  0xfb   :  { %v1040_v6 = vadd.f32 %v1039_v5, %v1038_v3  ;;  %v344_v7 = vadd.f32 %v960_v4, %v2165_v1  ;;  %v961_v8 = vpop.f32.mrb[2].mxu0 }
  0xfc   :  { %v962_v9 = vpop.f32.mrb[3].mxu0 }
  0xfd   :  { %v1041_v10 = vpop.f32.mrb[2].mxu1  ;;  %v2168_v11 = vadd.f32 %v1040_v6, %v344_v7  ;;  %v963_v12 = vadd.f32 %v962_v9, %v961_v8 }
  0xfe   :  { %v1042_v13 = vpop.f32.mrb[3].mxu1 }
  0xff   :  { %v1043_v14 = vadd.f32 %v1042_v13, %v1041_v10  ;;  %v349_v15 = vadd.f32 %v963_v12, %v2165_v1  ;;  %v964_v16 = vpop.f32.mrb[4].mxu0 }
 0x100   :  { %v965_v17 = vpop.f32.mrb[5].mxu0 }
 0x101   :  { %v1044_v18 = vpop.f32.mrb[4].mxu1  ;;  %v2171_v19 = vadd.f32 %v1043_v14, %v349_v15  ;;  %v966_v20 = vadd.f32 %v965_v17, %v964_v16 }
 0x102   :  { %v1045_v21 = vpop.f32.mrb[5].mxu1 }
 0x103   :  { %v1046_v22 = vadd.f32 %v1045_v21, %v1044_v18  ;;  %v354_v23 = vadd.f32 %v966_v20, %v2165_v1  ;;  %v967_v24 = vpop.f32.mrb[6].mxu0 }
 0x104   :  { %v968_v25 = vpop.f32.mrb[7].mxu0 }
 0x105   :  { %v1047_v26 = vpop.f32.mrb[6].mxu1  ;;  %v2174_v27 = vadd.f32 %v1046_v22, %v354_v23  ;;  %v969_v28 = vadd.f32 %v968_v25, %v967_v24 }
 0x106   :  { %v1048_v29 = vpop.f32.mrb[7].mxu1 }
 0x107   :  { %v1049_v30 = vadd.f32 %v1048_v29, %v1047_v26  ;;  %v359_v31 = vadd.f32 %v969_v28, %v2165_v1  ;;  %v970_v32 = vpop.f32.mrb[8].mxu0 }
 0x108   :  { %v971_v33 = vpop.f32.mrb[9].mxu0 }
 0x109   :  { %v1050_v34 = vpop.f32.mrb[8].mxu1  ;;  %v2177_v35 = vadd.f32 %v1049_v30, %v359_v31  ;;  %v972_v36 = vadd.f32 %v971_v33, %v970_v32 }
 0x10a   :  { %v1051_v37 = vpop.f32.mrb[9].mxu1 }
 0x10b   :  { %v1052_v38 = vadd.f32 %v1051_v37, %v1050_v34  ;;  %v364_v39 = vadd.f32 %v972_v36, %v2165_v1  ;;  %v973_v40 = vpop.f32.mrb[10].mxu0 }
 0x10c   :  { %v974_v41 = vpop.f32.mrb[11].mxu0 }
 0x10d   :  { %v1053_v42 = vpop.f32.mrb[10].mxu1  ;;  %v2180_v43 = vadd.f32 %v1052_v38, %v364_v39  ;;  %v975_v44 = vadd.f32 %v974_v41, %v973_v40 }
 0x10e   :  { %v1054_v45 = vpop.f32.mrb[11].mxu1 }
 0x10f   :  { %v1055_v46 = vadd.f32 %v1054_v45, %v1053_v42  ;;  %v369_v47 = vadd.f32 %v975_v44, %v2165_v1  ;;  %v976_v48 = vpop.f32.mrb[12].mxu0 }
 0x110   :  { %v977_v49 = vpop.f32.mrb[13].mxu0 }
 0x111   :  { %v1056_v50 = vpop.f32.mrb[12].mxu1  ;;  %v2183_v51 = vadd.f32 %v1055_v46, %v369_v47  ;;  %v978_v52 = vadd.f32 %v977_v49, %v976_v48 }
 0x112   :  { %v1057_v53 = vpop.f32.mrb[13].mxu1 }
 0x113   :  { %v1058_v54 = vadd.f32 %v1057_v53, %v1056_v50  ;;  %v374_v55 = vadd.f32 %v978_v52, %v2165_v1  ;;  %v979_v56 = vpop.f32.mrb[14].mxu0 }
 0x114   :  { %v980_v57 = vpop.f32.mrb[15].mxu0 }
 0x115   :  { %v1059_v58 = vpop.f32.mrb[14].mxu1  ;;  %v2186_v59 = vadd.f32 %v1058_v54, %v374_v55  ;;  %v981_v60 = vadd.f32 %v980_v57, %v979_v56 }
 0x116   :  { %v1060_v61 = vpop.f32.mrb[15].mxu1 }
 0x117   :  { %v1061_v62 = vadd.f32 %v1060_v61, %v1059_v58  ;;  %v379_v63 = vadd.f32 %v981_v60, %v2165_v1  ;;  %v982_v0 = vpop.f32.mrb[16].mxu0 }
 0x118   :  { %v983_v2 = vpop.f32.mrb[17].mxu0 }
 0x119   :  { %v1062_v3 = vpop.f32.mrb[16].mxu1  ;;  %v2189_v4 = vadd.f32 %v1061_v62, %v379_v63  ;;  %v984_v5 = vadd.f32 %v983_v2, %v982_v0 }
 0x11a   :  { %v1063_v6 = vpop.f32.mrb[17].mxu1 }
 0x11b   :  { %v1064_v7 = vadd.f32 %v1063_v6, %v1062_v3  ;;  %v384_v8 = vadd.f32 %v984_v5, %v2165_v1  ;;  %v985_v9 = vpop.f32.mrb[18].mxu0 }
 0x11c   :  { %v986_v10 = vpop.f32.mrb[19].mxu0 }
 0x11d   :  { %v1065_v12 = vpop.f32.mrb[18].mxu1  ;;  %v2192_v13 = vadd.f32 %v1064_v7, %v384_v8  ;;  %v987_v14 = vadd.f32 %v986_v10, %v985_v9 }
 0x11e   :  { %v1066_v15 = vpop.f32.mrb[19].mxu1 }
 0x11f   :  { %v1067_v16 = vadd.f32 %v1066_v15, %v1065_v12  ;;  %v389_v17 = vadd.f32 %v987_v14, %v2165_v1  ;;  %v988_v18 = vpop.f32.mrb[20].mxu0 }
 0x120   :  { %v989_v20 = vpop.f32.mrb[21].mxu0 }
 0x121   :  { %v1068_v21 = vpop.f32.mrb[20].mxu1  ;;  %v2195_v22 = vadd.f32 %v1067_v16, %v389_v17  ;;  %v990_v23 = vadd.f32 %v989_v20, %v988_v18 }
 0x122   :  { %v1069_v24 = vpop.f32.mrb[21].mxu1 }
 0x123   :  { %v1070_v25 = vadd.f32 %v1069_v24, %v1068_v21  ;;  %v394_v26 = vadd.f32 %v990_v23, %v2165_v1  ;;  %v991_v28 = vpop.f32.mrb[22].mxu0 }
 0x124   :  { %v992_v29 = vpop.f32.mrb[23].mxu0 }
 0x125   :  { %v1071_v30 = vpop.f32.mrb[22].mxu1  ;;  %v2198_v31 = vadd.f32 %v1070_v25, %v394_v26  ;;  %v993_v32 = vadd.f32 %v992_v29, %v991_v28 }
 0x126   :  { %v1072_v33 = vpop.f32.mrb[23].mxu1 }
 0x127   :  { %v1073_v34 = vadd.f32 %v1072_v33, %v1071_v30  ;;  %v399_v36 = vadd.f32 %v993_v32, %v2165_v1  ;;  %v994_v37 = vpop.f32.mrb[24].mxu0 }
 0x128   :  { %v995_v38 = vpop.f32.mrb[25].mxu0 }
 0x129   :  { %v1074_v39 = vpop.f32.mrb[24].mxu1  ;;  %v2201_v40 = vadd.f32 %v1073_v34, %v399_v36  ;;  %v996_v41 = vadd.f32 %v995_v38, %v994_v37 }
 0x12a   :  { %v1075_v42 = vpop.f32.mrb[25].mxu1 }
 0x12b   :  { %v1076_v44 = vadd.f32 %v1075_v42, %v1074_v39  ;;  %v404_v45 = vadd.f32 %v996_v41, %v2165_v1  ;;  %v997_v46 = vpop.f32.mrb[26].mxu0 }
 0x12c   :  { %v998_v47 = vpop.f32.mrb[27].mxu0 }
 0x12d   :  { %v1077_v48 = vpop.f32.mrb[26].mxu1  ;;  %v2204_v49 = vadd.f32 %v1076_v44, %v404_v45  ;;  %v999_v50 = vadd.f32 %v998_v47, %v997_v46 }
 0x12e   :  { %v1078_v52 = vpop.f32.mrb[27].mxu1 }
 0x12f   :  { %v1079_v53 = vadd.f32 %v1078_v52, %v1077_v48  ;;  %v409_v54 = vadd.f32 %v999_v50, %v2165_v1  ;;  %v1000_v55 = vpop.f32.mrb[28].mxu0 }
 0x130   :  { %v1001_v56 = vpop.f32.mrb[29].mxu0 }
 0x131   :  { %v1080_v57 = vpop.f32.mrb[28].mxu1  ;;  %v2207_v58 = vadd.f32 %v1079_v53, %v409_v54  ;;  %v1002_v60 = vadd.f32 %v1001_v56, %v1000_v55 }
 0x132   :  { %v1081_v61 = vpop.f32.mrb[29].mxu1 }
 0x133   :  { %v1082_v62 = vadd.f32 %v1081_v61, %v1080_v57  ;;  %v414_v63 = vadd.f32 %v1002_v60, %v2165_v1  ;;  %v1003_v0 = vpop.f32.mrb[30].mxu0 }
 0x134   :  { %v1004_v2 = vpop.f32.mrb[31].mxu0 }
 0x135   :  { %v1083_v3 = vpop.f32.mrb[30].mxu1  ;;  %v2210_v5 = vadd.f32 %v1082_v62, %v414_v63  ;;  %v1005_v6 = vadd.f32 %v1004_v2, %v1003_v0 }
 0x136   :  { %v1084_v7 = vpop.f32.mrb[31].mxu1 }
 0x137   :  { %v1085_v8 = vadd.f32 %v1084_v7, %v1083_v3  ;;  %v419_v9 = vadd.f32 %v1005_v6, %v2165_v1  ;;  %v1118_v10 = vpop.f32.mrb[32].mxu0 }
 0x138   :  { %v1119_v12 = vpop.f32.mrb[33].mxu0 }
 0x139   :  { %v1198_v14 = vpop.f32.mrb[32].mxu1  ;;  %v2213_v15 = vadd.f32 %v1085_v8, %v419_v9  ;;  %v1120_v16 = vadd.f32 %v1119_v12, %v1118_v10 }
 0x13a   :  { %v1199_v17 = vpop.f32.mrb[33].mxu1 }
 0x13b   :  { %v1200_v18 = vadd.f32 %v1199_v17, %v1198_v14  ;;  %v634_v20 = vadd.f32 %v1120_v16, %v2168_v11  ;;  %v1121_v21 = vpop.f32.mrb[34].mxu0 }
 0x13c   :  { %v1122_v23 = vpop.f32.mrb[35].mxu0 }
 0x13d   :  { %v1201_v24 = vpop.f32.mrb[34].mxu1  ;;  %v779_v25 = vadd.f32 %v1200_v18, %v634_v20  ;;  %v1123_v26 = vadd.f32 %v1122_v23, %v1121_v21 }
 0x13e   :  { %v1202_v28 = vpop.f32.mrb[35].mxu1 }
 0x13f   :  { %v1203_v29 = vadd.f32 %v1202_v28, %v1201_v24  ;;  %vm857_vm0 = vcmp.ge.f32.partialorder %v779_v25, 0.0  ;;  %v873_v30 = vmul.f32 0.2, %v779_v25  ;;  %v639_v1 = vadd.f32 %v1123_v26, %v2171_v19  ;;  %v1124_v32 = vpop.f32.mrb[36].mxu0 }
 0x140   :  { %v1125_v33 = vpop.f32.mrb[37].mxu0 }
 0x141   :  { %v1204_v34 = vpop.f32.mrb[36].mxu1  ;;  %v889_v36 = vsel %vm857_vm0, %v779_v25, %v873_v30  ;;  %v784_v37 = vadd.f32 %v1203_v29, %v639_v1  ;;  %v1126_v38 = vadd.f32 %v1125_v33, %v1124_v32 }
 0x142   :  { %v1205_v39 = vpop.f32.mrb[37].mxu1  ;;  %905 = vst [vmem:[%s2282_s3] sm:$0xff] %v889_v36 }
 0x143   :  { %v1206_v11 = vadd.f32 %v1205_v39, %v1204_v34  ;;  %vm858_vm1 = vcmp.ge.f32.partialorder %v784_v37, 0.0  ;;  %v874_v41 = vmul.f32 0.2, %v784_v37  ;;  %v644_v42 = vadd.f32 %v1126_v38, %v2174_v27  ;;  %v1127_v44 = vpop.f32.mrb[38].mxu0 }
 0x144   :  { %v1128_v45 = vpop.f32.mrb[39].mxu0 }
 0x145   :  { %v1207_v46 = vpop.f32.mrb[38].mxu1  ;;  %v890_v19 = vsel %vm858_vm1, %v784_v37, %v874_v41  ;;  %v789_v47 = vadd.f32 %v1206_v11, %v644_v42  ;;  %v1129_v48 = vadd.f32 %v1128_v45, %v1127_v44 }
 0x146   :  { %v1208_v50 = vpop.f32.mrb[39].mxu1  ;;  %906 = vst [vmem:[%s2282_s3 + $0x8] sm:$0xff] %v890_v19 }
 0x147   :  { %v1209_v52 = vadd.f32 %v1208_v50, %v1207_v46  ;;  %vm859_vm2 = vcmp.ge.f32.partialorder %v789_v47, 0.0  ;;  %v875_v53 = vmul.f32 0.2, %v789_v47  ;;  %v649_v54 = vadd.f32 %v1129_v48, %v2177_v35  ;;  %v1130_v55 = vpop.f32.mrb[40].mxu0 }
 0x148   :  { %v1131_v56 = vpop.f32.mrb[41].mxu0 }
 0x149   :  { %v1210_v57 = vpop.f32.mrb[40].mxu1  ;;  %v891_v27 = vsel %vm859_vm2, %v789_v47, %v875_v53  ;;  %v794_v60 = vadd.f32 %v1209_v52, %v649_v54  ;;  %v1132_v61 = vadd.f32 %v1131_v56, %v1130_v55 }
 0x14a   :  { %v1211_v62 = vpop.f32.mrb[41].mxu1  ;;  %907 = vst [vmem:[%s2282_s3 + $0x10] sm:$0xff] %v891_v27 }
 0x14b   :  { %v1212_v63 = vadd.f32 %v1211_v62, %v1210_v57  ;;  %vm860_vm3 = vcmp.ge.f32.partialorder %v794_v60, 0.0  ;;  %v876_v0 = vmul.f32 0.2, %v794_v60  ;;  %v654_v2 = vadd.f32 %v1132_v61, %v2180_v43  ;;  %v1133_v3 = vpop.f32.mrb[42].mxu0 }
 0x14c   :  { %v1134_v6 = vpop.f32.mrb[43].mxu0 }
 0x14d   :  { %v1213_v7 = vpop.f32.mrb[42].mxu1  ;;  %v892_v35 = vsel %vm860_vm3, %v794_v60, %v876_v0  ;;  %v799_v8 = vadd.f32 %v1212_v63, %v654_v2  ;;  %v1135_v9 = vadd.f32 %v1134_v6, %v1133_v3 }
 0x14e   :  { %v1214_v10 = vpop.f32.mrb[43].mxu1  ;;  %908 = vst [vmem:[%s2282_s3 + $0x18] sm:$0xff] %v892_v35 }
 0x14f   :  { %v1215_v12 = vadd.f32 %v1214_v10, %v1213_v7  ;;  %vm861_vm4 = vcmp.ge.f32.partialorder %v799_v8, 0.0  ;;  %v877_v14 = vmul.f32 0.2, %v799_v8  ;;  %v659_v16 = vadd.f32 %v1135_v9, %v2183_v51  ;;  %v1136_v17 = vpop.f32.mrb[44].mxu0 }
 0x150   :  { %v1137_v18 = vpop.f32.mrb[45].mxu0 }
 0x151   :  { %v1216_v20 = vpop.f32.mrb[44].mxu1  ;;  %v893_v43 = vsel %vm861_vm4, %v799_v8, %v877_v14  ;;  %v804_v21 = vadd.f32 %v1215_v12, %v659_v16  ;;  %v1138_v23 = vadd.f32 %v1137_v18, %v1136_v17 }
 0x152   :  { %v1217_v24 = vpop.f32.mrb[45].mxu1  ;;  %909 = vst [vmem:[%s2282_s3 + $0x20] sm:$0xff] %v893_v43 }
 0x153   :  { %v1218_v25 = vadd.f32 %v1217_v24, %v1216_v20  ;;  %vm862_vm5 = vcmp.ge.f32.partialorder %v804_v21, 0.0  ;;  %v878_v26 = vmul.f32 0.2, %v804_v21  ;;  %v664_v28 = vadd.f32 %v1138_v23, %v2186_v59  ;;  %v1139_v29 = vpop.f32.mrb[46].mxu0 }
 0x154   :  { %v1140_v30 = vpop.f32.mrb[47].mxu0 }
 0x155   :  { %v1219_v1 = vpop.f32.mrb[46].mxu1  ;;  %v894_v51 = vsel %vm862_vm5, %v804_v21, %v878_v26  ;;  %v809_v32 = vadd.f32 %v1218_v25, %v664_v28  ;;  %v1141_v33 = vadd.f32 %v1140_v30, %v1139_v29 }
 0x156   :  { %v1220_v34 = vpop.f32.mrb[47].mxu1  ;;  %910 = vst [vmem:[%s2282_s3 + $0x28] sm:$0xff] %v894_v51 }
 0x157   :  { %v1221_v36 = vadd.f32 %v1220_v34, %v1219_v1  ;;  %vm863_vm6 = vcmp.ge.f32.partialorder %v809_v32, 0.0  ;;  %v879_v37 = vmul.f32 0.2, %v809_v32  ;;  %v669_v38 = vadd.f32 %v1141_v33, %v2189_v4  ;;  %v1142_v39 = vpop.f32.mrb[48].mxu0 }
 0x158   :  { %v1143_v11 = vpop.f32.mrb[49].mxu0 }
 0x159   :  { %v1222_v41 = vpop.f32.mrb[48].mxu1  ;;  %v895_v59 = vsel %vm863_vm6, %v809_v32, %v879_v37  ;;  %v814_v42 = vadd.f32 %v1221_v36, %v669_v38  ;;  %v1144_v44 = vadd.f32 %v1143_v11, %v1142_v39 }
 0x15a   :  { %v1223_v45 = vpop.f32.mrb[49].mxu1  ;;  %911 = vst [vmem:[%s2282_s3 + $0x30] sm:$0xff] %v895_v59 }
 0x15b   :  { %v1224_v46 = vadd.f32 %v1223_v45, %v1222_v41  ;;  %vm864_vm7 = vcmp.ge.f32.partialorder %v814_v42, 0.0  ;;  %v880_v19 = vmul.f32 0.2, %v814_v42  ;;  %v674_v47 = vadd.f32 %v1144_v44, %v2192_v13  ;;  %v1145_v48 = vpop.f32.mrb[50].mxu0 }
 0x15c   :  { %v1146_v50 = vpop.f32.mrb[51].mxu0 }
 0x15d   :  { %v1225_v52 = vpop.f32.mrb[50].mxu1  ;;  %v896_v4 = vsel %vm864_vm7, %v814_v42, %v880_v19  ;;  %v819_v53 = vadd.f32 %v1224_v46, %v674_v47  ;;  %v1147_v54 = vadd.f32 %v1146_v50, %v1145_v48 }
 0x15e   :  { %v1226_v55 = vpop.f32.mrb[51].mxu1  ;;  %912 = vst [vmem:[%s2282_s3 + $0x38] sm:$0xff] %v896_v4 }
 0x15f   :  { %v1227_v56 = vadd.f32 %v1226_v55, %v1225_v52  ;;  %vm865_vm8 = vcmp.ge.f32.partialorder %v819_v53, 0.0  ;;  %v881_v57 = vmul.f32 0.2, %v819_v53  ;;  %v679_v27 = vadd.f32 %v1147_v54, %v2195_v22  ;;  %v1148_v60 = vpop.f32.mrb[52].mxu0 }
 0x160   :  { %v1149_v61 = vpop.f32.mrb[53].mxu0 }
 0x161   :  { %v1228_v62 = vpop.f32.mrb[52].mxu1  ;;  %v897_v13 = vsel %vm865_vm8, %v819_v53, %v881_v57  ;;  %v824_v63 = vadd.f32 %v1227_v56, %v679_v27  ;;  %v1150_v0 = vadd.f32 %v1149_v61, %v1148_v60 }
 0x162   :  { %v1229_v2 = vpop.f32.mrb[53].mxu1  ;;  %913 = vst [vmem:[%s2282_s3 + $0x40] sm:$0xff] %v897_v13 }
 0x163   :  { %v1230_v3 = vadd.f32 %v1229_v2, %v1228_v62  ;;  %vm866_vm9 = vcmp.ge.f32.partialorder %v824_v63, 0.0  ;;  %v882_v6 = vmul.f32 0.2, %v824_v63  ;;  %v684_v7 = vadd.f32 %v1150_v0, %v2198_v31  ;;  %v1151_v35 = vpop.f32.mrb[54].mxu0 }
 0x164   :  { %v1152_v8 = vpop.f32.mrb[55].mxu0 }
 0x165   :  { %v1231_v9 = vpop.f32.mrb[54].mxu1  ;;  %v898_v22 = vsel %vm866_vm9, %v824_v63, %v882_v6  ;;  %v829_v10 = vadd.f32 %v1230_v3, %v684_v7  ;;  %v1153_v12 = vadd.f32 %v1152_v8, %v1151_v35 }
 0x166   :  { %v1232_v14 = vpop.f32.mrb[55].mxu1  ;;  %914 = vst [vmem:[%s2282_s3 + $0x48] sm:$0xff] %v898_v22 }
 0x167   :  { %v1233_v16 = vadd.f32 %v1232_v14, %v1231_v9  ;;  %vm867_vm10 = vcmp.ge.f32.partialorder %v829_v10, 0.0  ;;  %v883_v17 = vmul.f32 0.2, %v829_v10  ;;  %v689_v18 = vadd.f32 %v1153_v12, %v2201_v40  ;;  %v1154_v20 = vpop.f32.mrb[56].mxu0 }
 0x168   :  { %v1155_v43 = vpop.f32.mrb[57].mxu0 }
 0x169   :  { %v1234_v21 = vpop.f32.mrb[56].mxu1  ;;  %v899_v31 = vsel %vm867_vm10, %v829_v10, %v883_v17  ;;  %v834_v23 = vadd.f32 %v1233_v16, %v689_v18  ;;  %v1156_v24 = vadd.f32 %v1155_v43, %v1154_v20 }
 0x16a   :  { %v1235_v25 = vpop.f32.mrb[57].mxu1  ;;  %915 = vst [vmem:[%s2282_s3 + $0x50] sm:$0xff] %v899_v31 }
 0x16b   :  { %v1236_v26 = vadd.f32 %v1235_v25, %v1234_v21  ;;  %vm868_vm11 = vcmp.ge.f32.partialorder %v834_v23, 0.0  ;;  %v884_v28 = vmul.f32 0.2, %v834_v23  ;;  %v694_v29 = vadd.f32 %v1156_v24, %v2204_v49  ;;  %v1157_v30 = vpop.f32.mrb[58].mxu0 }
 0x16c   :  { %v1158_v1 = vpop.f32.mrb[59].mxu0 }
 0x16d   :  { %v1237_v51 = vpop.f32.mrb[58].mxu1  ;;  %v900_v40 = vsel %vm868_vm11, %v834_v23, %v884_v28  ;;  %v839_v32 = vadd.f32 %v1236_v26, %v694_v29  ;;  %v1159_v33 = vadd.f32 %v1158_v1, %v1157_v30 }
 0x16e   :  { %v1238_v34 = vpop.f32.mrb[59].mxu1  ;;  %916 = vst [vmem:[%s2282_s3 + $0x58] sm:$0xff] %v900_v40 }
 0x16f   :  { %v1239_v36 = vadd.f32 %v1238_v34, %v1237_v51  ;;  %vm869_vm12 = vcmp.ge.f32.partialorder %v839_v32, 0.0  ;;  %v885_v37 = vmul.f32 0.2, %v839_v32  ;;  %v699_v38 = vadd.f32 %v1159_v33, %v2207_v58  ;;  %v1160_v39 = vpop.f32.mrb[60].mxu0 }
 0x170   :  { %v1161_v11 = vpop.f32.mrb[61].mxu0 }
 0x171   :  { %v1240_v41 = vpop.f32.mrb[60].mxu1  ;;  %v901_v49 = vsel %vm869_vm12, %v839_v32, %v885_v37  ;;  %v844_v59 = vadd.f32 %v1239_v36, %v699_v38  ;;  %v1162_v42 = vadd.f32 %v1161_v11, %v1160_v39 }
 0x172   :  { %v1241_v44 = vpop.f32.mrb[61].mxu1  ;;  %917 = vst [vmem:[%s2282_s3 + $0x60] sm:$0xff] %v901_v49 }
 0x173   :  { %v1242_v45 = vadd.f32 %v1241_v44, %v1240_v41  ;;  %vm870_vm13 = vcmp.ge.f32.partialorder %v844_v59, 0.0  ;;  %v886_v46 = vmul.f32 0.2, %v844_v59  ;;  %v704_v19 = vadd.f32 %v1162_v42, %v2210_v5  ;;  %v1163_v47 = vpop.f32.mrb[62].mxu0 }
 0x174   :  { %v1164_v48 = vpop.f32.mrb[63].mxu0 }
 0x175   :  { %v1243_v50 = vpop.f32.mrb[62].mxu1  ;;  %v902_v58 = vsel %vm870_vm13, %v844_v59, %v886_v46  ;;  %v849_v52 = vadd.f32 %v1242_v45, %v704_v19  ;;  %v1165_v4 = vadd.f32 %v1164_v48, %v1163_v47 }
 0x176   :  { %v1244_v53 = vpop.f32.mrb[63].mxu1  ;;  %918 = vst [vmem:[%s2282_s3 + $0x68] sm:$0xff] %v902_v58 }
 0x177   :  { %v1245_v54 = vadd.f32 %v1244_v53, %v1243_v50  ;;  %vm871_vm14 = vcmp.ge.f32.partialorder %v849_v52, 0.0  ;;  %v887_v55 = vmul.f32 0.2, %v849_v52  ;;  %v709_v56 = vadd.f32 %v1165_v4, %v2213_v15 }
 0x179   :  { %v903_v57 = vsel %vm871_vm14, %v849_v52, %v887_v55  ;;  %v854_v27 = vadd.f32 %v1245_v54, %v709_v56 }
 0x17a   :  { %919 = vst [vmem:[%s2282_s3 + $0x70] sm:$0xff] %v903_v57 }
 0x17b   :  { %vm872_vm15 = vcmp.ge.f32.partialorder %v854_v27, 0.0  ;;  %v888_v5 = vmul.f32 0.2, %v854_v27 }
 0x17d   :  { %v904_v60 = vsel %vm872_vm15, %v854_v27, %v888_v5 }
 0x17e   :  { %920 = vst [vmem:[%s2282_s3 + $0x78] sm:$0xff] %v904_v60 }

// kernel: custom_discriminator_forward.8
= control target key start
LH: loop header
LB: loop body
LE: loop exit
PB: predicated region body
PF: predicated region fallthrough
CT: control target
= control target key end

     0   :  { %s5009_s1 = inlined_call_operand.vmem [shape: f32[2048,256], index: 1, kind: input, shape index: {}]   ;;  %s5010_s0 = inlined_call_operand.vmem [shape: f32[104,2048], index: 0, kind: input, shape index: {}]   ;;  %s5011_s2 = inlined_call_operand.vmem [shape: f32[1,256], index: 2, kind: input, shape index: {}]   ;;  %s5012_s3 = inlined_call_operand.vmem [shape: f32[104,256], index: 3, kind: output, shape index: {}]  }
   0x1   :  { %v223_v0 = vld [vmem:[%s5009_s1 + $0x8] sm:$0xff]  ;;  %v225_v1 = vld [vmem:[%s5009_s1 + $0x18] sm:$0xff]  ;;  %v222_v5 = vld [vmem:[%s5009_s1] sm:$0xff] }
   0x2   :  { %v479_v2 = vld [vmem:[%s5009_s1 + $0x808] sm:$0xff]  ;;  %v1998_v3 = vpack.c.bf16 %v225_v1, %v223_v0  ;;  %v481_v4 = vld [vmem:[%s5009_s1 + $0x818] sm:$0xff]  ;;  %v224_v6 = vld [vmem:[%s5009_s1 + $0x10] sm:$0xff] }
   0x3   :  { %v2254_v7 = vpack.c.bf16 %v481_v4, %v479_v2  ;;  %v2000_v8 = vpack.c.bf16 %v224_v6, %v222_v5  ;;  %v478_v9 = vld [vmem:[%s5009_s1 + $0x800] sm:$0xff]  ;;  %v480_v10 = vld [vmem:[%s5009_s1 + $0x810] sm:$0xff]  ;;  %v227_v11 = vld [vmem:[%s5009_s1 + $0x28] sm:$0xff] }
   0x4   :  { %1999 = vmatprep.subr.bf16.mxu1 %v1998_v3  ;;  %v2256_v12 = vpack.c.bf16 %v480_v10, %v478_v9  ;;  %v229_v13 = vld [vmem:[%s5009_s1 + $0x38] sm:$0xff]  ;;  %v483_v14 = vld [vmem:[%s5009_s1 + $0x828] sm:$0xff]  ;;  %v226_v18 = vld [vmem:[%s5009_s1 + $0x20] sm:$0xff] }
   0x5   :  { %v485_v15 = vld [vmem:[%s5009_s1 + $0x838] sm:$0xff]  ;;  %2255 = vmatprep.subr.bf16.mxu0 %v2254_v7  ;;  %2001 = vmatpush1.bf16.msra.mxu1 %v2000_v8  ;;  %v2002_v16 = vpack.c.bf16 %v229_v13, %v227_v11  ;;  %v228_v19 = vld [vmem:[%s5009_s1 + $0x30] sm:$0xff]  ;;  %v482_v20 = vld [vmem:[%s5009_s1 + $0x820] sm:$0xff] }
   0x6   :  { %v2258_v17 = vpack.c.bf16 %v485_v15, %v483_v14  ;;  %2257 = vmatpush1.bf16.msra.mxu0 %v2256_v12  ;;  %v2004_v21 = vpack.c.bf16 %v228_v19, %v226_v18  ;;  %v484_v22 = vld [vmem:[%s5009_s1 + $0x830] sm:$0xff]  ;;  %v231_v23 = vld [vmem:[%s5009_s1 + $0x48] sm:$0xff]  ;;  %v233_v24 = vld [vmem:[%s5009_s1 + $0x58] sm:$0xff] }
   0x7   :  { %2003 = vmatprep.subr.bf16.mxu1 %v2002_v16  ;;  %v2260_v25 = vpack.c.bf16 %v484_v22, %v482_v20  ;;  %v2006_v26 = vpack.c.bf16 %v233_v24, %v231_v23  ;;  %v487_v27 = vld [vmem:[%s5009_s1 + $0x848] sm:$0xff]  ;;  %v489_v28 = vld [vmem:[%s5009_s1 + $0x858] sm:$0xff]  ;;  %v230_v29 = vld [vmem:[%s5009_s1 + $0x40] sm:$0xff] }
   0x8   :  { %2259 = vmatprep.subr.bf16.mxu0 %v2258_v17  ;;  %v2262_v30 = vpack.c.bf16 %v489_v28, %v487_v27  ;;  %v232_v31 = vld [vmem:[%s5009_s1 + $0x50] sm:$0xff]  ;;  %v486_v32 = vld [vmem:[%s5009_s1 + $0x840] sm:$0xff]  ;;  %v235_v35 = vld [vmem:[%s5009_s1 + $0x68] sm:$0xff] }
   0x9   :  { %v488_v33 = vld [vmem:[%s5009_s1 + $0x850] sm:$0xff]  ;;  %2005 = vmatpush1.bf16.msra.mxu1 %v2004_v21  ;;  %v2008_v34 = vpack.c.bf16 %v232_v31, %v230_v29  ;;  %v237_v36 = vld [vmem:[%s5009_s1 + $0x78] sm:$0xff]  ;;  %v491_v37 = vld [vmem:[%s5009_s1 + $0x868] sm:$0xff] }
   0xa   :  { %2261 = vmatpush1.bf16.msra.mxu0 %v2260_v25  ;;  %2007 = vmatprep.subr.bf16.mxu1 %v2006_v26  ;;  %v2264_v38 = vpack.c.bf16 %v488_v33, %v486_v32  ;;  %v2010_v39 = vpack.c.bf16 %v237_v36, %v235_v35  ;;  %v493_v40 = vld [vmem:[%s5009_s1 + $0x878] sm:$0xff]  ;;  %v234_v41 = vld [vmem:[%s5009_s1 + $0x60] sm:$0xff]  ;;  %v236_v42 = vld [vmem:[%s5009_s1 + $0x70] sm:$0xff] }
   0xb   :  { %2263 = vmatprep.subr.bf16.mxu0 %v2262_v30  ;;  %v2266_v43 = vpack.c.bf16 %v493_v40, %v491_v37  ;;  %v490_v44 = vld [vmem:[%s5009_s1 + $0x860] sm:$0xff]  ;;  %v492_v45 = vld [vmem:[%s5009_s1 + $0x870] sm:$0xff]  ;;  %v239_v46 = vld [vmem:[%s5009_s1 + $0x88] sm:$0xff]  ;;  %v2012_v50 = vpack.c.bf16 %v236_v42, %v234_v41 }
   0xc   :  { %v241_v47 = vld [vmem:[%s5009_s1 + $0x98] sm:$0xff]  ;;  %v495_v48 = vld [vmem:[%s5009_s1 + $0x888] sm:$0xff]  ;;  %v2268_v51 = vpack.c.bf16 %v492_v45, %v490_v44  ;;  %v238_v53 = vld [vmem:[%s5009_s1 + $0x80] sm:$0xff] }
   0xd   :  { %v497_v49 = vld [vmem:[%s5009_s1 + $0x898] sm:$0xff]  ;;  %2009 = vmatpush1.bf16.msra.mxu1 %v2008_v34  ;;  %v2014_v52 = vpack.c.bf16 %v241_v47, %v239_v46  ;;  %v240_v54 = vld [vmem:[%s5009_s1 + $0x90] sm:$0xff]  ;;  %v494_v55 = vld [vmem:[%s5009_s1 + $0x880] sm:$0xff] }
   0xe   :  { %2265 = vmatpush1.bf16.msra.mxu0 %v2264_v38  ;;  %2011 = vmatprep.subr.bf16.mxu1 %v2010_v39  ;;  %v2270_v56 = vpack.c.bf16 %v497_v49, %v495_v48  ;;  %v496_v57 = vld [vmem:[%s5009_s1 + $0x890] sm:$0xff]  ;;  %v243_v58 = vld [vmem:[%s5009_s1 + $0xa8] sm:$0xff]  ;;  %v245_v59 = vld [vmem:[%s5009_s1 + $0xb8] sm:$0xff]  ;;  %v2016_v62 = vpack.c.bf16 %v240_v54, %v238_v53 }
   0xf   :  { %2267 = vmatprep.subr.bf16.mxu0 %v2266_v43  ;;  %v499_v60 = vld [vmem:[%s5009_s1 + $0x8a8] sm:$0xff]  ;;  %v501_v61 = vld [vmem:[%s5009_s1 + $0x8b8] sm:$0xff]  ;;  %v2272_v63 = vpack.c.bf16 %v496_v57, %v494_v55  ;;  %v2018_v0 = vpack.c.bf16 %v245_v59, %v243_v58  ;;  %v242_v1 = vld [vmem:[%s5009_s1 + $0xa0] sm:$0xff] }
  0x10   :  { %v244_v2 = vld [vmem:[%s5009_s1 + $0xb0] sm:$0xff]  ;;  %v498_v3 = vld [vmem:[%s5009_s1 + $0x8a0] sm:$0xff]  ;;  %v2274_v4 = vpack.c.bf16 %v501_v61, %v499_v60  ;;  %v247_v6 = vld [vmem:[%s5009_s1 + $0xc8] sm:$0xff] }
  0x11   :  { %2013 = vmatpush1.bf16.msra.mxu1 %v2012_v50  ;;  %v500_v5 = vld [vmem:[%s5009_s1 + $0x8b0] sm:$0xff]  ;;  %v249_v7 = vld [vmem:[%s5009_s1 + $0xd8] sm:$0xff]  ;;  %v503_v8 = vld [vmem:[%s5009_s1 + $0x8c8] sm:$0xff]  ;;  %v2020_v10 = vpack.c.bf16 %v244_v2, %v242_v1 }
  0x12   :  { %2269 = vmatpush1.bf16.msra.mxu0 %v2268_v51  ;;  %2015 = vmatprep.subr.bf16.mxu1 %v2014_v52  ;;  %v505_v9 = vld [vmem:[%s5009_s1 + $0x8d8] sm:$0xff]  ;;  %v2276_v11 = vpack.c.bf16 %v500_v5, %v498_v3  ;;  %v2022_v12 = vpack.c.bf16 %v249_v7, %v247_v6  ;;  %v246_v13 = vld [vmem:[%s5009_s1 + $0xc0] sm:$0xff]  ;;  %v248_v14 = vld [vmem:[%s5009_s1 + $0xd0] sm:$0xff] }
  0x13   :  { %2271 = vmatprep.subr.bf16.mxu0 %v2270_v56  ;;  %v502_v15 = vld [vmem:[%s5009_s1 + $0x8c0] sm:$0xff]  ;;  %v2278_v16 = vpack.c.bf16 %v505_v9, %v503_v8  ;;  %v504_v17 = vld [vmem:[%s5009_s1 + $0x8d0] sm:$0xff]  ;;  %v251_v18 = vld [vmem:[%s5009_s1 + $0xe8] sm:$0xff]  ;;  %v2024_v22 = vpack.c.bf16 %v248_v14, %v246_v13 }
  0x14   :  { %v253_v19 = vld [vmem:[%s5009_s1 + $0xf8] sm:$0xff]  ;;  %v507_v20 = vld [vmem:[%s5009_s1 + $0x8e8] sm:$0xff]  ;;  %v2280_v23 = vpack.c.bf16 %v504_v17, %v502_v15  ;;  %v250_v25 = vld [vmem:[%s5009_s1 + $0xe0] sm:$0xff] }
  0x15   :  { %2017 = vmatpush1.bf16.msra.mxu1 %v2016_v62  ;;  %v509_v21 = vld [vmem:[%s5009_s1 + $0x8f8] sm:$0xff]  ;;  %v2026_v24 = vpack.c.bf16 %v253_v19, %v251_v18  ;;  %v252_v26 = vld [vmem:[%s5009_s1 + $0xf0] sm:$0xff]  ;;  %v506_v27 = vld [vmem:[%s5009_s1 + $0x8e0] sm:$0xff] }
  0x16   :  { %2273 = vmatpush1.bf16.msra.mxu0 %v2272_v63  ;;  %2019 = vmatprep.subr.bf16.mxu1 %v2018_v0  ;;  %v2282_v28 = vpack.c.bf16 %v509_v21, %v507_v20  ;;  %v508_v29 = vld [vmem:[%s5009_s1 + $0x8f0] sm:$0xff]  ;;  %v255_v30 = vld [vmem:[%s5009_s1 + $0x108] sm:$0xff]  ;;  %v257_v31 = vld [vmem:[%s5009_s1 + $0x118] sm:$0xff]  ;;  %v2028_v34 = vpack.c.bf16 %v252_v26, %v250_v25 }
  0x17   :  { %2275 = vmatprep.subr.bf16.mxu0 %v2274_v4  ;;  %v511_v32 = vld [vmem:[%s5009_s1 + $0x908] sm:$0xff]  ;;  %v513_v33 = vld [vmem:[%s5009_s1 + $0x918] sm:$0xff]  ;;  %v2284_v35 = vpack.c.bf16 %v508_v29, %v506_v27  ;;  %v2030_v36 = vpack.c.bf16 %v257_v31, %v255_v30  ;;  %v254_v37 = vld [vmem:[%s5009_s1 + $0x100] sm:$0xff] }
  0x18   :  { %v256_v38 = vld [vmem:[%s5009_s1 + $0x110] sm:$0xff]  ;;  %v510_v39 = vld [vmem:[%s5009_s1 + $0x900] sm:$0xff]  ;;  %v2286_v40 = vpack.c.bf16 %v513_v33, %v511_v32  ;;  %v259_v42 = vld [vmem:[%s5009_s1 + $0x128] sm:$0xff] }
  0x19   :  { %2021 = vmatpush1.bf16.msra.mxu1 %v2020_v10  ;;  %v512_v41 = vld [vmem:[%s5009_s1 + $0x910] sm:$0xff]  ;;  %v261_v43 = vld [vmem:[%s5009_s1 + $0x138] sm:$0xff]  ;;  %v515_v44 = vld [vmem:[%s5009_s1 + $0x928] sm:$0xff]  ;;  %v2032_v46 = vpack.c.bf16 %v256_v38, %v254_v37 }
  0x1a   :  { %2277 = vmatpush1.bf16.msra.mxu0 %v2276_v11  ;;  %2023 = vmatprep.subr.bf16.mxu1 %v2022_v12  ;;  %v517_v45 = vld [vmem:[%s5009_s1 + $0x938] sm:$0xff]  ;;  %v2288_v47 = vpack.c.bf16 %v512_v41, %v510_v39  ;;  %v2034_v48 = vpack.c.bf16 %v261_v43, %v259_v42  ;;  %v258_v49 = vld [vmem:[%s5009_s1 + $0x120] sm:$0xff]  ;;  %v260_v50 = vld [vmem:[%s5009_s1 + $0x130] sm:$0xff] }
  0x1b   :  { %2279 = vmatprep.subr.bf16.mxu0 %v2278_v16  ;;  %v514_v51 = vld [vmem:[%s5009_s1 + $0x920] sm:$0xff]  ;;  %v2290_v52 = vpack.c.bf16 %v517_v45, %v515_v44  ;;  %v516_v53 = vld [vmem:[%s5009_s1 + $0x930] sm:$0xff]  ;;  %v263_v54 = vld [vmem:[%s5009_s1 + $0x148] sm:$0xff]  ;;  %v2036_v58 = vpack.c.bf16 %v260_v50, %v258_v49 }
  0x1c   :  { %v265_v55 = vld [vmem:[%s5009_s1 + $0x158] sm:$0xff]  ;;  %v519_v56 = vld [vmem:[%s5009_s1 + $0x948] sm:$0xff]  ;;  %v2292_v59 = vpack.c.bf16 %v516_v53, %v514_v51  ;;  %v262_v61 = vld [vmem:[%s5009_s1 + $0x140] sm:$0xff] }
  0x1d   :  { %2025 = vmatpush1.bf16.msra.mxu1 %v2024_v22  ;;  %v521_v57 = vld [vmem:[%s5009_s1 + $0x958] sm:$0xff]  ;;  %v2038_v60 = vpack.c.bf16 %v265_v55, %v263_v54  ;;  %v264_v62 = vld [vmem:[%s5009_s1 + $0x150] sm:$0xff]  ;;  %v518_v63 = vld [vmem:[%s5009_s1 + $0x940] sm:$0xff] }
  0x1e   :  { %2281 = vmatpush1.bf16.msra.mxu0 %v2280_v23  ;;  %2027 = vmatprep.subr.bf16.mxu1 %v2026_v24  ;;  %v2294_v0 = vpack.c.bf16 %v521_v57, %v519_v56  ;;  %v520_v1 = vld [vmem:[%s5009_s1 + $0x950] sm:$0xff]  ;;  %v267_v2 = vld [vmem:[%s5009_s1 + $0x168] sm:$0xff]  ;;  %v269_v3 = vld [vmem:[%s5009_s1 + $0x178] sm:$0xff]  ;;  %v2040_v6 = vpack.c.bf16 %v264_v62, %v262_v61 }
  0x1f   :  { %2283 = vmatprep.subr.bf16.mxu0 %v2282_v28  ;;  %v523_v4 = vld [vmem:[%s5009_s1 + $0x968] sm:$0xff]  ;;  %v525_v5 = vld [vmem:[%s5009_s1 + $0x978] sm:$0xff]  ;;  %v266_v7 = vld [vmem:[%s5009_s1 + $0x160] sm:$0xff]  ;;  %v2296_v8 = vpack.c.bf16 %v520_v1, %v518_v63  ;;  %v2042_v9 = vpack.c.bf16 %v269_v3, %v267_v2 }
  0x20   :  { %v268_v10 = vld [vmem:[%s5009_s1 + $0x170] sm:$0xff]  ;;  %v522_v11 = vld [vmem:[%s5009_s1 + $0x960] sm:$0xff]  ;;  %v2298_v13 = vpack.c.bf16 %v525_v5, %v523_v4  ;;  %v271_v14 = vld [vmem:[%s5009_s1 + $0x188] sm:$0xff] }
  0x21   :  { %2029 = vmatpush1.bf16.msra.mxu1 %v2028_v34  ;;  %v524_v12 = vld [vmem:[%s5009_s1 + $0x970] sm:$0xff]  ;;  %v273_v15 = vld [vmem:[%s5009_s1 + $0x198] sm:$0xff]  ;;  %v15_v16 = vld [vmem:[%s5010_s0 + $0x8] sm:$0xff]  ;;  %v2044_v20 = vpack.c.bf16 %v268_v10, %v266_v7 }
  0x22   :  { %2285 = vmatpush1.bf16.msra.mxu0 %v2284_v35  ;;  %2031 = vmatprep.subr.bf16.mxu1 %v2030_v36  ;;  %v527_v17 = vld [vmem:[%s5009_s1 + $0x988] sm:$0xff]  ;;  %v529_v18 = vld [vmem:[%s5009_s1 + $0x998] sm:$0xff]  ;;  %v2300_v21 = vpack.c.bf16 %v524_v12, %v522_v11  ;;  %v2046_v22 = vpack.c.bf16 %v273_v15, %v271_v14  ;;  %v270_v23 = vld [vmem:[%s5009_s1 + $0x180] sm:$0xff] }
  0x23   :  { %2287 = vmatprep.subr.bf16.mxu0 %v2286_v40  ;;  %810 = vmatprep.mubr.f32.mxu1 %v15_v16  ;;  %v23_v19 = vld [vmem:[%s5010_s0 + $0x48] sm:$0xff]  ;;  %v272_v24 = vld [vmem:[%s5009_s1 + $0x190] sm:$0xff]  ;;  %v526_v25 = vld [vmem:[%s5009_s1 + $0x980] sm:$0xff]  ;;  %v2302_v26 = vpack.c.bf16 %v529_v18, %v527_v17 }
  0x24   :  { %1382 = vmatprep.mubr.f32.mxu0 %v23_v19  ;;  %v528_v27 = vld [vmem:[%s5009_s1 + $0x990] sm:$0xff]  ;;  %v275_v28 = vld [vmem:[%s5009_s1 + $0x1a8] sm:$0xff]  ;;  %v277_v29 = vld [vmem:[%s5009_s1 + $0x1b8] sm:$0xff]  ;;  %v2048_v32 = vpack.c.bf16 %v272_v24, %v270_v23 }
  0x25   :  { %2033 = vmatpush1.bf16.msra.mxu1 %v2032_v46  ;;  %v531_v30 = vld [vmem:[%s5009_s1 + $0x9a8] sm:$0xff]  ;;  %v533_v31 = vld [vmem:[%s5009_s1 + $0x9b8] sm:$0xff]  ;;  %v2304_v33 = vpack.c.bf16 %v528_v27, %v526_v25  ;;  %v2050_v34 = vpack.c.bf16 %v277_v29, %v275_v28  ;;  %v274_v35 = vld [vmem:[%s5009_s1 + $0x1a0] sm:$0xff] }
  0x26   :  { %2289 = vmatpush1.bf16.msra.mxu0 %v2288_v47  ;;  %2035 = vmatprep.subr.bf16.mxu1 %v2034_v48  ;;  %v276_v36 = vld [vmem:[%s5009_s1 + $0x1b0] sm:$0xff]  ;;  %v530_v37 = vld [vmem:[%s5009_s1 + $0x9a0] sm:$0xff]  ;;  %v2306_v38 = vpack.c.bf16 %v533_v31, %v531_v30  ;;  %v279_v40 = vld [vmem:[%s5009_s1 + $0x1c8] sm:$0xff] }
  0x27   :  { %2291 = vmatprep.subr.bf16.mxu0 %v2290_v52  ;;  %v532_v39 = vld [vmem:[%s5009_s1 + $0x9b0] sm:$0xff]  ;;  %v281_v41 = vld [vmem:[%s5009_s1 + $0x1d8] sm:$0xff]  ;;  %v535_v42 = vld [vmem:[%s5009_s1 + $0x9c8] sm:$0xff]  ;;  %v2052_v44 = vpack.c.bf16 %v276_v36, %v274_v35 }
  0x28   :  { %v537_v43 = vld [vmem:[%s5009_s1 + $0x9d8] sm:$0xff]  ;;  %v2308_v45 = vpack.c.bf16 %v532_v39, %v530_v37  ;;  %v2054_v46 = vpack.c.bf16 %v281_v41, %v279_v40  ;;  %v278_v47 = vld [vmem:[%s5009_s1 + $0x1c0] sm:$0xff]  ;;  %v280_v48 = vld [vmem:[%s5009_s1 + $0x1d0] sm:$0xff] }
  0x29   :  { %2037 = vmatpush1.bf16.msra.mxu1 %v2036_v58  ;;  %v534_v49 = vld [vmem:[%s5009_s1 + $0x9c0] sm:$0xff]  ;;  %v2310_v50 = vpack.c.bf16 %v537_v43, %v535_v42  ;;  %v536_v51 = vld [vmem:[%s5009_s1 + $0x9d0] sm:$0xff]  ;;  %v283_v52 = vld [vmem:[%s5009_s1 + $0x1e8] sm:$0xff]  ;;  %v2056_v56 = vpack.c.bf16 %v280_v48, %v278_v47 }
  0x2a   :  { %2293 = vmatpush1.bf16.msra.mxu0 %v2292_v59  ;;  %2039 = vmatprep.subr.bf16.mxu1 %v2038_v60  ;;  %v285_v53 = vld [vmem:[%s5009_s1 + $0x1f8] sm:$0xff]  ;;  %v539_v54 = vld [vmem:[%s5009_s1 + $0x9e8] sm:$0xff]  ;;  %v2312_v57 = vpack.c.bf16 %v536_v51, %v534_v49  ;;  %v282_v59 = vld [vmem:[%s5009_s1 + $0x1e0] sm:$0xff] }
  0x2b   :  { %2295 = vmatprep.subr.bf16.mxu0 %v2294_v0  ;;  %v541_v55 = vld [vmem:[%s5009_s1 + $0x9f8] sm:$0xff]  ;;  %v2058_v58 = vpack.c.bf16 %v285_v53, %v283_v52  ;;  %v284_v60 = vld [vmem:[%s5009_s1 + $0x1f0] sm:$0xff]  ;;  %v538_v61 = vld [vmem:[%s5009_s1 + $0x9e0] sm:$0xff] }
  0x2c   :  { %v2314_v62 = vpack.c.bf16 %v541_v55, %v539_v54  ;;  %v540_v63 = vld [vmem:[%s5009_s1 + $0x9f0] sm:$0xff]  ;;  %v287_v0 = vld [vmem:[%s5009_s1 + $0x208] sm:$0xff]  ;;  %v289_v1 = vld [vmem:[%s5009_s1 + $0x218] sm:$0xff]  ;;  %v2060_v4 = vpack.c.bf16 %v284_v60, %v282_v59 }
  0x2d   :  { %2041 = vmatpush1.bf16.msra.mxu1 %v2040_v6  ;;  %v543_v2 = vld [vmem:[%s5009_s1 + $0xa08] sm:$0xff]  ;;  %v545_v3 = vld [vmem:[%s5009_s1 + $0xa18] sm:$0xff]  ;;  %v2316_v5 = vpack.c.bf16 %v540_v63, %v538_v61  ;;  %v2062_v6 = vpack.c.bf16 %v289_v1, %v287_v0  ;;  %v286_v7 = vld [vmem:[%s5009_s1 + $0x200] sm:$0xff] }
  0x2e   :  { %2297 = vmatpush1.bf16.msra.mxu0 %v2296_v8  ;;  %2043 = vmatprep.subr.bf16.mxu1 %v2042_v9  ;;  %v288_v8 = vld [vmem:[%s5009_s1 + $0x210] sm:$0xff]  ;;  %v542_v9 = vld [vmem:[%s5009_s1 + $0xa00] sm:$0xff]  ;;  %v2318_v10 = vpack.c.bf16 %v545_v3, %v543_v2  ;;  %v291_v12 = vld [vmem:[%s5009_s1 + $0x228] sm:$0xff] }
  0x2f   :  { %2299 = vmatprep.subr.bf16.mxu0 %v2298_v13  ;;  %v544_v11 = vld [vmem:[%s5009_s1 + $0xa10] sm:$0xff]  ;;  %v293_v13 = vld [vmem:[%s5009_s1 + $0x238] sm:$0xff]  ;;  %v547_v14 = vld [vmem:[%s5009_s1 + $0xa28] sm:$0xff]  ;;  %v2064_v17 = vpack.c.bf16 %v288_v8, %v286_v7 }
  0x30   :  { %v549_v15 = vld [vmem:[%s5009_s1 + $0xa38] sm:$0xff]  ;;  %v14_v16 = vld [vmem:[%s5010_s0] sm:$0xff]  ;;  %v2320_v19 = vpack.c.bf16 %v544_v11, %v542_v9  ;;  %v548_v25 = vld [vmem:[%s5009_s1 + $0xa30] sm:$0xff] }
  0x31   :  { %2045 = vmatpush1.bf16.msra.mxu1 %v2044_v20  ;;  %v22_v18 = vld [vmem:[%s5010_s0 + $0x40] sm:$0xff]  ;;  %v2066_v20 = vpack.c.bf16 %v293_v13, %v291_v12  ;;  %v2322_v24 = vpack.c.bf16 %v549_v15, %v547_v14  ;;  %v297_v27 = vld [vmem:[%s5009_s1 + $0x258] sm:$0xff]  ;;  %v551_v28 = vld [vmem:[%s5009_s1 + $0xa48] sm:$0xff] }
  0x32   :  { %2301 = vmatpush1.bf16.msra.mxu0 %v2300_v21  ;;  %2047 = vmatprep.subr.bf16.mxu1 %v2046_v22  ;;  %v290_v21 = vld [vmem:[%s5009_s1 + $0x220] sm:$0xff]  ;;  %v292_v22 = vld [vmem:[%s5009_s1 + $0x230] sm:$0xff]  ;;  %v553_v29 = vld [vmem:[%s5009_s1 + $0xa58] sm:$0xff] }
  0x33   :  { %2303 = vmatprep.subr.bf16.mxu0 %v2302_v26  ;;  %v546_v23 = vld [vmem:[%s5009_s1 + $0xa20] sm:$0xff]  ;;  %v295_v26 = vld [vmem:[%s5009_s1 + $0x248] sm:$0xff]  ;;  %v2068_v31 = vpack.c.bf16 %v292_v22, %v290_v21  ;;  %v296_v37 = vld [vmem:[%s5009_s1 + $0x250] sm:$0xff]  ;;  %v2326_v40 = vpack.c.bf16 %v553_v29, %v551_v28 }
  0x34   :  { %v31_v30 = vld [vmem:[%s5010_s0 + $0x88] sm:$0xff]  ;;  %v2324_v35 = vpack.c.bf16 %v548_v25, %v546_v23  ;;  %v2070_v36 = vpack.c.bf16 %v297_v27, %v295_v26  ;;  %v38_v39 = vld [vmem:[%s5010_s0 + $0xc0] sm:$0xff]  ;;  %v552_v41 = vld [vmem:[%s5009_s1 + $0xa50] sm:$0xff] }
  0x35   :  { %2049 = vmatpush1.bf16.msra.mxu1 %v2048_v32  ;;  %v294_v32 = vld [vmem:[%s5009_s1 + $0x240] sm:$0xff]  ;;  %v299_v42 = vld [vmem:[%s5009_s1 + $0x268] sm:$0xff]  ;;  %v301_v43 = vld [vmem:[%s5009_s1 + $0x278] sm:$0xff] }
  0x36   :  { %2305 = vmatpush1.bf16.msra.mxu0 %v2304_v33  ;;  %2051 = vmatprep.subr.bf16.mxu1 %v2050_v34  ;;  %v39_v33 = vld [vmem:[%s5010_s0 + $0xc8] sm:$0xff]  ;;  %v30_v34 = vld [vmem:[%s5010_s0 + $0x80] sm:$0xff]  ;;  %v2072_v47 = vpack.c.bf16 %v296_v37, %v294_v32  ;;  %v2074_v52 = vpack.c.bf16 %v301_v43, %v299_v42  ;;  %v300_v53 = vld [vmem:[%s5009_s1 + $0x270] sm:$0xff] }
  0x37   :  { %2307 = vmatprep.subr.bf16.mxu0 %v2306_v38  ;;  %v550_v38 = vld [vmem:[%s5009_s1 + $0xa40] sm:$0xff]  ;;  %v55_v49 = vld [vmem:[%s5010_s0 + $0x148] sm:$0xff]  ;;  %v305_v59 = vld [vmem:[%s5009_s1 + $0x298] sm:$0xff] }
  0x38   :  { %v298_v48 = vld [vmem:[%s5009_s1 + $0x260] sm:$0xff]  ;;  %v2328_v51 = vpack.c.bf16 %v552_v41, %v550_v38  ;;  %v559_v60 = vld [vmem:[%s5009_s1 + $0xa88] sm:$0xff]  ;;  %v561_v61 = vld [vmem:[%s5009_s1 + $0xa98] sm:$0xff] }
  0x39   :  { %2053 = vmatpush1.bf16.msra.mxu1 %v2052_v44  ;;  %v555_v44 = vld [vmem:[%s5009_s1 + $0xa68] sm:$0xff]  ;;  %v554_v54 = vld [vmem:[%s5009_s1 + $0xa60] sm:$0xff]  ;;  %v2076_v63 = vpack.c.bf16 %v300_v53, %v298_v48  ;;  %v2334_v8 = vpack.c.bf16 %v561_v61, %v559_v60  ;;  %v560_v9 = vld [vmem:[%s5009_s1 + $0xa90] sm:$0xff] }
  0x3a   :  { %2309 = vmatpush1.bf16.msra.mxu0 %v2308_v45  ;;  %2055 = vmatprep.subr.bf16.mxu1 %v2054_v46  ;;  %v557_v45 = vld [vmem:[%s5009_s1 + $0xa78] sm:$0xff]  ;;  %v47_v46 = vld [vmem:[%s5010_s0 + $0x108] sm:$0xff]  ;;  %v54_v55 = vld [vmem:[%s5010_s0 + $0x140] sm:$0xff] }
  0x3b   :  { %2311 = vmatprep.subr.bf16.mxu0 %v2310_v50  ;;  %v46_v50 = vld [vmem:[%s5010_s0 + $0x100] sm:$0xff]  ;;  %v71_v1 = vld [vmem:[%s5010_s0 + $0x1c8] sm:$0xff]  ;;  %v309_v11 = vld [vmem:[%s5009_s1 + $0x2b8] sm:$0xff] }
  0x3c   :  { %v302_v0 = vld [vmem:[%s5009_s1 + $0x280] sm:$0xff]  ;;  %v563_v12 = vld [vmem:[%s5009_s1 + $0xaa8] sm:$0xff]  ;;  %v565_v13 = vld [vmem:[%s5009_s1 + $0xab8] sm:$0xff] }
  0x3d   :  { %2057 = vmatpush1.bf16.msra.mxu1 %v2056_v56  ;;  %v2330_v56 = vpack.c.bf16 %v557_v45, %v555_v44  ;;  %v62_v2 = vld [vmem:[%s5010_s0 + $0x180] sm:$0xff]  ;;  %v79_v14 = vld [vmem:[%s5010_s0 + $0x208] sm:$0xff]  ;;  %v308_v21 = vld [vmem:[%s5009_s1 + $0x2b0] sm:$0xff] }
  0x3e   :  { %2313 = vmatpush1.bf16.msra.mxu0 %v2312_v57  ;;  %2059 = vmatprep.subr.bf16.mxu1 %v2058_v58  ;;  %v556_v57 = vld [vmem:[%s5009_s1 + $0xa70] sm:$0xff]  ;;  %v303_v58 = vld [vmem:[%s5009_s1 + $0x288] sm:$0xff]  ;;  %v70_v7 = vld [vmem:[%s5010_s0 + $0x1c0] sm:$0xff] }
  0x3f   :  { %2315 = vmatprep.subr.bf16.mxu0 %v2314_v62  ;;  %v63_v62 = vld [vmem:[%s5010_s0 + $0x188] sm:$0xff]  ;;  %v2332_v3 = vpack.c.bf16 %v556_v57, %v554_v54  ;;  %v562_v22 = vld [vmem:[%s5009_s1 + $0xaa0] sm:$0xff]  ;;  %v564_v25 = vld [vmem:[%s5009_s1 + $0xab0] sm:$0xff] }
  0x40   :  { %v86_v23 = vld [vmem:[%s5010_s0 + $0x240] sm:$0xff]  ;;  %v311_v26 = vld [vmem:[%s5009_s1 + $0x2c8] sm:$0xff]  ;;  %v313_v27 = vld [vmem:[%s5009_s1 + $0x2d8] sm:$0xff] }
  0x41   :  { %2061 = vmatpush1.bf16.msra.mxu1 %v2060_v4  ;;  %v2078_v4 = vpack.c.bf16 %v305_v59, %v303_v58  ;;  %v567_v28 = vld [vmem:[%s5009_s1 + $0xac8] sm:$0xff]  ;;  %v569_v29 = vld [vmem:[%s5009_s1 + $0xad8] sm:$0xff]  ;;  %v310_v32 = vld [vmem:[%s5009_s1 + $0x2c0] sm:$0xff] }
  0x42   :  { %2317 = vmatpush1.bf16.msra.mxu0 %v2316_v5  ;;  %2063 = vmatprep.subr.bf16.mxu1 %v2062_v6  ;;  %v304_v5 = vld [vmem:[%s5009_s1 + $0x290] sm:$0xff]  ;;  %v558_v6 = vld [vmem:[%s5009_s1 + $0xa80] sm:$0xff]  ;;  %v315_v42 = vld [vmem:[%s5009_s1 + $0x2e8] sm:$0xff] }
  0x43   :  { %2319 = vmatprep.subr.bf16.mxu0 %v2318_v10  ;;  %v307_v10 = vld [vmem:[%s5009_s1 + $0x2a8] sm:$0xff]  ;;  %v2080_v15 = vpack.c.bf16 %v304_v5, %v302_v0  ;;  %v312_v37 = vld [vmem:[%s5009_s1 + $0x2d0] sm:$0xff]  ;;  %v566_v38 = vld [vmem:[%s5009_s1 + $0xac0] sm:$0xff] }
  0x44   :  { %811 = vmatmul.mubr.f32.vlgmr.msra.gmra.mrb[0].mxu1 %v14_v16  ;;  %v306_v16 = vld [vmem:[%s5009_s1 + $0x2a0] sm:$0xff]  ;;  %v568_v41 = vld [vmem:[%s5009_s1 + $0xad0] sm:$0xff]  ;;  %v317_v43 = vld [vmem:[%s5009_s1 + $0x2f8] sm:$0xff] }
  0x45   :  { %2065 = vmatpush1.bf16.msra.mxu1 %v2064_v17  ;;  %1383 = vmatmul.mubr.f32.vlgmr.msra.gmra.mrb[0].mxu0 %v22_v18  ;;  %v87_v17 = vld [vmem:[%s5010_s0 + $0x248] sm:$0xff]  ;;  %v78_v18 = vld [vmem:[%s5010_s0 + $0x200] sm:$0xff]  ;;  %v573_v45 = vld [vmem:[%s5009_s1 + $0xaf8] sm:$0xff] }
  0x46   :  { %2321 = vmatpush1.bf16.msra.mxu0 %v2320_v19  ;;  %2067 = vmatprep.subr.bf16.mxu1 %v2066_v20  ;;  %v2336_v19 = vpack.c.bf16 %v560_v9, %v558_v6  ;;  %v2082_v20 = vpack.c.bf16 %v309_v11, %v307_v10  ;;  %v571_v44 = vld [vmem:[%s5009_s1 + $0xae8] sm:$0xff]  ;;  %v314_v48 = vld [vmem:[%s5009_s1 + $0x2e0] sm:$0xff]  ;;  %v316_v53 = vld [vmem:[%s5009_s1 + $0x2f0] sm:$0xff] }
  0x47   :  { %2323 = vmatprep.subr.bf16.mxu0 %v2322_v24  ;;  %816 = vmatprep.mubr.f32.mxu1 %v31_v30  ;;  %v2338_v24 = vpack.c.bf16 %v565_v13, %v563_v12  ;;  %v95_v30 = vld [vmem:[%s5010_s0 + $0x288] sm:$0xff]  ;;  %v570_v54 = vld [vmem:[%s5009_s1 + $0xae0] sm:$0xff]  ;;  %v572_v57 = vld [vmem:[%s5009_s1 + $0xaf0] sm:$0xff] }
  0x48   :  { %1388 = vmatprep.mubr.f32.mxu0 %v39_v33  ;;  %817 = vmatmul.mubr.f32.gmra.mrb[2].mxu1 %v30_v34  ;;  %v103_v33 = vld [vmem:[%s5010_s0 + $0x2c8] sm:$0xff]  ;;  %v94_v34 = vld [vmem:[%s5010_s0 + $0x280] sm:$0xff]  ;;  %v321_v59 = vld [vmem:[%s5009_s1 + $0x318] sm:$0xff] }
  0x49   :  { %2069 = vmatpush1.bf16.msra.mxu1 %v2068_v31  ;;  %1389 = vmatmul.mubr.f32.gmra.mrb[2].mxu0 %v38_v39  ;;  %v2084_v31 = vpack.c.bf16 %v308_v21, %v306_v16  ;;  %v102_v39 = vld [vmem:[%s5010_s0 + $0x2c0] sm:$0xff]  ;;  %v319_v58 = vld [vmem:[%s5009_s1 + $0x308] sm:$0xff]  ;;  %v577_v61 = vld [vmem:[%s5009_s1 + $0xb18] sm:$0xff] }
  0x4a   :  { %2325 = vmatpush1.bf16.msra.mxu0 %v2324_v35  ;;  %2071 = vmatprep.subr.bf16.mxu1 %v2070_v36  ;;  %v2340_v35 = vpack.c.bf16 %v564_v25, %v562_v22  ;;  %v2086_v36 = vpack.c.bf16 %v313_v27, %v311_v26  ;;  %v575_v60 = vld [vmem:[%s5009_s1 + $0xb08] sm:$0xff]  ;;  %v318_v0 = vld [vmem:[%s5009_s1 + $0x300] sm:$0xff]  ;;  %v320_v5 = vld [vmem:[%s5009_s1 + $0x310] sm:$0xff] }
  0x4b   :  { %2327 = vmatprep.subr.bf16.mxu0 %v2326_v40  ;;  %822 = vmatprep.mubr.f32.mxu1 %v47_v46  ;;  %v2342_v40 = vpack.c.bf16 %v569_v29, %v567_v28  ;;  %v111_v46 = vld [vmem:[%s5010_s0 + $0x308] sm:$0xff]  ;;  %v574_v6 = vld [vmem:[%s5009_s1 + $0xb00] sm:$0xff]  ;;  %v576_v9 = vld [vmem:[%s5009_s1 + $0xb10] sm:$0xff] }
  0x4c   :  { %1394 = vmatprep.mubr.f32.mxu0 %v55_v49  ;;  %823 = vmatmul.mubr.f32.gmra.mrb[4].mxu1 %v46_v50  ;;  %v119_v49 = vld [vmem:[%s5010_s0 + $0x348] sm:$0xff]  ;;  %v110_v50 = vld [vmem:[%s5010_s0 + $0x300] sm:$0xff]  ;;  %v325_v11 = vld [vmem:[%s5009_s1 + $0x338] sm:$0xff] }
  0x4d   :  { %2073 = vmatpush1.bf16.msra.mxu1 %v2072_v47  ;;  %1395 = vmatmul.mubr.f32.gmra.mrb[4].mxu0 %v54_v55  ;;  %v2088_v47 = vpack.c.bf16 %v312_v37, %v310_v32  ;;  %v118_v55 = vld [vmem:[%s5010_s0 + $0x340] sm:$0xff]  ;;  %v323_v10 = vld [vmem:[%s5009_s1 + $0x328] sm:$0xff]  ;;  %v581_v13 = vld [vmem:[%s5009_s1 + $0xb38] sm:$0xff] }
  0x4e   :  { %2329 = vmatpush1.bf16.msra.mxu0 %v2328_v51  ;;  %2075 = vmatprep.subr.bf16.mxu1 %v2074_v52  ;;  %v2344_v51 = vpack.c.bf16 %v568_v41, %v566_v38  ;;  %v2090_v52 = vpack.c.bf16 %v317_v43, %v315_v42  ;;  %v579_v12 = vld [vmem:[%s5009_s1 + $0xb28] sm:$0xff]  ;;  %v322_v16 = vld [vmem:[%s5009_s1 + $0x320] sm:$0xff]  ;;  %v324_v21 = vld [vmem:[%s5009_s1 + $0x330] sm:$0xff] }
  0x4f   :  { %2331 = vmatprep.subr.bf16.mxu0 %v2330_v56  ;;  %828 = vmatprep.mubr.f32.mxu1 %v63_v62  ;;  %v2346_v56 = vpack.c.bf16 %v573_v45, %v571_v44  ;;  %v127_v62 = vld [vmem:[%s5010_s0 + $0x388] sm:$0xff]  ;;  %v578_v22 = vld [vmem:[%s5009_s1 + $0xb20] sm:$0xff]  ;;  %v580_v25 = vld [vmem:[%s5009_s1 + $0xb30] sm:$0xff] }
  0x50   :  { %1400 = vmatprep.mubr.f32.mxu0 %v71_v1  ;;  %829 = vmatmul.mubr.f32.gmra.mrb[6].mxu1 %v62_v2  ;;  %v135_v1 = vld [vmem:[%s5010_s0 + $0x3c8] sm:$0xff]  ;;  %v126_v2 = vld [vmem:[%s5010_s0 + $0x380] sm:$0xff]  ;;  %v329_v27 = vld [vmem:[%s5009_s1 + $0x358] sm:$0xff] }
  0x51   :  { %2077 = vmatpush1.bf16.msra.mxu1 %v2076_v63  ;;  %1401 = vmatmul.mubr.f32.gmra.mrb[6].mxu0 %v70_v7  ;;  %v2092_v63 = vpack.c.bf16 %v316_v53, %v314_v48  ;;  %v134_v7 = vld [vmem:[%s5010_s0 + $0x3c0] sm:$0xff]  ;;  %v327_v26 = vld [vmem:[%s5009_s1 + $0x348] sm:$0xff]  ;;  %v585_v29 = vld [vmem:[%s5009_s1 + $0xb58] sm:$0xff] }
  0x52   :  { %2333 = vmatpush1.bf16.msra.mxu0 %v2332_v3  ;;  %2079 = vmatprep.subr.bf16.mxu1 %v2078_v4  ;;  %v2348_v3 = vpack.c.bf16 %v572_v57, %v570_v54  ;;  %v2094_v4 = vpack.c.bf16 %v321_v59, %v319_v58  ;;  %v583_v28 = vld [vmem:[%s5009_s1 + $0xb48] sm:$0xff]  ;;  %v326_v32 = vld [vmem:[%s5009_s1 + $0x340] sm:$0xff]  ;;  %v328_v37 = vld [vmem:[%s5009_s1 + $0x350] sm:$0xff] }
  0x53   :  { %2335 = vmatprep.subr.bf16.mxu0 %v2334_v8  ;;  %834 = vmatprep.mubr.f32.mxu1 %v79_v14  ;;  %v2350_v8 = vpack.c.bf16 %v577_v61, %v575_v60  ;;  %v143_v14 = vld [vmem:[%s5010_s0 + $0x408] sm:$0xff]  ;;  %v582_v38 = vld [vmem:[%s5009_s1 + $0xb40] sm:$0xff]  ;;  %v584_v41 = vld [vmem:[%s5009_s1 + $0xb50] sm:$0xff] }
  0x54   :  { %1406 = vmatprep.mubr.f32.mxu0 %v87_v17  ;;  %835 = vmatmul.mubr.f32.gmra.mrb[8].mxu1 %v78_v18  ;;  %v151_v17 = vld [vmem:[%s5010_s0 + $0x448] sm:$0xff]  ;;  %v142_v18 = vld [vmem:[%s5010_s0 + $0x400] sm:$0xff]  ;;  %v333_v43 = vld [vmem:[%s5009_s1 + $0x378] sm:$0xff] }
  0x55   :  { %2081 = vmatpush1.bf16.msra.mxu1 %v2080_v15  ;;  %1407 = vmatmul.mubr.f32.gmra.mrb[8].mxu0 %v86_v23  ;;  %v2096_v15 = vpack.c.bf16 %v320_v5, %v318_v0  ;;  %v150_v23 = vld [vmem:[%s5010_s0 + $0x440] sm:$0xff]  ;;  %v331_v42 = vld [vmem:[%s5009_s1 + $0x368] sm:$0xff]  ;;  %v589_v45 = vld [vmem:[%s5009_s1 + $0xb78] sm:$0xff] }
  0x56   :  { %2337 = vmatpush1.bf16.msra.mxu0 %v2336_v19  ;;  %2083 = vmatprep.subr.bf16.mxu1 %v2082_v20  ;;  %v2352_v19 = vpack.c.bf16 %v576_v9, %v574_v6  ;;  %v2098_v20 = vpack.c.bf16 %v325_v11, %v323_v10  ;;  %v587_v44 = vld [vmem:[%s5009_s1 + $0xb68] sm:$0xff]  ;;  %v330_v48 = vld [vmem:[%s5009_s1 + $0x360] sm:$0xff]  ;;  %v332_v53 = vld [vmem:[%s5009_s1 + $0x370] sm:$0xff] }
  0x57   :  { %2339 = vmatprep.subr.bf16.mxu0 %v2338_v24  ;;  %840 = vmatprep.mubr.f32.mxu1 %v95_v30  ;;  %v2354_v24 = vpack.c.bf16 %v581_v13, %v579_v12  ;;  %v159_v30 = vld [vmem:[%s5010_s0 + $0x488] sm:$0xff]  ;;  %v586_v54 = vld [vmem:[%s5009_s1 + $0xb60] sm:$0xff]  ;;  %v588_v57 = vld [vmem:[%s5009_s1 + $0xb70] sm:$0xff] }
  0x58   :  { %1412 = vmatprep.mubr.f32.mxu0 %v103_v33  ;;  %841 = vmatmul.mubr.f32.gmra.mrb[10].mxu1 %v94_v34  ;;  %v167_v33 = vld [vmem:[%s5010_s0 + $0x4c8] sm:$0xff]  ;;  %v158_v34 = vld [vmem:[%s5010_s0 + $0x480] sm:$0xff]  ;;  %v337_v59 = vld [vmem:[%s5009_s1 + $0x398] sm:$0xff] }
  0x59   :  { %2085 = vmatpush1.bf16.msra.mxu1 %v2084_v31  ;;  %1413 = vmatmul.mubr.f32.gmra.mrb[10].mxu0 %v102_v39  ;;  %v2100_v31 = vpack.c.bf16 %v324_v21, %v322_v16  ;;  %v166_v39 = vld [vmem:[%s5010_s0 + $0x4c0] sm:$0xff]  ;;  %v335_v58 = vld [vmem:[%s5009_s1 + $0x388] sm:$0xff]  ;;  %v593_v61 = vld [vmem:[%s5009_s1 + $0xb98] sm:$0xff] }
  0x5a   :  { %2341 = vmatpush1.bf16.msra.mxu0 %v2340_v35  ;;  %2087 = vmatprep.subr.bf16.mxu1 %v2086_v36  ;;  %v2356_v35 = vpack.c.bf16 %v580_v25, %v578_v22  ;;  %v2102_v36 = vpack.c.bf16 %v329_v27, %v327_v26  ;;  %v591_v60 = vld [vmem:[%s5009_s1 + $0xb88] sm:$0xff]  ;;  %v334_v0 = vld [vmem:[%s5009_s1 + $0x380] sm:$0xff]  ;;  %v336_v5 = vld [vmem:[%s5009_s1 + $0x390] sm:$0xff] }
  0x5b   :  { %2343 = vmatprep.subr.bf16.mxu0 %v2342_v40  ;;  %846 = vmatprep.mubr.f32.mxu1 %v111_v46  ;;  %v2358_v40 = vpack.c.bf16 %v585_v29, %v583_v28  ;;  %v175_v46 = vld [vmem:[%s5010_s0 + $0x508] sm:$0xff]  ;;  %v590_v6 = vld [vmem:[%s5009_s1 + $0xb80] sm:$0xff]  ;;  %v592_v9 = vld [vmem:[%s5009_s1 + $0xb90] sm:$0xff] }
  0x5c   :  { %1418 = vmatprep.mubr.f32.mxu0 %v119_v49  ;;  %847 = vmatmul.mubr.f32.gmra.mrb[12].mxu1 %v110_v50  ;;  %v183_v49 = vld [vmem:[%s5010_s0 + $0x548] sm:$0xff]  ;;  %v174_v50 = vld [vmem:[%s5010_s0 + $0x500] sm:$0xff]  ;;  %v341_v11 = vld [vmem:[%s5009_s1 + $0x3b8] sm:$0xff] }
  0x5d   :  { %2089 = vmatpush1.bf16.msra.mxu1 %v2088_v47  ;;  %1419 = vmatmul.mubr.f32.gmra.mrb[12].mxu0 %v118_v55  ;;  %v2104_v47 = vpack.c.bf16 %v328_v37, %v326_v32  ;;  %v182_v55 = vld [vmem:[%s5010_s0 + $0x540] sm:$0xff]  ;;  %v339_v10 = vld [vmem:[%s5009_s1 + $0x3a8] sm:$0xff]  ;;  %v597_v13 = vld [vmem:[%s5009_s1 + $0xbb8] sm:$0xff] }
  0x5e   :  { %2345 = vmatpush1.bf16.msra.mxu0 %v2344_v51  ;;  %2091 = vmatprep.subr.bf16.mxu1 %v2090_v52  ;;  %v2360_v51 = vpack.c.bf16 %v584_v41, %v582_v38  ;;  %v2106_v52 = vpack.c.bf16 %v333_v43, %v331_v42  ;;  %v595_v12 = vld [vmem:[%s5009_s1 + $0xba8] sm:$0xff]  ;;  %v338_v16 = vld [vmem:[%s5009_s1 + $0x3a0] sm:$0xff]  ;;  %v340_v21 = vld [vmem:[%s5009_s1 + $0x3b0] sm:$0xff] }
  0x5f   :  { %2347 = vmatprep.subr.bf16.mxu0 %v2346_v56  ;;  %852 = vmatprep.mubr.f32.mxu1 %v127_v62  ;;  %v2362_v56 = vpack.c.bf16 %v589_v45, %v587_v44  ;;  %v191_v62 = vld [vmem:[%s5010_s0 + $0x588] sm:$0xff]  ;;  %v594_v22 = vld [vmem:[%s5009_s1 + $0xba0] sm:$0xff]  ;;  %v596_v25 = vld [vmem:[%s5009_s1 + $0xbb0] sm:$0xff] }
  0x60   :  { %1424 = vmatprep.mubr.f32.mxu0 %v135_v1  ;;  %853 = vmatmul.mubr.f32.gmra.mrb[14].mxu1 %v126_v2  ;;  %v199_v1 = vld [vmem:[%s5010_s0 + $0x5c8] sm:$0xff]  ;;  %v190_v2 = vld [vmem:[%s5010_s0 + $0x580] sm:$0xff]  ;;  %v345_v27 = vld [vmem:[%s5009_s1 + $0x3d8] sm:$0xff] }
  0x61   :  { %2093 = vmatpush1.bf16.msra.mxu1 %v2092_v63  ;;  %1425 = vmatmul.mubr.f32.gmra.mrb[14].mxu0 %v134_v7  ;;  %v2108_v63 = vpack.c.bf16 %v332_v53, %v330_v48  ;;  %v198_v7 = vld [vmem:[%s5010_s0 + $0x5c0] sm:$0xff]  ;;  %v343_v26 = vld [vmem:[%s5009_s1 + $0x3c8] sm:$0xff]  ;;  %v601_v29 = vld [vmem:[%s5009_s1 + $0xbd8] sm:$0xff] }
  0x62   :  { %2349 = vmatpush1.bf16.msra.mxu0 %v2348_v3  ;;  %2095 = vmatprep.subr.bf16.mxu1 %v2094_v4  ;;  %v2364_v3 = vpack.c.bf16 %v588_v57, %v586_v54  ;;  %v2110_v4 = vpack.c.bf16 %v337_v59, %v335_v58  ;;  %v599_v28 = vld [vmem:[%s5009_s1 + $0xbc8] sm:$0xff]  ;;  %v25_v32 = vld [vmem:[%s5010_s0 + $0x58] sm:$0xff]  ;;  %v598_v37 = vld [vmem:[%s5009_s1 + $0xbc0] sm:$0xff] }
  0x63   :  { %2351 = vmatprep.subr.bf16.mxu0 %v2350_v8  ;;  %858 = vmatprep.mubr.f32.mxu1 %v143_v14  ;;  %v2366_v8 = vpack.c.bf16 %v593_v61, %v591_v60  ;;  %v207_v14 = vld [vmem:[%s5010_s0 + $0x608] sm:$0xff]  ;;  %v2374_v38 = vpack.c.bf16 %v601_v29, %v599_v28  ;;  %v349_v41 = vld [vmem:[%s5009_s1 + $0x3f8] sm:$0xff]  ;;  %v348_v48 = vld [vmem:[%s5009_s1 + $0x3f0] sm:$0xff] }
  0x64   :  { %1430 = vmatprep.mubr.f32.mxu0 %v151_v17  ;;  %859 = vmatmul.mubr.f32.gmra.mrb[16].mxu1 %v142_v18  ;;  %v215_v17 = vld [vmem:[%s5010_s0 + $0x648] sm:$0xff]  ;;  %v206_v18 = vld [vmem:[%s5010_s0 + $0x600] sm:$0xff]  ;;  %v605_v43 = vld [vmem:[%s5009_s1 + $0xbf8] sm:$0xff] }
  0x65   :  { %2097 = vmatpush1.bf16.msra.mxu1 %v2096_v15  ;;  %1431 = vmatmul.mubr.f32.gmra.mrb[16].mxu0 %v150_v23  ;;  %v2112_v15 = vpack.c.bf16 %v336_v5, %v334_v0  ;;  %v214_v23 = vld [vmem:[%s5010_s0 + $0x640] sm:$0xff]  ;;  %v603_v42 = vld [vmem:[%s5009_s1 + $0xbe8] sm:$0xff]  ;;  %v353_v53 = vld [vmem:[%s5009_s1 + $0x418] sm:$0xff] }
  0x66   :  { %2353 = vmatpush1.bf16.msra.mxu0 %v2352_v19  ;;  %2099 = vmatprep.subr.bf16.mxu1 %v2098_v20  ;;  %v2368_v19 = vpack.c.bf16 %v592_v9, %v590_v6  ;;  %v2114_v20 = vpack.c.bf16 %v341_v11, %v339_v10  ;;  %v607_v54 = vld [vmem:[%s5009_s1 + $0xc08] sm:$0xff]  ;;  %v350_v59 = vld [vmem:[%s5009_s1 + $0x400] sm:$0xff]  ;;  %v352_v60 = vld [vmem:[%s5009_s1 + $0x410] sm:$0xff] }
  0x67   :  { %2355 = vmatprep.subr.bf16.mxu0 %v2354_v24  ;;  %864 = vmatprep.mubr.f32.mxu1 %v159_v30  ;;  %v2370_v24 = vpack.c.bf16 %v597_v13, %v595_v12  ;;  %v17_v30 = vld [vmem:[%s5010_s0 + $0x18] sm:$0xff]  ;;  %v606_v61 = vld [vmem:[%s5009_s1 + $0xc00] sm:$0xff]  ;;  %v355_v0 = vld [vmem:[%s5009_s1 + $0x428] sm:$0xff]  ;;  %v2128_v5 = vpack.c.bf16 %v352_v60, %v350_v59 }
  0x68   :  { %1436 = vmatprep.mubr.f32.mxu0 %v167_v33  ;;  %865 = vmatmul.mubr.f32.gmra.mrb[18].mxu1 %v158_v34  ;;  %v2372_v33 = vpack.c.bf16 %v596_v25, %v594_v22  ;;  %v2118_v34 = vpack.c.bf16 %v345_v27, %v343_v26  ;;  %v24_v6 = vld [vmem:[%s5010_s0 + $0x50] sm:$0xff]  ;;  %v354_v9 = vld [vmem:[%s5009_s1 + $0x420] sm:$0xff] }
  0x69   :  { %2101 = vmatpush1.bf16.msra.mxu1 %v2100_v31  ;;  %1437 = vmatmul.mubr.f32.gmra.mrb[18].mxu0 %v166_v39  ;;  %v2116_v31 = vpack.c.bf16 %v340_v21, %v338_v16  ;;  %v600_v39 = vld [vmem:[%s5009_s1 + $0xbd0] sm:$0xff]  ;;  %v610_v11 = vld [vmem:[%s5009_s1 + $0xc20] sm:$0xff]  ;;  %v615_v16 = vld [vmem:[%s5009_s1 + $0xc48] sm:$0xff] }
  0x6a   :  { %2357 = vmatpush1.bf16.msra.mxu0 %v2356_v35  ;;  %2103 = vmatprep.subr.bf16.mxu1 %v2102_v36  ;;  %v342_v35 = vld [vmem:[%s5009_s1 + $0x3c0] sm:$0xff]  ;;  %v344_v36 = vld [vmem:[%s5009_s1 + $0x3d0] sm:$0xff]  ;;  %v2376_v45 = vpack.c.bf16 %v600_v39, %v598_v37  ;;  %v41_v21 = vld [vmem:[%s5010_s0 + $0xd8] sm:$0xff] }
  0x6b   :  { %2359 = vmatprep.subr.bf16.mxu0 %v2358_v40  ;;  %870 = vmatprep.mubr.f32.mxu1 %v175_v46  ;;  %v347_v40 = vld [vmem:[%s5009_s1 + $0x3e8] sm:$0xff]  ;;  %v2120_v44 = vpack.c.bf16 %v344_v36, %v342_v35  ;;  %v356_v10 = vld [vmem:[%s5009_s1 + $0x430] sm:$0xff]  ;;  %v614_v26 = vld [vmem:[%s5009_s1 + $0xc40] sm:$0xff] }
  0x6c   :  { %1442 = vmatprep.mubr.f32.mxu0 %v183_v49  ;;  %871 = vmatmul.mubr.f32.gmra.mrb[20].mxu1 %v174_v50  ;;  %v2122_v46 = vpack.c.bf16 %v349_v41, %v347_v40  ;;  %v602_v49 = vld [vmem:[%s5009_s1 + $0xbe0] sm:$0xff]  ;;  %v2378_v50 = vpack.c.bf16 %v605_v43, %v603_v42  ;;  %v612_v13 = vld [vmem:[%s5009_s1 + $0xc30] sm:$0xff]  ;;  %v57_v37 = vld [vmem:[%s5010_s0 + $0x158] sm:$0xff] }
  0x6d   :  { %2105 = vmatpush1.bf16.msra.mxu1 %v2104_v47  ;;  %1443 = vmatmul.mubr.f32.gmra.mrb[20].mxu0 %v182_v55  ;;  %v346_v47 = vld [vmem:[%s5009_s1 + $0x3e0] sm:$0xff]  ;;  %v609_v55 = vld [vmem:[%s5009_s1 + $0xc18] sm:$0xff]  ;;  %v32_v22 = vld [vmem:[%s5010_s0 + $0x90] sm:$0xff] }
  0x6e   :  { %2361 = vmatpush1.bf16.msra.mxu0 %v2360_v51  ;;  %2107 = vmatprep.subr.bf16.mxu1 %v2106_v52  ;;  %v604_v51 = vld [vmem:[%s5009_s1 + $0xbf0] sm:$0xff]  ;;  %v351_v52 = vld [vmem:[%s5009_s1 + $0x408] sm:$0xff]  ;;  %v362_v36 = vld [vmem:[%s5009_s1 + $0x460] sm:$0xff] }
  0x6f   :  { %2363 = vmatprep.subr.bf16.mxu0 %v2362_v56  ;;  %876 = vmatprep.mubr.f32.mxu1 %v191_v62  ;;  %v2124_v56 = vpack.c.bf16 %v348_v48, %v346_v47  ;;  %v2380_v57 = vpack.c.bf16 %v604_v51, %v602_v49  ;;  %v2126_v58 = vpack.c.bf16 %v353_v53, %v351_v52  ;;  %v360_v25 = vld [vmem:[%s5009_s1 + $0x450] sm:$0xff]  ;;  %v618_v42 = vld [vmem:[%s5009_s1 + $0xc60] sm:$0xff]  ;;  %v369_v47 = vld [vmem:[%s5009_s1 + $0x498] sm:$0xff] }
  0x70   :  { %1448 = vmatprep.mubr.f32.mxu0 %v199_v1  ;;  %877 = vmatmul.mubr.f32.gmra.mrb[22].mxu1 %v190_v2  ;;  %v2382_v62 = vpack.c.bf16 %v609_v55, %v607_v54  ;;  %v357_v1 = vld [vmem:[%s5009_s1 + $0x438] sm:$0xff]  ;;  %v611_v2 = vld [vmem:[%s5009_s1 + $0xc28] sm:$0xff]  ;;  %v40_v27 = vld [vmem:[%s5010_s0 + $0xd0] sm:$0xff] }
  0x71   :  { %2109 = vmatpush1.bf16.msra.mxu1 %v2108_v63  ;;  %1449 = vmatmul.mubr.f32.gmra.mrb[22].mxu0 %v198_v7  ;;  %v608_v63 = vld [vmem:[%s5009_s1 + $0xc10] sm:$0xff]  ;;  %v623_v48 = vld [vmem:[%s5009_s1 + $0xc88] sm:$0xff]  ;;  %v625_v49 = vld [vmem:[%s5009_s1 + $0xc98] sm:$0xff] }
  0x72   :  { %2365 = vmatpush1.bf16.msra.mxu0 %v2364_v3  ;;  %2111 = vmatprep.subr.bf16.mxu1 %v2110_v4  ;;  %v613_v3 = vld [vmem:[%s5009_s1 + $0xc38] sm:$0xff]  ;;  %v16_v4 = vld [vmem:[%s5010_s0 + $0x10] sm:$0xff]  ;;  %v2384_v7 = vpack.c.bf16 %v608_v63, %v606_v61  ;;  %v366_v52 = vld [vmem:[%s5009_s1 + $0x480] sm:$0xff]  ;;  %v2398_v60 = vpack.c.bf16 %v625_v49, %v623_v48 }
  0x73   :  { %2367 = vmatprep.subr.bf16.mxu0 %v2366_v8  ;;  %882 = vmatprep.mubr.f32.mxu1 %v207_v14  ;;  %v2130_v8 = vpack.c.bf16 %v357_v1, %v355_v0  ;;  %v2386_v12 = vpack.c.bf16 %v613_v3, %v611_v2  ;;  %v359_v14 = vld [vmem:[%s5009_s1 + $0x448] sm:$0xff]  ;;  %v616_v29 = vld [vmem:[%s5009_s1 + $0xc50] sm:$0xff]  ;;  %v73_v53 = vld [vmem:[%s5010_s0 + $0x1d8] sm:$0xff] }
  0x74   :  { %1454 = vmatprep.mubr.f32.mxu0 %v215_v17  ;;  %883 = vmatmul.mubr.f32.gmra.mrb[24].mxu1 %v206_v18  ;;  %v617_v17 = vld [vmem:[%s5009_s1 + $0xc58] sm:$0xff]  ;;  %v2392_v39 = vpack.c.bf16 %v616_v29, %v614_v26  ;;  %v364_v41 = vld [vmem:[%s5009_s1 + $0x470] sm:$0xff]  ;;  %v627_v0 = vld [vmem:[%s5009_s1 + $0xca8] sm:$0xff] }
  0x75   :  { %2113 = vmatpush1.bf16.msra.mxu1 %v2112_v15  ;;  %1455 = vmatmul.mubr.f32.gmra.mrb[24].mxu0 %v214_v23  ;;  %v361_v15 = vld [vmem:[%s5009_s1 + $0x458] sm:$0xff]  ;;  %v2388_v23 = vpack.c.bf16 %v612_v13, %v610_v11  ;;  %v2390_v28 = vpack.c.bf16 %v617_v17, %v615_v16  ;;  %v56_v43 = vld [vmem:[%s5010_s0 + $0x150] sm:$0xff]  ;;  %v2140_v51 = vpack.c.bf16 %v364_v41, %v362_v36  ;;  %v631_v16 = vld [vmem:[%s5009_s1 + $0xcc8] sm:$0xff] }
  0x76   :  { %2369 = vmatpush1.bf16.msra.mxu0 %v2368_v19  ;;  %2115 = vmatprep.subr.bf16.mxu1 %v2114_v20  ;;  %v33_v18 = vld [vmem:[%s5010_s0 + $0x98] sm:$0xff]  ;;  %v2132_v19 = vpack.c.bf16 %v356_v10, %v354_v9  ;;  %v358_v20 = vld [vmem:[%s5009_s1 + $0x440] sm:$0xff]  ;;  %v64_v54 = vld [vmem:[%s5010_s0 + $0x190] sm:$0xff] }
  0x77   :  { %2371 = vmatprep.subr.bf16.mxu0 %v2370_v24  ;;  %953 = vmatprep.mubr.f32.mxu1 %v17_v30  ;;  %v2134_v24 = vpack.c.bf16 %v361_v15, %v359_v14  ;;  %v363_v30 = vld [vmem:[%s5009_s1 + $0x468] sm:$0xff]  ;;  %v2136_v35 = vpack.c.bf16 %v360_v25, %v358_v20  ;;  %v72_v59 = vld [vmem:[%s5010_s0 + $0x1d0] sm:$0xff]  ;;  %v373_v63 = vld [vmem:[%s5009_s1 + $0x4b8] sm:$0xff] }
  0x78   :  { %1525 = vmatprep.mubr.f32.mxu0 %v25_v32  ;;  %v619_v32 = vld [vmem:[%s5009_s1 + $0xc68] sm:$0xff]  ;;  %v624_v61 = vld [vmem:[%s5009_s1 + $0xc90] sm:$0xff]  ;;  %v629_v1 = vld [vmem:[%s5009_s1 + $0xcb8] sm:$0xff] }
  0x79   :  { %2117 = vmatpush1.bf16.msra.mxu1 %v2116_v31  ;;  %v365_v31 = vld [vmem:[%s5009_s1 + $0x478] sm:$0xff]  ;;  %v372_v9 = vld [vmem:[%s5009_s1 + $0x4b0] sm:$0xff]  ;;  %v626_v10 = vld [vmem:[%s5009_s1 + $0xca0] sm:$0xff] }
  0x7a   :  { %2373 = vmatpush1.bf16.msra.mxu0 %v2372_v33  ;;  %2119 = vmatprep.subr.bf16.mxu1 %v2118_v34  ;;  %v621_v33 = vld [vmem:[%s5009_s1 + $0xc78] sm:$0xff]  ;;  %v2138_v40 = vpack.c.bf16 %v365_v31, %v363_v30  ;;  %v88_v11 = vld [vmem:[%s5010_s0 + $0x250] sm:$0xff]  ;;  %v375_v14 = vld [vmem:[%s5009_s1 + $0x4c8] sm:$0xff] }
  0x7b   :  { %2375 = vmatprep.subr.bf16.mxu0 %v2374_v38  ;;  %v49_v34 = vld [vmem:[%s5010_s0 + $0x118] sm:$0xff]  ;;  %v48_v38 = vld [vmem:[%s5010_s0 + $0x110] sm:$0xff]  ;;  %v374_v20 = vld [vmem:[%s5009_s1 + $0x4c0] sm:$0xff] }
  0x7c   :  { %v81_v2 = vld [vmem:[%s5010_s0 + $0x218] sm:$0xff]  ;;  %v628_v13 = vld [vmem:[%s5009_s1 + $0xcb0] sm:$0xff]  ;;  %v630_v26 = vld [vmem:[%s5009_s1 + $0xcc0] sm:$0xff] }
  0x7d   :  { %2121 = vmatpush1.bf16.msra.mxu1 %v2120_v44  ;;  %v2394_v44 = vpack.c.bf16 %v621_v33, %v619_v32  ;;  %v377_v15 = vld [vmem:[%s5009_s1 + $0x4d8] sm:$0xff]  ;;  %v376_v25 = vld [vmem:[%s5009_s1 + $0x4d0] sm:$0xff]  ;;  %v379_v30 = vld [vmem:[%s5009_s1 + $0x4e8] sm:$0xff] }
  0x7e   :  { %2377 = vmatpush1.bf16.msra.mxu0 %v2376_v45  ;;  %2123 = vmatprep.subr.bf16.mxu1 %v2122_v46  ;;  %v620_v45 = vld [vmem:[%s5009_s1 + $0xc70] sm:$0xff]  ;;  %v367_v46 = vld [vmem:[%s5009_s1 + $0x488] sm:$0xff]  ;;  %v633_v17 = vld [vmem:[%s5009_s1 + $0xcd8] sm:$0xff] }
  0x7f   :  { %2379 = vmatprep.subr.bf16.mxu0 %v2378_v50  ;;  %v65_v50 = vld [vmem:[%s5010_s0 + $0x198] sm:$0xff]  ;;  %v2396_v55 = vpack.c.bf16 %v620_v45, %v618_v42  ;;  %v632_v29 = vld [vmem:[%s5009_s1 + $0xcd0] sm:$0xff]  ;;  %v635_v32 = vld [vmem:[%s5009_s1 + $0xce8] sm:$0xff] }
  0x80   :  { %v381_v31 = vld [vmem:[%s5009_s1 + $0x4f8] sm:$0xff]  ;;  %v378_v36 = vld [vmem:[%s5009_s1 + $0x4e0] sm:$0xff]  ;;  %v380_v41 = vld [vmem:[%s5009_s1 + $0x4f0] sm:$0xff] }
  0x81   :  { %2125 = vmatpush1.bf16.msra.mxu1 %v2124_v56  ;;  %v2142_v56 = vpack.c.bf16 %v369_v47, %v367_v46  ;;  %v637_v33 = vld [vmem:[%s5009_s1 + $0xcf8] sm:$0xff]  ;;  %v634_v42 = vld [vmem:[%s5009_s1 + $0xce0] sm:$0xff]  ;;  %v636_v45 = vld [vmem:[%s5009_s1 + $0xcf0] sm:$0xff] }
  0x82   :  { %2381 = vmatpush1.bf16.msra.mxu0 %v2380_v57  ;;  %2127 = vmatprep.subr.bf16.mxu1 %v2126_v58  ;;  %v368_v57 = vld [vmem:[%s5009_s1 + $0x490] sm:$0xff]  ;;  %v622_v58 = vld [vmem:[%s5009_s1 + $0xc80] sm:$0xff]  ;;  %v383_v46 = vld [vmem:[%s5009_s1 + $0x508] sm:$0xff] }
  0x83   :  { %2383 = vmatprep.subr.bf16.mxu0 %v2382_v62  ;;  %v371_v62 = vld [vmem:[%s5009_s1 + $0x4a8] sm:$0xff]  ;;  %v2144_v3 = vpack.c.bf16 %v368_v57, %v366_v52  ;;  %v385_v47 = vld [vmem:[%s5009_s1 + $0x518] sm:$0xff]  ;;  %v382_v52 = vld [vmem:[%s5009_s1 + $0x500] sm:$0xff] }
  0x84   :  { %954 = vmatmul.mubr.f32.vlgmr.msra.gmra.mrb[0].mxu1 %v16_v4  ;;  %v370_v4 = vld [vmem:[%s5009_s1 + $0x4a0] sm:$0xff]  ;;  %v639_v48 = vld [vmem:[%s5009_s1 + $0xd08] sm:$0xff]  ;;  %v641_v49 = vld [vmem:[%s5009_s1 + $0xd18] sm:$0xff] }
  0x85   :  { %2129 = vmatpush1.bf16.msra.mxu1 %v2128_v5  ;;  %1526 = vmatmul.mubr.f32.vlgmr.msra.gmra.mrb[0].mxu0 %v24_v6  ;;  %v89_v5 = vld [vmem:[%s5010_s0 + $0x258] sm:$0xff]  ;;  %v80_v6 = vld [vmem:[%s5010_s0 + $0x210] sm:$0xff] }
  0x86   :  { %2385 = vmatpush1.bf16.msra.mxu0 %v2384_v7  ;;  %2131 = vmatprep.subr.bf16.mxu1 %v2130_v8  ;;  %v2400_v7 = vpack.c.bf16 %v624_v61, %v622_v58  ;;  %v2146_v8 = vpack.c.bf16 %v373_v63, %v371_v62  ;;  %v384_v57 = vld [vmem:[%s5009_s1 + $0x510] sm:$0xff]  ;;  %v638_v58 = vld [vmem:[%s5009_s1 + $0xd00] sm:$0xff]  ;;  %v387_v62 = vld [vmem:[%s5009_s1 + $0x528] sm:$0xff] }
  0x87   :  { %2387 = vmatprep.subr.bf16.mxu0 %v2386_v12  ;;  %959 = vmatprep.mubr.f32.mxu1 %v33_v18  ;;  %v2402_v12 = vpack.c.bf16 %v629_v1, %v627_v0  ;;  %v97_v18 = vld [vmem:[%s5010_s0 + $0x298] sm:$0xff]  ;;  %v640_v61 = vld [vmem:[%s5009_s1 + $0xd10] sm:$0xff]  ;;  %v643_v0 = vld [vmem:[%s5009_s1 + $0xd28] sm:$0xff] }
  0x88   :  { %1531 = vmatprep.mubr.f32.mxu0 %v41_v21  ;;  %960 = vmatmul.mubr.f32.gmra.mrb[2].mxu1 %v32_v22  ;;  %v105_v21 = vld [vmem:[%s5010_s0 + $0x2d8] sm:$0xff]  ;;  %v96_v22 = vld [vmem:[%s5010_s0 + $0x290] sm:$0xff] }
  0x89   :  { %2133 = vmatpush1.bf16.msra.mxu1 %v2132_v19  ;;  %1532 = vmatmul.mubr.f32.gmra.mrb[2].mxu0 %v40_v27  ;;  %v2148_v19 = vpack.c.bf16 %v372_v9, %v370_v4  ;;  %v104_v27 = vld [vmem:[%s5010_s0 + $0x2d0] sm:$0xff]  ;;  %v389_v63 = vld [vmem:[%s5009_s1 + $0x538] sm:$0xff]  ;;  %v386_v4 = vld [vmem:[%s5009_s1 + $0x520] sm:$0xff] }
  0x8a   :  { %2389 = vmatpush1.bf16.msra.mxu0 %v2388_v23  ;;  %2135 = vmatprep.subr.bf16.mxu1 %v2134_v24  ;;  %v2404_v23 = vpack.c.bf16 %v628_v13, %v626_v10  ;;  %v2150_v24 = vpack.c.bf16 %v377_v15, %v375_v14  ;;  %v645_v1 = vld [vmem:[%s5009_s1 + $0xd38] sm:$0xff]  ;;  %v388_v9 = vld [vmem:[%s5009_s1 + $0x530] sm:$0xff]  ;;  %v642_v10 = vld [vmem:[%s5009_s1 + $0xd20] sm:$0xff] }
  0x8b   :  { %2391 = vmatprep.subr.bf16.mxu0 %v2390_v28  ;;  %965 = vmatprep.mubr.f32.mxu1 %v49_v34  ;;  %v2406_v28 = vpack.c.bf16 %v633_v17, %v631_v16  ;;  %v113_v34 = vld [vmem:[%s5010_s0 + $0x318] sm:$0xff]  ;;  %v644_v13 = vld [vmem:[%s5009_s1 + $0xd30] sm:$0xff]  ;;  %v391_v14 = vld [vmem:[%s5009_s1 + $0x548] sm:$0xff] }
  0x8c   :  { %1537 = vmatprep.mubr.f32.mxu0 %v57_v37  ;;  %966 = vmatmul.mubr.f32.gmra.mrb[4].mxu1 %v48_v38  ;;  %v121_v37 = vld [vmem:[%s5010_s0 + $0x358] sm:$0xff]  ;;  %v112_v38 = vld [vmem:[%s5010_s0 + $0x310] sm:$0xff]  ;;  %v647_v16 = vld [vmem:[%s5009_s1 + $0xd48] sm:$0xff] }
  0x8d   :  { %2137 = vmatpush1.bf16.msra.mxu1 %v2136_v35  ;;  %1538 = vmatmul.mubr.f32.gmra.mrb[4].mxu0 %v56_v43  ;;  %v2152_v35 = vpack.c.bf16 %v376_v25, %v374_v20  ;;  %v120_v43 = vld [vmem:[%s5010_s0 + $0x350] sm:$0xff]  ;;  %v393_v15 = vld [vmem:[%s5009_s1 + $0x558] sm:$0xff]  ;;  %v390_v20 = vld [vmem:[%s5009_s1 + $0x540] sm:$0xff] }
  0x8e   :  { %2393 = vmatpush1.bf16.msra.mxu0 %v2392_v39  ;;  %2139 = vmatprep.subr.bf16.mxu1 %v2138_v40  ;;  %v2408_v39 = vpack.c.bf16 %v632_v29, %v630_v26  ;;  %v2154_v40 = vpack.c.bf16 %v381_v31, %v379_v30  ;;  %v649_v17 = vld [vmem:[%s5009_s1 + $0xd58] sm:$0xff]  ;;  %v392_v25 = vld [vmem:[%s5009_s1 + $0x550] sm:$0xff]  ;;  %v646_v26 = vld [vmem:[%s5009_s1 + $0xd40] sm:$0xff] }
  0x8f   :  { %2395 = vmatprep.subr.bf16.mxu0 %v2394_v44  ;;  %971 = vmatprep.mubr.f32.mxu1 %v65_v50  ;;  %v2410_v44 = vpack.c.bf16 %v637_v33, %v635_v32  ;;  %v129_v50 = vld [vmem:[%s5010_s0 + $0x398] sm:$0xff]  ;;  %v648_v29 = vld [vmem:[%s5009_s1 + $0xd50] sm:$0xff]  ;;  %v395_v30 = vld [vmem:[%s5009_s1 + $0x568] sm:$0xff] }
  0x90   :  { %1543 = vmatprep.mubr.f32.mxu0 %v73_v53  ;;  %972 = vmatmul.mubr.f32.gmra.mrb[6].mxu1 %v64_v54  ;;  %v137_v53 = vld [vmem:[%s5010_s0 + $0x3d8] sm:$0xff]  ;;  %v128_v54 = vld [vmem:[%s5010_s0 + $0x390] sm:$0xff]  ;;  %v651_v32 = vld [vmem:[%s5009_s1 + $0xd68] sm:$0xff] }
  0x91   :  { %2141 = vmatpush1.bf16.msra.mxu1 %v2140_v51  ;;  %1544 = vmatmul.mubr.f32.gmra.mrb[6].mxu0 %v72_v59  ;;  %v2156_v51 = vpack.c.bf16 %v380_v41, %v378_v36  ;;  %v136_v59 = vld [vmem:[%s5010_s0 + $0x3d0] sm:$0xff]  ;;  %v397_v31 = vld [vmem:[%s5009_s1 + $0x578] sm:$0xff]  ;;  %v394_v36 = vld [vmem:[%s5009_s1 + $0x560] sm:$0xff] }
  0x92   :  { %2397 = vmatpush1.bf16.msra.mxu0 %v2396_v55  ;;  %2143 = vmatprep.subr.bf16.mxu1 %v2142_v56  ;;  %v2412_v55 = vpack.c.bf16 %v636_v45, %v634_v42  ;;  %v2158_v56 = vpack.c.bf16 %v385_v47, %v383_v46  ;;  %v653_v33 = vld [vmem:[%s5009_s1 + $0xd78] sm:$0xff]  ;;  %v396_v41 = vld [vmem:[%s5009_s1 + $0x570] sm:$0xff]  ;;  %v650_v42 = vld [vmem:[%s5009_s1 + $0xd60] sm:$0xff] }
  0x93   :  { %2399 = vmatprep.subr.bf16.mxu0 %v2398_v60  ;;  %977 = vmatprep.mubr.f32.mxu1 %v81_v2  ;;  %v2414_v60 = vpack.c.bf16 %v641_v49, %v639_v48  ;;  %v145_v2 = vld [vmem:[%s5010_s0 + $0x418] sm:$0xff]  ;;  %v652_v45 = vld [vmem:[%s5009_s1 + $0xd70] sm:$0xff]  ;;  %v399_v46 = vld [vmem:[%s5009_s1 + $0x588] sm:$0xff] }
  0x94   :  { %1549 = vmatprep.mubr.f32.mxu0 %v89_v5  ;;  %978 = vmatmul.mubr.f32.gmra.mrb[8].mxu1 %v80_v6  ;;  %v153_v5 = vld [vmem:[%s5010_s0 + $0x458] sm:$0xff]  ;;  %v144_v6 = vld [vmem:[%s5010_s0 + $0x410] sm:$0xff]  ;;  %v655_v48 = vld [vmem:[%s5009_s1 + $0xd88] sm:$0xff] }
  0x95   :  { %2145 = vmatpush1.bf16.msra.mxu1 %v2144_v3  ;;  %1550 = vmatmul.mubr.f32.gmra.mrb[8].mxu0 %v88_v11  ;;  %v2160_v3 = vpack.c.bf16 %v384_v57, %v382_v52  ;;  %v152_v11 = vld [vmem:[%s5010_s0 + $0x450] sm:$0xff]  ;;  %v401_v47 = vld [vmem:[%s5009_s1 + $0x598] sm:$0xff]  ;;  %v398_v52 = vld [vmem:[%s5009_s1 + $0x580] sm:$0xff] }
  0x96   :  { %2401 = vmatpush1.bf16.msra.mxu0 %v2400_v7  ;;  %2147 = vmatprep.subr.bf16.mxu1 %v2146_v8  ;;  %v2416_v7 = vpack.c.bf16 %v640_v61, %v638_v58  ;;  %v2162_v8 = vpack.c.bf16 %v389_v63, %v387_v62  ;;  %v657_v49 = vld [vmem:[%s5009_s1 + $0xd98] sm:$0xff]  ;;  %v400_v57 = vld [vmem:[%s5009_s1 + $0x590] sm:$0xff]  ;;  %v654_v58 = vld [vmem:[%s5009_s1 + $0xd80] sm:$0xff] }
  0x97   :  { %2403 = vmatprep.subr.bf16.mxu0 %v2402_v12  ;;  %983 = vmatprep.mubr.f32.mxu1 %v97_v18  ;;  %v2418_v12 = vpack.c.bf16 %v645_v1, %v643_v0  ;;  %v161_v18 = vld [vmem:[%s5010_s0 + $0x498] sm:$0xff]  ;;  %v656_v61 = vld [vmem:[%s5009_s1 + $0xd90] sm:$0xff]  ;;  %v403_v62 = vld [vmem:[%s5009_s1 + $0x5a8] sm:$0xff] }
  0x98   :  { %1555 = vmatprep.mubr.f32.mxu0 %v105_v21  ;;  %984 = vmatmul.mubr.f32.gmra.mrb[10].mxu1 %v96_v22  ;;  %v169_v21 = vld [vmem:[%s5010_s0 + $0x4d8] sm:$0xff]  ;;  %v160_v22 = vld [vmem:[%s5010_s0 + $0x490] sm:$0xff]  ;;  %v659_v0 = vld [vmem:[%s5009_s1 + $0xda8] sm:$0xff] }
  0x99   :  { %2149 = vmatpush1.bf16.msra.mxu1 %v2148_v19  ;;  %1556 = vmatmul.mubr.f32.gmra.mrb[10].mxu0 %v104_v27  ;;  %v2164_v19 = vpack.c.bf16 %v388_v9, %v386_v4  ;;  %v168_v27 = vld [vmem:[%s5010_s0 + $0x4d0] sm:$0xff]  ;;  %v405_v63 = vld [vmem:[%s5009_s1 + $0x5b8] sm:$0xff]  ;;  %v402_v4 = vld [vmem:[%s5009_s1 + $0x5a0] sm:$0xff] }
  0x9a   :  { %2405 = vmatpush1.bf16.msra.mxu0 %v2404_v23  ;;  %2151 = vmatprep.subr.bf16.mxu1 %v2150_v24  ;;  %v2420_v23 = vpack.c.bf16 %v644_v13, %v642_v10  ;;  %v2166_v24 = vpack.c.bf16 %v393_v15, %v391_v14  ;;  %v661_v1 = vld [vmem:[%s5009_s1 + $0xdb8] sm:$0xff]  ;;  %v404_v9 = vld [vmem:[%s5009_s1 + $0x5b0] sm:$0xff]  ;;  %v658_v10 = vld [vmem:[%s5009_s1 + $0xda0] sm:$0xff] }
  0x9b   :  { %2407 = vmatprep.subr.bf16.mxu0 %v2406_v28  ;;  %989 = vmatprep.mubr.f32.mxu1 %v113_v34  ;;  %v2422_v28 = vpack.c.bf16 %v649_v17, %v647_v16  ;;  %v177_v34 = vld [vmem:[%s5010_s0 + $0x518] sm:$0xff]  ;;  %v660_v13 = vld [vmem:[%s5009_s1 + $0xdb0] sm:$0xff]  ;;  %v407_v14 = vld [vmem:[%s5009_s1 + $0x5c8] sm:$0xff] }
  0x9c   :  { %1561 = vmatprep.mubr.f32.mxu0 %v121_v37  ;;  %990 = vmatmul.mubr.f32.gmra.mrb[12].mxu1 %v112_v38  ;;  %v185_v37 = vld [vmem:[%s5010_s0 + $0x558] sm:$0xff]  ;;  %v176_v38 = vld [vmem:[%s5010_s0 + $0x510] sm:$0xff]  ;;  %v663_v16 = vld [vmem:[%s5009_s1 + $0xdc8] sm:$0xff] }
  0x9d   :  { %2153 = vmatpush1.bf16.msra.mxu1 %v2152_v35  ;;  %1562 = vmatmul.mubr.f32.gmra.mrb[12].mxu0 %v120_v43  ;;  %v2168_v35 = vpack.c.bf16 %v392_v25, %v390_v20  ;;  %v184_v43 = vld [vmem:[%s5010_s0 + $0x550] sm:$0xff]  ;;  %v409_v15 = vld [vmem:[%s5009_s1 + $0x5d8] sm:$0xff]  ;;  %v27_v20 = vld [vmem:[%s5010_s0 + $0x68] sm:$0xff] }
  0x9e   :  { %2409 = vmatpush1.bf16.msra.mxu0 %v2408_v39  ;;  %2155 = vmatprep.subr.bf16.mxu1 %v2154_v40  ;;  %v2424_v39 = vpack.c.bf16 %v648_v29, %v646_v26  ;;  %v2170_v40 = vpack.c.bf16 %v397_v31, %v395_v30  ;;  %v665_v17 = vld [vmem:[%s5009_s1 + $0xdd8] sm:$0xff]  ;;  %v662_v25 = vld [vmem:[%s5009_s1 + $0xdc0] sm:$0xff]  ;;  %v667_v30 = vld [vmem:[%s5009_s1 + $0xde8] sm:$0xff] }
  0x9f   :  { %2411 = vmatprep.subr.bf16.mxu0 %v2410_v44  ;;  %995 = vmatprep.mubr.f32.mxu1 %v129_v50  ;;  %v2426_v44 = vpack.c.bf16 %v653_v33, %v651_v32  ;;  %v193_v50 = vld [vmem:[%s5010_s0 + $0x598] sm:$0xff]  ;;  %v2438_v26 = vpack.c.bf16 %v665_v17, %v663_v16  ;;  %v680_v17 = vld [vmem:[%s5009_s1 + $0xe50] sm:$0xff] }
  0xa0   :  { %1567 = vmatprep.mubr.f32.mxu0 %v137_v53  ;;  %996 = vmatmul.mubr.f32.gmra.mrb[14].mxu1 %v128_v54  ;;  %v201_v53 = vld [vmem:[%s5010_s0 + $0x5d8] sm:$0xff]  ;;  %v192_v54 = vld [vmem:[%s5010_s0 + $0x590] sm:$0xff] }
  0xa1   :  { %2157 = vmatpush1.bf16.msra.mxu1 %v2156_v51  ;;  %1568 = vmatmul.mubr.f32.gmra.mrb[14].mxu0 %v136_v59  ;;  %v2172_v51 = vpack.c.bf16 %v396_v41, %v394_v36  ;;  %v200_v59 = vld [vmem:[%s5010_s0 + $0x5d0] sm:$0xff]  ;;  %v413_v29 = vld [vmem:[%s5009_s1 + $0x5f8] sm:$0xff] }
  0xa2   :  { %2413 = vmatpush1.bf16.msra.mxu0 %v2412_v55  ;;  %2159 = vmatprep.subr.bf16.mxu1 %v2158_v56  ;;  %v2428_v55 = vpack.c.bf16 %v652_v45, %v650_v42  ;;  %v2174_v56 = vpack.c.bf16 %v401_v47, %v399_v46  ;;  %v669_v31 = vld [vmem:[%s5009_s1 + $0xdf8] sm:$0xff]  ;;  %v412_v36 = vld [vmem:[%s5009_s1 + $0x5f0] sm:$0xff]  ;;  %v671_v42 = vld [vmem:[%s5009_s1 + $0xe08] sm:$0xff] }
  0xa3   :  { %2415 = vmatprep.subr.bf16.mxu0 %v2414_v60  ;;  %1001 = vmatprep.mubr.f32.mxu1 %v145_v2  ;;  %v2430_v60 = vpack.c.bf16 %v657_v49, %v655_v48  ;;  %v209_v2 = vld [vmem:[%s5010_s0 + $0x618] sm:$0xff]  ;;  %v414_v47 = vld [vmem:[%s5009_s1 + $0x600] sm:$0xff]  ;;  %v416_v48 = vld [vmem:[%s5009_s1 + $0x610] sm:$0xff] }
  0xa4   :  { %1573 = vmatprep.mubr.f32.mxu0 %v153_v5  ;;  %1002 = vmatmul.mubr.f32.gmra.mrb[16].mxu1 %v144_v6  ;;  %v217_v5 = vld [vmem:[%s5010_s0 + $0x658] sm:$0xff]  ;;  %v208_v6 = vld [vmem:[%s5010_s0 + $0x610] sm:$0xff]  ;;  %v670_v49 = vld [vmem:[%s5009_s1 + $0xe00] sm:$0xff] }
  0xa5   :  { %2161 = vmatpush1.bf16.msra.mxu1 %v2160_v3  ;;  %1574 = vmatmul.mubr.f32.gmra.mrb[16].mxu0 %v152_v11  ;;  %v2176_v3 = vpack.c.bf16 %v400_v57, %v398_v52  ;;  %v216_v11 = vld [vmem:[%s5010_s0 + $0x650] sm:$0xff]  ;;  %v417_v41 = vld [vmem:[%s5009_s1 + $0x618] sm:$0xff]  ;;  %v419_v52 = vld [vmem:[%s5009_s1 + $0x628] sm:$0xff]  ;;  %v2192_v57 = vpack.c.bf16 %v416_v48, %v414_v47 }
  0xa6   :  { %2417 = vmatpush1.bf16.msra.mxu0 %v2416_v7  ;;  %2163 = vmatprep.subr.bf16.mxu1 %v2162_v8  ;;  %v2432_v7 = vpack.c.bf16 %v656_v61, %v654_v58  ;;  %v2178_v8 = vpack.c.bf16 %v405_v63, %v403_v62  ;;  %v26_v58 = vld [vmem:[%s5010_s0 + $0x60] sm:$0xff]  ;;  %v420_v62 = vld [vmem:[%s5009_s1 + $0x630] sm:$0xff] }
  0xa7   :  { %2419 = vmatprep.subr.bf16.mxu0 %v2418_v12  ;;  %1007 = vmatprep.mubr.f32.mxu1 %v161_v18  ;;  %v2434_v12 = vpack.c.bf16 %v661_v1, %v659_v0  ;;  %v19_v18 = vld [vmem:[%s5010_s0 + $0x28] sm:$0xff]  ;;  %v418_v61 = vld [vmem:[%s5009_s1 + $0x620] sm:$0xff]  ;;  %v676_v1 = vld [vmem:[%s5009_s1 + $0xe30] sm:$0xff] }
  0xa8   :  { %1579 = vmatprep.mubr.f32.mxu0 %v169_v21  ;;  %1008 = vmatmul.mubr.f32.gmra.mrb[18].mxu1 %v160_v22  ;;  %v2436_v21 = vpack.c.bf16 %v660_v13, %v658_v10  ;;  %v2182_v22 = vpack.c.bf16 %v409_v15, %v407_v14  ;;  %v674_v63 = vld [vmem:[%s5009_s1 + $0xe20] sm:$0xff]  ;;  %v424_v13 = vld [vmem:[%s5009_s1 + $0x650] sm:$0xff] }
  0xa9   :  { %2165 = vmatpush1.bf16.msra.mxu1 %v2164_v19  ;;  %1580 = vmatmul.mubr.f32.gmra.mrb[18].mxu0 %v168_v27  ;;  %v2180_v19 = vpack.c.bf16 %v404_v9, %v402_v4  ;;  %v664_v27 = vld [vmem:[%s5009_s1 + $0xdd0] sm:$0xff]  ;;  %v679_v4 = vld [vmem:[%s5009_s1 + $0xe48] sm:$0xff]  ;;  %v34_v10 = vld [vmem:[%s5010_s0 + $0xa0] sm:$0xff] }
  0xaa   :  { %2421 = vmatpush1.bf16.msra.mxu0 %v2420_v23  ;;  %2167 = vmatprep.subr.bf16.mxu1 %v2166_v24  ;;  %v406_v23 = vld [vmem:[%s5009_s1 + $0x5c0] sm:$0xff]  ;;  %v408_v24 = vld [vmem:[%s5009_s1 + $0x5d0] sm:$0xff]  ;;  %v2440_v33 = vpack.c.bf16 %v664_v27, %v662_v25  ;;  %v43_v9 = vld [vmem:[%s5010_s0 + $0xe8] sm:$0xff] }
  0xab   :  { %2423 = vmatprep.subr.bf16.mxu0 %v2422_v28  ;;  %1013 = vmatprep.mubr.f32.mxu1 %v177_v34  ;;  %v411_v28 = vld [vmem:[%s5009_s1 + $0x5e8] sm:$0xff]  ;;  %v2184_v32 = vpack.c.bf16 %v408_v24, %v406_v23  ;;  %v678_v14 = vld [vmem:[%s5009_s1 + $0xe40] sm:$0xff] }
  0xac   :  { %1585 = vmatprep.mubr.f32.mxu0 %v185_v37  ;;  %1014 = vmatmul.mubr.f32.gmra.mrb[20].mxu1 %v176_v38  ;;  %v2186_v34 = vpack.c.bf16 %v413_v29, %v411_v28  ;;  %v666_v37 = vld [vmem:[%s5009_s1 + $0xde0] sm:$0xff]  ;;  %v2442_v38 = vpack.c.bf16 %v669_v31, %v667_v30  ;;  %v59_v25 = vld [vmem:[%s5010_s0 + $0x168] sm:$0xff]  ;;  %v2456_v27 = vpack.c.bf16 %v680_v17, %v678_v14  ;;  %v428_v29 = vld [vmem:[%s5009_s1 + $0x670] sm:$0xff] }
  0xad   :  { %2169 = vmatpush1.bf16.msra.mxu1 %v2168_v35  ;;  %1586 = vmatmul.mubr.f32.gmra.mrb[20].mxu0 %v184_v43  ;;  %v410_v35 = vld [vmem:[%s5009_s1 + $0x5e0] sm:$0xff]  ;;  %v673_v43 = vld [vmem:[%s5009_s1 + $0xe18] sm:$0xff]  ;;  %v696_v17 = vld [vmem:[%s5009_s1 + $0xed0] sm:$0xff] }
  0xae   :  { %2425 = vmatpush1.bf16.msra.mxu0 %v2424_v39  ;;  %2171 = vmatprep.subr.bf16.mxu1 %v2170_v40  ;;  %v668_v39 = vld [vmem:[%s5009_s1 + $0xdf0] sm:$0xff]  ;;  %v415_v40 = vld [vmem:[%s5009_s1 + $0x608] sm:$0xff]  ;;  %v42_v15 = vld [vmem:[%s5010_s0 + $0xe0] sm:$0xff] }
  0xaf   :  { %2427 = vmatprep.subr.bf16.mxu0 %v2426_v44  ;;  %1019 = vmatprep.mubr.f32.mxu1 %v193_v50  ;;  %v2188_v44 = vpack.c.bf16 %v412_v36, %v410_v35  ;;  %v2444_v45 = vpack.c.bf16 %v668_v39, %v666_v37  ;;  %v2190_v46 = vpack.c.bf16 %v417_v41, %v415_v40  ;;  %v426_v24 = vld [vmem:[%s5009_s1 + $0x660] sm:$0xff]  ;;  %v433_v35 = vld [vmem:[%s5009_s1 + $0x698] sm:$0xff]  ;;  %v687_v36 = vld [vmem:[%s5009_s1 + $0xe88] sm:$0xff] }
  0xb0   :  { %1591 = vmatprep.mubr.f32.mxu0 %v201_v53  ;;  %1020 = vmatmul.mubr.f32.gmra.mrb[22].mxu1 %v192_v54  ;;  %v2446_v50 = vpack.c.bf16 %v673_v43, %v671_v42  ;;  %v421_v53 = vld [vmem:[%s5009_s1 + $0x638] sm:$0xff]  ;;  %v675_v54 = vld [vmem:[%s5009_s1 + $0xe28] sm:$0xff]  ;;  %v682_v30 = vld [vmem:[%s5009_s1 + $0xe60] sm:$0xff]  ;;  %v2204_v39 = vpack.c.bf16 %v428_v29, %v426_v24 }
  0xb1   :  { %2173 = vmatpush1.bf16.msra.mxu1 %v2172_v51  ;;  %1592 = vmatmul.mubr.f32.gmra.mrb[22].mxu0 %v200_v59  ;;  %v672_v51 = vld [vmem:[%s5009_s1 + $0xe10] sm:$0xff]  ;;  %v58_v31 = vld [vmem:[%s5010_s0 + $0x160] sm:$0xff]  ;;  %v689_v37 = vld [vmem:[%s5009_s1 + $0xe98] sm:$0xff] }
  0xb2   :  { %2429 = vmatpush1.bf16.msra.mxu0 %v2428_v55  ;;  %2175 = vmatprep.subr.bf16.mxu1 %v2174_v56  ;;  %v677_v55 = vld [vmem:[%s5009_s1 + $0xe38] sm:$0xff]  ;;  %v18_v56 = vld [vmem:[%s5010_s0 + $0x20] sm:$0xff]  ;;  %v2448_v59 = vpack.c.bf16 %v672_v51, %v670_v49  ;;  %v75_v41 = vld [vmem:[%s5010_s0 + $0x1e8] sm:$0xff]  ;;  %v2462_v48 = vpack.c.bf16 %v689_v37, %v687_v36 }
  0xb3   :  { %2431 = vmatprep.subr.bf16.mxu0 %v2430_v60  ;;  %1025 = vmatprep.mubr.f32.mxu1 %v209_v2  ;;  %v2194_v60 = vpack.c.bf16 %v421_v53, %v419_v52  ;;  %v2450_v0 = vpack.c.bf16 %v677_v55, %v675_v54  ;;  %v423_v2 = vld [vmem:[%s5009_s1 + $0x648] sm:$0xff]  ;;  %v430_v40 = vld [vmem:[%s5009_s1 + $0x680] sm:$0xff]  ;;  %v688_v49 = vld [vmem:[%s5009_s1 + $0xe90] sm:$0xff] }
  0xb4   :  { %1597 = vmatprep.mubr.f32.mxu0 %v217_v5  ;;  %1026 = vmatmul.mubr.f32.gmra.mrb[24].mxu1 %v208_v6  ;;  %v681_v5 = vld [vmem:[%s5009_s1 + $0xe58] sm:$0xff]  ;;  %v35_v6 = vld [vmem:[%s5010_s0 + $0xa8] sm:$0xff]  ;;  %v66_v42 = vld [vmem:[%s5010_s0 + $0x1a0] sm:$0xff] }
  0xb5   :  { %2177 = vmatpush1.bf16.msra.mxu1 %v2176_v3  ;;  %1598 = vmatmul.mubr.f32.gmra.mrb[24].mxu0 %v216_v11  ;;  %v425_v3 = vld [vmem:[%s5009_s1 + $0x658] sm:$0xff]  ;;  %v2452_v11 = vpack.c.bf16 %v676_v1, %v674_v63  ;;  %v2454_v16 = vpack.c.bf16 %v681_v5, %v679_v4  ;;  %v74_v47 = vld [vmem:[%s5010_s0 + $0x1e0] sm:$0xff]  ;;  %v691_v52 = vld [vmem:[%s5009_s1 + $0xea8] sm:$0xff] }
  0xb6   :  { %2433 = vmatpush1.bf16.msra.mxu0 %v2432_v7  ;;  %2179 = vmatprep.subr.bf16.mxu1 %v2178_v8  ;;  %v2196_v7 = vpack.c.bf16 %v420_v62, %v418_v61  ;;  %v422_v8 = vld [vmem:[%s5009_s1 + $0x640] sm:$0xff]  ;;  %v437_v51 = vld [vmem:[%s5009_s1 + $0x6b8] sm:$0xff]  ;;  %v83_v54 = vld [vmem:[%s5010_s0 + $0x228] sm:$0xff] }
  0xb7   :  { %2435 = vmatprep.subr.bf16.mxu0 %v2434_v12  ;;  %1096 = vmatprep.mubr.f32.mxu1 %v19_v18  ;;  %v2198_v12 = vpack.c.bf16 %v425_v3, %v423_v2  ;;  %v427_v18 = vld [vmem:[%s5009_s1 + $0x668] sm:$0xff]  ;;  %v2200_v23 = vpack.c.bf16 %v424_v13, %v422_v8  ;;  %v693_v53 = vld [vmem:[%s5009_s1 + $0xeb8] sm:$0xff]  ;;  %v436_v61 = vld [vmem:[%s5009_s1 + $0x6b0] sm:$0xff] }
  0xb8   :  { %1668 = vmatprep.mubr.f32.mxu0 %v27_v20  ;;  %v683_v20 = vld [vmem:[%s5009_s1 + $0xe68] sm:$0xff]  ;;  %v690_v62 = vld [vmem:[%s5009_s1 + $0xea0] sm:$0xff]  ;;  %v692_v1 = vld [vmem:[%s5009_s1 + $0xeb0] sm:$0xff] }
  0xb9   :  { %2181 = vmatpush1.bf16.msra.mxu1 %v2180_v19  ;;  %v429_v19 = vld [vmem:[%s5009_s1 + $0x678] sm:$0xff]  ;;  %v90_v63 = vld [vmem:[%s5010_s0 + $0x260] sm:$0xff]  ;;  %v439_v2 = vld [vmem:[%s5009_s1 + $0x6c8] sm:$0xff] }
  0xba   :  { %2437 = vmatpush1.bf16.msra.mxu0 %v2436_v21  ;;  %2183 = vmatprep.subr.bf16.mxu1 %v2182_v22  ;;  %v685_v21 = vld [vmem:[%s5009_s1 + $0xe78] sm:$0xff]  ;;  %v51_v22 = vld [vmem:[%s5010_s0 + $0x128] sm:$0xff]  ;;  %v2202_v28 = vpack.c.bf16 %v429_v19, %v427_v18  ;;  %v438_v8 = vld [vmem:[%s5009_s1 + $0x6c0] sm:$0xff] }
  0xbb   :  { %2439 = vmatprep.subr.bf16.mxu0 %v2438_v26  ;;  %v50_v26 = vld [vmem:[%s5010_s0 + $0x120] sm:$0xff]  ;;  %v441_v3 = vld [vmem:[%s5009_s1 + $0x6d8] sm:$0xff]  ;;  %v695_v4 = vld [vmem:[%s5009_s1 + $0xec8] sm:$0xff] }
  0xbc   :  { %v697_v5 = vld [vmem:[%s5009_s1 + $0xed8] sm:$0xff]  ;;  %v440_v13 = vld [vmem:[%s5009_s1 + $0x6d0] sm:$0xff]  ;;  %v694_v14 = vld [vmem:[%s5009_s1 + $0xec0] sm:$0xff] }
  0xbd   :  { %2185 = vmatpush1.bf16.msra.mxu1 %v2184_v32  ;;  %v2458_v32 = vpack.c.bf16 %v685_v21, %v683_v20  ;;  %v443_v18 = vld [vmem:[%s5009_s1 + $0x6e8] sm:$0xff]  ;;  %v445_v19 = vld [vmem:[%s5009_s1 + $0x6f8] sm:$0xff]  ;;  %v442_v24 = vld [vmem:[%s5009_s1 + $0x6e0] sm:$0xff] }
  0xbe   :  { %2441 = vmatpush1.bf16.msra.mxu0 %v2440_v33  ;;  %2187 = vmatprep.subr.bf16.mxu1 %v2186_v34  ;;  %v684_v33 = vld [vmem:[%s5009_s1 + $0xe70] sm:$0xff]  ;;  %v431_v34 = vld [vmem:[%s5009_s1 + $0x688] sm:$0xff]  ;;  %v701_v21 = vld [vmem:[%s5009_s1 + $0xef8] sm:$0xff] }
  0xbf   :  { %2443 = vmatprep.subr.bf16.mxu0 %v2442_v38  ;;  %v67_v38 = vld [vmem:[%s5010_s0 + $0x1a8] sm:$0xff]  ;;  %v2460_v43 = vpack.c.bf16 %v684_v33, %v682_v30  ;;  %v444_v29 = vld [vmem:[%s5009_s1 + $0x6f0] sm:$0xff]  ;;  %v698_v30 = vld [vmem:[%s5009_s1 + $0xee0] sm:$0xff] }
  0xc0   :  { %v699_v20 = vld [vmem:[%s5009_s1 + $0xee8] sm:$0xff]  ;;  %v700_v33 = vld [vmem:[%s5009_s1 + $0xef0] sm:$0xff]  ;;  %v705_v37 = vld [vmem:[%s5009_s1 + $0xf18] sm:$0xff] }
  0xc1   :  { %2189 = vmatpush1.bf16.msra.mxu1 %v2188_v44  ;;  %v2206_v44 = vpack.c.bf16 %v433_v35, %v431_v34  ;;  %v447_v34 = vld [vmem:[%s5009_s1 + $0x708] sm:$0xff]  ;;  %v449_v35 = vld [vmem:[%s5009_s1 + $0x718] sm:$0xff] }
  0xc2   :  { %2445 = vmatpush1.bf16.msra.mxu0 %v2444_v45  ;;  %2191 = vmatprep.subr.bf16.mxu1 %v2190_v46  ;;  %v432_v45 = vld [vmem:[%s5009_s1 + $0x690] sm:$0xff]  ;;  %v686_v46 = vld [vmem:[%s5009_s1 + $0xe80] sm:$0xff]  ;;  %v703_v36 = vld [vmem:[%s5009_s1 + $0xf08] sm:$0xff] }
  0xc3   :  { %2447 = vmatprep.subr.bf16.mxu0 %v2446_v50  ;;  %v435_v50 = vld [vmem:[%s5009_s1 + $0x6a8] sm:$0xff]  ;;  %v2208_v55 = vpack.c.bf16 %v432_v45, %v430_v40  ;;  %v446_v40 = vld [vmem:[%s5009_s1 + $0x700] sm:$0xff]  ;;  %v448_v45 = vld [vmem:[%s5009_s1 + $0x710] sm:$0xff] }
  0xc4   :  { %1097 = vmatmul.mubr.f32.vlgmr.msra.gmra.mrb[0].mxu1 %v18_v56  ;;  %v434_v56 = vld [vmem:[%s5009_s1 + $0x6a0] sm:$0xff] }
  0xc5   :  { %2193 = vmatpush1.bf16.msra.mxu1 %v2192_v57  ;;  %1669 = vmatmul.mubr.f32.vlgmr.msra.gmra.mrb[0].mxu0 %v26_v58  ;;  %v91_v57 = vld [vmem:[%s5010_s0 + $0x268] sm:$0xff]  ;;  %v82_v58 = vld [vmem:[%s5010_s0 + $0x220] sm:$0xff] }
  0xc6   :  { %2449 = vmatpush1.bf16.msra.mxu0 %v2448_v59  ;;  %2195 = vmatprep.subr.bf16.mxu1 %v2194_v60  ;;  %v2464_v59 = vpack.c.bf16 %v688_v49, %v686_v46  ;;  %v2210_v60 = vpack.c.bf16 %v437_v51, %v435_v50  ;;  %v702_v46 = vld [vmem:[%s5009_s1 + $0xf00] sm:$0xff]  ;;  %v704_v49 = vld [vmem:[%s5009_s1 + $0xf10] sm:$0xff]  ;;  %v451_v50 = vld [vmem:[%s5009_s1 + $0x728] sm:$0xff] }
  0xc7   :  { %2451 = vmatprep.subr.bf16.mxu0 %v2450_v0  ;;  %1102 = vmatprep.mubr.f32.mxu1 %v35_v6  ;;  %v2466_v0 = vpack.c.bf16 %v693_v53, %v691_v52  ;;  %v99_v6 = vld [vmem:[%s5010_s0 + $0x2a8] sm:$0xff]  ;;  %v453_v51 = vld [vmem:[%s5009_s1 + $0x738] sm:$0xff] }
  0xc8   :  { %1674 = vmatprep.mubr.f32.mxu0 %v43_v9  ;;  %1103 = vmatmul.mubr.f32.gmra.mrb[2].mxu1 %v34_v10  ;;  %v107_v9 = vld [vmem:[%s5010_s0 + $0x2e8] sm:$0xff]  ;;  %v98_v10 = vld [vmem:[%s5010_s0 + $0x2a0] sm:$0xff]  ;;  %v709_v53 = vld [vmem:[%s5009_s1 + $0xf38] sm:$0xff] }
  0xc9   :  { %2197 = vmatpush1.bf16.msra.mxu1 %v2196_v7  ;;  %1675 = vmatmul.mubr.f32.gmra.mrb[2].mxu0 %v42_v15  ;;  %v2212_v7 = vpack.c.bf16 %v436_v61, %v434_v56  ;;  %v106_v15 = vld [vmem:[%s5010_s0 + $0x2e0] sm:$0xff]  ;;  %v707_v52 = vld [vmem:[%s5009_s1 + $0xf28] sm:$0xff]  ;;  %v452_v61 = vld [vmem:[%s5009_s1 + $0x730] sm:$0xff] }
  0xca   :  { %2453 = vmatpush1.bf16.msra.mxu0 %v2452_v11  ;;  %2199 = vmatprep.subr.bf16.mxu1 %v2198_v12  ;;  %v2468_v11 = vpack.c.bf16 %v692_v1, %v690_v62  ;;  %v2214_v12 = vpack.c.bf16 %v441_v3, %v439_v2  ;;  %v450_v56 = vld [vmem:[%s5009_s1 + $0x720] sm:$0xff]  ;;  %v708_v1 = vld [vmem:[%s5009_s1 + $0xf30] sm:$0xff]  ;;  %v455_v2 = vld [vmem:[%s5009_s1 + $0x748] sm:$0xff] }
  0xcb   :  { %2455 = vmatprep.subr.bf16.mxu0 %v2454_v16  ;;  %1108 = vmatprep.mubr.f32.mxu1 %v51_v22  ;;  %v2470_v16 = vpack.c.bf16 %v697_v5, %v695_v4  ;;  %v115_v22 = vld [vmem:[%s5010_s0 + $0x328] sm:$0xff]  ;;  %v706_v62 = vld [vmem:[%s5009_s1 + $0xf20] sm:$0xff]  ;;  %v457_v3 = vld [vmem:[%s5009_s1 + $0x758] sm:$0xff] }
  0xcc   :  { %1680 = vmatprep.mubr.f32.mxu0 %v59_v25  ;;  %1109 = vmatmul.mubr.f32.gmra.mrb[4].mxu1 %v50_v26  ;;  %v123_v25 = vld [vmem:[%s5010_s0 + $0x368] sm:$0xff]  ;;  %v114_v26 = vld [vmem:[%s5010_s0 + $0x320] sm:$0xff]  ;;  %v713_v5 = vld [vmem:[%s5009_s1 + $0xf58] sm:$0xff] }
  0xcd   :  { %2201 = vmatpush1.bf16.msra.mxu1 %v2200_v23  ;;  %1681 = vmatmul.mubr.f32.gmra.mrb[4].mxu0 %v58_v31  ;;  %v2216_v23 = vpack.c.bf16 %v440_v13, %v438_v8  ;;  %v122_v31 = vld [vmem:[%s5010_s0 + $0x360] sm:$0xff]  ;;  %v711_v4 = vld [vmem:[%s5009_s1 + $0xf48] sm:$0xff]  ;;  %v456_v13 = vld [vmem:[%s5009_s1 + $0x750] sm:$0xff] }
  0xce   :  { %2457 = vmatpush1.bf16.msra.mxu0 %v2456_v27  ;;  %2203 = vmatprep.subr.bf16.mxu1 %v2202_v28  ;;  %v2472_v27 = vpack.c.bf16 %v696_v17, %v694_v14  ;;  %v2218_v28 = vpack.c.bf16 %v445_v19, %v443_v18  ;;  %v454_v8 = vld [vmem:[%s5009_s1 + $0x740] sm:$0xff]  ;;  %v712_v17 = vld [vmem:[%s5009_s1 + $0xf50] sm:$0xff]  ;;  %v459_v18 = vld [vmem:[%s5009_s1 + $0x768] sm:$0xff] }
  0xcf   :  { %2459 = vmatprep.subr.bf16.mxu0 %v2458_v32  ;;  %1114 = vmatprep.mubr.f32.mxu1 %v67_v38  ;;  %v2474_v32 = vpack.c.bf16 %v701_v21, %v699_v20  ;;  %v131_v38 = vld [vmem:[%s5010_s0 + $0x3a8] sm:$0xff]  ;;  %v710_v14 = vld [vmem:[%s5009_s1 + $0xf40] sm:$0xff]  ;;  %v461_v19 = vld [vmem:[%s5009_s1 + $0x778] sm:$0xff] }
  0xd0   :  { %1686 = vmatprep.mubr.f32.mxu0 %v75_v41  ;;  %1115 = vmatmul.mubr.f32.gmra.mrb[6].mxu1 %v66_v42  ;;  %v139_v41 = vld [vmem:[%s5010_s0 + $0x3e8] sm:$0xff]  ;;  %v130_v42 = vld [vmem:[%s5010_s0 + $0x3a0] sm:$0xff]  ;;  %v717_v21 = vld [vmem:[%s5009_s1 + $0xf78] sm:$0xff] }
  0xd1   :  { %2205 = vmatpush1.bf16.msra.mxu1 %v2204_v39  ;;  %1687 = vmatmul.mubr.f32.gmra.mrb[6].mxu0 %v74_v47  ;;  %v2220_v39 = vpack.c.bf16 %v444_v29, %v442_v24  ;;  %v138_v47 = vld [vmem:[%s5010_s0 + $0x3e0] sm:$0xff]  ;;  %v715_v20 = vld [vmem:[%s5009_s1 + $0xf68] sm:$0xff]  ;;  %v460_v29 = vld [vmem:[%s5009_s1 + $0x770] sm:$0xff] }
  0xd2   :  { %2461 = vmatpush1.bf16.msra.mxu0 %v2460_v43  ;;  %2207 = vmatprep.subr.bf16.mxu1 %v2206_v44  ;;  %v2476_v43 = vpack.c.bf16 %v700_v33, %v698_v30  ;;  %v2222_v44 = vpack.c.bf16 %v449_v35, %v447_v34  ;;  %v458_v24 = vld [vmem:[%s5009_s1 + $0x760] sm:$0xff]  ;;  %v716_v33 = vld [vmem:[%s5009_s1 + $0xf70] sm:$0xff]  ;;  %v463_v34 = vld [vmem:[%s5009_s1 + $0x788] sm:$0xff] }
  0xd3   :  { %2463 = vmatprep.subr.bf16.mxu0 %v2462_v48  ;;  %1120 = vmatprep.mubr.f32.mxu1 %v83_v54  ;;  %v2478_v48 = vpack.c.bf16 %v705_v37, %v703_v36  ;;  %v147_v54 = vld [vmem:[%s5010_s0 + $0x428] sm:$0xff]  ;;  %v714_v30 = vld [vmem:[%s5009_s1 + $0xf60] sm:$0xff]  ;;  %v465_v35 = vld [vmem:[%s5009_s1 + $0x798] sm:$0xff] }
  0xd4   :  { %1692 = vmatprep.mubr.f32.mxu0 %v91_v57  ;;  %1121 = vmatmul.mubr.f32.gmra.mrb[8].mxu1 %v82_v58  ;;  %v155_v57 = vld [vmem:[%s5010_s0 + $0x468] sm:$0xff]  ;;  %v146_v58 = vld [vmem:[%s5010_s0 + $0x420] sm:$0xff]  ;;  %v721_v37 = vld [vmem:[%s5009_s1 + $0xf98] sm:$0xff] }
  0xd5   :  { %2209 = vmatpush1.bf16.msra.mxu1 %v2208_v55  ;;  %1693 = vmatmul.mubr.f32.gmra.mrb[8].mxu0 %v90_v63  ;;  %v2224_v55 = vpack.c.bf16 %v448_v45, %v446_v40  ;;  %v154_v63 = vld [vmem:[%s5010_s0 + $0x460] sm:$0xff]  ;;  %v719_v36 = vld [vmem:[%s5009_s1 + $0xf88] sm:$0xff]  ;;  %v464_v45 = vld [vmem:[%s5009_s1 + $0x790] sm:$0xff] }
  0xd6   :  { %2465 = vmatpush1.bf16.msra.mxu0 %v2464_v59  ;;  %2211 = vmatprep.subr.bf16.mxu1 %v2210_v60  ;;  %v2480_v59 = vpack.c.bf16 %v704_v49, %v702_v46  ;;  %v2226_v60 = vpack.c.bf16 %v453_v51, %v451_v50  ;;  %v462_v40 = vld [vmem:[%s5009_s1 + $0x780] sm:$0xff]  ;;  %v720_v49 = vld [vmem:[%s5009_s1 + $0xf90] sm:$0xff]  ;;  %v467_v50 = vld [vmem:[%s5009_s1 + $0x7a8] sm:$0xff] }
  0xd7   :  { %2467 = vmatprep.subr.bf16.mxu0 %v2466_v0  ;;  %1126 = vmatprep.mubr.f32.mxu1 %v99_v6  ;;  %v2482_v0 = vpack.c.bf16 %v709_v53, %v707_v52  ;;  %v163_v6 = vld [vmem:[%s5010_s0 + $0x4a8] sm:$0xff]  ;;  %v718_v46 = vld [vmem:[%s5009_s1 + $0xf80] sm:$0xff]  ;;  %v469_v51 = vld [vmem:[%s5009_s1 + $0x7b8] sm:$0xff] }
  0xd8   :  { %1698 = vmatprep.mubr.f32.mxu0 %v107_v9  ;;  %1127 = vmatmul.mubr.f32.gmra.mrb[10].mxu1 %v98_v10  ;;  %v171_v9 = vld [vmem:[%s5010_s0 + $0x4e8] sm:$0xff]  ;;  %v162_v10 = vld [vmem:[%s5010_s0 + $0x4a0] sm:$0xff]  ;;  %v725_v53 = vld [vmem:[%s5009_s1 + $0xfb8] sm:$0xff] }
  0xd9   :  { %2213 = vmatpush1.bf16.msra.mxu1 %v2212_v7  ;;  %1699 = vmatmul.mubr.f32.gmra.mrb[10].mxu0 %v106_v15  ;;  %v2228_v7 = vpack.c.bf16 %v452_v61, %v450_v56  ;;  %v170_v15 = vld [vmem:[%s5010_s0 + $0x4e0] sm:$0xff]  ;;  %v723_v52 = vld [vmem:[%s5009_s1 + $0xfa8] sm:$0xff]  ;;  %v468_v61 = vld [vmem:[%s5009_s1 + $0x7b0] sm:$0xff] }
  0xda   :  { %2469 = vmatpush1.bf16.msra.mxu0 %v2468_v11  ;;  %2215 = vmatprep.subr.bf16.mxu1 %v2214_v12  ;;  %v2484_v11 = vpack.c.bf16 %v708_v1, %v706_v62  ;;  %v2230_v12 = vpack.c.bf16 %v457_v3, %v455_v2  ;;  %v466_v56 = vld [vmem:[%s5009_s1 + $0x7a0] sm:$0xff]  ;;  %v724_v1 = vld [vmem:[%s5009_s1 + $0xfb0] sm:$0xff]  ;;  %v471_v2 = vld [vmem:[%s5009_s1 + $0x7c8] sm:$0xff] }
  0xdb   :  { %2471 = vmatprep.subr.bf16.mxu0 %v2470_v16  ;;  %1132 = vmatprep.mubr.f32.mxu1 %v115_v22  ;;  %v2486_v16 = vpack.c.bf16 %v713_v5, %v711_v4  ;;  %v179_v22 = vld [vmem:[%s5010_s0 + $0x528] sm:$0xff]  ;;  %v722_v62 = vld [vmem:[%s5009_s1 + $0xfa0] sm:$0xff]  ;;  %v473_v3 = vld [vmem:[%s5009_s1 + $0x7d8] sm:$0xff] }
  0xdc   :  { %1704 = vmatprep.mubr.f32.mxu0 %v123_v25  ;;  %1133 = vmatmul.mubr.f32.gmra.mrb[12].mxu1 %v114_v26  ;;  %v187_v25 = vld [vmem:[%s5010_s0 + $0x568] sm:$0xff]  ;;  %v178_v26 = vld [vmem:[%s5010_s0 + $0x520] sm:$0xff]  ;;  %v729_v5 = vld [vmem:[%s5009_s1 + $0xfd8] sm:$0xff] }
  0xdd   :  { %2217 = vmatpush1.bf16.msra.mxu1 %v2216_v23  ;;  %1705 = vmatmul.mubr.f32.gmra.mrb[12].mxu0 %v122_v31  ;;  %v2232_v23 = vpack.c.bf16 %v456_v13, %v454_v8  ;;  %v186_v31 = vld [vmem:[%s5010_s0 + $0x560] sm:$0xff]  ;;  %v727_v4 = vld [vmem:[%s5009_s1 + $0xfc8] sm:$0xff]  ;;  %v29_v8 = vld [vmem:[%s5010_s0 + $0x78] sm:$0xff] }
  0xde   :  { %2473 = vmatpush1.bf16.msra.mxu0 %v2472_v27  ;;  %2219 = vmatprep.subr.bf16.mxu1 %v2218_v28  ;;  %v2488_v27 = vpack.c.bf16 %v712_v17, %v710_v14  ;;  %v2234_v28 = vpack.c.bf16 %v461_v19, %v459_v18  ;;  %v726_v13 = vld [vmem:[%s5009_s1 + $0xfc0] sm:$0xff]  ;;  %v2502_v14 = vpack.c.bf16 %v729_v5, %v727_v4  ;;  %v477_v17 = vld [vmem:[%s5009_s1 + $0x7f8] sm:$0xff]  ;;  %v731_v18 = vld [vmem:[%s5009_s1 + $0xfe8] sm:$0xff] }
  0xdf   :  { %2475 = vmatprep.subr.bf16.mxu0 %v2474_v32  ;;  %1138 = vmatprep.mubr.f32.mxu1 %v131_v38  ;;  %v2490_v32 = vpack.c.bf16 %v717_v21, %v715_v20  ;;  %v195_v38 = vld [vmem:[%s5010_s0 + $0x5a8] sm:$0xff]  ;;  %v733_v19 = vld [vmem:[%s5009_s1 + $0xff8] sm:$0xff] }
  0xe0   :  { %1710 = vmatprep.mubr.f32.mxu0 %v139_v41  ;;  %1139 = vmatmul.mubr.f32.gmra.mrb[14].mxu1 %v130_v42  ;;  %v203_v41 = vld [vmem:[%s5010_s0 + $0x5e8] sm:$0xff]  ;;  %v194_v42 = vld [vmem:[%s5010_s0 + $0x5a0] sm:$0xff]  ;;  %v181_v4 = vld [vmem:[%s5010_s0 + $0x538] sm:$0xff] }
  0xe1   :  { %2221 = vmatpush1.bf16.msra.mxu1 %v2220_v39  ;;  %1711 = vmatmul.mubr.f32.gmra.mrb[14].mxu0 %v138_v47  ;;  %v2236_v39 = vpack.c.bf16 %v460_v29, %v458_v24  ;;  %v202_v47 = vld [vmem:[%s5010_s0 + $0x5e0] sm:$0xff]  ;;  %v476_v24 = vld [vmem:[%s5009_s1 + $0x7f0] sm:$0xff]  ;;  %v189_v5 = vld [vmem:[%s5010_s0 + $0x578] sm:$0xff] }
  0xe2   :  { %2477 = vmatpush1.bf16.msra.mxu0 %v2476_v43  ;;  %2223 = vmatprep.subr.bf16.mxu1 %v2222_v44  ;;  %v2492_v43 = vpack.c.bf16 %v716_v33, %v714_v30  ;;  %v2238_v44 = vpack.c.bf16 %v465_v35, %v463_v34  ;;  %v20_v30 = vld [vmem:[%s5010_s0 + $0x30] sm:$0xff]  ;;  %v45_v33 = vld [vmem:[%s5010_s0 + $0xf8] sm:$0xff] }
  0xe3   :  { %2479 = vmatprep.subr.bf16.mxu0 %v2478_v48  ;;  %1144 = vmatprep.mubr.f32.mxu1 %v147_v54  ;;  %v2494_v48 = vpack.c.bf16 %v721_v37, %v719_v36  ;;  %v211_v54 = vld [vmem:[%s5010_s0 + $0x628] sm:$0xff]  ;;  %v36_v34 = vld [vmem:[%s5010_s0 + $0xb0] sm:$0xff]  ;;  %v53_v36 = vld [vmem:[%s5010_s0 + $0x138] sm:$0xff] }
  0xe4   :  { %1716 = vmatprep.mubr.f32.mxu0 %v155_v57  ;;  %1145 = vmatmul.mubr.f32.gmra.mrb[16].mxu1 %v146_v58  ;;  %v219_v57 = vld [vmem:[%s5010_s0 + $0x668] sm:$0xff]  ;;  %v210_v58 = vld [vmem:[%s5010_s0 + $0x620] sm:$0xff]  ;;  %v44_v35 = vld [vmem:[%s5010_s0 + $0xf0] sm:$0xff] }
  0xe5   :  { %2225 = vmatpush1.bf16.msra.mxu1 %v2224_v55  ;;  %1717 = vmatmul.mubr.f32.gmra.mrb[16].mxu0 %v154_v63  ;;  %v2240_v55 = vpack.c.bf16 %v464_v45, %v462_v40  ;;  %v218_v63 = vld [vmem:[%s5010_s0 + $0x660] sm:$0xff]  ;;  %v61_v37 = vld [vmem:[%s5010_s0 + $0x178] sm:$0xff] }
  0xe6   :  { %2481 = vmatpush1.bf16.msra.mxu0 %v2480_v59  ;;  %2227 = vmatprep.subr.bf16.mxu1 %v2226_v60  ;;  %v2496_v59 = vpack.c.bf16 %v720_v49, %v718_v46  ;;  %v2242_v60 = vpack.c.bf16 %v469_v51, %v467_v50  ;;  %v69_v40 = vld [vmem:[%s5010_s0 + $0x1b8] sm:$0xff]  ;;  %v84_v46 = vld [vmem:[%s5010_s0 + $0x230] sm:$0xff] }
  0xe7   :  { %2483 = vmatprep.subr.bf16.mxu0 %v2482_v0  ;;  %1150 = vmatprep.mubr.f32.mxu1 %v163_v6  ;;  %v2498_v0 = vpack.c.bf16 %v725_v53, %v723_v52  ;;  %v21_v6 = vld [vmem:[%s5010_s0 + $0x38] sm:$0xff]  ;;  %v100_v50 = vld [vmem:[%s5010_s0 + $0x2b0] sm:$0xff] }
  0xe8   :  { %1722 = vmatprep.mubr.f32.mxu0 %v171_v9  ;;  %1151 = vmatmul.mubr.f32.gmra.mrb[18].mxu1 %v162_v10  ;;  %v2500_v9 = vpack.c.bf16 %v724_v1, %v722_v62  ;;  %v2246_v10 = vpack.c.bf16 %v473_v3, %v471_v2  ;;  %v93_v45 = vld [vmem:[%s5010_s0 + $0x278] sm:$0xff]  ;;  %v108_v51 = vld [vmem:[%s5010_s0 + $0x2f0] sm:$0xff] }
  0xe9   :  { %2229 = vmatpush1.bf16.msra.mxu1 %v2228_v7  ;;  %1723 = vmatmul.mubr.f32.gmra.mrb[18].mxu0 %v170_v15  ;;  %v2244_v7 = vpack.c.bf16 %v468_v61, %v466_v56  ;;  %v728_v15 = vld [vmem:[%s5009_s1 + $0xfd0] sm:$0xff]  ;;  %v109_v49 = vld [vmem:[%s5010_s0 + $0x2f8] sm:$0xff] }
  0xea   :  { %2485 = vmatpush1.bf16.msra.mxu0 %v2484_v11  ;;  %2231 = vmatprep.subr.bf16.mxu1 %v2230_v12  ;;  %v470_v11 = vld [vmem:[%s5009_s1 + $0x7c0] sm:$0xff]  ;;  %v472_v12 = vld [vmem:[%s5009_s1 + $0x7d0] sm:$0xff]  ;;  %v2504_v21 = vpack.c.bf16 %v728_v15, %v726_v13  ;;  %v117_v52 = vld [vmem:[%s5010_s0 + $0x338] sm:$0xff] }
  0xeb   :  { %2487 = vmatprep.subr.bf16.mxu0 %v2486_v16  ;;  %1156 = vmatprep.mubr.f32.mxu1 %v179_v22  ;;  %v475_v16 = vld [vmem:[%s5009_s1 + $0x7e8] sm:$0xff]  ;;  %v2248_v20 = vpack.c.bf16 %v472_v12, %v470_v11  ;;  %v125_v53 = vld [vmem:[%s5010_s0 + $0x378] sm:$0xff]  ;;  %v148_v62 = vld [vmem:[%s5010_s0 + $0x430] sm:$0xff] }
  0xec   :  { %1728 = vmatprep.mubr.f32.mxu0 %v187_v25  ;;  %1157 = vmatmul.mubr.f32.gmra.mrb[20].mxu1 %v178_v26  ;;  %v2250_v22 = vpack.c.bf16 %v477_v17, %v475_v16  ;;  %v2506_v25 = vpack.c.bf16 %v733_v19, %v731_v18  ;;  %v730_v26 = vld [vmem:[%s5009_s1 + $0xfe0] sm:$0xff]  ;;  %v133_v56 = vld [vmem:[%s5010_s0 + $0x3b8] sm:$0xff]  ;;  %v164_v2 = vld [vmem:[%s5010_s0 + $0x4b0] sm:$0xff]  ;;  %v736_v16 = vlaneseq }
  0xed   :  { %2233 = vmatpush1.bf16.msra.mxu1 %v2232_v23  ;;  %1729 = vmatmul.mubr.f32.gmra.mrb[20].mxu0 %v186_v31  ;;  %v474_v23 = vld [vmem:[%s5009_s1 + $0x7e0] sm:$0xff]  ;;  %v28_v31 = vld [vmem:[%s5010_s0 + $0x70] sm:$0xff]  ;;  %v157_v61 = vld [vmem:[%s5010_s0 + $0x478] sm:$0xff] }
  0xee   :  { %2489 = vmatpush1.bf16.msra.mxu0 %v2488_v27  ;;  %2235 = vmatprep.subr.bf16.mxu1 %v2234_v28  ;;  %v732_v27 = vld [vmem:[%s5009_s1 + $0xff0] sm:$0xff]  ;;  %v2252_v28 = vpack.c.bf16 %v476_v24, %v474_v23  ;;  %v173_v1 = vld [vmem:[%s5010_s0 + $0x4f8] sm:$0xff]  ;;  %v737_v17 = vshrl.u32 %v736_v16, 7  ;;  %v734_v19 = vld [vmem:[%s5011_s2] sm:$0x3] }
  0xef   :  { %2491 = vmatprep.subr.bf16.mxu0 %v2490_v32  ;;  %1162 = vmatprep.mubr.f32.mxu1 %v195_v38  ;;  %v2508_v29 = vpack.c.bf16 %v732_v27, %v730_v26  ;;  %v37_v32 = vld [vmem:[%s5010_s0 + $0xb8] sm:$0xff]  ;;  %v52_v38 = vld [vmem:[%s5010_s0 + $0x130] sm:$0xff] }
  0xf0   :  { %1734 = vmatprep.mubr.f32.mxu0 %v203_v41  ;;  %1163 = vmatmul.mubr.f32.gmra.mrb[22].mxu1 %v194_v42  ;;  %v77_v41 = vld [vmem:[%s5010_s0 + $0x1f8] sm:$0xff]  ;;  %v68_v42 = vld [vmem:[%s5010_s0 + $0x1b0] sm:$0xff]  ;;  %v738_v18 = vsub.s32 0, %v737_v17 }
  0xf1   :  { %2237 = vmatpush1.bf16.msra.mxu1 %v2236_v39  ;;  %1735 = vmatmul.mubr.f32.gmra.mrb[22].mxu0 %v202_v47  ;;  %v60_v39 = vld [vmem:[%s5010_s0 + $0x170] sm:$0xff]  ;;  %v213_v12 = vld [vmem:[%s5010_s0 + $0x638] sm:$0xff] }
  0xf2   :  { %2493 = vmatpush1.bf16.msra.mxu0 %v2492_v43  ;;  %2239 = vmatprep.subr.bf16.mxu1 %v2238_v44  ;;  %v76_v43 = vld [vmem:[%s5010_s0 + $0x1f0] sm:$0xff]  ;;  %v85_v44 = vld [vmem:[%s5010_s0 + $0x238] sm:$0xff] }
  0xf3   :  { %2495 = vmatprep.subr.bf16.mxu0 %v2494_v48  ;;  %1168 = vmatprep.mubr.f32.mxu1 %v211_v54  ;;  %v92_v47 = vld [vmem:[%s5010_s0 + $0x270] sm:$0xff]  ;;  %v101_v48 = vld [vmem:[%s5010_s0 + $0x2b8] sm:$0xff] }
  0xf4   :  { %1740 = vmatprep.mubr.f32.mxu0 %v219_v57  ;;  %1169 = vmatmul.mubr.f32.gmra.mrb[24].mxu1 %v210_v58  ;;  %v116_v54 = vld [vmem:[%s5010_s0 + $0x330] sm:$0xff]  ;;  %v141_v57 = vld [vmem:[%s5010_s0 + $0x3f8] sm:$0xff] }
  0xf5   :  { %2241 = vmatpush1.bf16.msra.mxu1 %v2240_v55  ;;  %1741 = vmatmul.mubr.f32.gmra.mrb[24].mxu0 %v218_v63  ;;  %v124_v55 = vld [vmem:[%s5010_s0 + $0x370] sm:$0xff]  ;;  %v221_v13 = vld [vmem:[%s5010_s0 + $0x678] sm:$0xff] }
  0xf6   :  { %2497 = vmatpush1.bf16.msra.mxu0 %v2496_v59  ;;  %2243 = vmatprep.subr.bf16.mxu1 %v2242_v60  ;;  %v132_v58 = vld [vmem:[%s5010_s0 + $0x3b0] sm:$0xff]  ;;  %v149_v60 = vld [vmem:[%s5010_s0 + $0x438] sm:$0xff] }
  0xf7   :  { %2499 = vmatprep.subr.bf16.mxu0 %v2498_v0  ;;  %1239 = vmatprep.mubr.f32.mxu1 %v21_v6  ;;  %v140_v59 = vld [vmem:[%s5010_s0 + $0x3f0] sm:$0xff]  ;;  %v165_v0 = vld [vmem:[%s5010_s0 + $0x4b8] sm:$0xff] }
  0xf8   :  { %1811 = vmatprep.mubr.f32.mxu0 %v29_v8  ;;  %v156_v63 = vld [vmem:[%s5010_s0 + $0x470] sm:$0xff]  ;;  %v197_v8 = vld [vmem:[%s5010_s0 + $0x5b8] sm:$0xff] }
  0xf9   :  { %2245 = vmatpush1.bf16.msra.mxu1 %v2244_v7  ;;  %v172_v3 = vld [vmem:[%s5010_s0 + $0x4f0] sm:$0xff] }
  0xfa   :  { %2501 = vmatpush1.bf16.msra.mxu0 %v2500_v9  ;;  %2247 = vmatprep.subr.bf16.mxu1 %v2246_v10  ;;  %v180_v6 = vld [vmem:[%s5010_s0 + $0x530] sm:$0xff]  ;;  %v205_v9 = vld [vmem:[%s5010_s0 + $0x5f8] sm:$0xff] }
  0xfb   :  { %2503 = vmatprep.subr.bf16.mxu0 %v2502_v14  ;;  %v188_v7 = vld [vmem:[%s5010_s0 + $0x570] sm:$0xff] }
  0xfc   :  { %v196_v10 = vld [vmem:[%s5010_s0 + $0x5b0] sm:$0xff] }
  0xfd   :  { %2249 = vmatpush1.bf16.msra.mxu1 %v2248_v20  ;;  %v204_v11 = vld [vmem:[%s5010_s0 + $0x5f0] sm:$0xff]  ;;  %v742_v20 = vsub.s32 1, %v737_v17 }
  0xfe   :  { %2505 = vmatpush1.bf16.msra.mxu0 %v2504_v21  ;;  %2251 = vmatprep.subr.bf16.mxu1 %v2250_v22  ;;  %v212_v14 = vld [vmem:[%s5010_s0 + $0x630] sm:$0xff]  ;;  %v4901_v21 = vrot.slane %v734_v19, %v738_v18 }
  0xff   :  { %2507 = vmatprep.subr.bf16.mxu0 %v2506_v25  ;;  %v220_v15 = vld [vmem:[%s5010_s0 + $0x670] sm:$0xff]  ;;  %v4903_v22 = vrot.slane %v734_v19, %v742_v20 }
 0x101   :  { %2253 = vmatpush1.bf16.msra.mxu1 %v2252_v28 }
 0x102   :  { %2509 = vmatpush1.bf16.msra.mxu0 %v2508_v29 }
 0x104   :  { %1240 = vmatmul.mubr.f32.vlgmr.msra.gmra.mrb[0].mxu1 %v20_v30 }
 0x105   :  { %1812 = vmatmul.mubr.f32.vlgmr.msra.gmra.mrb[0].mxu0 %v28_v31  ;;  %1245 = vmatprep.mubr.f32.mxu1 %v37_v32 }
 0x106   :  { %1817 = vmatprep.mubr.f32.mxu0 %v45_v33 }
 0x108   :  { %1246 = vmatmul.mubr.f32.gmra.mrb[2].mxu1 %v36_v34 }
 0x109   :  { %1818 = vmatmul.mubr.f32.gmra.mrb[2].mxu0 %v44_v35  ;;  %1251 = vmatprep.mubr.f32.mxu1 %v53_v36 }
 0x10a   :  { %1823 = vmatprep.mubr.f32.mxu0 %v61_v37 }
 0x10c   :  { %1252 = vmatmul.mubr.f32.gmra.mrb[4].mxu1 %v52_v38 }
 0x10d   :  { %1824 = vmatmul.mubr.f32.gmra.mrb[4].mxu0 %v60_v39  ;;  %1257 = vmatprep.mubr.f32.mxu1 %v69_v40 }
 0x10e   :  { %1829 = vmatprep.mubr.f32.mxu0 %v77_v41 }
 0x110   :  { %1258 = vmatmul.mubr.f32.gmra.mrb[6].mxu1 %v68_v42 }
 0x111   :  { %1830 = vmatmul.mubr.f32.gmra.mrb[6].mxu0 %v76_v43  ;;  %1263 = vmatprep.mubr.f32.mxu1 %v85_v44 }
 0x112   :  { %1835 = vmatprep.mubr.f32.mxu0 %v93_v45 }
 0x114   :  { %1264 = vmatmul.mubr.f32.gmra.mrb[8].mxu1 %v84_v46 }
 0x115   :  { %1836 = vmatmul.mubr.f32.gmra.mrb[8].mxu0 %v92_v47  ;;  %1269 = vmatprep.mubr.f32.mxu1 %v101_v48 }
 0x116   :  { %1841 = vmatprep.mubr.f32.mxu0 %v109_v49 }
 0x118   :  { %1270 = vmatmul.mubr.f32.gmra.mrb[10].mxu1 %v100_v50 }
 0x119   :  { %1842 = vmatmul.mubr.f32.gmra.mrb[10].mxu0 %v108_v51  ;;  %1275 = vmatprep.mubr.f32.mxu1 %v117_v52 }
 0x11a   :  { %1847 = vmatprep.mubr.f32.mxu0 %v125_v53 }
 0x11c   :  { %1276 = vmatmul.mubr.f32.gmra.mrb[12].mxu1 %v116_v54 }
 0x11d   :  { %1848 = vmatmul.mubr.f32.gmra.mrb[12].mxu0 %v124_v55  ;;  %1281 = vmatprep.mubr.f32.mxu1 %v133_v56 }
 0x11e   :  { %1853 = vmatprep.mubr.f32.mxu0 %v141_v57 }
 0x120   :  { %1282 = vmatmul.mubr.f32.gmra.mrb[14].mxu1 %v132_v58 }
 0x121   :  { %1854 = vmatmul.mubr.f32.gmra.mrb[14].mxu0 %v140_v59  ;;  %1287 = vmatprep.mubr.f32.mxu1 %v149_v60 }
 0x122   :  { %1859 = vmatprep.mubr.f32.mxu0 %v157_v61 }
 0x124   :  { %1288 = vmatmul.mubr.f32.gmra.mrb[16].mxu1 %v148_v62 }
 0x125   :  { %1860 = vmatmul.mubr.f32.gmra.mrb[16].mxu0 %v156_v63  ;;  %1293 = vmatprep.mubr.f32.mxu1 %v165_v0 }
 0x126   :  { %1865 = vmatprep.mubr.f32.mxu0 %v173_v1 }
 0x128   :  { %1294 = vmatmul.mubr.f32.gmra.mrb[18].mxu1 %v164_v2 }
 0x129   :  { %1866 = vmatmul.mubr.f32.gmra.mrb[18].mxu0 %v172_v3  ;;  %1299 = vmatprep.mubr.f32.mxu1 %v181_v4 }
 0x12a   :  { %1871 = vmatprep.mubr.f32.mxu0 %v189_v5 }
 0x12c   :  { %1300 = vmatmul.mubr.f32.gmra.mrb[20].mxu1 %v180_v6 }
 0x12d   :  { %1872 = vmatmul.mubr.f32.gmra.mrb[20].mxu0 %v188_v7  ;;  %1305 = vmatprep.mubr.f32.mxu1 %v197_v8 }
 0x12e   :  { %1877 = vmatprep.mubr.f32.mxu0 %v205_v9 }
 0x130   :  { %1306 = vmatmul.mubr.f32.gmra.mrb[22].mxu1 %v196_v10 }
 0x131   :  { %1878 = vmatmul.mubr.f32.gmra.mrb[22].mxu0 %v204_v11  ;;  %1311 = vmatprep.mubr.f32.mxu1 %v213_v12 }
 0x132   :  { %1883 = vmatprep.mubr.f32.mxu0 %v221_v13 }
 0x134   :  { %1312 = vmatmul.mubr.f32.gmra.mrb[24].mxu1 %v212_v14 }
 0x135   :  { %1884 = vmatmul.mubr.f32.gmra.mrb[24].mxu0 %v220_v15 }
 0x1d7   :  { %v1241_v23 = vpop.f32.mrb[0].mxu1 }
 0x1d8   :  { %v2510_v24 = vadd.f32 %v1241_v23, %v4901_v21  ;;  %v1813_v25 = vpop.f32.mrb[0].mxu0  ;;  %v1243_v26 = vpop.f32.mrb[1].mxu1 }
 0x1d9   :  { %v2512_v27 = vadd.f32 %v1243_v26, %v4903_v22  ;;  %v1815_v28 = vpop.f32.mrb[1].mxu0 }
 0x1da   :  { %v2511_v29 = vadd.f32 %v2510_v24, %v1813_v25 }
 0x1db   :  { %v2513_v30 = vadd.f32 %v2512_v27, %v1815_v28  ;;  %v1247_v31 = vpop.f32.mrb[2].mxu1 }
 0x1dc   :  { %vm1890_vm0 = vcmp.ge.f32.partialorder %v2511_v29, 0.0  ;;  %v1916_v32 = vmul.f32 0.2, %v2511_v29  ;;  %v2514_v33 = vadd.f32 %v1247_v31, %v4901_v21  ;;  %v1819_v34 = vpop.f32.mrb[2].mxu0  ;;  %v1249_v35 = vpop.f32.mrb[3].mxu1 }
 0x1dd   :  { %vm1891_vm1 = vcmp.ge.f32.partialorder %v2513_v30, 0.0  ;;  %v1917_v36 = vmul.f32 0.2, %v2513_v30  ;;  %v2516_v37 = vadd.f32 %v1249_v35, %v4903_v22  ;;  %v1821_v38 = vpop.f32.mrb[3].mxu0 }
 0x1de   :  { %v1942_v39 = vsel %vm1890_vm0, %v2511_v29, %v1916_v32  ;;  %v2515_v40 = vadd.f32 %v2514_v33, %v1819_v34 }
 0x1df   :  { %1968 = vst [vmem:[%s5012_s3] sm:$0xff] %v1942_v39  ;;  %v1943_v41 = vsel %vm1891_vm1, %v2513_v30, %v1917_v36  ;;  %v2517_v42 = vadd.f32 %v2516_v37, %v1821_v38  ;;  %v1253_v43 = vpop.f32.mrb[4].mxu1 }
 0x1e0   :  { %1969 = vst [vmem:[%s5012_s3 + $0x8] sm:$0xff] %v1943_v41  ;;  %vm1892_vm2 = vcmp.ge.f32.partialorder %v2515_v40, 0.0  ;;  %v1918_v44 = vmul.f32 0.2, %v2515_v40  ;;  %v2518_v45 = vadd.f32 %v1253_v43, %v4901_v21  ;;  %v1825_v46 = vpop.f32.mrb[4].mxu0  ;;  %v1255_v47 = vpop.f32.mrb[5].mxu1 }
 0x1e1   :  { %vm1893_vm3 = vcmp.ge.f32.partialorder %v2517_v42, 0.0  ;;  %v1919_v48 = vmul.f32 0.2, %v2517_v42  ;;  %v2520_v49 = vadd.f32 %v1255_v47, %v4903_v22  ;;  %v1827_v50 = vpop.f32.mrb[5].mxu0 }
 0x1e2   :  { %v1944_v51 = vsel %vm1892_vm2, %v2515_v40, %v1918_v44  ;;  %v2519_v52 = vadd.f32 %v2518_v45, %v1825_v46 }
 0x1e3   :  { %1970 = vst [vmem:[%s5012_s3 + $0x10] sm:$0xff] %v1944_v51  ;;  %v1945_v53 = vsel %vm1893_vm3, %v2517_v42, %v1919_v48  ;;  %v2521_v54 = vadd.f32 %v2520_v49, %v1827_v50  ;;  %v1259_v55 = vpop.f32.mrb[6].mxu1 }
 0x1e4   :  { %1971 = vst [vmem:[%s5012_s3 + $0x18] sm:$0xff] %v1945_v53  ;;  %vm1894_vm4 = vcmp.ge.f32.partialorder %v2519_v52, 0.0  ;;  %v1920_v56 = vmul.f32 0.2, %v2519_v52  ;;  %v2522_v57 = vadd.f32 %v1259_v55, %v4901_v21  ;;  %v1831_v58 = vpop.f32.mrb[6].mxu0  ;;  %v1261_v59 = vpop.f32.mrb[7].mxu1 }
 0x1e5   :  { %vm1895_vm5 = vcmp.ge.f32.partialorder %v2521_v54, 0.0  ;;  %v1921_v60 = vmul.f32 0.2, %v2521_v54  ;;  %v2524_v61 = vadd.f32 %v1261_v59, %v4903_v22  ;;  %v1833_v62 = vpop.f32.mrb[7].mxu0 }
 0x1e6   :  { %v1946_v63 = vsel %vm1894_vm4, %v2519_v52, %v1920_v56  ;;  %v2523_v0 = vadd.f32 %v2522_v57, %v1831_v58 }
 0x1e7   :  { %1972 = vst [vmem:[%s5012_s3 + $0x20] sm:$0xff] %v1946_v63  ;;  %v1947_v1 = vsel %vm1895_vm5, %v2521_v54, %v1921_v60  ;;  %v2525_v2 = vadd.f32 %v2524_v61, %v1833_v62  ;;  %v1265_v3 = vpop.f32.mrb[8].mxu1 }
 0x1e8   :  { %1973 = vst [vmem:[%s5012_s3 + $0x28] sm:$0xff] %v1947_v1  ;;  %vm1896_vm6 = vcmp.ge.f32.partialorder %v2523_v0, 0.0  ;;  %v1922_v4 = vmul.f32 0.2, %v2523_v0  ;;  %v2526_v5 = vadd.f32 %v1265_v3, %v4901_v21  ;;  %v1837_v6 = vpop.f32.mrb[8].mxu0  ;;  %v1267_v7 = vpop.f32.mrb[9].mxu1 }
 0x1e9   :  { %vm1897_vm7 = vcmp.ge.f32.partialorder %v2525_v2, 0.0  ;;  %v1923_v8 = vmul.f32 0.2, %v2525_v2  ;;  %v2528_v9 = vadd.f32 %v1267_v7, %v4903_v22  ;;  %v1839_v10 = vpop.f32.mrb[9].mxu0 }
 0x1ea   :  { %v1948_v11 = vsel %vm1896_vm6, %v2523_v0, %v1922_v4  ;;  %v2527_v12 = vadd.f32 %v2526_v5, %v1837_v6 }
 0x1eb   :  { %1974 = vst [vmem:[%s5012_s3 + $0x30] sm:$0xff] %v1948_v11  ;;  %v1949_v13 = vsel %vm1897_vm7, %v2525_v2, %v1923_v8  ;;  %v2529_v14 = vadd.f32 %v2528_v9, %v1839_v10  ;;  %v1271_v15 = vpop.f32.mrb[10].mxu1 }
 0x1ec   :  { %1975 = vst [vmem:[%s5012_s3 + $0x38] sm:$0xff] %v1949_v13  ;;  %vm1898_vm8 = vcmp.ge.f32.partialorder %v2527_v12, 0.0  ;;  %v1924_v16 = vmul.f32 0.2, %v2527_v12  ;;  %v2530_v17 = vadd.f32 %v1271_v15, %v4901_v21  ;;  %v1843_v18 = vpop.f32.mrb[10].mxu0  ;;  %v1273_v19 = vpop.f32.mrb[11].mxu1 }
 0x1ed   :  { %vm1899_vm9 = vcmp.ge.f32.partialorder %v2529_v14, 0.0  ;;  %v1925_v20 = vmul.f32 0.2, %v2529_v14  ;;  %v2532_v23 = vadd.f32 %v1273_v19, %v4903_v22  ;;  %v1845_v24 = vpop.f32.mrb[11].mxu0 }
 0x1ee   :  { %v1950_v25 = vsel %vm1898_vm8, %v2527_v12, %v1924_v16  ;;  %v2531_v26 = vadd.f32 %v2530_v17, %v1843_v18 }
 0x1ef   :  { %1976 = vst [vmem:[%s5012_s3 + $0x40] sm:$0xff] %v1950_v25  ;;  %v1951_v27 = vsel %vm1899_vm9, %v2529_v14, %v1925_v20  ;;  %v2533_v28 = vadd.f32 %v2532_v23, %v1845_v24  ;;  %v1277_v29 = vpop.f32.mrb[12].mxu1 }
 0x1f0   :  { %1977 = vst [vmem:[%s5012_s3 + $0x48] sm:$0xff] %v1951_v27  ;;  %vm1900_vm10 = vcmp.ge.f32.partialorder %v2531_v26, 0.0  ;;  %v1926_v30 = vmul.f32 0.2, %v2531_v26  ;;  %v2534_v31 = vadd.f32 %v1277_v29, %v4901_v21  ;;  %v1849_v32 = vpop.f32.mrb[12].mxu0  ;;  %v1279_v33 = vpop.f32.mrb[13].mxu1 }
 0x1f1   :  { %vm1901_vm11 = vcmp.ge.f32.partialorder %v2533_v28, 0.0  ;;  %v1927_v34 = vmul.f32 0.2, %v2533_v28  ;;  %v2536_v35 = vadd.f32 %v1279_v33, %v4903_v22  ;;  %v1851_v36 = vpop.f32.mrb[13].mxu0 }
 0x1f2   :  { %v1952_v37 = vsel %vm1900_vm10, %v2531_v26, %v1926_v30  ;;  %v2535_v38 = vadd.f32 %v2534_v31, %v1849_v32 }
 0x1f3   :  { %1978 = vst [vmem:[%s5012_s3 + $0x50] sm:$0xff] %v1952_v37  ;;  %v1953_v39 = vsel %vm1901_vm11, %v2533_v28, %v1927_v34  ;;  %v2537_v40 = vadd.f32 %v2536_v35, %v1851_v36  ;;  %v1283_v41 = vpop.f32.mrb[14].mxu1 }
 0x1f4   :  { %1979 = vst [vmem:[%s5012_s3 + $0x58] sm:$0xff] %v1953_v39  ;;  %vm1902_vm12 = vcmp.ge.f32.partialorder %v2535_v38, 0.0  ;;  %v1928_v42 = vmul.f32 0.2, %v2535_v38  ;;  %v2538_v43 = vadd.f32 %v1283_v41, %v4901_v21  ;;  %v1855_v44 = vpop.f32.mrb[14].mxu0  ;;  %v1285_v45 = vpop.f32.mrb[15].mxu1 }
 0x1f5   :  { %vm1903_vm13 = vcmp.ge.f32.partialorder %v2537_v40, 0.0  ;;  %v1929_v46 = vmul.f32 0.2, %v2537_v40  ;;  %v2540_v47 = vadd.f32 %v1285_v45, %v4903_v22  ;;  %v1857_v48 = vpop.f32.mrb[15].mxu0 }
 0x1f6   :  { %v1954_v49 = vsel %vm1902_vm12, %v2535_v38, %v1928_v42  ;;  %v2539_v50 = vadd.f32 %v2538_v43, %v1855_v44 }
 0x1f7   :  { %1980 = vst [vmem:[%s5012_s3 + $0x60] sm:$0xff] %v1954_v49  ;;  %v1955_v51 = vsel %vm1903_vm13, %v2537_v40, %v1929_v46  ;;  %v2541_v52 = vadd.f32 %v2540_v47, %v1857_v48  ;;  %v1289_v53 = vpop.f32.mrb[16].mxu1 }
 0x1f8   :  { %1981 = vst [vmem:[%s5012_s3 + $0x68] sm:$0xff] %v1955_v51  ;;  %vm1904_vm14 = vcmp.ge.f32.partialorder %v2539_v50, 0.0  ;;  %v1930_v54 = vmul.f32 0.2, %v2539_v50  ;;  %v2542_v55 = vadd.f32 %v1289_v53, %v4901_v21  ;;  %v1861_v56 = vpop.f32.mrb[16].mxu0  ;;  %v1291_v57 = vpop.f32.mrb[17].mxu1 }
 0x1f9   :  { %vm1905_vm15 = vcmp.ge.f32.partialorder %v2541_v52, 0.0  ;;  %v1931_v58 = vmul.f32 0.2, %v2541_v52  ;;  %v2544_v59 = vadd.f32 %v1291_v57, %v4903_v22  ;;  %v1863_v60 = vpop.f32.mrb[17].mxu0 }
 0x1fa   :  { %v1956_v61 = vsel %vm1904_vm14, %v2539_v50, %v1930_v54  ;;  %v2543_v62 = vadd.f32 %v2542_v55, %v1861_v56 }
 0x1fb   :  { %1982 = vst [vmem:[%s5012_s3 + $0x70] sm:$0xff] %v1956_v61  ;;  %v1957_v63 = vsel %vm1905_vm15, %v2541_v52, %v1931_v58  ;;  %v2545_v0 = vadd.f32 %v2544_v59, %v1863_v60  ;;  %v1295_v1 = vpop.f32.mrb[18].mxu1 }
 0x1fc   :  { %1983 = vst [vmem:[%s5012_s3 + $0x78] sm:$0xff] %v1957_v63  ;;  %vm1906_vm0 = vcmp.ge.f32.partialorder %v2543_v62, 0.0  ;;  %v1932_v2 = vmul.f32 0.2, %v2543_v62  ;;  %v2546_v3 = vadd.f32 %v1295_v1, %v4901_v21  ;;  %v1867_v4 = vpop.f32.mrb[18].mxu0  ;;  %v1297_v5 = vpop.f32.mrb[19].mxu1 }
 0x1fd   :  { %vm1907_vm1 = vcmp.ge.f32.partialorder %v2545_v0, 0.0  ;;  %v1933_v6 = vmul.f32 0.2, %v2545_v0  ;;  %v2548_v7 = vadd.f32 %v1297_v5, %v4903_v22  ;;  %v1869_v8 = vpop.f32.mrb[19].mxu0 }
 0x1fe   :  { %v1958_v9 = vsel %vm1906_vm0, %v2543_v62, %v1932_v2  ;;  %v2547_v10 = vadd.f32 %v2546_v3, %v1867_v4 }
 0x1ff   :  { %1984 = vst [vmem:[%s5012_s3 + $0x80] sm:$0xff] %v1958_v9  ;;  %v1959_v11 = vsel %vm1907_vm1, %v2545_v0, %v1933_v6  ;;  %v2549_v12 = vadd.f32 %v2548_v7, %v1869_v8  ;;  %v1301_v13 = vpop.f32.mrb[20].mxu1 }
 0x200   :  { %1985 = vst [vmem:[%s5012_s3 + $0x88] sm:$0xff] %v1959_v11  ;;  %vm1908_vm2 = vcmp.ge.f32.partialorder %v2547_v10, 0.0  ;;  %v1934_v14 = vmul.f32 0.2, %v2547_v10  ;;  %v2550_v15 = vadd.f32 %v1301_v13, %v4901_v21  ;;  %v1873_v16 = vpop.f32.mrb[20].mxu0  ;;  %v1303_v17 = vpop.f32.mrb[21].mxu1 }
 0x201   :  { %vm1909_vm3 = vcmp.ge.f32.partialorder %v2549_v12, 0.0  ;;  %v1935_v18 = vmul.f32 0.2, %v2549_v12  ;;  %v2552_v19 = vadd.f32 %v1303_v17, %v4903_v22  ;;  %v1875_v20 = vpop.f32.mrb[21].mxu0 }
 0x202   :  { %v1960_v23 = vsel %vm1908_vm2, %v2547_v10, %v1934_v14  ;;  %v2551_v24 = vadd.f32 %v2550_v15, %v1873_v16 }
 0x203   :  { %1986 = vst [vmem:[%s5012_s3 + $0x90] sm:$0xff] %v1960_v23  ;;  %v1961_v25 = vsel %vm1909_vm3, %v2549_v12, %v1935_v18  ;;  %v2553_v26 = vadd.f32 %v2552_v19, %v1875_v20  ;;  %v1307_v27 = vpop.f32.mrb[22].mxu1 }
 0x204   :  { %1987 = vst [vmem:[%s5012_s3 + $0x98] sm:$0xff] %v1961_v25  ;;  %vm1910_vm4 = vcmp.ge.f32.partialorder %v2551_v24, 0.0  ;;  %v1936_v28 = vmul.f32 0.2, %v2551_v24  ;;  %v2554_v29 = vadd.f32 %v1307_v27, %v4901_v21  ;;  %v1879_v30 = vpop.f32.mrb[22].mxu0  ;;  %v1309_v31 = vpop.f32.mrb[23].mxu1 }
 0x205   :  { %vm1911_vm5 = vcmp.ge.f32.partialorder %v2553_v26, 0.0  ;;  %v1937_v32 = vmul.f32 0.2, %v2553_v26  ;;  %v2556_v33 = vadd.f32 %v1309_v31, %v4903_v22  ;;  %v1881_v34 = vpop.f32.mrb[23].mxu0 }
 0x206   :  { %v1962_v35 = vsel %vm1910_vm4, %v2551_v24, %v1936_v28  ;;  %v2555_v36 = vadd.f32 %v2554_v29, %v1879_v30 }
 0x207   :  { %1988 = vst [vmem:[%s5012_s3 + $0xa0] sm:$0xff] %v1962_v35  ;;  %v1963_v37 = vsel %vm1911_vm5, %v2553_v26, %v1937_v32  ;;  %v2557_v38 = vadd.f32 %v2556_v33, %v1881_v34  ;;  %v1313_v39 = vpop.f32.mrb[24].mxu1 }
 0x208   :  { %1989 = vst [vmem:[%s5012_s3 + $0xa8] sm:$0xff] %v1963_v37  ;;  %vm1912_vm6 = vcmp.ge.f32.partialorder %v2555_v36, 0.0  ;;  %v1938_v40 = vmul.f32 0.2, %v2555_v36  ;;  %v2558_v41 = vadd.f32 %v1313_v39, %v4901_v21  ;;  %v1885_v42 = vpop.f32.mrb[24].mxu0  ;;  %v1315_v43 = vpop.f32.mrb[25].mxu1 }
 0x209   :  { %vm1913_vm7 = vcmp.ge.f32.partialorder %v2557_v38, 0.0  ;;  %v1939_v44 = vmul.f32 0.2, %v2557_v38  ;;  %v2560_v45 = vadd.f32 %v1315_v43, %v4903_v22  ;;  %v1887_v46 = vpop.f32.mrb[25].mxu0 }
 0x20a   :  { %v1964_v47 = vsel %vm1912_vm6, %v2555_v36, %v1938_v40  ;;  %v2559_v48 = vadd.f32 %v2558_v41, %v1885_v42 }
 0x20b   :  { %1990 = vst [vmem:[%s5012_s3 + $0xb0] sm:$0xff] %v1964_v47  ;;  %v1965_v49 = vsel %vm1913_vm7, %v2557_v38, %v1939_v44  ;;  %v2561_v50 = vadd.f32 %v2560_v45, %v1887_v46 }
 0x20c   :  { %1991 = vst [vmem:[%s5012_s3 + $0xb8] sm:$0xff] %v1965_v49  ;;  %vm1914_vm8 = vcmp.ge.f32.partialorder %v2559_v48, 0.0  ;;  %v1940_v21 = vmul.f32 0.2, %v2559_v48 }
 0x20d   :  { %vm1915_vm9 = vcmp.ge.f32.partialorder %v2561_v50, 0.0  ;;  %v1941_v51 = vmul.f32 0.2, %v2561_v50 }
 0x20e   :  { %v1966_v52 = vsel %vm1914_vm8, %v2559_v48, %v1940_v21 }
 0x20f   :  { %1992 = vst [vmem:[%s5012_s3 + $0xc0] sm:$0xff] %v1966_v52  ;;  %v1967_v22 = vsel %vm1915_vm9, %v2561_v50, %v1941_v51 }
 0x210   :  { %1993 = vst [vmem:[%s5012_s3 + $0xc8] sm:$0xff] %v1967_v22 }

// kernel: custom_discriminator_forward.9
= control target key start
LH: loop header
LB: loop body
LE: loop exit
PB: predicated region body
PF: predicated region fallthrough
CT: control target
= control target key end

     0   :  { %s6701_s1 = inlined_call_operand.vmem [shape: f32[4096,128], index: 1, kind: input, shape index: {}]   ;;  %s6702_s0 = inlined_call_operand.vmem [shape: f32[72,4096], index: 0, kind: input, shape index: {}]   ;;  %s6703_s2 = inlined_call_operand.vmem [shape: f32[1,128], index: 2, kind: input, shape index: {}]   ;;  %s6704_s3 = inlined_call_operand.vmem [shape: f32[72,128], index: 3, kind: output, shape index: {}]  }
   0x1   :  { %v318_v0 = vld [vmem:[%s6701_s1 + $0x80] sm:$0xff]  ;;  %v319_v1 = vld [vmem:[%s6701_s1 + $0x88] sm:$0xff]  ;;  %v320_v11 = vld [vmem:[%s6701_s1 + $0x90] sm:$0xff] }
   0x2   :  { %v302_v2 = vld [vmem:[%s6701_s1] sm:$0xff]  ;;  %v3539_v3 = vpack.c.bf16 %v319_v1, %v318_v0  ;;  %v303_v4 = vld [vmem:[%s6701_s1 + $0x8] sm:$0xff]  ;;  %v321_v13 = vld [vmem:[%s6701_s1 + $0x98] sm:$0xff] }
   0x3   :  { %v350_v5 = vld [vmem:[%s6701_s1 + $0x180] sm:$0xff]  ;;  %v351_v6 = vld [vmem:[%s6701_s1 + $0x188] sm:$0xff]  ;;  %v3541_v7 = vpack.c.bf16 %v303_v4, %v302_v2  ;;  %v304_v14 = vld [vmem:[%s6701_s1 + $0x10] sm:$0xff]  ;;  %v3543_v16 = vpack.c.bf16 %v321_v13, %v320_v11 }
   0x4   :  { %v3571_v8 = vpack.c.bf16 %v351_v6, %v350_v5  ;;  %v334_v9 = vld [vmem:[%s6701_s1 + $0x100] sm:$0xff]  ;;  %v335_v10 = vld [vmem:[%s6701_s1 + $0x108] sm:$0xff]  ;;  %3540 = vmatprep.subr.bf16.mxu0 %v3539_v3  ;;  %v305_v15 = vld [vmem:[%s6701_s1 + $0x18] sm:$0xff] }
   0x5   :  { %v3573_v12 = vpack.c.bf16 %v335_v10, %v334_v9  ;;  %3542 = vmatpush3.bf16.msra.mxu0 %v3541_v7  ;;  %v3545_v17 = vpack.c.bf16 %v305_v15, %v304_v14  ;;  %v352_v18 = vld [vmem:[%s6701_s1 + $0x190] sm:$0xff]  ;;  %v353_v19 = vld [vmem:[%s6701_s1 + $0x198] sm:$0xff]  ;;  %v322_v23 = vld [vmem:[%s6701_s1 + $0xa0] sm:$0xff] }
   0x6   :  { %3572 = vmatprep.subr.bf16.mxu1 %v3571_v8  ;;  %v336_v20 = vld [vmem:[%s6701_s1 + $0x110] sm:$0xff]  ;;  %v3575_v21 = vpack.c.bf16 %v353_v19, %v352_v18  ;;  %v337_v22 = vld [vmem:[%s6701_s1 + $0x118] sm:$0xff]  ;;  %v323_v24 = vld [vmem:[%s6701_s1 + $0xa8] sm:$0xff]  ;;  %3544 = vmatprep.subr.bf16.mxu0 %v3543_v16 }
   0x7   :  { %3574 = vmatpush3.bf16.msra.mxu1 %v3573_v12  ;;  %v3577_v25 = vpack.c.bf16 %v337_v22, %v336_v20  ;;  %v3547_v26 = vpack.c.bf16 %v323_v24, %v322_v23  ;;  %v306_v27 = vld [vmem:[%s6701_s1 + $0x20] sm:$0xff]  ;;  %v307_v28 = vld [vmem:[%s6701_s1 + $0x28] sm:$0xff]  ;;  %v324_v35 = vld [vmem:[%s6701_s1 + $0xb0] sm:$0xff] }
   0x8   :  { %v354_v29 = vld [vmem:[%s6701_s1 + $0x1a0] sm:$0xff]  ;;  %3576 = vmatprep.subr.bf16.mxu1 %v3575_v21  ;;  %v355_v30 = vld [vmem:[%s6701_s1 + $0x1a8] sm:$0xff]  ;;  %v3549_v33 = vpack.c.bf16 %v307_v28, %v306_v27  ;;  %v325_v36 = vld [vmem:[%s6701_s1 + $0xb8] sm:$0xff] }
   0x9   :  { %v338_v31 = vld [vmem:[%s6701_s1 + $0x120] sm:$0xff]  ;;  %v339_v32 = vld [vmem:[%s6701_s1 + $0x128] sm:$0xff]  ;;  %3546 = vmatpush3.bf16.msra.mxu0 %v3545_v17  ;;  %v3579_v34 = vpack.c.bf16 %v355_v30, %v354_v29  ;;  %v308_v37 = vld [vmem:[%s6701_s1 + $0x30] sm:$0xff]  ;;  %v3551_v39 = vpack.c.bf16 %v325_v36, %v324_v35 }
   0xa   :  { %3548 = vmatprep.subr.bf16.mxu0 %v3547_v26  ;;  %v3581_v38 = vpack.c.bf16 %v339_v32, %v338_v31  ;;  %v309_v40 = vld [vmem:[%s6701_s1 + $0x38] sm:$0xff]  ;;  %v356_v41 = vld [vmem:[%s6701_s1 + $0x1b0] sm:$0xff]  ;;  %v326_v46 = vld [vmem:[%s6701_s1 + $0xc0] sm:$0xff] }
   0xb   :  { %3578 = vmatpush3.bf16.msra.mxu1 %v3577_v25  ;;  %v357_v42 = vld [vmem:[%s6701_s1 + $0x1b8] sm:$0xff]  ;;  %v340_v44 = vld [vmem:[%s6701_s1 + $0x130] sm:$0xff]  ;;  %v327_v47 = vld [vmem:[%s6701_s1 + $0xc8] sm:$0xff]  ;;  %v3553_v48 = vpack.c.bf16 %v309_v40, %v308_v37 }
   0xc   :  { %3580 = vmatprep.subr.bf16.mxu1 %v3579_v34  ;;  %v3583_v43 = vpack.c.bf16 %v357_v42, %v356_v41  ;;  %v341_v45 = vld [vmem:[%s6701_s1 + $0x138] sm:$0xff]  ;;  %v358_v49 = vld [vmem:[%s6701_s1 + $0x1c0] sm:$0xff]  ;;  %v359_v50 = vld [vmem:[%s6701_s1 + $0x1c8] sm:$0xff]  ;;  %v3555_v52 = vpack.c.bf16 %v327_v47, %v326_v46 }
   0xd   :  { %3550 = vmatpush3.bf16.msra.mxu0 %v3549_v33  ;;  %v3585_v51 = vpack.c.bf16 %v341_v45, %v340_v44  ;;  %v310_v53 = vld [vmem:[%s6701_s1 + $0x40] sm:$0xff]  ;;  %v311_v54 = vld [vmem:[%s6701_s1 + $0x48] sm:$0xff]  ;;  %v3587_v56 = vpack.c.bf16 %v359_v50, %v358_v49  ;;  %v328_v58 = vld [vmem:[%s6701_s1 + $0xd0] sm:$0xff] }
   0xe   :  { %3552 = vmatprep.subr.bf16.mxu0 %v3551_v39  ;;  %v342_v55 = vld [vmem:[%s6701_s1 + $0x140] sm:$0xff]  ;;  %v343_v57 = vld [vmem:[%s6701_s1 + $0x148] sm:$0xff]  ;;  %v329_v59 = vld [vmem:[%s6701_s1 + $0xd8] sm:$0xff]  ;;  %v3557_v62 = vpack.c.bf16 %v311_v54, %v310_v53 }
   0xf   :  { %3582 = vmatpush3.bf16.msra.mxu1 %v3581_v38  ;;  %v360_v60 = vld [vmem:[%s6701_s1 + $0x1d0] sm:$0xff]  ;;  %v361_v61 = vld [vmem:[%s6701_s1 + $0x1d8] sm:$0xff]  ;;  %v3589_v63 = vpack.c.bf16 %v343_v57, %v342_v55  ;;  %v3559_v0 = vpack.c.bf16 %v329_v59, %v328_v58  ;;  %v330_v6 = vld [vmem:[%s6701_s1 + $0xe0] sm:$0xff] }
  0x10   :  { %3584 = vmatprep.subr.bf16.mxu1 %v3583_v43  ;;  %v312_v1 = vld [vmem:[%s6701_s1 + $0x50] sm:$0xff]  ;;  %v313_v2 = vld [vmem:[%s6701_s1 + $0x58] sm:$0xff]  ;;  %v3591_v4 = vpack.c.bf16 %v361_v61, %v360_v60  ;;  %v331_v7 = vld [vmem:[%s6701_s1 + $0xe8] sm:$0xff] }
  0x11   :  { %3554 = vmatpush3.bf16.msra.mxu0 %v3553_v48  ;;  %v344_v3 = vld [vmem:[%s6701_s1 + $0x150] sm:$0xff]  ;;  %v345_v5 = vld [vmem:[%s6701_s1 + $0x158] sm:$0xff]  ;;  %v362_v8 = vld [vmem:[%s6701_s1 + $0x1e0] sm:$0xff]  ;;  %v3561_v10 = vpack.c.bf16 %v313_v2, %v312_v1  ;;  %v3563_v14 = vpack.c.bf16 %v331_v7, %v330_v6 }
  0x12   :  { %3556 = vmatprep.subr.bf16.mxu0 %v3555_v52  ;;  %v363_v9 = vld [vmem:[%s6701_s1 + $0x1e8] sm:$0xff]  ;;  %v314_v11 = vld [vmem:[%s6701_s1 + $0x60] sm:$0xff]  ;;  %v3593_v13 = vpack.c.bf16 %v345_v5, %v344_v3  ;;  %v332_v19 = vld [vmem:[%s6701_s1 + $0xf0] sm:$0xff] }
  0x13   :  { %3586 = vmatpush3.bf16.msra.mxu1 %v3585_v51  ;;  %v15_v12 = vld [vmem:[%s6702_s0 + $0x8] sm:$0xff]  ;;  %v346_v16 = vld [vmem:[%s6701_s1 + $0x160] sm:$0xff]  ;;  %v3595_v18 = vpack.c.bf16 %v363_v9, %v362_v8  ;;  %v333_v20 = vld [vmem:[%s6701_s1 + $0xf8] sm:$0xff] }
  0x14   :  { %3588 = vmatprep.subr.bf16.mxu1 %v3587_v56  ;;  %v315_v15 = vld [vmem:[%s6701_s1 + $0x68] sm:$0xff]  ;;  %885 = vmatprep.mubr.f32.mxu0 %v15_v12  ;;  %v17_v21 = vld [vmem:[%s6702_s0 + $0x18] sm:$0xff]  ;;  %v364_v22 = vld [vmem:[%s6701_s1 + $0x1f0] sm:$0xff]  ;;  %v3567_v26 = vpack.c.bf16 %v333_v20, %v332_v19 }
  0x15   :  { %3558 = vmatpush3.bf16.msra.mxu0 %v3557_v62  ;;  %v347_v17 = vld [vmem:[%s6701_s1 + $0x168] sm:$0xff]  ;;  %v365_v23 = vld [vmem:[%s6701_s1 + $0x1f8] sm:$0xff]  ;;  %995 = vmatprep.mubr.f32.mxu1 %v17_v21  ;;  %v3565_v24 = vpack.c.bf16 %v315_v15, %v314_v11  ;;  %v316_v27 = vld [vmem:[%s6701_s1 + $0x70] sm:$0xff] }
  0x16   :  { %3560 = vmatprep.subr.bf16.mxu0 %v3559_v0  ;;  %v3597_v25 = vpack.c.bf16 %v347_v17, %v346_v16  ;;  %v317_v28 = vld [vmem:[%s6701_s1 + $0x78] sm:$0xff]  ;;  %v348_v29 = vld [vmem:[%s6701_s1 + $0x170] sm:$0xff]  ;;  %v3599_v30 = vpack.c.bf16 %v365_v23, %v364_v22  ;;  %v382_v32 = vld [vmem:[%s6701_s1 + $0x280] sm:$0xff] }
  0x17   :  { %3590 = vmatpush3.bf16.msra.mxu1 %v3589_v63  ;;  %v349_v31 = vld [vmem:[%s6701_s1 + $0x178] sm:$0xff]  ;;  %v383_v33 = vld [vmem:[%s6701_s1 + $0x288] sm:$0xff]  ;;  %v414_v34 = vld [vmem:[%s6701_s1 + $0x380] sm:$0xff]  ;;  %v3569_v36 = vpack.c.bf16 %v317_v28, %v316_v27 }
  0x18   :  { %3592 = vmatprep.subr.bf16.mxu1 %v3591_v4  ;;  %v415_v35 = vld [vmem:[%s6701_s1 + $0x388] sm:$0xff]  ;;  %v3601_v37 = vpack.c.bf16 %v349_v31, %v348_v29  ;;  %v3603_v38 = vpack.c.bf16 %v383_v33, %v382_v32  ;;  %v366_v39 = vld [vmem:[%s6701_s1 + $0x200] sm:$0xff]  ;;  %v384_v44 = vld [vmem:[%s6701_s1 + $0x290] sm:$0xff] }
  0x19   :  { %3562 = vmatpush3.bf16.msra.mxu0 %v3561_v10  ;;  %v367_v40 = vld [vmem:[%s6701_s1 + $0x208] sm:$0xff]  ;;  %v3635_v41 = vpack.c.bf16 %v415_v35, %v414_v34  ;;  %v398_v42 = vld [vmem:[%s6701_s1 + $0x300] sm:$0xff]  ;;  %v385_v45 = vld [vmem:[%s6701_s1 + $0x298] sm:$0xff] }
  0x1a   :  { %3564 = vmatprep.subr.bf16.mxu0 %v3563_v14  ;;  %v399_v43 = vld [vmem:[%s6701_s1 + $0x308] sm:$0xff]  ;;  %v14_v46 = vld [vmem:[%s6702_s0] sm:$0xff]  ;;  %v3605_v47 = vpack.c.bf16 %v367_v40, %v366_v39  ;;  %v416_v48 = vld [vmem:[%s6701_s1 + $0x390] sm:$0xff]  ;;  %v3607_v55 = vpack.c.bf16 %v385_v45, %v384_v44 }
  0x1b   :  { %3594 = vmatpush3.bf16.msra.mxu1 %v3593_v13  ;;  %v417_v49 = vld [vmem:[%s6701_s1 + $0x398] sm:$0xff]  ;;  %v16_v50 = vld [vmem:[%s6702_s0 + $0x10] sm:$0xff]  ;;  %v3637_v51 = vpack.c.bf16 %v399_v43, %v398_v42  ;;  %v47_v54 = vld [vmem:[%s6702_s0 + $0x108] sm:$0xff] }
  0x1c   :  { %3596 = vmatprep.subr.bf16.mxu1 %v3595_v18  ;;  %v368_v52 = vld [vmem:[%s6701_s1 + $0x210] sm:$0xff]  ;;  %v369_v53 = vld [vmem:[%s6701_s1 + $0x218] sm:$0xff]  ;;  %v3639_v59 = vpack.c.bf16 %v417_v49, %v416_v48  ;;  %v386_v60 = vld [vmem:[%s6701_s1 + $0x2a0] sm:$0xff] }
  0x1d   :  { %3566 = vmatpush3.bf16.msra.mxu0 %v3565_v24  ;;  %v400_v56 = vld [vmem:[%s6701_s1 + $0x310] sm:$0xff]  ;;  %v401_v57 = vld [vmem:[%s6701_s1 + $0x318] sm:$0xff]  ;;  %v387_v61 = vld [vmem:[%s6701_s1 + $0x2a8] sm:$0xff]  ;;  %v3609_v63 = vpack.c.bf16 %v369_v53, %v368_v52 }
  0x1e   :  { %3568 = vmatprep.subr.bf16.mxu0 %v3567_v26  ;;  %v49_v58 = vld [vmem:[%s6702_s0 + $0x118] sm:$0xff]  ;;  %v46_v62 = vld [vmem:[%s6702_s0 + $0x100] sm:$0xff]  ;;  %v419_v1 = vld [vmem:[%s6701_s1 + $0x3a8] sm:$0xff]  ;;  %v3641_v3 = vpack.c.bf16 %v401_v57, %v400_v56  ;;  %v3611_v7 = vpack.c.bf16 %v387_v61, %v386_v60 }
  0x1f   :  { %3598 = vmatpush3.bf16.msra.mxu1 %v3597_v25  ;;  %v418_v0 = vld [vmem:[%s6701_s1 + $0x3a0] sm:$0xff]  ;;  %v48_v2 = vld [vmem:[%s6702_s0 + $0x110] sm:$0xff]  ;;  %v371_v5 = vld [vmem:[%s6701_s1 + $0x228] sm:$0xff] }
  0x20   :  { %3600 = vmatprep.subr.bf16.mxu1 %v3599_v30  ;;  %v370_v4 = vld [vmem:[%s6701_s1 + $0x220] sm:$0xff]  ;;  %v79_v6 = vld [vmem:[%s6702_s0 + $0x208] sm:$0xff]  ;;  %v81_v10 = vld [vmem:[%s6702_s0 + $0x218] sm:$0xff]  ;;  %v3643_v11 = vpack.c.bf16 %v419_v1, %v418_v0 }
  0x21   :  { %3570 = vmatpush3.bf16.msra.mxu0 %v3569_v36  ;;  %v402_v8 = vld [vmem:[%s6701_s1 + $0x320] sm:$0xff]  ;;  %v403_v9 = vld [vmem:[%s6701_s1 + $0x328] sm:$0xff]  ;;  %v388_v12 = vld [vmem:[%s6701_s1 + $0x2b0] sm:$0xff]  ;;  %v3613_v15 = vpack.c.bf16 %v371_v5, %v370_v4 }
  0x22   :  { %3604 = vmatprep.subr.bf16.mxu0 %v3603_v38  ;;  %v389_v13 = vld [vmem:[%s6701_s1 + $0x2b8] sm:$0xff]  ;;  %v78_v14 = vld [vmem:[%s6702_s0 + $0x200] sm:$0xff]  ;;  %v420_v16 = vld [vmem:[%s6701_s1 + $0x3b0] sm:$0xff]  ;;  %v3645_v20 = vpack.c.bf16 %v403_v9, %v402_v8 }
  0x23   :  { %3602 = vmatpush3.bf16.msra.mxu1 %v3601_v37  ;;  %v421_v17 = vld [vmem:[%s6701_s1 + $0x3b8] sm:$0xff]  ;;  %v80_v18 = vld [vmem:[%s6702_s0 + $0x210] sm:$0xff]  ;;  %v111_v19 = vld [vmem:[%s6702_s0 + $0x308] sm:$0xff]  ;;  %v3615_v22 = vpack.c.bf16 %v389_v13, %v388_v12 }
  0x24   :  { %3636 = vmatprep.subr.bf16.mxu1 %v3635_v41  ;;  %886 = vmatmul.mubr.f32.vlgmr.msra.gmra.mrb[0].mxu0 %v14_v46  ;;  %v113_v21 = vld [vmem:[%s6702_s0 + $0x318] sm:$0xff]  ;;  %v372_v23 = vld [vmem:[%s6701_s1 + $0x230] sm:$0xff]  ;;  %v3647_v26 = vpack.c.bf16 %v421_v17, %v420_v16  ;;  %v390_v28 = vld [vmem:[%s6701_s1 + $0x2c0] sm:$0xff] }
  0x25   :  { %3606 = vmatpush3.bf16.msra.mxu0 %v3605_v47  ;;  %890 = vmatprep.mubr.f32.mxu0 %v47_v54  ;;  %v373_v24 = vld [vmem:[%s6701_s1 + $0x238] sm:$0xff]  ;;  %v404_v25 = vld [vmem:[%s6701_s1 + $0x330] sm:$0xff]  ;;  %v391_v29 = vld [vmem:[%s6701_s1 + $0x2c8] sm:$0xff] }
  0x26   :  { %996 = vmatmul.mubr.f32.vlgmr.msra.gmra.mrb[0].mxu1 %v16_v50  ;;  %3608 = vmatprep.subr.bf16.mxu0 %v3607_v55  ;;  %v405_v27 = vld [vmem:[%s6701_s1 + $0x338] sm:$0xff]  ;;  %v110_v30 = vld [vmem:[%s6702_s0 + $0x300] sm:$0xff]  ;;  %v423_v32 = vld [vmem:[%s6701_s1 + $0x3c8] sm:$0xff]  ;;  %v3617_v35 = vpack.c.bf16 %v373_v24, %v372_v23  ;;  %v3619_v38 = vpack.c.bf16 %v391_v29, %v390_v28 }
  0x27   :  { %3638 = vmatpush3.bf16.msra.mxu1 %v3637_v51  ;;  %1000 = vmatprep.mubr.f32.mxu1 %v49_v58  ;;  %v422_v31 = vld [vmem:[%s6701_s1 + $0x3c0] sm:$0xff]  ;;  %v112_v33 = vld [vmem:[%s6702_s0 + $0x310] sm:$0xff]  ;;  %v143_v34 = vld [vmem:[%s6702_s0 + $0x408] sm:$0xff]  ;;  %v3649_v37 = vpack.c.bf16 %v405_v27, %v404_v25 }
  0x28   :  { %891 = vmatmul.mubr.f32.gmra.mrb[2].mxu0 %v46_v62  ;;  %3640 = vmatprep.subr.bf16.mxu1 %v3639_v59  ;;  %v145_v36 = vld [vmem:[%s6702_s0 + $0x418] sm:$0xff]  ;;  %v374_v39 = vld [vmem:[%s6701_s1 + $0x240] sm:$0xff]  ;;  %v375_v40 = vld [vmem:[%s6701_s1 + $0x248] sm:$0xff]  ;;  %v3651_v42 = vpack.c.bf16 %v423_v32, %v422_v31 }
  0x29   :  { %3610 = vmatpush3.bf16.msra.mxu0 %v3609_v63  ;;  %895 = vmatprep.mubr.f32.mxu0 %v79_v6  ;;  %v406_v41 = vld [vmem:[%s6701_s1 + $0x340] sm:$0xff]  ;;  %v407_v43 = vld [vmem:[%s6701_s1 + $0x348] sm:$0xff]  ;;  %v392_v44 = vld [vmem:[%s6701_s1 + $0x2d0] sm:$0xff]  ;;  %v3621_v51 = vpack.c.bf16 %v375_v40, %v374_v39 }
  0x2a   :  { %1001 = vmatmul.mubr.f32.gmra.mrb[2].mxu1 %v48_v2  ;;  %3612 = vmatprep.subr.bf16.mxu0 %v3611_v7  ;;  %v393_v45 = vld [vmem:[%s6701_s1 + $0x2d8] sm:$0xff]  ;;  %v142_v46 = vld [vmem:[%s6702_s0 + $0x400] sm:$0xff]  ;;  %v424_v47 = vld [vmem:[%s6701_s1 + $0x3d0] sm:$0xff]  ;;  %v3653_v53 = vpack.c.bf16 %v407_v43, %v406_v41 }
  0x2b   :  { %3642 = vmatpush3.bf16.msra.mxu1 %v3641_v3  ;;  %1005 = vmatprep.mubr.f32.mxu1 %v81_v10  ;;  %v425_v48 = vld [vmem:[%s6701_s1 + $0x3d8] sm:$0xff]  ;;  %v144_v49 = vld [vmem:[%s6702_s0 + $0x410] sm:$0xff]  ;;  %v175_v50 = vld [vmem:[%s6702_s0 + $0x508] sm:$0xff]  ;;  %v3623_v54 = vpack.c.bf16 %v393_v45, %v392_v44 }
  0x2c   :  { %896 = vmatmul.mubr.f32.gmra.mrb[4].mxu0 %v78_v14  ;;  %3644 = vmatprep.subr.bf16.mxu1 %v3643_v11  ;;  %v177_v52 = vld [vmem:[%s6702_s0 + $0x518] sm:$0xff]  ;;  %v376_v55 = vld [vmem:[%s6701_s1 + $0x250] sm:$0xff]  ;;  %v3655_v58 = vpack.c.bf16 %v425_v48, %v424_v47  ;;  %v394_v60 = vld [vmem:[%s6701_s1 + $0x2e0] sm:$0xff] }
  0x2d   :  { %3614 = vmatpush3.bf16.msra.mxu0 %v3613_v15  ;;  %900 = vmatprep.mubr.f32.mxu0 %v111_v19  ;;  %v377_v56 = vld [vmem:[%s6701_s1 + $0x258] sm:$0xff]  ;;  %v408_v57 = vld [vmem:[%s6701_s1 + $0x350] sm:$0xff]  ;;  %v395_v61 = vld [vmem:[%s6701_s1 + $0x2e8] sm:$0xff] }
  0x2e   :  { %1006 = vmatmul.mubr.f32.gmra.mrb[4].mxu1 %v80_v18  ;;  %3616 = vmatprep.subr.bf16.mxu0 %v3615_v22  ;;  %v409_v59 = vld [vmem:[%s6701_s1 + $0x358] sm:$0xff]  ;;  %v174_v62 = vld [vmem:[%s6702_s0 + $0x500] sm:$0xff]  ;;  %v427_v0 = vld [vmem:[%s6701_s1 + $0x3e8] sm:$0xff]  ;;  %v3625_v3 = vpack.c.bf16 %v377_v56, %v376_v55  ;;  %v3627_v6 = vpack.c.bf16 %v395_v61, %v394_v60 }
  0x2f   :  { %3646 = vmatpush3.bf16.msra.mxu1 %v3645_v20  ;;  %1010 = vmatprep.mubr.f32.mxu1 %v113_v21  ;;  %v426_v63 = vld [vmem:[%s6701_s1 + $0x3e0] sm:$0xff]  ;;  %v176_v1 = vld [vmem:[%s6702_s0 + $0x510] sm:$0xff]  ;;  %v207_v2 = vld [vmem:[%s6702_s0 + $0x608] sm:$0xff]  ;;  %v3657_v5 = vpack.c.bf16 %v409_v59, %v408_v57 }
  0x30   :  { %901 = vmatmul.mubr.f32.gmra.mrb[6].mxu0 %v110_v30  ;;  %3648 = vmatprep.subr.bf16.mxu1 %v3647_v26  ;;  %v209_v4 = vld [vmem:[%s6702_s0 + $0x618] sm:$0xff]  ;;  %v378_v7 = vld [vmem:[%s6701_s1 + $0x260] sm:$0xff]  ;;  %v379_v8 = vld [vmem:[%s6701_s1 + $0x268] sm:$0xff]  ;;  %v3659_v10 = vpack.c.bf16 %v427_v0, %v426_v63 }
  0x31   :  { %905 = vmatprep.mubr.f32.mxu0 %v143_v34  ;;  %3618 = vmatpush3.bf16.msra.mxu0 %v3617_v35  ;;  %v410_v9 = vld [vmem:[%s6701_s1 + $0x360] sm:$0xff]  ;;  %v411_v11 = vld [vmem:[%s6701_s1 + $0x368] sm:$0xff]  ;;  %v396_v12 = vld [vmem:[%s6701_s1 + $0x2f0] sm:$0xff]  ;;  %v3629_v19 = vpack.c.bf16 %v379_v8, %v378_v7 }
  0x32   :  { %1011 = vmatmul.mubr.f32.gmra.mrb[6].mxu1 %v112_v33  ;;  %3620 = vmatprep.subr.bf16.mxu0 %v3619_v38  ;;  %v397_v13 = vld [vmem:[%s6701_s1 + $0x2f8] sm:$0xff]  ;;  %v206_v14 = vld [vmem:[%s6702_s0 + $0x600] sm:$0xff]  ;;  %v428_v15 = vld [vmem:[%s6701_s1 + $0x3f0] sm:$0xff]  ;;  %v3661_v21 = vpack.c.bf16 %v411_v11, %v410_v9 }
  0x33   :  { %1015 = vmatprep.mubr.f32.mxu1 %v145_v36  ;;  %3650 = vmatpush3.bf16.msra.mxu1 %v3649_v37  ;;  %v429_v16 = vld [vmem:[%s6701_s1 + $0x3f8] sm:$0xff]  ;;  %v208_v17 = vld [vmem:[%s6702_s0 + $0x610] sm:$0xff]  ;;  %v239_v18 = vld [vmem:[%s6702_s0 + $0x708] sm:$0xff]  ;;  %v3631_v22 = vpack.c.bf16 %v397_v13, %v396_v12 }
  0x34   :  { %906 = vmatmul.mubr.f32.gmra.mrb[8].mxu0 %v142_v46  ;;  %3652 = vmatprep.subr.bf16.mxu1 %v3651_v42  ;;  %v241_v20 = vld [vmem:[%s6702_s0 + $0x718] sm:$0xff]  ;;  %v380_v23 = vld [vmem:[%s6701_s1 + $0x270] sm:$0xff]  ;;  %v3663_v26 = vpack.c.bf16 %v429_v16, %v428_v15  ;;  %v446_v28 = vld [vmem:[%s6701_s1 + $0x480] sm:$0xff] }
  0x35   :  { %910 = vmatprep.mubr.f32.mxu0 %v175_v50  ;;  %3622 = vmatpush3.bf16.msra.mxu0 %v3621_v51  ;;  %v381_v24 = vld [vmem:[%s6701_s1 + $0x278] sm:$0xff]  ;;  %v412_v25 = vld [vmem:[%s6701_s1 + $0x370] sm:$0xff]  ;;  %v447_v29 = vld [vmem:[%s6701_s1 + $0x488] sm:$0xff] }
  0x36   :  { %1016 = vmatmul.mubr.f32.gmra.mrb[8].mxu1 %v144_v49  ;;  %3624 = vmatprep.subr.bf16.mxu0 %v3623_v54  ;;  %v413_v27 = vld [vmem:[%s6701_s1 + $0x378] sm:$0xff]  ;;  %v238_v30 = vld [vmem:[%s6702_s0 + $0x700] sm:$0xff]  ;;  %v479_v32 = vld [vmem:[%s6701_s1 + $0x588] sm:$0xff]  ;;  %v3633_v35 = vpack.c.bf16 %v381_v24, %v380_v23  ;;  %v3667_v38 = vpack.c.bf16 %v447_v29, %v446_v28 }
  0x37   :  { %1020 = vmatprep.mubr.f32.mxu1 %v177_v52  ;;  %3654 = vmatpush3.bf16.msra.mxu1 %v3653_v53  ;;  %v478_v31 = vld [vmem:[%s6701_s1 + $0x580] sm:$0xff]  ;;  %v240_v33 = vld [vmem:[%s6702_s0 + $0x710] sm:$0xff]  ;;  %v271_v34 = vld [vmem:[%s6702_s0 + $0x808] sm:$0xff]  ;;  %v3665_v37 = vpack.c.bf16 %v413_v27, %v412_v25 }
  0x38   :  { %911 = vmatmul.mubr.f32.gmra.mrb[10].mxu0 %v174_v62  ;;  %3656 = vmatprep.subr.bf16.mxu1 %v3655_v58  ;;  %v273_v36 = vld [vmem:[%s6702_s0 + $0x818] sm:$0xff]  ;;  %v3699_v39 = vpack.c.bf16 %v479_v32, %v478_v31  ;;  %v270_v40 = vld [vmem:[%s6702_s0 + $0x800] sm:$0xff]  ;;  %v272_v41 = vld [vmem:[%s6702_s0 + $0x810] sm:$0xff] }
  0x39   :  { %915 = vmatprep.mubr.f32.mxu0 %v207_v2  ;;  %3626 = vmatpush3.bf16.msra.mxu0 %v3625_v3  ;;  %v19_v42 = vld [vmem:[%s6702_s0 + $0x28] sm:$0xff]  ;;  %v430_v43 = vld [vmem:[%s6701_s1 + $0x400] sm:$0xff]  ;;  %v21_v45 = vld [vmem:[%s6702_s0 + $0x38] sm:$0xff] }
  0x3a   :  { %1021 = vmatmul.mubr.f32.gmra.mrb[10].mxu1 %v176_v1  ;;  %3628 = vmatprep.subr.bf16.mxu0 %v3627_v6  ;;  %v431_v44 = vld [vmem:[%s6701_s1 + $0x408] sm:$0xff]  ;;  %v462_v46 = vld [vmem:[%s6701_s1 + $0x500] sm:$0xff]  ;;  %v448_v48 = vld [vmem:[%s6701_s1 + $0x490] sm:$0xff] }
  0x3b   :  { %1025 = vmatprep.mubr.f32.mxu1 %v209_v4  ;;  %3658 = vmatpush3.bf16.msra.mxu1 %v3657_v5  ;;  %v463_v47 = vld [vmem:[%s6701_s1 + $0x508] sm:$0xff]  ;;  %v449_v49 = vld [vmem:[%s6701_s1 + $0x498] sm:$0xff]  ;;  %v18_v50 = vld [vmem:[%s6702_s0 + $0x20] sm:$0xff]  ;;  %v3669_v51 = vpack.c.bf16 %v431_v44, %v430_v43 }
  0x3c   :  { %916 = vmatmul.mubr.f32.gmra.mrb[12].mxu0 %v206_v14  ;;  %3660 = vmatprep.subr.bf16.mxu1 %v3659_v10  ;;  %v480_v52 = vld [vmem:[%s6701_s1 + $0x590] sm:$0xff]  ;;  %v481_v53 = vld [vmem:[%s6701_s1 + $0x598] sm:$0xff]  ;;  %v3701_v55 = vpack.c.bf16 %v463_v47, %v462_v46  ;;  %v51_v58 = vld [vmem:[%s6702_s0 + $0x128] sm:$0xff]  ;;  %v3671_v59 = vpack.c.bf16 %v449_v49, %v448_v48 }
  0x3d   :  { %920 = vmatprep.mubr.f32.mxu0 %v239_v18  ;;  %3630 = vmatpush3.bf16.msra.mxu0 %v3629_v19  ;;  %v20_v54 = vld [vmem:[%s6702_s0 + $0x30] sm:$0xff]  ;;  %v433_v57 = vld [vmem:[%s6701_s1 + $0x418] sm:$0xff]  ;;  %v3703_v63 = vpack.c.bf16 %v481_v53, %v480_v52  ;;  %v450_v0 = vld [vmem:[%s6701_s1 + $0x4a0] sm:$0xff] }
  0x3e   :  { %1026 = vmatmul.mubr.f32.gmra.mrb[12].mxu1 %v208_v17  ;;  %3632 = vmatprep.subr.bf16.mxu0 %v3631_v22  ;;  %v432_v56 = vld [vmem:[%s6701_s1 + $0x410] sm:$0xff]  ;;  %v465_v61 = vld [vmem:[%s6701_s1 + $0x518] sm:$0xff]  ;;  %v451_v1 = vld [vmem:[%s6701_s1 + $0x4a8] sm:$0xff] }
  0x3f   :  { %1030 = vmatprep.mubr.f32.mxu1 %v241_v20  ;;  %3662 = vmatpush3.bf16.msra.mxu1 %v3661_v21  ;;  %v464_v60 = vld [vmem:[%s6701_s1 + $0x510] sm:$0xff]  ;;  %v53_v62 = vld [vmem:[%s6702_s0 + $0x138] sm:$0xff]  ;;  %v50_v2 = vld [vmem:[%s6702_s0 + $0x120] sm:$0xff]  ;;  %v3673_v3 = vpack.c.bf16 %v433_v57, %v432_v56  ;;  %v3675_v11 = vpack.c.bf16 %v451_v1, %v450_v0 }
  0x40   :  { %921 = vmatmul.mubr.f32.gmra.mrb[14].mxu0 %v238_v30  ;;  %3664 = vmatprep.subr.bf16.mxu1 %v3663_v26  ;;  %v482_v4 = vld [vmem:[%s6701_s1 + $0x5a0] sm:$0xff]  ;;  %v483_v5 = vld [vmem:[%s6701_s1 + $0x5a8] sm:$0xff]  ;;  %v52_v6 = vld [vmem:[%s6702_s0 + $0x130] sm:$0xff]  ;;  %v3705_v7 = vpack.c.bf16 %v465_v61, %v464_v60 }
  0x41   :  { %925 = vmatprep.mubr.f32.mxu0 %v271_v34  ;;  %3634 = vmatpush3.bf16.msra.mxu0 %v3633_v35  ;;  %v434_v8 = vld [vmem:[%s6701_s1 + $0x420] sm:$0xff]  ;;  %v435_v9 = vld [vmem:[%s6701_s1 + $0x428] sm:$0xff]  ;;  %v85_v14 = vld [vmem:[%s6702_s0 + $0x238] sm:$0xff]  ;;  %v3707_v15 = vpack.c.bf16 %v483_v5, %v482_v4 }
  0x42   :  { %1031 = vmatmul.mubr.f32.gmra.mrb[14].mxu1 %v240_v33  ;;  %3668 = vmatprep.subr.bf16.mxu0 %v3667_v38  ;;  %v83_v10 = vld [vmem:[%s6702_s0 + $0x228] sm:$0xff]  ;;  %v466_v12 = vld [vmem:[%s6701_s1 + $0x520] sm:$0xff]  ;;  %v452_v16 = vld [vmem:[%s6701_s1 + $0x4b0] sm:$0xff]  ;;  %v3677_v19 = vpack.c.bf16 %v435_v9, %v434_v8 }
  0x43   :  { %1035 = vmatprep.mubr.f32.mxu1 %v273_v36  ;;  %3666 = vmatpush3.bf16.msra.mxu1 %v3665_v37  ;;  %v467_v13 = vld [vmem:[%s6701_s1 + $0x528] sm:$0xff]  ;;  %v453_v17 = vld [vmem:[%s6701_s1 + $0x4b8] sm:$0xff]  ;;  %v82_v18 = vld [vmem:[%s6702_s0 + $0x220] sm:$0xff] }
  0x44   :  { %926 = vmatmul.mubr.f32.gmra.mrb[16].mxu0 %v270_v40  ;;  %3700 = vmatprep.subr.bf16.mxu1 %v3699_v39  ;;  %v484_v20 = vld [vmem:[%s6701_s1 + $0x5b0] sm:$0xff]  ;;  %v485_v21 = vld [vmem:[%s6701_s1 + $0x5b8] sm:$0xff]  ;;  %v115_v23 = vld [vmem:[%s6702_s0 + $0x328] sm:$0xff]  ;;  %v3709_v24 = vpack.c.bf16 %v467_v13, %v466_v12  ;;  %v3679_v26 = vpack.c.bf16 %v453_v17, %v452_v16 }
  0x45   :  { %1105 = vmatprep.mubr.f32.mxu0 %v19_v42  ;;  %v84_v22 = vld [vmem:[%s6702_s0 + $0x230] sm:$0xff]  ;;  %v117_v25 = vld [vmem:[%s6702_s0 + $0x338] sm:$0xff]  ;;  %v3711_v30 = vpack.c.bf16 %v485_v21, %v484_v20  ;;  %v454_v32 = vld [vmem:[%s6701_s1 + $0x4c0] sm:$0xff] }
  0x46   :  { %1036 = vmatmul.mubr.f32.gmra.mrb[16].mxu1 %v272_v41  ;;  %v436_v27 = vld [vmem:[%s6701_s1 + $0x430] sm:$0xff]  ;;  %v437_v28 = vld [vmem:[%s6701_s1 + $0x438] sm:$0xff]  ;;  %v455_v33 = vld [vmem:[%s6701_s1 + $0x4c8] sm:$0xff] }
  0x47   :  { %1215 = vmatprep.mubr.f32.mxu1 %v21_v45  ;;  %v468_v29 = vld [vmem:[%s6701_s1 + $0x530] sm:$0xff]  ;;  %v469_v31 = vld [vmem:[%s6701_s1 + $0x538] sm:$0xff]  ;;  %v114_v34 = vld [vmem:[%s6702_s0 + $0x320] sm:$0xff]  ;;  %v3681_v39 = vpack.c.bf16 %v437_v28, %v436_v27  ;;  %v3683_v42 = vpack.c.bf16 %v455_v33, %v454_v32 }
  0x48   :  { %1106 = vmatmul.mubr.f32.vlgmr.msra.gmra.mrb[18].mxu0 %v18_v50  ;;  %v486_v35 = vld [vmem:[%s6701_s1 + $0x5c0] sm:$0xff]  ;;  %v487_v36 = vld [vmem:[%s6701_s1 + $0x5c8] sm:$0xff]  ;;  %v116_v37 = vld [vmem:[%s6702_s0 + $0x330] sm:$0xff]  ;;  %v3713_v41 = vpack.c.bf16 %v469_v31, %v468_v29 }
  0x49   :  { %3670 = vmatpush3.bf16.msra.mxu0 %v3669_v51  ;;  %1110 = vmatprep.mubr.f32.mxu0 %v51_v58  ;;  %v147_v38 = vld [vmem:[%s6702_s0 + $0x428] sm:$0xff]  ;;  %v149_v40 = vld [vmem:[%s6702_s0 + $0x438] sm:$0xff]  ;;  %v438_v43 = vld [vmem:[%s6701_s1 + $0x440] sm:$0xff]  ;;  %v3715_v46 = vpack.c.bf16 %v487_v36, %v486_v35 }
  0x4a   :  { %1216 = vmatmul.mubr.f32.vlgmr.msra.gmra.mrb[18].mxu1 %v20_v54  ;;  %3672 = vmatprep.subr.bf16.mxu0 %v3671_v59  ;;  %v439_v44 = vld [vmem:[%s6701_s1 + $0x448] sm:$0xff]  ;;  %v470_v45 = vld [vmem:[%s6701_s1 + $0x540] sm:$0xff]  ;;  %v456_v48 = vld [vmem:[%s6701_s1 + $0x4d0] sm:$0xff] }
  0x4b   :  { %3702 = vmatpush3.bf16.msra.mxu1 %v3701_v55  ;;  %1220 = vmatprep.mubr.f32.mxu1 %v53_v62  ;;  %v471_v47 = vld [vmem:[%s6701_s1 + $0x548] sm:$0xff]  ;;  %v457_v49 = vld [vmem:[%s6701_s1 + $0x4d8] sm:$0xff]  ;;  %v146_v50 = vld [vmem:[%s6702_s0 + $0x420] sm:$0xff]  ;;  %v3685_v55 = vpack.c.bf16 %v439_v44, %v438_v43 }
  0x4c   :  { %1111 = vmatmul.mubr.f32.gmra.mrb[20].mxu0 %v50_v2  ;;  %3704 = vmatprep.subr.bf16.mxu1 %v3703_v63  ;;  %v488_v51 = vld [vmem:[%s6701_s1 + $0x5d0] sm:$0xff]  ;;  %v489_v52 = vld [vmem:[%s6701_s1 + $0x5d8] sm:$0xff]  ;;  %v179_v54 = vld [vmem:[%s6702_s0 + $0x528] sm:$0xff]  ;;  %v3717_v57 = vpack.c.bf16 %v471_v47, %v470_v45  ;;  %v3687_v58 = vpack.c.bf16 %v457_v49, %v456_v48 }
  0x4d   :  { %3674 = vmatpush3.bf16.msra.mxu0 %v3673_v3  ;;  %1115 = vmatprep.mubr.f32.mxu0 %v83_v10  ;;  %v148_v53 = vld [vmem:[%s6702_s0 + $0x430] sm:$0xff]  ;;  %v181_v56 = vld [vmem:[%s6702_s0 + $0x538] sm:$0xff]  ;;  %v3719_v62 = vpack.c.bf16 %v489_v52, %v488_v51  ;;  %v458_v0 = vld [vmem:[%s6701_s1 + $0x4e0] sm:$0xff] }
  0x4e   :  { %1221 = vmatmul.mubr.f32.gmra.mrb[20].mxu1 %v52_v6  ;;  %3676 = vmatprep.subr.bf16.mxu0 %v3675_v11  ;;  %v440_v59 = vld [vmem:[%s6701_s1 + $0x450] sm:$0xff]  ;;  %v441_v60 = vld [vmem:[%s6701_s1 + $0x458] sm:$0xff]  ;;  %v459_v1 = vld [vmem:[%s6701_s1 + $0x4e8] sm:$0xff] }
  0x4f   :  { %3706 = vmatpush3.bf16.msra.mxu1 %v3705_v7  ;;  %1225 = vmatprep.mubr.f32.mxu1 %v85_v14  ;;  %v472_v61 = vld [vmem:[%s6701_s1 + $0x550] sm:$0xff]  ;;  %v473_v63 = vld [vmem:[%s6701_s1 + $0x558] sm:$0xff]  ;;  %v178_v2 = vld [vmem:[%s6702_s0 + $0x520] sm:$0xff]  ;;  %v3689_v7 = vpack.c.bf16 %v441_v60, %v440_v59  ;;  %v3691_v10 = vpack.c.bf16 %v459_v1, %v458_v0 }
  0x50   :  { %1116 = vmatmul.mubr.f32.gmra.mrb[22].mxu0 %v82_v18  ;;  %3708 = vmatprep.subr.bf16.mxu1 %v3707_v15  ;;  %v490_v3 = vld [vmem:[%s6701_s1 + $0x5e0] sm:$0xff]  ;;  %v491_v4 = vld [vmem:[%s6701_s1 + $0x5e8] sm:$0xff]  ;;  %v180_v5 = vld [vmem:[%s6702_s0 + $0x530] sm:$0xff]  ;;  %v3721_v9 = vpack.c.bf16 %v473_v63, %v472_v61 }
  0x51   :  { %3678 = vmatpush3.bf16.msra.mxu0 %v3677_v19  ;;  %1120 = vmatprep.mubr.f32.mxu0 %v115_v23  ;;  %v211_v6 = vld [vmem:[%s6702_s0 + $0x628] sm:$0xff]  ;;  %v213_v8 = vld [vmem:[%s6702_s0 + $0x638] sm:$0xff]  ;;  %v442_v11 = vld [vmem:[%s6701_s1 + $0x460] sm:$0xff]  ;;  %v3723_v14 = vpack.c.bf16 %v491_v4, %v490_v3 }
  0x52   :  { %1226 = vmatmul.mubr.f32.gmra.mrb[22].mxu1 %v84_v22  ;;  %3680 = vmatprep.subr.bf16.mxu0 %v3679_v26  ;;  %v443_v12 = vld [vmem:[%s6701_s1 + $0x468] sm:$0xff]  ;;  %v474_v13 = vld [vmem:[%s6701_s1 + $0x560] sm:$0xff]  ;;  %v460_v16 = vld [vmem:[%s6701_s1 + $0x4f0] sm:$0xff] }
  0x53   :  { %3710 = vmatpush3.bf16.msra.mxu1 %v3709_v24  ;;  %1230 = vmatprep.mubr.f32.mxu1 %v117_v25  ;;  %v475_v15 = vld [vmem:[%s6701_s1 + $0x568] sm:$0xff]  ;;  %v461_v17 = vld [vmem:[%s6701_s1 + $0x4f8] sm:$0xff]  ;;  %v210_v18 = vld [vmem:[%s6702_s0 + $0x620] sm:$0xff]  ;;  %v3693_v23 = vpack.c.bf16 %v443_v12, %v442_v11 }
  0x54   :  { %1121 = vmatmul.mubr.f32.gmra.mrb[24].mxu0 %v114_v34  ;;  %3712 = vmatprep.subr.bf16.mxu1 %v3711_v30  ;;  %v492_v19 = vld [vmem:[%s6701_s1 + $0x5f0] sm:$0xff]  ;;  %v493_v20 = vld [vmem:[%s6701_s1 + $0x5f8] sm:$0xff]  ;;  %v243_v22 = vld [vmem:[%s6702_s0 + $0x728] sm:$0xff]  ;;  %v3725_v25 = vpack.c.bf16 %v475_v15, %v474_v13  ;;  %v3695_v26 = vpack.c.bf16 %v461_v17, %v460_v16 }
  0x55   :  { %1125 = vmatprep.mubr.f32.mxu0 %v147_v38  ;;  %3682 = vmatpush3.bf16.msra.mxu0 %v3681_v39  ;;  %v212_v21 = vld [vmem:[%s6702_s0 + $0x630] sm:$0xff]  ;;  %v245_v24 = vld [vmem:[%s6702_s0 + $0x738] sm:$0xff]  ;;  %v3727_v30 = vpack.c.bf16 %v493_v20, %v492_v19  ;;  %v510_v32 = vld [vmem:[%s6701_s1 + $0x680] sm:$0xff] }
  0x56   :  { %1231 = vmatmul.mubr.f32.gmra.mrb[24].mxu1 %v116_v37  ;;  %3684 = vmatprep.subr.bf16.mxu0 %v3683_v42  ;;  %v444_v27 = vld [vmem:[%s6701_s1 + $0x470] sm:$0xff]  ;;  %v445_v28 = vld [vmem:[%s6701_s1 + $0x478] sm:$0xff]  ;;  %v511_v33 = vld [vmem:[%s6701_s1 + $0x688] sm:$0xff] }
  0x57   :  { %1235 = vmatprep.mubr.f32.mxu1 %v149_v40  ;;  %3714 = vmatpush3.bf16.msra.mxu1 %v3713_v41  ;;  %v476_v29 = vld [vmem:[%s6701_s1 + $0x570] sm:$0xff]  ;;  %v477_v31 = vld [vmem:[%s6701_s1 + $0x578] sm:$0xff]  ;;  %v242_v34 = vld [vmem:[%s6702_s0 + $0x720] sm:$0xff]  ;;  %v3697_v39 = vpack.c.bf16 %v445_v28, %v444_v27  ;;  %v3731_v42 = vpack.c.bf16 %v511_v33, %v510_v32 }
  0x58   :  { %1126 = vmatmul.mubr.f32.gmra.mrb[26].mxu0 %v146_v50  ;;  %3716 = vmatprep.subr.bf16.mxu1 %v3715_v46  ;;  %v542_v35 = vld [vmem:[%s6701_s1 + $0x780] sm:$0xff]  ;;  %v543_v36 = vld [vmem:[%s6701_s1 + $0x788] sm:$0xff]  ;;  %v244_v37 = vld [vmem:[%s6702_s0 + $0x730] sm:$0xff]  ;;  %v3729_v41 = vpack.c.bf16 %v477_v31, %v476_v29 }
  0x59   :  { %1130 = vmatprep.mubr.f32.mxu0 %v179_v54  ;;  %3686 = vmatpush3.bf16.msra.mxu0 %v3685_v55  ;;  %v275_v38 = vld [vmem:[%s6702_s0 + $0x828] sm:$0xff]  ;;  %v277_v40 = vld [vmem:[%s6702_s0 + $0x838] sm:$0xff]  ;;  %v3763_v43 = vpack.c.bf16 %v543_v36, %v542_v35  ;;  %v274_v44 = vld [vmem:[%s6702_s0 + $0x820] sm:$0xff] }
  0x5a   :  { %1236 = vmatmul.mubr.f32.gmra.mrb[26].mxu1 %v148_v53  ;;  %3688 = vmatprep.subr.bf16.mxu0 %v3687_v58  ;;  %v276_v45 = vld [vmem:[%s6702_s0 + $0x830] sm:$0xff]  ;;  %v23_v46 = vld [vmem:[%s6702_s0 + $0x48] sm:$0xff]  ;;  %v494_v47 = vld [vmem:[%s6701_s1 + $0x600] sm:$0xff] }
  0x5b   :  { %1240 = vmatprep.mubr.f32.mxu1 %v181_v56  ;;  %3718 = vmatpush3.bf16.msra.mxu1 %v3717_v57  ;;  %v495_v48 = vld [vmem:[%s6701_s1 + $0x608] sm:$0xff]  ;;  %v25_v49 = vld [vmem:[%s6702_s0 + $0x58] sm:$0xff]  ;;  %v526_v50 = vld [vmem:[%s6701_s1 + $0x700] sm:$0xff] }
  0x5c   :  { %1131 = vmatmul.mubr.f32.gmra.mrb[28].mxu0 %v178_v2  ;;  %3720 = vmatprep.subr.bf16.mxu1 %v3719_v62  ;;  %v527_v51 = vld [vmem:[%s6701_s1 + $0x708] sm:$0xff]  ;;  %v512_v52 = vld [vmem:[%s6701_s1 + $0x690] sm:$0xff]  ;;  %v513_v53 = vld [vmem:[%s6701_s1 + $0x698] sm:$0xff]  ;;  %v3733_v55 = vpack.c.bf16 %v495_v48, %v494_v47 }
  0x5d   :  { %1135 = vmatprep.mubr.f32.mxu0 %v211_v6  ;;  %3690 = vmatpush3.bf16.msra.mxu0 %v3689_v7  ;;  %v22_v54 = vld [vmem:[%s6702_s0 + $0x40] sm:$0xff]  ;;  %v544_v56 = vld [vmem:[%s6701_s1 + $0x790] sm:$0xff]  ;;  %v545_v57 = vld [vmem:[%s6701_s1 + $0x798] sm:$0xff]  ;;  %v3765_v59 = vpack.c.bf16 %v527_v51, %v526_v50  ;;  %v3735_v63 = vpack.c.bf16 %v513_v53, %v512_v52 }
  0x5e   :  { %1241 = vmatmul.mubr.f32.gmra.mrb[28].mxu1 %v180_v5  ;;  %3692 = vmatprep.subr.bf16.mxu0 %v3691_v10  ;;  %v24_v58 = vld [vmem:[%s6702_s0 + $0x50] sm:$0xff]  ;;  %v497_v61 = vld [vmem:[%s6701_s1 + $0x618] sm:$0xff]  ;;  %v55_v62 = vld [vmem:[%s6702_s0 + $0x148] sm:$0xff]  ;;  %v3767_v3 = vpack.c.bf16 %v545_v57, %v544_v56 }
  0x5f   :  { %1245 = vmatprep.mubr.f32.mxu1 %v213_v8  ;;  %3722 = vmatpush3.bf16.msra.mxu1 %v3721_v9  ;;  %v496_v60 = vld [vmem:[%s6701_s1 + $0x610] sm:$0xff]  ;;  %v529_v1 = vld [vmem:[%s6701_s1 + $0x718] sm:$0xff]  ;;  %v514_v4 = vld [vmem:[%s6701_s1 + $0x6a0] sm:$0xff] }
  0x60   :  { %1136 = vmatmul.mubr.f32.gmra.mrb[30].mxu0 %v210_v18  ;;  %3724 = vmatprep.subr.bf16.mxu1 %v3723_v14  ;;  %v528_v0 = vld [vmem:[%s6701_s1 + $0x710] sm:$0xff]  ;;  %v57_v2 = vld [vmem:[%s6702_s0 + $0x158] sm:$0xff]  ;;  %v515_v5 = vld [vmem:[%s6701_s1 + $0x6a8] sm:$0xff]  ;;  %v3737_v7 = vpack.c.bf16 %v497_v61, %v496_v60 }
  0x61   :  { %1140 = vmatprep.mubr.f32.mxu0 %v243_v22  ;;  %3694 = vmatpush3.bf16.msra.mxu0 %v3693_v23  ;;  %v54_v6 = vld [vmem:[%s6702_s0 + $0x140] sm:$0xff]  ;;  %v547_v9 = vld [vmem:[%s6701_s1 + $0x7a8] sm:$0xff]  ;;  %v56_v10 = vld [vmem:[%s6702_s0 + $0x150] sm:$0xff]  ;;  %v3769_v11 = vpack.c.bf16 %v529_v1, %v528_v0  ;;  %v3739_v15 = vpack.c.bf16 %v515_v5, %v514_v4 }
  0x62   :  { %1246 = vmatmul.mubr.f32.gmra.mrb[30].mxu1 %v212_v21  ;;  %3696 = vmatprep.subr.bf16.mxu0 %v3695_v26  ;;  %v546_v8 = vld [vmem:[%s6701_s1 + $0x7a0] sm:$0xff]  ;;  %v499_v13 = vld [vmem:[%s6701_s1 + $0x628] sm:$0xff]  ;;  %v89_v18 = vld [vmem:[%s6702_s0 + $0x258] sm:$0xff] }
  0x63   :  { %1250 = vmatprep.mubr.f32.mxu1 %v245_v24  ;;  %3726 = vmatpush3.bf16.msra.mxu1 %v3725_v25  ;;  %v498_v12 = vld [vmem:[%s6701_s1 + $0x620] sm:$0xff]  ;;  %v87_v14 = vld [vmem:[%s6702_s0 + $0x248] sm:$0xff]  ;;  %v3771_v19 = vpack.c.bf16 %v547_v9, %v546_v8  ;;  %v516_v20 = vld [vmem:[%s6701_s1 + $0x6b0] sm:$0xff] }
  0x64   :  { %1141 = vmatmul.mubr.f32.gmra.mrb[32].mxu0 %v242_v34  ;;  %3728 = vmatprep.subr.bf16.mxu1 %v3727_v30  ;;  %v530_v16 = vld [vmem:[%s6701_s1 + $0x720] sm:$0xff]  ;;  %v531_v17 = vld [vmem:[%s6701_s1 + $0x728] sm:$0xff]  ;;  %v517_v21 = vld [vmem:[%s6701_s1 + $0x6b8] sm:$0xff]  ;;  %v3741_v23 = vpack.c.bf16 %v499_v13, %v498_v12 }
  0x65   :  { %1145 = vmatprep.mubr.f32.mxu0 %v275_v38  ;;  %3698 = vmatpush3.bf16.msra.mxu0 %v3697_v39  ;;  %v86_v22 = vld [vmem:[%s6702_s0 + $0x240] sm:$0xff]  ;;  %v548_v24 = vld [vmem:[%s6701_s1 + $0x7b0] sm:$0xff]  ;;  %v549_v25 = vld [vmem:[%s6701_s1 + $0x7b8] sm:$0xff]  ;;  %v3773_v28 = vpack.c.bf16 %v531_v17, %v530_v16  ;;  %v3743_v30 = vpack.c.bf16 %v517_v21, %v516_v20 }
  0x66   :  { %1251 = vmatmul.mubr.f32.gmra.mrb[32].mxu1 %v244_v37  ;;  %3732 = vmatprep.subr.bf16.mxu0 %v3731_v42  ;;  %v88_v26 = vld [vmem:[%s6702_s0 + $0x250] sm:$0xff]  ;;  %v119_v27 = vld [vmem:[%s6702_s0 + $0x348] sm:$0xff]  ;;  %v121_v29 = vld [vmem:[%s6702_s0 + $0x358] sm:$0xff]  ;;  %v3775_v34 = vpack.c.bf16 %v549_v25, %v548_v24 }
  0x67   :  { %1255 = vmatprep.mubr.f32.mxu1 %v277_v40  ;;  %3730 = vmatpush3.bf16.msra.mxu1 %v3729_v41  ;;  %v500_v31 = vld [vmem:[%s6701_s1 + $0x630] sm:$0xff]  ;;  %v501_v32 = vld [vmem:[%s6701_s1 + $0x638] sm:$0xff]  ;;  %v518_v36 = vld [vmem:[%s6701_s1 + $0x6c0] sm:$0xff] }
  0x68   :  { %1146 = vmatmul.mubr.f32.gmra.mrb[34].mxu0 %v274_v44  ;;  %3764 = vmatprep.subr.bf16.mxu1 %v3763_v43  ;;  %v532_v33 = vld [vmem:[%s6701_s1 + $0x730] sm:$0xff]  ;;  %v533_v35 = vld [vmem:[%s6701_s1 + $0x738] sm:$0xff]  ;;  %v519_v37 = vld [vmem:[%s6701_s1 + $0x6c8] sm:$0xff]  ;;  %v3745_v43 = vpack.c.bf16 %v501_v32, %v500_v31 }
  0x69   :  { %1325 = vmatprep.mubr.f32.mxu0 %v23_v46  ;;  %v118_v38 = vld [vmem:[%s6702_s0 + $0x340] sm:$0xff]  ;;  %v551_v40 = vld [vmem:[%s6701_s1 + $0x7c8] sm:$0xff]  ;;  %v120_v41 = vld [vmem:[%s6702_s0 + $0x350] sm:$0xff]  ;;  %v3747_v46 = vpack.c.bf16 %v519_v37, %v518_v36 }
  0x6a   :  { %1256 = vmatmul.mubr.f32.gmra.mrb[34].mxu1 %v276_v45  ;;  %v550_v39 = vld [vmem:[%s6701_s1 + $0x7c0] sm:$0xff]  ;;  %v151_v42 = vld [vmem:[%s6702_s0 + $0x448] sm:$0xff]  ;;  %v153_v44 = vld [vmem:[%s6702_s0 + $0x458] sm:$0xff]  ;;  %v3777_v45 = vpack.c.bf16 %v533_v35, %v532_v33 }
  0x6b   :  { %1435 = vmatprep.mubr.f32.mxu1 %v25_v49  ;;  %v502_v47 = vld [vmem:[%s6701_s1 + $0x640] sm:$0xff]  ;;  %v503_v48 = vld [vmem:[%s6701_s1 + $0x648] sm:$0xff]  ;;  %v3779_v50 = vpack.c.bf16 %v551_v40, %v550_v39  ;;  %v520_v52 = vld [vmem:[%s6701_s1 + $0x6d0] sm:$0xff] }
  0x6c   :  { %1326 = vmatmul.mubr.f32.vlgmr.msra.gmra.mrb[36].mxu0 %v22_v54  ;;  %v534_v49 = vld [vmem:[%s6701_s1 + $0x740] sm:$0xff]  ;;  %v535_v51 = vld [vmem:[%s6701_s1 + $0x748] sm:$0xff]  ;;  %v521_v53 = vld [vmem:[%s6701_s1 + $0x6d8] sm:$0xff] }
  0x6d   :  { %3734 = vmatpush3.bf16.msra.mxu0 %v3733_v55  ;;  %1330 = vmatprep.mubr.f32.mxu0 %v55_v62  ;;  %v150_v54 = vld [vmem:[%s6702_s0 + $0x440] sm:$0xff]  ;;  %v552_v55 = vld [vmem:[%s6701_s1 + $0x7d0] sm:$0xff]  ;;  %v553_v56 = vld [vmem:[%s6701_s1 + $0x7d8] sm:$0xff]  ;;  %v3781_v61 = vpack.c.bf16 %v535_v51, %v534_v49  ;;  %v3751_v62 = vpack.c.bf16 %v521_v53, %v520_v52 }
  0x6e   :  { %1436 = vmatmul.mubr.f32.vlgmr.msra.gmra.mrb[36].mxu1 %v24_v58  ;;  %3736 = vmatprep.subr.bf16.mxu0 %v3735_v63  ;;  %v152_v57 = vld [vmem:[%s6702_s0 + $0x450] sm:$0xff]  ;;  %v183_v58 = vld [vmem:[%s6702_s0 + $0x548] sm:$0xff]  ;;  %v185_v60 = vld [vmem:[%s6702_s0 + $0x558] sm:$0xff] }
  0x6f   :  { %3766 = vmatpush3.bf16.msra.mxu1 %v3765_v59  ;;  %1440 = vmatprep.mubr.f32.mxu1 %v57_v2  ;;  %v3749_v59 = vpack.c.bf16 %v503_v48, %v502_v47  ;;  %v504_v63 = vld [vmem:[%s6701_s1 + $0x650] sm:$0xff]  ;;  %v505_v0 = vld [vmem:[%s6701_s1 + $0x658] sm:$0xff]  ;;  %v3783_v2 = vpack.c.bf16 %v553_v56, %v552_v55  ;;  %v522_v4 = vld [vmem:[%s6701_s1 + $0x6e0] sm:$0xff] }
  0x70   :  { %1331 = vmatmul.mubr.f32.gmra.mrb[38].mxu0 %v54_v6  ;;  %3768 = vmatprep.subr.bf16.mxu1 %v3767_v3  ;;  %v536_v1 = vld [vmem:[%s6701_s1 + $0x750] sm:$0xff]  ;;  %v537_v3 = vld [vmem:[%s6701_s1 + $0x758] sm:$0xff]  ;;  %v523_v5 = vld [vmem:[%s6701_s1 + $0x6e8] sm:$0xff] }
  0x71   :  { %3738 = vmatpush3.bf16.msra.mxu0 %v3737_v7  ;;  %1335 = vmatprep.mubr.f32.mxu0 %v87_v14  ;;  %v182_v6 = vld [vmem:[%s6702_s0 + $0x540] sm:$0xff]  ;;  %v555_v8 = vld [vmem:[%s6701_s1 + $0x7e8] sm:$0xff]  ;;  %v184_v9 = vld [vmem:[%s6702_s0 + $0x550] sm:$0xff]  ;;  %v3785_v13 = vpack.c.bf16 %v537_v3, %v536_v1  ;;  %v3755_v14 = vpack.c.bf16 %v523_v5, %v522_v4 }
  0x72   :  { %1441 = vmatmul.mubr.f32.gmra.mrb[38].mxu1 %v56_v10  ;;  %3740 = vmatprep.subr.bf16.mxu0 %v3739_v15  ;;  %v554_v7 = vld [vmem:[%s6701_s1 + $0x7e0] sm:$0xff]  ;;  %v215_v10 = vld [vmem:[%s6702_s0 + $0x648] sm:$0xff]  ;;  %v217_v12 = vld [vmem:[%s6702_s0 + $0x658] sm:$0xff] }
  0x73   :  { %3770 = vmatpush3.bf16.msra.mxu1 %v3769_v11  ;;  %1445 = vmatprep.mubr.f32.mxu1 %v89_v18  ;;  %v3753_v11 = vpack.c.bf16 %v505_v0, %v504_v63  ;;  %v506_v15 = vld [vmem:[%s6701_s1 + $0x660] sm:$0xff]  ;;  %v507_v16 = vld [vmem:[%s6701_s1 + $0x668] sm:$0xff]  ;;  %v3787_v18 = vpack.c.bf16 %v555_v8, %v554_v7  ;;  %v524_v20 = vld [vmem:[%s6701_s1 + $0x6f0] sm:$0xff] }
  0x74   :  { %1336 = vmatmul.mubr.f32.gmra.mrb[40].mxu0 %v86_v22  ;;  %3772 = vmatprep.subr.bf16.mxu1 %v3771_v19  ;;  %v538_v17 = vld [vmem:[%s6701_s1 + $0x760] sm:$0xff]  ;;  %v539_v19 = vld [vmem:[%s6701_s1 + $0x768] sm:$0xff]  ;;  %v525_v21 = vld [vmem:[%s6701_s1 + $0x6f8] sm:$0xff] }
  0x75   :  { %3742 = vmatpush3.bf16.msra.mxu0 %v3741_v23  ;;  %1340 = vmatprep.mubr.f32.mxu0 %v119_v27  ;;  %v214_v22 = vld [vmem:[%s6702_s0 + $0x640] sm:$0xff]  ;;  %v556_v23 = vld [vmem:[%s6701_s1 + $0x7f0] sm:$0xff]  ;;  %v557_v24 = vld [vmem:[%s6701_s1 + $0x7f8] sm:$0xff]  ;;  %v3757_v27 = vpack.c.bf16 %v507_v16, %v506_v15 }
  0x76   :  { %1446 = vmatmul.mubr.f32.gmra.mrb[40].mxu1 %v88_v26  ;;  %3744 = vmatprep.subr.bf16.mxu0 %v3743_v30  ;;  %v216_v25 = vld [vmem:[%s6702_s0 + $0x650] sm:$0xff]  ;;  %v247_v26 = vld [vmem:[%s6702_s0 + $0x748] sm:$0xff]  ;;  %v3759_v30 = vpack.c.bf16 %v525_v21, %v524_v20  ;;  %v509_v32 = vld [vmem:[%s6701_s1 + $0x678] sm:$0xff] }
  0x77   :  { %3774 = vmatpush3.bf16.msra.mxu1 %v3773_v28  ;;  %1450 = vmatprep.mubr.f32.mxu1 %v121_v29  ;;  %v249_v28 = vld [vmem:[%s6702_s0 + $0x758] sm:$0xff]  ;;  %v3789_v29 = vpack.c.bf16 %v539_v19, %v538_v17  ;;  %v508_v31 = vld [vmem:[%s6701_s1 + $0x670] sm:$0xff]  ;;  %v574_v36 = vld [vmem:[%s6701_s1 + $0x880] sm:$0xff] }
  0x78   :  { %1341 = vmatmul.mubr.f32.gmra.mrb[42].mxu0 %v118_v38  ;;  %3776 = vmatprep.subr.bf16.mxu1 %v3775_v34  ;;  %v540_v33 = vld [vmem:[%s6701_s1 + $0x770] sm:$0xff]  ;;  %v3791_v34 = vpack.c.bf16 %v557_v24, %v556_v23  ;;  %v541_v35 = vld [vmem:[%s6701_s1 + $0x778] sm:$0xff]  ;;  %v575_v37 = vld [vmem:[%s6701_s1 + $0x888] sm:$0xff] }
  0x79   :  { %1345 = vmatprep.mubr.f32.mxu0 %v151_v42  ;;  %3746 = vmatpush3.bf16.msra.mxu0 %v3745_v43  ;;  %v246_v38 = vld [vmem:[%s6702_s0 + $0x740] sm:$0xff]  ;;  %v607_v40 = vld [vmem:[%s6701_s1 + $0x988] sm:$0xff]  ;;  %v3761_v43 = vpack.c.bf16 %v509_v32, %v508_v31  ;;  %v280_v49 = vld [vmem:[%s6702_s0 + $0x850] sm:$0xff] }
  0x7a   :  { %1451 = vmatmul.mubr.f32.gmra.mrb[42].mxu1 %v120_v41  ;;  %3748 = vmatprep.subr.bf16.mxu0 %v3747_v46  ;;  %v606_v39 = vld [vmem:[%s6701_s1 + $0x980] sm:$0xff]  ;;  %v248_v41 = vld [vmem:[%s6702_s0 + $0x750] sm:$0xff]  ;;  %v279_v42 = vld [vmem:[%s6702_s0 + $0x848] sm:$0xff]  ;;  %v3795_v46 = vpack.c.bf16 %v575_v37, %v574_v36 }
  0x7b   :  { %1455 = vmatprep.mubr.f32.mxu1 %v153_v44  ;;  %3778 = vmatpush3.bf16.msra.mxu1 %v3777_v45  ;;  %v281_v44 = vld [vmem:[%s6702_s0 + $0x858] sm:$0xff]  ;;  %v3793_v45 = vpack.c.bf16 %v541_v35, %v540_v33  ;;  %v3827_v47 = vpack.c.bf16 %v607_v40, %v606_v39  ;;  %v278_v48 = vld [vmem:[%s6702_s0 + $0x840] sm:$0xff]  ;;  %v559_v52 = vld [vmem:[%s6701_s1 + $0x808] sm:$0xff] }
  0x7c   :  { %1346 = vmatmul.mubr.f32.gmra.mrb[44].mxu0 %v150_v54  ;;  %3780 = vmatprep.subr.bf16.mxu1 %v3779_v50  ;;  %v27_v50 = vld [vmem:[%s6702_s0 + $0x68] sm:$0xff]  ;;  %v558_v51 = vld [vmem:[%s6701_s1 + $0x800] sm:$0xff]  ;;  %v29_v53 = vld [vmem:[%s6702_s0 + $0x78] sm:$0xff] }
  0x7d   :  { %1350 = vmatprep.mubr.f32.mxu0 %v183_v58  ;;  %3750 = vmatpush3.bf16.msra.mxu0 %v3749_v59  ;;  %v590_v54 = vld [vmem:[%s6701_s1 + $0x900] sm:$0xff]  ;;  %v591_v55 = vld [vmem:[%s6701_s1 + $0x908] sm:$0xff]  ;;  %v576_v56 = vld [vmem:[%s6701_s1 + $0x890] sm:$0xff]  ;;  %v3797_v59 = vpack.c.bf16 %v559_v52, %v558_v51 }
  0x7e   :  { %1456 = vmatmul.mubr.f32.gmra.mrb[44].mxu1 %v152_v57  ;;  %3752 = vmatprep.subr.bf16.mxu0 %v3751_v62  ;;  %v577_v57 = vld [vmem:[%s6701_s1 + $0x898] sm:$0xff]  ;;  %v26_v58 = vld [vmem:[%s6702_s0 + $0x60] sm:$0xff]  ;;  %v28_v62 = vld [vmem:[%s6702_s0 + $0x70] sm:$0xff]  ;;  %v3829_v63 = vpack.c.bf16 %v591_v55, %v590_v54 }
  0x7f   :  { %1460 = vmatprep.mubr.f32.mxu1 %v185_v60  ;;  %3782 = vmatpush3.bf16.msra.mxu1 %v3781_v61  ;;  %v608_v60 = vld [vmem:[%s6701_s1 + $0x990] sm:$0xff]  ;;  %v609_v61 = vld [vmem:[%s6701_s1 + $0x998] sm:$0xff]  ;;  %v3799_v3 = vpack.c.bf16 %v577_v57, %v576_v56  ;;  %v578_v8 = vld [vmem:[%s6701_s1 + $0x8a0] sm:$0xff] }
  0x80   :  { %1351 = vmatmul.mubr.f32.gmra.mrb[46].mxu0 %v182_v6  ;;  %3784 = vmatprep.subr.bf16.mxu1 %v3783_v2  ;;  %v560_v0 = vld [vmem:[%s6701_s1 + $0x810] sm:$0xff]  ;;  %v561_v1 = vld [vmem:[%s6701_s1 + $0x818] sm:$0xff]  ;;  %v59_v2 = vld [vmem:[%s6702_s0 + $0x168] sm:$0xff]  ;;  %v3831_v7 = vpack.c.bf16 %v609_v61, %v608_v60 }
  0x81   :  { %1355 = vmatprep.mubr.f32.mxu0 %v215_v10  ;;  %3754 = vmatpush3.bf16.msra.mxu0 %v3753_v11  ;;  %v592_v4 = vld [vmem:[%s6701_s1 + $0x910] sm:$0xff]  ;;  %v593_v5 = vld [vmem:[%s6701_s1 + $0x918] sm:$0xff]  ;;  %v58_v10 = vld [vmem:[%s6702_s0 + $0x160] sm:$0xff]  ;;  %v3801_v11 = vpack.c.bf16 %v561_v1, %v560_v0 }
  0x82   :  { %1461 = vmatmul.mubr.f32.gmra.mrb[46].mxu1 %v184_v9  ;;  %3756 = vmatprep.subr.bf16.mxu0 %v3755_v14  ;;  %v61_v6 = vld [vmem:[%s6702_s0 + $0x178] sm:$0xff]  ;;  %v579_v9 = vld [vmem:[%s6701_s1 + $0x8a8] sm:$0xff]  ;;  %v60_v14 = vld [vmem:[%s6702_s0 + $0x170] sm:$0xff]  ;;  %v3833_v15 = vpack.c.bf16 %v593_v5, %v592_v4 }
  0x83   :  { %1465 = vmatprep.mubr.f32.mxu1 %v217_v12  ;;  %3786 = vmatpush3.bf16.msra.mxu1 %v3785_v13  ;;  %v610_v12 = vld [vmem:[%s6701_s1 + $0x9a0] sm:$0xff]  ;;  %v611_v13 = vld [vmem:[%s6701_s1 + $0x9a8] sm:$0xff]  ;;  %v3803_v19 = vpack.c.bf16 %v579_v9, %v578_v8  ;;  %v580_v24 = vld [vmem:[%s6701_s1 + $0x8b0] sm:$0xff] }
  0x84   :  { %1356 = vmatmul.mubr.f32.gmra.mrb[48].mxu0 %v214_v22  ;;  %3788 = vmatprep.subr.bf16.mxu1 %v3787_v18  ;;  %v562_v16 = vld [vmem:[%s6701_s1 + $0x820] sm:$0xff]  ;;  %v563_v17 = vld [vmem:[%s6701_s1 + $0x828] sm:$0xff]  ;;  %v93_v22 = vld [vmem:[%s6702_s0 + $0x278] sm:$0xff]  ;;  %v3835_v23 = vpack.c.bf16 %v611_v13, %v610_v12 }
  0x85   :  { %1360 = vmatprep.mubr.f32.mxu0 %v247_v26  ;;  %3758 = vmatpush3.bf16.msra.mxu0 %v3757_v27  ;;  %v91_v18 = vld [vmem:[%s6702_s0 + $0x268] sm:$0xff]  ;;  %v594_v20 = vld [vmem:[%s6701_s1 + $0x920] sm:$0xff]  ;;  %v3805_v27 = vpack.c.bf16 %v563_v17, %v562_v16  ;;  %v125_v33 = vld [vmem:[%s6702_s0 + $0x378] sm:$0xff] }
  0x86   :  { %1466 = vmatmul.mubr.f32.gmra.mrb[48].mxu1 %v216_v25  ;;  %3760 = vmatprep.subr.bf16.mxu0 %v3759_v30  ;;  %v595_v21 = vld [vmem:[%s6701_s1 + $0x928] sm:$0xff]  ;;  %v581_v25 = vld [vmem:[%s6701_s1 + $0x8b8] sm:$0xff]  ;;  %v90_v26 = vld [vmem:[%s6702_s0 + $0x260] sm:$0xff] }
  0x87   :  { %1470 = vmatprep.mubr.f32.mxu1 %v249_v28  ;;  %3790 = vmatpush3.bf16.msra.mxu1 %v3789_v29  ;;  %v612_v28 = vld [vmem:[%s6701_s1 + $0x9b0] sm:$0xff]  ;;  %v613_v29 = vld [vmem:[%s6701_s1 + $0x9b8] sm:$0xff]  ;;  %v123_v31 = vld [vmem:[%s6702_s0 + $0x368] sm:$0xff]  ;;  %v3837_v32 = vpack.c.bf16 %v595_v21, %v594_v20 }
  0x88   :  { %1361 = vmatmul.mubr.f32.gmra.mrb[50].mxu0 %v246_v38  ;;  %3792 = vmatprep.subr.bf16.mxu1 %v3791_v34  ;;  %v92_v30 = vld [vmem:[%s6702_s0 + $0x270] sm:$0xff]  ;;  %v3807_v34 = vpack.c.bf16 %v581_v25, %v580_v24  ;;  %v565_v36 = vld [vmem:[%s6701_s1 + $0x838] sm:$0xff]  ;;  %v3839_v38 = vpack.c.bf16 %v613_v29, %v612_v28  ;;  %v582_v40 = vld [vmem:[%s6701_s1 + $0x8c0] sm:$0xff] }
  0x89   :  { %1365 = vmatprep.mubr.f32.mxu0 %v279_v42  ;;  %3762 = vmatpush3.bf16.msra.mxu0 %v3761_v43  ;;  %v564_v35 = vld [vmem:[%s6701_s1 + $0x830] sm:$0xff]  ;;  %v597_v39 = vld [vmem:[%s6701_s1 + $0x938] sm:$0xff]  ;;  %v122_v42 = vld [vmem:[%s6702_s0 + $0x360] sm:$0xff] }
  0x8a   :  { %1471 = vmatmul.mubr.f32.gmra.mrb[50].mxu1 %v248_v41  ;;  %3796 = vmatprep.subr.bf16.mxu0 %v3795_v46  ;;  %v596_v37 = vld [vmem:[%s6701_s1 + $0x930] sm:$0xff]  ;;  %v583_v41 = vld [vmem:[%s6701_s1 + $0x8c8] sm:$0xff]  ;;  %v614_v43 = vld [vmem:[%s6701_s1 + $0x9c0] sm:$0xff] }
  0x8b   :  { %1475 = vmatprep.mubr.f32.mxu1 %v281_v44  ;;  %3794 = vmatpush3.bf16.msra.mxu1 %v3793_v45  ;;  %v615_v44 = vld [vmem:[%s6701_s1 + $0x9c8] sm:$0xff]  ;;  %v124_v45 = vld [vmem:[%s6702_s0 + $0x370] sm:$0xff]  ;;  %v566_v51 = vld [vmem:[%s6701_s1 + $0x840] sm:$0xff] }
  0x8c   :  { %1366 = vmatmul.mubr.f32.gmra.mrb[52].mxu0 %v278_v48  ;;  %3828 = vmatprep.subr.bf16.mxu1 %v3827_v47  ;;  %v155_v46 = vld [vmem:[%s6702_s0 + $0x468] sm:$0xff]  ;;  %v3809_v47 = vpack.c.bf16 %v565_v36, %v564_v35  ;;  %v157_v48 = vld [vmem:[%s6702_s0 + $0x478] sm:$0xff]  ;;  %v3843_v54 = vpack.c.bf16 %v615_v44, %v614_v43  ;;  %v584_v56 = vld [vmem:[%s6701_s1 + $0x8d0] sm:$0xff] }
  0x8d   :  { %1545 = vmatprep.mubr.f32.mxu0 %v27_v50  ;;  %v3811_v50 = vpack.c.bf16 %v583_v41, %v582_v40  ;;  %v567_v52 = vld [vmem:[%s6701_s1 + $0x848] sm:$0xff]  ;;  %v585_v57 = vld [vmem:[%s6701_s1 + $0x8d8] sm:$0xff]  ;;  %v156_v61 = vld [vmem:[%s6702_s0 + $0x470] sm:$0xff] }
  0x8e   :  { %1476 = vmatmul.mubr.f32.gmra.mrb[52].mxu1 %v280_v49  ;;  %v3841_v49 = vpack.c.bf16 %v597_v39, %v596_v37  ;;  %v599_v55 = vld [vmem:[%s6701_s1 + $0x948] sm:$0xff]  ;;  %v617_v60 = vld [vmem:[%s6701_s1 + $0x9d8] sm:$0xff]  ;;  %v600_v5 = vld [vmem:[%s6701_s1 + $0x950] sm:$0xff] }
  0x8f   :  { %1655 = vmatprep.mubr.f32.mxu1 %v29_v53  ;;  %v598_v53 = vld [vmem:[%s6701_s1 + $0x940] sm:$0xff]  ;;  %v189_v0 = vld [vmem:[%s6702_s0 + $0x578] sm:$0xff]  ;;  %v587_v9 = vld [vmem:[%s6701_s1 + $0x8e8] sm:$0xff] }
  0x90   :  { %1546 = vmatmul.mubr.f32.vlgmr.msra.gmra.mrb[54].mxu0 %v26_v58  ;;  %v154_v58 = vld [vmem:[%s6702_s0 + $0x460] sm:$0xff]  ;;  %v3845_v1 = vpack.c.bf16 %v599_v55, %v598_v53  ;;  %v569_v4 = vld [vmem:[%s6701_s1 + $0x858] sm:$0xff]  ;;  %v619_v12 = vld [vmem:[%s6701_s1 + $0x9e8] sm:$0xff] }
  0x91   :  { %3798 = vmatpush3.bf16.msra.mxu0 %v3797_v59  ;;  %1550 = vmatprep.mubr.f32.mxu0 %v59_v2  ;;  %v616_v59 = vld [vmem:[%s6701_s1 + $0x9d0] sm:$0xff]  ;;  %v3815_v2 = vpack.c.bf16 %v585_v57, %v584_v56  ;;  %v586_v8 = vld [vmem:[%s6701_s1 + $0x8e0] sm:$0xff]  ;;  %v221_v16 = vld [vmem:[%s6702_s0 + $0x678] sm:$0xff] }
  0x92   :  { %1656 = vmatmul.mubr.f32.vlgmr.msra.gmra.mrb[54].mxu1 %v28_v62  ;;  %3800 = vmatprep.subr.bf16.mxu0 %v3799_v3  ;;  %v187_v62 = vld [vmem:[%s6702_s0 + $0x568] sm:$0xff]  ;;  %v568_v3 = vld [vmem:[%s6701_s1 + $0x850] sm:$0xff]  ;;  %v602_v21 = vld [vmem:[%s6701_s1 + $0x960] sm:$0xff] }
  0x93   :  { %3830 = vmatpush3.bf16.msra.mxu1 %v3829_v63  ;;  %1660 = vmatprep.mubr.f32.mxu1 %v61_v6  ;;  %v3813_v63 = vpack.c.bf16 %v567_v52, %v566_v51  ;;  %v3847_v6 = vpack.c.bf16 %v617_v60, %v616_v59  ;;  %v188_v13 = vld [vmem:[%s6702_s0 + $0x570] sm:$0xff]  ;;  %v571_v20 = vld [vmem:[%s6701_s1 + $0x868] sm:$0xff]  ;;  %v589_v25 = vld [vmem:[%s6701_s1 + $0x8f8] sm:$0xff] }
  0x94   :  { %1551 = vmatmul.mubr.f32.gmra.mrb[56].mxu0 %v58_v10  ;;  %3832 = vmatprep.subr.bf16.mxu1 %v3831_v7  ;;  %v601_v7 = vld [vmem:[%s6701_s1 + $0x958] sm:$0xff]  ;;  %v186_v10 = vld [vmem:[%s6702_s0 + $0x560] sm:$0xff]  ;;  %v588_v24 = vld [vmem:[%s6701_s1 + $0x8f0] sm:$0xff] }
  0x95   :  { %3802 = vmatpush3.bf16.msra.mxu0 %v3801_v11  ;;  %1555 = vmatprep.mubr.f32.mxu0 %v91_v18  ;;  %v618_v11 = vld [vmem:[%s6701_s1 + $0x9e0] sm:$0xff]  ;;  %v3849_v17 = vpack.c.bf16 %v601_v7, %v600_v5  ;;  %v3819_v18 = vpack.c.bf16 %v587_v9, %v586_v8  ;;  %v621_v28 = vld [vmem:[%s6701_s1 + $0x9f8] sm:$0xff]  ;;  %v220_v29 = vld [vmem:[%s6702_s0 + $0x670] sm:$0xff] }
  0x96   :  { %1661 = vmatmul.mubr.f32.gmra.mrb[56].mxu1 %v60_v14  ;;  %3804 = vmatprep.subr.bf16.mxu0 %v3803_v19  ;;  %v219_v14 = vld [vmem:[%s6702_s0 + $0x668] sm:$0xff]  ;;  %v570_v19 = vld [vmem:[%s6701_s1 + $0x860] sm:$0xff]  ;;  %v572_v35 = vld [vmem:[%s6701_s1 + $0x870] sm:$0xff] }
  0x97   :  { %3834 = vmatpush3.bf16.msra.mxu1 %v3833_v15  ;;  %1665 = vmatprep.mubr.f32.mxu1 %v93_v22  ;;  %v3817_v15 = vpack.c.bf16 %v569_v4, %v568_v3  ;;  %v3851_v22 = vpack.c.bf16 %v619_v12, %v618_v11  ;;  %v573_v36 = vld [vmem:[%s6701_s1 + $0x878] sm:$0xff]  ;;  %v604_v37 = vld [vmem:[%s6701_s1 + $0x970] sm:$0xff]  ;;  %v638_v40 = vld [vmem:[%s6701_s1 + $0xa80] sm:$0xff] }
  0x98   :  { %1556 = vmatmul.mubr.f32.gmra.mrb[58].mxu0 %v90_v26  ;;  %3836 = vmatprep.subr.bf16.mxu1 %v3835_v23  ;;  %v603_v23 = vld [vmem:[%s6701_s1 + $0x968] sm:$0xff]  ;;  %v218_v26 = vld [vmem:[%s6702_s0 + $0x660] sm:$0xff]  ;;  %v605_v39 = vld [vmem:[%s6701_s1 + $0x978] sm:$0xff] }
  0x99   :  { %3806 = vmatpush3.bf16.msra.mxu0 %v3805_v27  ;;  %1560 = vmatprep.mubr.f32.mxu0 %v123_v31  ;;  %v620_v27 = vld [vmem:[%s6701_s1 + $0x9f0] sm:$0xff]  ;;  %v3821_v31 = vpack.c.bf16 %v571_v20, %v570_v19  ;;  %v639_v41 = vld [vmem:[%s6701_s1 + $0xa88] sm:$0xff]  ;;  %v670_v43 = vld [vmem:[%s6701_s1 + $0xb80] sm:$0xff] }
  0x9a   :  { %1666 = vmatmul.mubr.f32.gmra.mrb[58].mxu1 %v92_v30  ;;  %3808 = vmatprep.subr.bf16.mxu0 %v3807_v34  ;;  %v251_v30 = vld [vmem:[%s6702_s0 + $0x768] sm:$0xff]  ;;  %v3823_v34 = vpack.c.bf16 %v589_v25, %v588_v24  ;;  %v282_v52 = vld [vmem:[%s6702_s0 + $0x860] sm:$0xff]  ;;  %v284_v53 = vld [vmem:[%s6702_s0 + $0x870] sm:$0xff] }
  0x9b   :  { %3838 = vmatpush3.bf16.msra.mxu1 %v3837_v32  ;;  %1670 = vmatprep.mubr.f32.mxu1 %v125_v33  ;;  %v253_v32 = vld [vmem:[%s6702_s0 + $0x778] sm:$0xff]  ;;  %v3853_v33 = vpack.c.bf16 %v603_v23, %v602_v21  ;;  %v671_v44 = vld [vmem:[%s6701_s1 + $0xb88] sm:$0xff]  ;;  %v622_v55 = vld [vmem:[%s6701_s1 + $0xa00] sm:$0xff] }
  0x9c   :  { %1561 = vmatmul.mubr.f32.gmra.mrb[60].mxu0 %v122_v42  ;;  %3840 = vmatprep.subr.bf16.mxu1 %v3839_v38  ;;  %v3855_v38 = vpack.c.bf16 %v621_v28, %v620_v27  ;;  %v250_v42 = vld [vmem:[%s6702_s0 + $0x760] sm:$0xff]  ;;  %v3891_v51 = vpack.c.bf16 %v671_v44, %v670_v43  ;;  %v623_v56 = vld [vmem:[%s6701_s1 + $0xa08] sm:$0xff]  ;;  %v33_v57 = vld [vmem:[%s6702_s0 + $0x98] sm:$0xff] }
  0x9d   :  { %1565 = vmatprep.mubr.f32.mxu0 %v155_v46  ;;  %3810 = vmatpush3.bf16.msra.mxu0 %v3809_v47  ;;  %v283_v46 = vld [vmem:[%s6702_s0 + $0x868] sm:$0xff]  ;;  %v3825_v47 = vpack.c.bf16 %v573_v36, %v572_v35  ;;  %v640_v60 = vld [vmem:[%s6701_s1 + $0xa90] sm:$0xff]  ;;  %v625_v5 = vld [vmem:[%s6701_s1 + $0xa18] sm:$0xff] }
  0x9e   :  { %1671 = vmatmul.mubr.f32.gmra.mrb[60].mxu1 %v124_v45  ;;  %3812 = vmatprep.subr.bf16.mxu0 %v3811_v50  ;;  %v252_v45 = vld [vmem:[%s6702_s0 + $0x770] sm:$0xff]  ;;  %v3859_v50 = vpack.c.bf16 %v639_v41, %v638_v40  ;;  %v655_v59 = vld [vmem:[%s6701_s1 + $0xb08] sm:$0xff]  ;;  %v657_v9 = vld [vmem:[%s6701_s1 + $0xb18] sm:$0xff] }
  0x9f   :  { %1675 = vmatprep.mubr.f32.mxu1 %v157_v48  ;;  %3842 = vmatpush3.bf16.msra.mxu1 %v3841_v49  ;;  %v285_v48 = vld [vmem:[%s6702_s0 + $0x878] sm:$0xff]  ;;  %v3857_v49 = vpack.c.bf16 %v605_v39, %v604_v37  ;;  %v624_v4 = vld [vmem:[%s6701_s1 + $0xa10] sm:$0xff]  ;;  %v642_v12 = vld [vmem:[%s6701_s1 + $0xaa0] sm:$0xff] }
  0xa0   :  { %1566 = vmatmul.mubr.f32.gmra.mrb[62].mxu0 %v154_v58  ;;  %3844 = vmatprep.subr.bf16.mxu1 %v3843_v54  ;;  %v31_v54 = vld [vmem:[%s6702_s0 + $0x88] sm:$0xff]  ;;  %v654_v58 = vld [vmem:[%s6701_s1 + $0xb00] sm:$0xff]  ;;  %v656_v8 = vld [vmem:[%s6701_s1 + $0xb10] sm:$0xff] }
  0xa1   :  { %1570 = vmatprep.mubr.f32.mxu0 %v187_v62  ;;  %3814 = vmatpush3.bf16.msra.mxu0 %v3813_v63  ;;  %v30_v62 = vld [vmem:[%s6702_s0 + $0x80] sm:$0xff]  ;;  %v3861_v63 = vpack.c.bf16 %v623_v56, %v622_v55  ;;  %v3893_v3 = vpack.c.bf16 %v655_v59, %v654_v58  ;;  %v3897_v19 = vpack.c.bf16 %v657_v9, %v656_v8  ;;  %v627_v21 = vld [vmem:[%s6701_s1 + $0xa28] sm:$0xff]  ;;  %v644_v28 = vld [vmem:[%s6701_s1 + $0xab0] sm:$0xff] }
  0xa2   :  { %1676 = vmatmul.mubr.f32.gmra.mrb[62].mxu1 %v156_v61  ;;  %3816 = vmatprep.subr.bf16.mxu0 %v3815_v2  ;;  %v641_v61 = vld [vmem:[%s6701_s1 + $0xa98] sm:$0xff]  ;;  %v32_v2 = vld [vmem:[%s6702_s0 + $0x90] sm:$0xff]  ;;  %v626_v20 = vld [vmem:[%s6701_s1 + $0xa20] sm:$0xff] }
  0xa3   :  { %1680 = vmatprep.mubr.f32.mxu1 %v189_v0  ;;  %3846 = vmatpush3.bf16.msra.mxu1 %v3845_v1  ;;  %v672_v0 = vld [vmem:[%s6701_s1 + $0xb90] sm:$0xff]  ;;  %v673_v1 = vld [vmem:[%s6701_s1 + $0xb98] sm:$0xff]  ;;  %v3863_v7 = vpack.c.bf16 %v641_v61, %v640_v60  ;;  %v658_v24 = vld [vmem:[%s6701_s1 + $0xb20] sm:$0xff] }
  0xa4   :  { %1571 = vmatmul.mubr.f32.gmra.mrb[64].mxu0 %v186_v10  ;;  %3848 = vmatprep.subr.bf16.mxu1 %v3847_v6  ;;  %v63_v6 = vld [vmem:[%s6702_s0 + $0x188] sm:$0xff]  ;;  %v65_v10 = vld [vmem:[%s6702_s0 + $0x198] sm:$0xff]  ;;  %v3895_v11 = vpack.c.bf16 %v673_v1, %v672_v0  ;;  %v628_v39 = vld [vmem:[%s6701_s1 + $0xa30] sm:$0xff] }
  0xa5   :  { %1575 = vmatprep.mubr.f32.mxu0 %v219_v14  ;;  %3818 = vmatpush3.bf16.msra.mxu0 %v3817_v15  ;;  %v62_v14 = vld [vmem:[%s6702_s0 + $0x180] sm:$0xff]  ;;  %v3865_v15 = vpack.c.bf16 %v625_v5, %v624_v4  ;;  %v659_v25 = vld [vmem:[%s6701_s1 + $0xb28] sm:$0xff]  ;;  %v129_v37 = vld [vmem:[%s6702_s0 + $0x398] sm:$0xff] }
  0xa6   :  { %1681 = vmatmul.mubr.f32.gmra.mrb[64].mxu1 %v188_v13  ;;  %3820 = vmatprep.subr.bf16.mxu0 %v3819_v18  ;;  %v643_v13 = vld [vmem:[%s6701_s1 + $0xaa8] sm:$0xff]  ;;  %v64_v18 = vld [vmem:[%s6702_s0 + $0x190] sm:$0xff]  ;;  %v3901_v36 = vpack.c.bf16 %v659_v25, %v658_v24  ;;  %v629_v40 = vld [vmem:[%s6701_s1 + $0xa38] sm:$0xff] }
  0xa7   :  { %1685 = vmatprep.mubr.f32.mxu1 %v221_v16  ;;  %3850 = vmatpush3.bf16.msra.mxu1 %v3849_v17  ;;  %v674_v16 = vld [vmem:[%s6701_s1 + $0xba0] sm:$0xff]  ;;  %v675_v17 = vld [vmem:[%s6701_s1 + $0xba8] sm:$0xff]  ;;  %v3867_v23 = vpack.c.bf16 %v643_v13, %v642_v12  ;;  %v660_v41 = vld [vmem:[%s6701_s1 + $0xb30] sm:$0xff] }
  0xa8   :  { %1576 = vmatmul.mubr.f32.gmra.mrb[66].mxu0 %v218_v26  ;;  %3852 = vmatprep.subr.bf16.mxu1 %v3851_v22  ;;  %v95_v22 = vld [vmem:[%s6702_s0 + $0x288] sm:$0xff]  ;;  %v97_v26 = vld [vmem:[%s6702_s0 + $0x298] sm:$0xff]  ;;  %v3899_v27 = vpack.c.bf16 %v675_v17, %v674_v16  ;;  %v646_v44 = vld [vmem:[%s6701_s1 + $0xac0] sm:$0xff] }
  0xa9   :  { %1580 = vmatprep.mubr.f32.mxu0 %v251_v30  ;;  %3822 = vmatpush3.bf16.msra.mxu0 %v3821_v31  ;;  %v94_v30 = vld [vmem:[%s6702_s0 + $0x280] sm:$0xff]  ;;  %v3869_v31 = vpack.c.bf16 %v627_v21, %v626_v20  ;;  %v127_v35 = vld [vmem:[%s6702_s0 + $0x388] sm:$0xff]  ;;  %v661_v43 = vld [vmem:[%s6701_s1 + $0xb38] sm:$0xff] }
  0xaa   :  { %1686 = vmatmul.mubr.f32.gmra.mrb[66].mxu1 %v220_v29  ;;  %3824 = vmatprep.subr.bf16.mxu0 %v3823_v34  ;;  %v645_v29 = vld [vmem:[%s6701_s1 + $0xab8] sm:$0xff]  ;;  %v96_v34 = vld [vmem:[%s6702_s0 + $0x290] sm:$0xff]  ;;  %v630_v55 = vld [vmem:[%s6701_s1 + $0xa40] sm:$0xff] }
  0xab   :  { %1690 = vmatprep.mubr.f32.mxu1 %v253_v32  ;;  %3854 = vmatpush3.bf16.msra.mxu1 %v3853_v33  ;;  %v676_v32 = vld [vmem:[%s6701_s1 + $0xbb0] sm:$0xff]  ;;  %v677_v33 = vld [vmem:[%s6701_s1 + $0xbb8] sm:$0xff]  ;;  %v631_v56 = vld [vmem:[%s6701_s1 + $0xa48] sm:$0xff] }
  0xac   :  { %1581 = vmatmul.mubr.f32.gmra.mrb[68].mxu0 %v250_v42  ;;  %3856 = vmatprep.subr.bf16.mxu1 %v3855_v38  ;;  %v3871_v38 = vpack.c.bf16 %v645_v29, %v644_v28  ;;  %v3903_v42 = vpack.c.bf16 %v677_v33, %v676_v32  ;;  %v663_v59 = vld [vmem:[%s6701_s1 + $0xb48] sm:$0xff]  ;;  %v648_v60 = vld [vmem:[%s6701_s1 + $0xad0] sm:$0xff]  ;;  %v649_v61 = vld [vmem:[%s6701_s1 + $0xad8] sm:$0xff] }
  0xad   :  { %1585 = vmatprep.mubr.f32.mxu0 %v283_v46  ;;  %3826 = vmatpush3.bf16.msra.mxu0 %v3825_v47  ;;  %v126_v46 = vld [vmem:[%s6702_s0 + $0x380] sm:$0xff]  ;;  %v681_v0 = vld [vmem:[%s6701_s1 + $0xbd8] sm:$0xff]  ;;  %v160_v1 = vld [vmem:[%s6702_s0 + $0x490] sm:$0xff] }
  0xae   :  { %1691 = vmatmul.mubr.f32.gmra.mrb[68].mxu1 %v252_v45  ;;  %3860 = vmatprep.subr.bf16.mxu0 %v3859_v50  ;;  %v647_v45 = vld [vmem:[%s6701_s1 + $0xac8] sm:$0xff]  ;;  %v678_v47 = vld [vmem:[%s6701_s1 + $0xbc0] sm:$0xff]  ;;  %v193_v4 = vld [vmem:[%s6702_s0 + $0x598] sm:$0xff] }
  0xaf   :  { %1695 = vmatprep.mubr.f32.mxu1 %v285_v48  ;;  %3858 = vmatpush3.bf16.msra.mxu1 %v3857_v49  ;;  %v679_v48 = vld [vmem:[%s6701_s1 + $0xbc8] sm:$0xff]  ;;  %v128_v49 = vld [vmem:[%s6702_s0 + $0x390] sm:$0xff]  ;;  %v633_v8 = vld [vmem:[%s6701_s1 + $0xa58] sm:$0xff] }
  0xb0   :  { %1586 = vmatmul.mubr.f32.gmra.mrb[70].mxu0 %v282_v52  ;;  %3892 = vmatprep.subr.bf16.mxu1 %v3891_v51  ;;  %v159_v50 = vld [vmem:[%s6702_s0 + $0x488] sm:$0xff]  ;;  %v3873_v51 = vpack.c.bf16 %v629_v40, %v628_v39  ;;  %v161_v52 = vld [vmem:[%s6702_s0 + $0x498] sm:$0xff]  ;;  %v3907_v58 = vpack.c.bf16 %v679_v48, %v678_v47  ;;  %v664_v9 = vld [vmem:[%s6701_s1 + $0xb50] sm:$0xff] }
  0xb1   :  { %1765 = vmatprep.mubr.f32.mxu0 %v31_v54  ;;  %v3875_v54 = vpack.c.bf16 %v647_v45, %v646_v44  ;;  %v650_v12 = vld [vmem:[%s6701_s1 + $0xae0] sm:$0xff]  ;;  %v651_v13 = vld [vmem:[%s6701_s1 + $0xae8] sm:$0xff]  ;;  %v192_v17 = vld [vmem:[%s6702_s0 + $0x590] sm:$0xff] }
  0xb2   :  { %1696 = vmatmul.mubr.f32.gmra.mrb[70].mxu1 %v284_v53  ;;  %v3905_v53 = vpack.c.bf16 %v661_v43, %v660_v41  ;;  %v683_v16 = vld [vmem:[%s6701_s1 + $0xbe8] sm:$0xff]  ;;  %v225_v20 = vld [vmem:[%s6702_s0 + $0x698] sm:$0xff]  ;;  %v666_v25 = vld [vmem:[%s6701_s1 + $0xb60] sm:$0xff] }
  0xb3   :  { %1875 = vmatprep.mubr.f32.mxu1 %v33_v57  ;;  %v662_v57 = vld [vmem:[%s6701_s1 + $0xb40] sm:$0xff]  ;;  %v635_v24 = vld [vmem:[%s6701_s1 + $0xa68] sm:$0xff]  ;;  %v652_v28 = vld [vmem:[%s6701_s1 + $0xaf0] sm:$0xff] }
  0xb4   :  { %1766 = vmatmul.mubr.f32.vlgmr.msra.gmra.mrb[72].mxu0 %v30_v62  ;;  %v158_v62 = vld [vmem:[%s6702_s0 + $0x480] sm:$0xff]  ;;  %v3909_v5 = vpack.c.bf16 %v663_v59, %v662_v57  ;;  %v653_v29 = vld [vmem:[%s6701_s1 + $0xaf8] sm:$0xff]  ;;  %v224_v33 = vld [vmem:[%s6702_s0 + $0x690] sm:$0xff] }
  0xb5   :  { %3862 = vmatpush3.bf16.msra.mxu0 %v3861_v63  ;;  %1770 = vmatprep.mubr.f32.mxu0 %v63_v6  ;;  %v680_v63 = vld [vmem:[%s6701_s1 + $0xbd0] sm:$0xff]  ;;  %v3879_v6 = vpack.c.bf16 %v649_v61, %v648_v60  ;;  %v685_v32 = vld [vmem:[%s6701_s1 + $0xbf8] sm:$0xff]  ;;  %v702_v44 = vld [vmem:[%s6701_s1 + $0xc80] sm:$0xff] }
  0xb6   :  { %1876 = vmatmul.mubr.f32.vlgmr.msra.gmra.mrb[72].mxu1 %v32_v2  ;;  %3864 = vmatprep.subr.bf16.mxu0 %v3863_v7  ;;  %v191_v2 = vld [vmem:[%s6702_s0 + $0x588] sm:$0xff]  ;;  %v632_v7 = vld [vmem:[%s6701_s1 + $0xa50] sm:$0xff]  ;;  %v637_v40 = vld [vmem:[%s6701_s1 + $0xa78] sm:$0xff] }
  0xb7   :  { %3894 = vmatpush3.bf16.msra.mxu1 %v3893_v3  ;;  %1880 = vmatprep.mubr.f32.mxu1 %v65_v10  ;;  %v3877_v3 = vpack.c.bf16 %v631_v56, %v630_v55  ;;  %v3911_v10 = vpack.c.bf16 %v681_v0, %v680_v63  ;;  %v636_v39 = vld [vmem:[%s6701_s1 + $0xa70] sm:$0xff]  ;;  %v669_v43 = vld [vmem:[%s6701_s1 + $0xb78] sm:$0xff]  ;;  %v703_v45 = vld [vmem:[%s6701_s1 + $0xc88] sm:$0xff] }
  0xb8   :  { %1771 = vmatmul.mubr.f32.gmra.mrb[74].mxu0 %v62_v14  ;;  %3896 = vmatprep.subr.bf16.mxu1 %v3895_v11  ;;  %v665_v11 = vld [vmem:[%s6701_s1 + $0xb58] sm:$0xff]  ;;  %v190_v14 = vld [vmem:[%s6702_s0 + $0x580] sm:$0xff]  ;;  %v668_v41 = vld [vmem:[%s6701_s1 + $0xb70] sm:$0xff] }
  0xb9   :  { %3866 = vmatpush3.bf16.msra.mxu0 %v3865_v15  ;;  %1775 = vmatprep.mubr.f32.mxu0 %v95_v22  ;;  %v682_v15 = vld [vmem:[%s6701_s1 + $0xbe0] sm:$0xff]  ;;  %v3913_v21 = vpack.c.bf16 %v665_v11, %v664_v9  ;;  %v3883_v22 = vpack.c.bf16 %v651_v13, %v650_v12  ;;  %v735_v48 = vld [vmem:[%s6701_s1 + $0xd88] sm:$0xff]  ;;  %v288_v57 = vld [vmem:[%s6702_s0 + $0x890] sm:$0xff] }
  0xba   :  { %1881 = vmatmul.mubr.f32.gmra.mrb[74].mxu1 %v64_v18  ;;  %3868 = vmatprep.subr.bf16.mxu0 %v3867_v23  ;;  %v223_v18 = vld [vmem:[%s6702_s0 + $0x688] sm:$0xff]  ;;  %v634_v23 = vld [vmem:[%s6701_s1 + $0xa60] sm:$0xff]  ;;  %v37_v61 = vld [vmem:[%s6702_s0 + $0xb8] sm:$0xff] }
  0xbb   :  { %3898 = vmatpush3.bf16.msra.mxu1 %v3897_v19  ;;  %1885 = vmatprep.mubr.f32.mxu1 %v97_v26  ;;  %v3881_v19 = vpack.c.bf16 %v633_v8, %v632_v7  ;;  %v3915_v26 = vpack.c.bf16 %v683_v16, %v682_v15  ;;  %v734_v47 = vld [vmem:[%s6701_s1 + $0xd80] sm:$0xff]  ;;  %v687_v60 = vld [vmem:[%s6701_s1 + $0xc08] sm:$0xff]  ;;  %v704_v0 = vld [vmem:[%s6701_s1 + $0xc90] sm:$0xff] }
  0xbc   :  { %1776 = vmatmul.mubr.f32.gmra.mrb[76].mxu0 %v94_v30  ;;  %3900 = vmatprep.subr.bf16.mxu1 %v3899_v27  ;;  %v667_v27 = vld [vmem:[%s6701_s1 + $0xb68] sm:$0xff]  ;;  %v222_v30 = vld [vmem:[%s6702_s0 + $0x680] sm:$0xff]  ;;  %v3955_v55 = vpack.c.bf16 %v735_v48, %v734_v47  ;;  %v688_v8 = vld [vmem:[%s6701_s1 + $0xc10] sm:$0xff] }
  0xbd   :  { %3870 = vmatpush3.bf16.msra.mxu0 %v3869_v31  ;;  %1780 = vmatprep.mubr.f32.mxu0 %v127_v35  ;;  %v684_v31 = vld [vmem:[%s6701_s1 + $0xbf0] sm:$0xff]  ;;  %v3885_v35 = vpack.c.bf16 %v635_v24, %v634_v23  ;;  %v286_v56 = vld [vmem:[%s6702_s0 + $0x880] sm:$0xff]  ;;  %v719_v63 = vld [vmem:[%s6701_s1 + $0xd08] sm:$0xff] }
  0xbe   :  { %1886 = vmatmul.mubr.f32.gmra.mrb[76].mxu1 %v96_v34  ;;  %3872 = vmatprep.subr.bf16.mxu0 %v3871_v38  ;;  %v255_v34 = vld [vmem:[%s6702_s0 + $0x788] sm:$0xff]  ;;  %v3887_v38 = vpack.c.bf16 %v653_v29, %v652_v28  ;;  %v686_v59 = vld [vmem:[%s6701_s1 + $0xc00] sm:$0xff]  ;;  %v689_v9 = vld [vmem:[%s6701_s1 + $0xc18] sm:$0xff] }
  0xbf   :  { %3902 = vmatpush3.bf16.msra.mxu1 %v3901_v36  ;;  %1890 = vmatprep.mubr.f32.mxu1 %v129_v37  ;;  %v257_v36 = vld [vmem:[%s6702_s0 + $0x798] sm:$0xff]  ;;  %v3917_v37 = vpack.c.bf16 %v667_v27, %v666_v25  ;;  %v720_v12 = vld [vmem:[%s6701_s1 + $0xd10] sm:$0xff]  ;;  %v706_v16 = vld [vmem:[%s6701_s1 + $0xca0] sm:$0xff] }
  0xc0   :  { %1781 = vmatmul.mubr.f32.gmra.mrb[78].mxu0 %v126_v46  ;;  %3904 = vmatprep.subr.bf16.mxu1 %v3903_v42  ;;  %v3919_v42 = vpack.c.bf16 %v685_v32, %v684_v31  ;;  %v254_v46 = vld [vmem:[%s6702_s0 + $0x780] sm:$0xff]  ;;  %v721_v13 = vld [vmem:[%s6701_s1 + $0xd18] sm:$0xff]  ;;  %v691_v25 = vld [vmem:[%s6701_s1 + $0xc28] sm:$0xff] }
  0xc1   :  { %1785 = vmatprep.mubr.f32.mxu0 %v159_v50  ;;  %3874 = vmatpush3.bf16.msra.mxu0 %v3873_v51  ;;  %v287_v50 = vld [vmem:[%s6702_s0 + $0x888] sm:$0xff]  ;;  %v3889_v51 = vpack.c.bf16 %v637_v40, %v636_v39  ;;  %v3961_v23 = vpack.c.bf16 %v721_v13, %v720_v12  ;;  %v690_v24 = vld [vmem:[%s6701_s1 + $0xc20] sm:$0xff]  ;;  %v708_v32 = vld [vmem:[%s6701_s1 + $0xcb0] sm:$0xff] }
  0xc2   :  { %1891 = vmatmul.mubr.f32.gmra.mrb[78].mxu1 %v128_v49  ;;  %3876 = vmatprep.subr.bf16.mxu0 %v3875_v54  ;;  %v256_v49 = vld [vmem:[%s6702_s0 + $0x790] sm:$0xff]  ;;  %v3923_v54 = vpack.c.bf16 %v703_v45, %v702_v44  ;;  %v722_v28 = vld [vmem:[%s6701_s1 + $0xd20] sm:$0xff]  ;;  %v723_v29 = vld [vmem:[%s6701_s1 + $0xd28] sm:$0xff] }
  0xc3   :  { %1895 = vmatprep.mubr.f32.mxu1 %v161_v52  ;;  %3906 = vmatpush3.bf16.msra.mxu1 %v3905_v53  ;;  %v289_v52 = vld [vmem:[%s6702_s0 + $0x898] sm:$0xff]  ;;  %v3921_v53 = vpack.c.bf16 %v669_v43, %v668_v41  ;;  %v131_v39 = vld [vmem:[%s6702_s0 + $0x3a8] sm:$0xff]  ;;  %v3965_v40 = vpack.c.bf16 %v723_v29, %v722_v28  ;;  %v692_v43 = vld [vmem:[%s6701_s1 + $0xc30] sm:$0xff] }
  0xc4   :  { %1786 = vmatmul.mubr.f32.gmra.mrb[80].mxu0 %v158_v62  ;;  %3908 = vmatprep.subr.bf16.mxu1 %v3907_v58  ;;  %v35_v58 = vld [vmem:[%s6702_s0 + $0xa8] sm:$0xff]  ;;  %v718_v62 = vld [vmem:[%s6701_s1 + $0xd00] sm:$0xff]  ;;  %v133_v41 = vld [vmem:[%s6702_s0 + $0x3b8] sm:$0xff] }
  0xc5   :  { %1790 = vmatprep.mubr.f32.mxu0 %v191_v2  ;;  %3878 = vmatpush3.bf16.msra.mxu0 %v3877_v3  ;;  %v34_v2 = vld [vmem:[%s6702_s0 + $0xa0] sm:$0xff]  ;;  %v3925_v3 = vpack.c.bf16 %v687_v60, %v686_v59  ;;  %v3957_v7 = vpack.c.bf16 %v719_v63, %v718_v62  ;;  %v693_v44 = vld [vmem:[%s6701_s1 + $0xc38] sm:$0xff]  ;;  %v724_v45 = vld [vmem:[%s6701_s1 + $0xd30] sm:$0xff] }
  0xc6   :  { %1896 = vmatmul.mubr.f32.gmra.mrb[80].mxu1 %v160_v1  ;;  %3880 = vmatprep.subr.bf16.mxu0 %v3879_v6  ;;  %v705_v1 = vld [vmem:[%s6701_s1 + $0xc98] sm:$0xff]  ;;  %v36_v6 = vld [vmem:[%s6702_s0 + $0xb0] sm:$0xff]  ;;  %v710_v48 = vld [vmem:[%s6701_s1 + $0xcc0] sm:$0xff] }
  0xc7   :  { %1900 = vmatprep.mubr.f32.mxu1 %v193_v4  ;;  %3910 = vmatpush3.bf16.msra.mxu1 %v3909_v5  ;;  %v736_v4 = vld [vmem:[%s6701_s1 + $0xd90] sm:$0xff]  ;;  %v737_v5 = vld [vmem:[%s6701_s1 + $0xd98] sm:$0xff]  ;;  %v3927_v11 = vpack.c.bf16 %v705_v1, %v704_v0  ;;  %v694_v59 = vld [vmem:[%s6701_s1 + $0xc40] sm:$0xff] }
  0xc8   :  { %1791 = vmatmul.mubr.f32.gmra.mrb[82].mxu0 %v190_v14  ;;  %3912 = vmatprep.subr.bf16.mxu1 %v3911_v10  ;;  %v67_v10 = vld [vmem:[%s6702_s0 + $0x1a8] sm:$0xff]  ;;  %v69_v14 = vld [vmem:[%s6702_s0 + $0x1b8] sm:$0xff]  ;;  %v3959_v15 = vpack.c.bf16 %v737_v5, %v736_v4  ;;  %v712_v0 = vld [vmem:[%s6701_s1 + $0xcd0] sm:$0xff] }
  0xc9   :  { %1795 = vmatprep.mubr.f32.mxu0 %v223_v18  ;;  %3882 = vmatpush3.bf16.msra.mxu0 %v3881_v19  ;;  %v66_v18 = vld [vmem:[%s6702_s0 + $0x1a0] sm:$0xff]  ;;  %v3929_v19 = vpack.c.bf16 %v689_v9, %v688_v8  ;;  %v725_v47 = vld [vmem:[%s6701_s1 + $0xd38] sm:$0xff]  ;;  %v695_v60 = vld [vmem:[%s6701_s1 + $0xc48] sm:$0xff] }
  0xca   :  { %1901 = vmatmul.mubr.f32.gmra.mrb[82].mxu1 %v192_v17  ;;  %3884 = vmatprep.subr.bf16.mxu0 %v3883_v22  ;;  %v707_v17 = vld [vmem:[%s6701_s1 + $0xca8] sm:$0xff]  ;;  %v68_v22 = vld [vmem:[%s6702_s0 + $0x1b0] sm:$0xff]  ;;  %v713_v1 = vld [vmem:[%s6701_s1 + $0xcd8] sm:$0xff] }
  0xcb   :  { %1905 = vmatprep.mubr.f32.mxu1 %v225_v20  ;;  %3914 = vmatpush3.bf16.msra.mxu1 %v3913_v21  ;;  %v738_v20 = vld [vmem:[%s6701_s1 + $0xda0] sm:$0xff]  ;;  %v739_v21 = vld [vmem:[%s6701_s1 + $0xda8] sm:$0xff]  ;;  %v3931_v27 = vpack.c.bf16 %v707_v17, %v706_v16  ;;  %v745_v4 = vld [vmem:[%s6701_s1 + $0xdd8] sm:$0xff] }
  0xcc   :  { %1796 = vmatmul.mubr.f32.gmra.mrb[84].mxu0 %v222_v30  ;;  %3916 = vmatprep.subr.bf16.mxu1 %v3915_v26  ;;  %v99_v26 = vld [vmem:[%s6702_s0 + $0x2a8] sm:$0xff]  ;;  %v101_v30 = vld [vmem:[%s6702_s0 + $0x2b8] sm:$0xff]  ;;  %v3963_v31 = vpack.c.bf16 %v739_v21, %v738_v20  ;;  %v164_v5 = vld [vmem:[%s6702_s0 + $0x4b0] sm:$0xff] }
  0xcd   :  { %1800 = vmatprep.mubr.f32.mxu0 %v255_v34  ;;  %3886 = vmatpush3.bf16.msra.mxu0 %v3885_v35  ;;  %v98_v34 = vld [vmem:[%s6702_s0 + $0x2a0] sm:$0xff]  ;;  %v3933_v35 = vpack.c.bf16 %v691_v25, %v690_v24  ;;  %v727_v63 = vld [vmem:[%s6701_s1 + $0xd48] sm:$0xff]  ;;  %v197_v8 = vld [vmem:[%s6702_s0 + $0x5b8] sm:$0xff] }
  0xce   :  { %1906 = vmatmul.mubr.f32.gmra.mrb[84].mxu1 %v224_v33  ;;  %3888 = vmatprep.subr.bf16.mxu0 %v3887_v38  ;;  %v709_v33 = vld [vmem:[%s6701_s1 + $0xcb8] sm:$0xff]  ;;  %v100_v38 = vld [vmem:[%s6702_s0 + $0x2b0] sm:$0xff]  ;;  %v714_v16 = vld [vmem:[%s6701_s1 + $0xce0] sm:$0xff] }
  0xcf   :  { %1910 = vmatprep.mubr.f32.mxu1 %v257_v36  ;;  %3918 = vmatpush3.bf16.msra.mxu1 %v3917_v37  ;;  %v740_v36 = vld [vmem:[%s6701_s1 + $0xdb0] sm:$0xff]  ;;  %v741_v37 = vld [vmem:[%s6701_s1 + $0xdb8] sm:$0xff]  ;;  %v715_v17 = vld [vmem:[%s6701_s1 + $0xce8] sm:$0xff] }
  0xd0   :  { %1801 = vmatmul.mubr.f32.gmra.mrb[86].mxu0 %v254_v46  ;;  %3920 = vmatprep.subr.bf16.mxu1 %v3919_v42  ;;  %v3935_v42 = vpack.c.bf16 %v709_v33, %v708_v32  ;;  %v3967_v46 = vpack.c.bf16 %v741_v37, %v740_v36  ;;  %v697_v12 = vld [vmem:[%s6701_s1 + $0xc58] sm:$0xff]  ;;  %v728_v13 = vld [vmem:[%s6701_s1 + $0xd50] sm:$0xff]  ;;  %v747_v20 = vld [vmem:[%s6701_s1 + $0xde8] sm:$0xff] }
  0xd1   :  { %1805 = vmatprep.mubr.f32.mxu0 %v287_v50  ;;  %3890 = vmatpush3.bf16.msra.mxu0 %v3889_v51  ;;  %v130_v50 = vld [vmem:[%s6702_s0 + $0x3a0] sm:$0xff]  ;;  %v196_v21 = vld [vmem:[%s6702_s0 + $0x5b0] sm:$0xff]  ;;  %v229_v24 = vld [vmem:[%s6702_s0 + $0x6b8] sm:$0xff] }
  0xd2   :  { %1911 = vmatmul.mubr.f32.gmra.mrb[86].mxu1 %v256_v49  ;;  %3924 = vmatprep.subr.bf16.mxu0 %v3923_v54  ;;  %v711_v49 = vld [vmem:[%s6701_s1 + $0xcc8] sm:$0xff]  ;;  %v742_v51 = vld [vmem:[%s6701_s1 + $0xdc0] sm:$0xff]  ;;  %v716_v32 = vld [vmem:[%s6701_s1 + $0xcf0] sm:$0xff] }
  0xd3   :  { %1915 = vmatprep.mubr.f32.mxu1 %v289_v52  ;;  %3922 = vmatpush3.bf16.msra.mxu1 %v3921_v53  ;;  %v743_v52 = vld [vmem:[%s6701_s1 + $0xdc8] sm:$0xff]  ;;  %v132_v53 = vld [vmem:[%s6702_s0 + $0x3b0] sm:$0xff]  ;;  %v730_v29 = vld [vmem:[%s6701_s1 + $0xd60] sm:$0xff] }
  0xd4   :  { %1806 = vmatmul.mubr.f32.gmra.mrb[88].mxu0 %v286_v56  ;;  %3956 = vmatprep.subr.bf16.mxu1 %v3955_v55  ;;  %v163_v54 = vld [vmem:[%s6702_s0 + $0x4a8] sm:$0xff]  ;;  %v3937_v55 = vpack.c.bf16 %v693_v44, %v692_v43  ;;  %v165_v56 = vld [vmem:[%s6702_s0 + $0x4b8] sm:$0xff]  ;;  %v3971_v62 = vpack.c.bf16 %v743_v52, %v742_v51  ;;  %v228_v37 = vld [vmem:[%s6702_s0 + $0x6b0] sm:$0xff] }
  0xd5   :  { %1985 = vmatprep.mubr.f32.mxu0 %v35_v58  ;;  %v3939_v58 = vpack.c.bf16 %v711_v49, %v710_v48  ;;  %v699_v28 = vld [vmem:[%s6701_s1 + $0xc68] sm:$0xff]  ;;  %v717_v33 = vld [vmem:[%s6701_s1 + $0xcf8] sm:$0xff]  ;;  %v700_v43 = vld [vmem:[%s6701_s1 + $0xc70] sm:$0xff] }
  0xd6   :  { %1916 = vmatmul.mubr.f32.gmra.mrb[88].mxu1 %v288_v57  ;;  %v3969_v57 = vpack.c.bf16 %v725_v47, %v724_v45  ;;  %v749_v36 = vld [vmem:[%s6701_s1 + $0xdf8] sm:$0xff]  ;;  %v732_v45 = vld [vmem:[%s6701_s1 + $0xd70] sm:$0xff]  ;;  %v766_v48 = vld [vmem:[%s6701_s1 + $0xe80] sm:$0xff] }
  0xd7   :  { %2095 = vmatprep.mubr.f32.mxu1 %v37_v61  ;;  %v726_v61 = vld [vmem:[%s6701_s1 + $0xd40] sm:$0xff]  ;;  %v701_v44 = vld [vmem:[%s6701_s1 + $0xc78] sm:$0xff]  ;;  %v767_v49 = vld [vmem:[%s6701_s1 + $0xe88] sm:$0xff] }
  0xd8   :  { %1986 = vmatmul.mubr.f32.vlgmr.msra.gmra.mrb[90].mxu0 %v34_v2  ;;  %v162_v2 = vld [vmem:[%s6702_s0 + $0x4a0] sm:$0xff]  ;;  %v3973_v9 = vpack.c.bf16 %v727_v63, %v726_v61  ;;  %v733_v47 = vld [vmem:[%s6701_s1 + $0xd78] sm:$0xff]  ;;  %v799_v52 = vld [vmem:[%s6701_s1 + $0xf88] sm:$0xff] }
  0xd9   :  { %3926 = vmatpush3.bf16.msra.mxu0 %v3925_v3  ;;  %1990 = vmatprep.mubr.f32.mxu0 %v67_v10  ;;  %v744_v3 = vld [vmem:[%s6701_s1 + $0xdd0] sm:$0xff]  ;;  %v3943_v10 = vpack.c.bf16 %v713_v1, %v712_v0  ;;  %v798_v51 = vld [vmem:[%s6701_s1 + $0xf80] sm:$0xff]  ;;  %v751_v0 = vld [vmem:[%s6701_s1 + $0xe08] sm:$0xff] }
  0xda   :  { %2096 = vmatmul.mubr.f32.vlgmr.msra.gmra.mrb[90].mxu1 %v36_v6  ;;  %3928 = vmatprep.subr.bf16.mxu0 %v3927_v11  ;;  %v195_v6 = vld [vmem:[%s6702_s0 + $0x5a8] sm:$0xff]  ;;  %v696_v11 = vld [vmem:[%s6701_s1 + $0xc50] sm:$0xff]  ;;  %v750_v63 = vld [vmem:[%s6701_s1 + $0xe00] sm:$0xff] }
  0xdb   :  { %3958 = vmatpush3.bf16.msra.mxu1 %v3957_v7  ;;  %2100 = vmatprep.mubr.f32.mxu1 %v69_v14  ;;  %v3941_v7 = vpack.c.bf16 %v695_v60, %v694_v59  ;;  %v3975_v14 = vpack.c.bf16 %v745_v4, %v744_v3  ;;  %v4019_v59 = vpack.c.bf16 %v799_v52, %v798_v51  ;;  %v290_v60 = vld [vmem:[%s6702_s0 + $0x8a0] sm:$0xff]  ;;  %v292_v61 = vld [vmem:[%s6702_s0 + $0x8b0] sm:$0xff]  ;;  %v783_v4 = vld [vmem:[%s6701_s1 + $0xf08] sm:$0xff] }
  0xdc   :  { %1991 = vmatmul.mubr.f32.gmra.mrb[92].mxu0 %v66_v18  ;;  %3960 = vmatprep.subr.bf16.mxu1 %v3959_v15  ;;  %v729_v15 = vld [vmem:[%s6701_s1 + $0xd58] sm:$0xff]  ;;  %v194_v18 = vld [vmem:[%s6702_s0 + $0x5a0] sm:$0xff] }
  0xdd   :  { %3930 = vmatpush3.bf16.msra.mxu0 %v3929_v19  ;;  %1995 = vmatprep.mubr.f32.mxu0 %v99_v26  ;;  %v746_v19 = vld [vmem:[%s6701_s1 + $0xde0] sm:$0xff]  ;;  %v3977_v25 = vpack.c.bf16 %v729_v15, %v728_v13  ;;  %v3947_v26 = vpack.c.bf16 %v715_v17, %v714_v16  ;;  %v3989_v13 = vpack.c.bf16 %v751_v0, %v750_v63  ;;  %v801_v15 = vld [vmem:[%s6701_s1 + $0xf98] sm:$0xff]  ;;  %v40_v17 = vld [vmem:[%s6702_s0 + $0xd0] sm:$0xff] }
  0xde   :  { %2101 = vmatmul.mubr.f32.gmra.mrb[92].mxu1 %v68_v22  ;;  %3932 = vmatprep.subr.bf16.mxu0 %v3931_v27  ;;  %v227_v22 = vld [vmem:[%s6702_s0 + $0x6a8] sm:$0xff]  ;;  %v698_v27 = vld [vmem:[%s6701_s1 + $0xc60] sm:$0xff]  ;;  %v805_v63 = vld [vmem:[%s6701_s1 + $0xfb8] sm:$0xff] }
  0xdf   :  { %3962 = vmatpush3.bf16.msra.mxu1 %v3961_v23  ;;  %2105 = vmatprep.mubr.f32.mxu1 %v101_v30  ;;  %v3945_v23 = vpack.c.bf16 %v697_v12, %v696_v11  ;;  %v3979_v30 = vpack.c.bf16 %v747_v20, %v746_v19  ;;  %v782_v3 = vld [vmem:[%s6701_s1 + $0xf00] sm:$0xff]  ;;  %v752_v19 = vld [vmem:[%s6701_s1 + $0xe10] sm:$0xff]  ;;  %v753_v20 = vld [vmem:[%s6701_s1 + $0xe18] sm:$0xff] }
  0xe0   :  { %1996 = vmatmul.mubr.f32.gmra.mrb[94].mxu0 %v98_v34  ;;  %3964 = vmatprep.subr.bf16.mxu1 %v3963_v31  ;;  %v731_v31 = vld [vmem:[%s6701_s1 + $0xd68] sm:$0xff]  ;;  %v226_v34 = vld [vmem:[%s6702_s0 + $0x6a0] sm:$0xff] }
  0xe1   :  { %3934 = vmatpush3.bf16.msra.mxu0 %v3933_v35  ;;  %2000 = vmatprep.mubr.f32.mxu0 %v131_v39  ;;  %v748_v35 = vld [vmem:[%s6701_s1 + $0xdf0] sm:$0xff]  ;;  %v3949_v39 = vpack.c.bf16 %v699_v28, %v698_v27  ;;  %v38_v12 = vld [vmem:[%s6702_s0 + $0xc0] sm:$0xff] }
  0xe2   :  { %2106 = vmatmul.mubr.f32.gmra.mrb[94].mxu1 %v100_v38  ;;  %3936 = vmatprep.subr.bf16.mxu0 %v3935_v42  ;;  %v259_v38 = vld [vmem:[%s6702_s0 + $0x7a8] sm:$0xff]  ;;  %v3951_v42 = vpack.c.bf16 %v717_v33, %v716_v32 }
  0xe3   :  { %3966 = vmatpush3.bf16.msra.mxu1 %v3965_v40  ;;  %2110 = vmatprep.mubr.f32.mxu1 %v133_v41  ;;  %v261_v40 = vld [vmem:[%s6702_s0 + $0x7b8] sm:$0xff]  ;;  %v3981_v41 = vpack.c.bf16 %v731_v31, %v730_v29  ;;  %v770_v31 = vld [vmem:[%s6701_s1 + $0xea0] sm:$0xff]  ;;  %v771_v32 = vld [vmem:[%s6701_s1 + $0xea8] sm:$0xff] }
  0xe4   :  { %2001 = vmatmul.mubr.f32.gmra.mrb[96].mxu0 %v130_v50  ;;  %3968 = vmatprep.subr.bf16.mxu1 %v3967_v46  ;;  %v3983_v46 = vpack.c.bf16 %v749_v36, %v748_v35  ;;  %v258_v50 = vld [vmem:[%s6702_s0 + $0x7a0] sm:$0xff]  ;;  %v73_v29 = vld [vmem:[%s6702_s0 + $0x1d8] sm:$0xff] }
  0xe5   :  { %2005 = vmatprep.mubr.f32.mxu0 %v163_v54  ;;  %3938 = vmatpush3.bf16.msra.mxu0 %v3937_v55  ;;  %v291_v54 = vld [vmem:[%s6702_s0 + $0x8a8] sm:$0xff]  ;;  %v3953_v55 = vpack.c.bf16 %v701_v44, %v700_v43  ;;  %v70_v36 = vld [vmem:[%s6702_s0 + $0x1c0] sm:$0xff] }
  0xe6   :  { %2111 = vmatmul.mubr.f32.gmra.mrb[96].mxu1 %v132_v53  ;;  %3940 = vmatprep.subr.bf16.mxu0 %v3939_v58  ;;  %v260_v53 = vld [vmem:[%s6702_s0 + $0x7b0] sm:$0xff]  ;;  %v3987_v58 = vpack.c.bf16 %v767_v49, %v766_v48  ;;  %v754_v43 = vld [vmem:[%s6701_s1 + $0xe20] sm:$0xff]  ;;  %v755_v44 = vld [vmem:[%s6701_s1 + $0xe28] sm:$0xff]  ;;  %v3995_v48 = vpack.c.bf16 %v771_v32, %v770_v31 }
  0xe7   :  { %2115 = vmatprep.mubr.f32.mxu1 %v165_v56  ;;  %3970 = vmatpush3.bf16.msra.mxu1 %v3969_v57  ;;  %v293_v56 = vld [vmem:[%s6702_s0 + $0x8b8] sm:$0xff]  ;;  %v3985_v57 = vpack.c.bf16 %v733_v47, %v732_v45  ;;  %v103_v47 = vld [vmem:[%s6702_s0 + $0x2c8] sm:$0xff]  ;;  %v786_v49 = vld [vmem:[%s6701_s1 + $0xf20] sm:$0xff] }
  0xe8   :  { %2006 = vmatmul.mubr.f32.gmra.mrb[98].mxu0 %v162_v2  ;;  %3972 = vmatprep.subr.bf16.mxu1 %v3971_v62  ;;  %v39_v62 = vld [vmem:[%s6702_s0 + $0xc8] sm:$0xff]  ;;  %v41_v2 = vld [vmem:[%s6702_s0 + $0xd8] sm:$0xff] }
  0xe9   :  { %2010 = vmatprep.mubr.f32.mxu0 %v195_v6  ;;  %3942 = vmatpush3.bf16.msra.mxu0 %v3941_v7 }
  0xea   :  { %2116 = vmatmul.mubr.f32.gmra.mrb[98].mxu1 %v164_v5  ;;  %3944 = vmatprep.subr.bf16.mxu0 %v3943_v10  ;;  %v6096_v5 = vld [vmem:[%s6703_s2] ss:$0 sm:$0xff] }
  0xeb   :  { %2120 = vmatprep.mubr.f32.mxu1 %v197_v8  ;;  %3974 = vmatpush3.bf16.msra.mxu1 %v3973_v9  ;;  %v768_v8 = vld [vmem:[%s6701_s1 + $0xe90] sm:$0xff]  ;;  %v769_v9 = vld [vmem:[%s6701_s1 + $0xe98] sm:$0xff] }
  0xec   :  { %2011 = vmatmul.mubr.f32.gmra.mrb[100].mxu0 %v194_v18  ;;  %3976 = vmatprep.subr.bf16.mxu1 %v3975_v14  ;;  %v800_v14 = vld [vmem:[%s6701_s1 + $0xf90] sm:$0xff]  ;;  %v4021_v18 = vpack.c.bf16 %v783_v4, %v782_v3  ;;  %v137_v4 = vld [vmem:[%s6702_s0 + $0x3d8] sm:$0xff] }
  0xed   :  { %2015 = vmatprep.mubr.f32.mxu0 %v227_v22  ;;  %3946 = vmatpush3.bf16.msra.mxu0 %v3945_v23  ;;  %v71_v23 = vld [vmem:[%s6702_s0 + $0x1c8] sm:$0xff] }
  0xee   :  { %2121 = vmatmul.mubr.f32.gmra.mrb[100].mxu1 %v196_v21  ;;  %3948 = vmatprep.subr.bf16.mxu0 %v3947_v26  ;;  %v785_v26 = vld [vmem:[%s6701_s1 + $0xf18] sm:$0xff] }
  0xef   :  { %2125 = vmatprep.mubr.f32.mxu1 %v229_v24  ;;  %3978 = vmatpush3.bf16.msra.mxu1 %v3977_v25  ;;  %v3991_v24 = vpack.c.bf16 %v769_v9, %v768_v8  ;;  %v784_v25 = vld [vmem:[%s6701_s1 + $0xf10] sm:$0xff] }
  0xf0   :  { %2016 = vmatmul.mubr.f32.gmra.mrb[102].mxu0 %v226_v34  ;;  %3980 = vmatprep.subr.bf16.mxu1 %v3979_v30  ;;  %v4023_v30 = vpack.c.bf16 %v801_v15, %v800_v14  ;;  %v756_v9 = vld [vmem:[%s6701_s1 + $0xe30] sm:$0xff]  ;;  %v789_v15 = vld [vmem:[%s6701_s1 + $0xf38] sm:$0xff] }
  0xf1   :  { %2020 = vmatprep.mubr.f32.mxu0 %v259_v38  ;;  %3950 = vmatpush3.bf16.msra.mxu0 %v3949_v39  ;;  %v802_v38 = vld [vmem:[%s6701_s1 + $0xfa0] sm:$0xff]  ;;  %v803_v39 = vld [vmem:[%s6701_s1 + $0xfa8] sm:$0xff] }
  0xf2   :  { %2126 = vmatmul.mubr.f32.gmra.mrb[102].mxu1 %v228_v37  ;;  %3952 = vmatprep.subr.bf16.mxu0 %v3951_v42  ;;  %v3993_v37 = vpack.c.bf16 %v753_v20, %v752_v19  ;;  %v4025_v42 = vpack.c.bf16 %v785_v26, %v784_v25  ;;  %v136_v25 = vld [vmem:[%s6702_s0 + $0x3d0] sm:$0xff]  ;;  %v167_v26 = vld [vmem:[%s6702_s0 + $0x4c8] sm:$0xff] }
  0xf3   :  { %2130 = vmatprep.mubr.f32.mxu1 %v261_v40  ;;  %3982 = vmatpush3.bf16.msra.mxu1 %v3981_v41  ;;  %v72_v41 = vld [vmem:[%s6702_s0 + $0x1d0] sm:$0xff] }
  0xf4   :  { %2021 = vmatmul.mubr.f32.gmra.mrb[104].mxu0 %v258_v50  ;;  %3984 = vmatprep.subr.bf16.mxu1 %v3983_v46  ;;  %v787_v50 = vld [vmem:[%s6701_s1 + $0xf28] sm:$0xff] }
  0xf5   :  { %2025 = vmatprep.mubr.f32.mxu0 %v291_v54  ;;  %3954 = vmatpush3.bf16.msra.mxu0 %v3953_v55  ;;  %v4027_v54 = vpack.c.bf16 %v803_v39, %v802_v38  ;;  %v772_v55 = vld [vmem:[%s6701_s1 + $0xeb0] sm:$0xff]  ;;  %v4029_v3 = vpack.c.bf16 %v787_v50, %v786_v49 }
  0xf6   :  { %2131 = vmatmul.mubr.f32.gmra.mrb[104].mxu1 %v260_v53  ;;  %3988 = vmatprep.subr.bf16.mxu0 %v3987_v58  ;;  %v105_v53 = vld [vmem:[%s6702_s0 + $0x2d8] sm:$0xff]  ;;  %v168_v50 = vld [vmem:[%s6702_s0 + $0x4d0] sm:$0xff] }
  0xf7   :  { %2135 = vmatprep.mubr.f32.mxu1 %v293_v56  ;;  %v2627_v1 = vpop.f32.mrb[0].mxu0  ;;  %3986 = vmatpush3.bf16.msra.mxu1 %v3985_v57  ;;  %v773_v56 = vld [vmem:[%s6701_s1 + $0xeb8] sm:$0xff] }
  0xf8   :  { %v2628_v6 = vpop.f32.mrb[1].mxu0  ;;  %2026 = vmatmul.mubr.f32.gmra.mrb[106].mxu0 %v290_v60  ;;  %4020 = vmatprep.subr.bf16.mxu1 %v4019_v59  ;;  %v102_v60 = vld [vmem:[%s6702_s0 + $0x2c0] sm:$0xff]  ;;  %v3999_v8 = vpack.c.bf16 %v773_v56, %v772_v55 }
  0xf9   :  { %v2686_v7 = vpop.f32.mrb[0].mxu1  ;;  %v2629_v10 = vadd.f32 %v2628_v6, %v2627_v1  ;;  %2205 = vmatprep.mubr.f32.mxu0 %v39_v62  ;;  %v804_v62 = vld [vmem:[%s6701_s1 + $0xfb0] sm:$0xff] }
  0xfa   :  { %v2687_v11 = vpop.f32.mrb[1].mxu1  ;;  %2136 = vmatmul.mubr.f32.gmra.mrb[106].mxu1 %v292_v61  ;;  %v3997_v61 = vpack.c.bf16 %v755_v44, %v754_v43  ;;  %v104_v1 = vld [vmem:[%s6702_s0 + $0x2d0] sm:$0xff]  ;;  %v4031_v14 = vpack.c.bf16 %v805_v63, %v804_v62 }
  0xfb   :  { %v2688_v16 = vadd.f32 %v2687_v11, %v2686_v7  ;;  %2315 = vmatprep.mubr.f32.mxu1 %v41_v2  ;;  %v888_v21 = vadd.f32 %v2629_v10, %v6096_v5  ;;  %v2630_v22 = vpop.f32.mrb[2].mxu0  ;;  %v135_v2 = vld [vmem:[%s6702_s0 + $0x3c8] sm:$0xff]  ;;  %v757_v10 = vld [vmem:[%s6701_s1 + $0xe38] sm:$0xff]  ;;  %v788_v11 = vld [vmem:[%s6701_s1 + $0xf30] sm:$0xff] }
  0xfc   :  { %v2631_v27 = vpop.f32.mrb[3].mxu0  ;;  %2206 = vmatmul.mubr.f32.vlgmr.msra.gmra.mrb[108].mxu0 %v38_v12  ;;  %v4033_v31 = vpack.c.bf16 %v789_v15, %v788_v11  ;;  %v233_v15 = vld [vmem:[%s6702_s0 + $0x6d8] sm:$0xff] }
  0xfd   :  { %v2689_v28 = vpop.f32.mrb[2].mxu1  ;;  %v6141_v33 = vadd.f32 %v2688_v16, %v888_v21  ;;  %v2632_v34 = vadd.f32 %v2631_v27, %v2630_v22  ;;  %3990 = vmatpush3.bf16.msra.mxu0 %v3989_v13  ;;  %2210 = vmatprep.mubr.f32.mxu0 %v71_v23  ;;  %v774_v16 = vld [vmem:[%s6701_s1 + $0xec0] sm:$0xff]  ;;  %v807_v23 = vld [vmem:[%s6701_s1 + $0xfc8] sm:$0xff]  ;;  %v4001_v27 = vpack.c.bf16 %v757_v10, %v756_v9 }
  0xfe   :  { %v2690_v35 = vpop.f32.mrb[3].mxu1  ;;  %2316 = vmatmul.mubr.f32.vlgmr.msra.gmra.mrb[108].mxu1 %v40_v17  ;;  %3992 = vmatprep.subr.bf16.mxu0 %v3991_v24  ;;  %v775_v17 = vld [vmem:[%s6701_s1 + $0xec8] sm:$0xff]  ;;  %v134_v21 = vld [vmem:[%s6702_s0 + $0x3c0] sm:$0xff] }
  0xff   :  { %v2691_v40 = vadd.f32 %v2690_v35, %v2689_v28  ;;  %4022 = vmatpush3.bf16.msra.mxu1 %v4021_v18  ;;  %v893_v45 = vadd.f32 %v2632_v34, %v6096_v5  ;;  %v2633_v46 = vpop.f32.mrb[4].mxu0  ;;  %2320 = vmatprep.mubr.f32.mxu1 %v73_v29  ;;  %v806_v22 = vld [vmem:[%s6701_s1 + $0xfc0] sm:$0xff]  ;;  %v169_v28 = vld [vmem:[%s6702_s0 + $0x4d8] sm:$0xff]  ;;  %v4003_v32 = vpack.c.bf16 %v775_v17, %v774_v16  ;;  %v759_v35 = vld [vmem:[%s6701_s1 + $0xe48] sm:$0xff] }
 0x100   :  { %v2634_v51 = vpop.f32.mrb[5].mxu0  ;;  %2211 = vmatmul.mubr.f32.gmra.mrb[110].mxu0 %v70_v36  ;;  %4024 = vmatprep.subr.bf16.mxu1 %v4023_v30  ;;  %v758_v34 = vld [vmem:[%s6701_s1 + $0xe40] sm:$0xff]  ;;  %v4035_v39 = vpack.c.bf16 %v807_v23, %v806_v22  ;;  %v811_v10 = vld [vmem:[%s6701_s1 + $0xfe8] sm:$0xff] }
 0x101   :  { %v2692_v52 = vpop.f32.mrb[4].mxu1  ;;  %v6180_v57 = vadd.f32 %v2691_v40, %v893_v45  ;;  %v2635_v58 = vadd.f32 %v2634_v51, %v2633_v46  ;;  %3994 = vmatpush3.bf16.msra.mxu0 %v3993_v37  ;;  %2215 = vmatprep.mubr.f32.mxu0 %v103_v47  ;;  %v790_v36 = vld [vmem:[%s6701_s1 + $0xf40] sm:$0xff]  ;;  %v791_v40 = vld [vmem:[%s6701_s1 + $0xf48] sm:$0xff]  ;;  %v808_v47 = vld [vmem:[%s6701_s1 + $0xfd0] sm:$0xff] }
 0x102   :  { %v2693_v59 = vpop.f32.mrb[5].mxu1  ;;  %2321 = vmatmul.mubr.f32.gmra.mrb[110].mxu1 %v72_v41  ;;  %3996 = vmatprep.subr.bf16.mxu0 %v3995_v48  ;;  %v776_v41 = vld [vmem:[%s6701_s1 + $0xed0] sm:$0xff]  ;;  %v166_v46 = vld [vmem:[%s6702_s0 + $0x4c0] sm:$0xff]  ;;  %v809_v48 = vld [vmem:[%s6701_s1 + $0xfd8] sm:$0xff]  ;;  %v4037_v56 = vpack.c.bf16 %v791_v40, %v790_v36 }
 0x103   :  { %v2694_v0 = vadd.f32 %v2693_v59, %v2692_v52  ;;  %4026 = vmatpush3.bf16.msra.mxu1 %v4025_v42  ;;  %v898_v6 = vadd.f32 %v2635_v58, %v6096_v5  ;;  %v2636_v7 = vpop.f32.mrb[6].mxu0  ;;  %2325 = vmatprep.mubr.f32.mxu1 %v105_v53  ;;  %v777_v42 = vld [vmem:[%s6701_s1 + $0xed8] sm:$0xff]  ;;  %v199_v51 = vld [vmem:[%s6702_s0 + $0x5c8] sm:$0xff]  ;;  %v4005_v52 = vpack.c.bf16 %v759_v35, %v758_v34  ;;  %v760_v59 = vld [vmem:[%s6701_s1 + $0xe50] sm:$0xff] }
 0x104   :  { %v2637_v12 = vpop.f32.mrb[7].mxu0  ;;  %2216 = vmatmul.mubr.f32.gmra.mrb[112].mxu0 %v102_v60  ;;  %4028 = vmatprep.subr.bf16.mxu1 %v4027_v54  ;;  %v201_v53 = vld [vmem:[%s6702_s0 + $0x5d8] sm:$0xff]  ;;  %v4007_v58 = vpack.c.bf16 %v777_v42, %v776_v41  ;;  %v810_v9 = vld [vmem:[%s6701_s1 + $0xfe0] sm:$0xff]  ;;  %v763_v22 = vld [vmem:[%s6701_s1 + $0xe68] sm:$0xff] }
 0x105   :  { %v2695_v13 = vpop.f32.mrb[6].mxu1  ;;  %v6219_v18 = vadd.f32 %v2694_v0, %v898_v6  ;;  %v2638_v19 = vadd.f32 %v2637_v12, %v2636_v7  ;;  %3998 = vmatpush3.bf16.msra.mxu0 %v3997_v61  ;;  %2220 = vmatprep.mubr.f32.mxu0 %v135_v2  ;;  %v761_v60 = vld [vmem:[%s6701_s1 + $0xe58] sm:$0xff]  ;;  %v792_v61 = vld [vmem:[%s6701_s1 + $0xf50] sm:$0xff]  ;;  %v4039_v0 = vpack.c.bf16 %v809_v48, %v808_v47  ;;  %v778_v2 = vld [vmem:[%s6701_s1 + $0xee0] sm:$0xff] }
 0x106   :  { %v2696_v20 = vpop.f32.mrb[7].mxu1  ;;  %2326 = vmatmul.mubr.f32.gmra.mrb[112].mxu1 %v104_v1  ;;  %4000 = vmatprep.subr.bf16.mxu0 %v3999_v8  ;;  %v793_v1 = vld [vmem:[%s6701_s1 + $0xf58] sm:$0xff]  ;;  %v198_v8 = vld [vmem:[%s6702_s0 + $0x5c0] sm:$0xff]  ;;  %v200_v12 = vld [vmem:[%s6702_s0 + $0x5d0] sm:$0xff] }
 0x107   :  { %v2697_v24 = vadd.f32 %v2696_v20, %v2695_v13  ;;  %4030 = vmatpush3.bf16.msra.mxu1 %v4029_v3  ;;  %v903_v29 = vadd.f32 %v2638_v19, %v6096_v5  ;;  %v2639_v30 = vpop.f32.mrb[8].mxu0  ;;  %2330 = vmatprep.mubr.f32.mxu1 %v137_v4  ;;  %v779_v3 = vld [vmem:[%s6701_s1 + $0xee8] sm:$0xff]  ;;  %v4041_v19 = vpack.c.bf16 %v793_v1, %v792_v61  ;;  %v794_v23 = vld [vmem:[%s6701_s1 + $0xf60] sm:$0xff]  ;;  %v812_v35 = vld [vmem:[%s6701_s1 + $0xff0] sm:$0xff] }
 0x108   :  { %v2640_v37 = vpop.f32.mrb[9].mxu0  ;;  %2221 = vmatmul.mubr.f32.gmra.mrb[114].mxu0 %v134_v21  ;;  %4032 = vmatprep.subr.bf16.mxu1 %v4031_v14  ;;  %v231_v13 = vld [vmem:[%s6702_s0 + $0x6c8] sm:$0xff]  ;;  %v4009_v14 = vpack.c.bf16 %v761_v60, %v760_v59  ;;  %v4011_v20 = vpack.c.bf16 %v779_v3, %v778_v2  ;;  %v762_v21 = vld [vmem:[%s6701_s1 + $0xe60] sm:$0xff]  ;;  %v813_v36 = vld [vmem:[%s6701_s1 + $0xff8] sm:$0xff] }
 0x109   :  { %v2698_v38 = vpop.f32.mrb[8].mxu1  ;;  %v6258_v43 = vadd.f32 %v2697_v24, %v903_v29  ;;  %v2641_v44 = vadd.f32 %v2640_v37, %v2639_v30  ;;  %2225 = vmatprep.mubr.f32.mxu0 %v167_v26  ;;  %4002 = vmatpush3.bf16.msra.mxu0 %v4001_v27  ;;  %v4043_v26 = vpack.c.bf16 %v811_v10, %v810_v9  ;;  %v795_v27 = vld [vmem:[%s6701_s1 + $0xf68] sm:$0xff]  ;;  %v781_v29 = vld [vmem:[%s6701_s1 + $0xef8] sm:$0xff]  ;;  %v230_v34 = vld [vmem:[%s6702_s0 + $0x6c0] sm:$0xff] }
 0x10a   :  { %v2699_v45 = vpop.f32.mrb[9].mxu1  ;;  %2331 = vmatmul.mubr.f32.gmra.mrb[114].mxu1 %v136_v25  ;;  %4004 = vmatprep.subr.bf16.mxu0 %v4003_v32  ;;  %v4013_v40 = vpack.c.bf16 %v763_v22, %v762_v21  ;;  %v764_v47 = vld [vmem:[%s6701_s1 + $0xe70] sm:$0xff]  ;;  %v765_v48 = vld [vmem:[%s6701_s1 + $0xe78] sm:$0xff]  ;;  %v295_v61 = vld [vmem:[%s6702_s0 + $0x8c8] sm:$0xff] }
 0x10b   :  { %v2700_v49 = vadd.f32 %v2699_v45, %v2698_v38  ;;  %2335 = vmatprep.mubr.f32.mxu1 %v169_v28  ;;  %v908_v54 = vadd.f32 %v2641_v44, %v6096_v5  ;;  %v2642_v55 = vpop.f32.mrb[10].mxu0  ;;  %4034 = vmatpush3.bf16.msra.mxu1 %v4033_v31  ;;  %v780_v28 = vld [vmem:[%s6701_s1 + $0xef0] sm:$0xff]  ;;  %v265_v44 = vld [vmem:[%s6702_s0 + $0x7d8] sm:$0xff]  ;;  %v4045_v45 = vpack.c.bf16 %v795_v27, %v794_v23  ;;  %v294_v10 = vld [vmem:[%s6702_s0 + $0x8c0] sm:$0xff] }
 0x10c   :  { %v2643_v62 = vpop.f32.mrb[11].mxu0  ;;  %2226 = vmatmul.mubr.f32.gmra.mrb[116].mxu0 %v166_v46  ;;  %4036 = vmatprep.subr.bf16.mxu1 %v4035_v39  ;;  %v232_v38 = vld [vmem:[%s6702_s0 + $0x6d0] sm:$0xff]  ;;  %v263_v39 = vld [vmem:[%s6702_s0 + $0x7c8] sm:$0xff]  ;;  %v4015_v46 = vpack.c.bf16 %v781_v29, %v780_v28  ;;  %v297_v1 = vld [vmem:[%s6702_s0 + $0x8d8] sm:$0xff] }
 0x10d   :  { %v2701_v63 = vpop.f32.mrb[10].mxu1  ;;  %v6297_v4 = vadd.f32 %v2700_v49, %v908_v54  ;;  %v2644_v6 = vadd.f32 %v2643_v62, %v2642_v55  ;;  %2230 = vmatprep.mubr.f32.mxu0 %v199_v51  ;;  %4006 = vmatpush3.bf16.msra.mxu0 %v4005_v52  ;;  %v4047_v51 = vpack.c.bf16 %v813_v36, %v812_v35  ;;  %v796_v52 = vld [vmem:[%s6701_s1 + $0xf70] sm:$0xff]  ;;  %v42_v23 = vld [vmem:[%s6702_s0 + $0xe0] sm:$0xff]  ;;  %v77_v28 = vld [vmem:[%s6702_s0 + $0x1f8] sm:$0xff] }
 0x10e   :  { %v2702_v7 = vpop.f32.mrb[11].mxu1  ;;  %2336 = vmatmul.mubr.f32.gmra.mrb[116].mxu1 %v168_v50  ;;  %4008 = vmatprep.subr.bf16.mxu0 %v4007_v58  ;;  %v262_v58 = vld [vmem:[%s6702_s0 + $0x7c0] sm:$0xff]  ;;  %v264_v60 = vld [vmem:[%s6702_s0 + $0x7d0] sm:$0xff]  ;;  %v4017_v62 = vpack.c.bf16 %v765_v48, %v764_v47 }
 0x10f   :  { %v2703_v11 = vadd.f32 %v2702_v7, %v2701_v63  ;;  %2340 = vmatprep.mubr.f32.mxu1 %v201_v53  ;;  %v913_v16 = vadd.f32 %v2644_v6, %v6096_v5  ;;  %v2645_v17 = vpop.f32.mrb[12].mxu0  ;;  %4038 = vmatpush3.bf16.msra.mxu1 %v4037_v56  ;;  %v797_v53 = vld [vmem:[%s6701_s1 + $0xf78] sm:$0xff]  ;;  %v74_v36 = vld [vmem:[%s6702_s0 + $0x1e0] sm:$0xff] }
 0x110   :  { %v2646_v24 = vpop.f32.mrb[13].mxu0  ;;  %2231 = vmatmul.mubr.f32.gmra.mrb[118].mxu0 %v198_v8  ;;  %4040 = vmatprep.subr.bf16.mxu1 %v4039_v0  ;;  %v4049_v2 = vpack.c.bf16 %v797_v53, %v796_v52  ;;  %v106_v48 = vld [vmem:[%s6702_s0 + $0x2e0] sm:$0xff]  ;;  %v141_v53 = vld [vmem:[%s6702_s0 + $0x3f8] sm:$0xff] }
 0x111   :  { %v2704_v25 = vpop.f32.mrb[12].mxu1  ;;  %v6336_v30 = vadd.f32 %v2703_v11, %v913_v16  ;;  %v2647_v31 = vadd.f32 %v2646_v24, %v2645_v17  ;;  %2235 = vmatprep.mubr.f32.mxu0 %v231_v13  ;;  %4010 = vmatpush3.bf16.msra.mxu0 %v4009_v14  ;;  %v43_v13 = vld [vmem:[%s6702_s0 + $0xe8] sm:$0xff]  ;;  %v45_v16 = vld [vmem:[%s6702_s0 + $0xf8] sm:$0xff]  ;;  %v44_v24 = vld [vmem:[%s6702_s0 + $0xf0] sm:$0xff] }
 0x112   :  { %v2705_v32 = vpop.f32.mrb[13].mxu1  ;;  %2341 = vmatmul.mubr.f32.gmra.mrb[118].mxu1 %v200_v12  ;;  %4012 = vmatprep.subr.bf16.mxu0 %v4011_v20  ;;  %v296_v12 = vld [vmem:[%s6702_s0 + $0x8d0] sm:$0xff] }
 0x113   :  { %v2706_v37 = vadd.f32 %v2705_v32, %v2704_v25  ;;  %2345 = vmatprep.mubr.f32.mxu1 %v233_v15  ;;  %v918_v41 = vadd.f32 %v2647_v31, %v6096_v5  ;;  %v2648_v42 = vpop.f32.mrb[14].mxu0  ;;  %4042 = vmatpush3.bf16.msra.mxu1 %v4041_v19  ;;  %v75_v25 = vld [vmem:[%s6702_s0 + $0x1e8] sm:$0xff] }
 0x114   :  { %v2649_v49 = vpop.f32.mrb[15].mxu0  ;;  %2236 = vmatmul.mubr.f32.gmra.mrb[120].mxu0 %v230_v34  ;;  %4044 = vmatprep.subr.bf16.mxu1 %v4043_v26 }
 0x115   :  { %v2707_v50 = vpop.f32.mrb[14].mxu1  ;;  %v6369_v54 = vadd.f32 %v2706_v37, %v918_v41  ;;  %v2650_v55 = vadd.f32 %v2649_v49, %v2648_v42  ;;  %2240 = vmatprep.mubr.f32.mxu0 %v263_v39  ;;  %4014 = vmatpush3.bf16.msra.mxu0 %v4013_v40  ;;  %v109_v41 = vld [vmem:[%s6702_s0 + $0x2f8] sm:$0xff] }
 0x116   :  { %v2708_v56 = vpop.f32.mrb[15].mxu1  ;;  %2346 = vmatmul.mubr.f32.gmra.mrb[120].mxu1 %v232_v38  ;;  %4016 = vmatprep.subr.bf16.mxu0 %v4015_v46  ;;  %v107_v38 = vld [vmem:[%s6702_s0 + $0x2e8] sm:$0xff] }
 0x117   :  { %v2709_v59 = vadd.f32 %v2708_v56, %v2707_v50  ;;  %2350 = vmatprep.mubr.f32.mxu1 %v265_v44  ;;  %v923_v63 = vadd.f32 %v2650_v55, %v6096_v5  ;;  %v2651_v0 = vpop.f32.mrb[16].mxu0  ;;  %4046 = vmatpush3.bf16.msra.mxu1 %v4045_v45  ;;  %v139_v50 = vld [vmem:[%s6702_s0 + $0x3e8] sm:$0xff] }
 0x118   :  { %v2652_v3 = vpop.f32.mrb[17].mxu0  ;;  %2241 = vmatmul.mubr.f32.gmra.mrb[122].mxu0 %v262_v58  ;;  %4048 = vmatprep.subr.bf16.mxu1 %v4047_v51 }
 0x119   :  { %v2710_v6 = vpop.f32.mrb[16].mxu1  ;;  %v6384_v7 = vadd.f32 %v2709_v59, %v923_v63  ;;  %v2653_v8 = vadd.f32 %v2652_v3, %v2651_v0  ;;  %2245 = vmatprep.mubr.f32.mxu0 %v295_v61  ;;  %4018 = vmatpush3.bf16.msra.mxu0 %v4017_v62  ;;  %v138_v61 = vld [vmem:[%s6702_s0 + $0x3e0] sm:$0xff]  ;;  %v171_v63 = vld [vmem:[%s6702_s0 + $0x4e8] sm:$0xff] }
 0x11a   :  { %v2711_v9 = vpop.f32.mrb[17].mxu1  ;;  %2351 = vmatmul.mubr.f32.gmra.mrb[122].mxu1 %v264_v60 }
 0x11b   :  { %v2712_v11 = vadd.f32 %v2711_v9, %v2710_v6  ;;  %2355 = vmatprep.mubr.f32.mxu1 %v297_v1  ;;  %v928_v14 = vadd.f32 %v2653_v8, %v6096_v5  ;;  %v2745_v15 = vpop.f32.mrb[18].mxu0  ;;  %4050 = vmatpush3.bf16.msra.mxu1 %v4049_v2  ;;  %v173_v2 = vld [vmem:[%s6702_s0 + $0x4f8] sm:$0xff] }
 0x11c   :  { %v2746_v17 = vpop.f32.mrb[19].mxu0  ;;  %2246 = vmatmul.mubr.f32.gmra.mrb[124].mxu0 %v294_v10 }
 0x11d   :  { %v2804_v19 = vpop.f32.mrb[18].mxu1  ;;  %v6399_v20 = vadd.f32 %v2712_v11, %v928_v14  ;;  %v2747_v21 = vadd.f32 %v2746_v17, %v2745_v15  ;;  %2425 = vmatprep.mubr.f32.mxu0 %v43_v13  ;;  %v170_v11 = vld [vmem:[%s6702_s0 + $0x4e0] sm:$0xff]  ;;  %v203_v13 = vld [vmem:[%s6702_s0 + $0x5e8] sm:$0xff] }
 0x11e   :  { %v2805_v22 = vpop.f32.mrb[19].mxu1  ;;  %2356 = vmatmul.mubr.f32.gmra.mrb[124].mxu1 %v296_v12 }
 0x11f   :  { %v2806_v5 = vadd.f32 %v2805_v22, %v2804_v19  ;;  %2535 = vmatprep.mubr.f32.mxu1 %v45_v16  ;;  %v1108_v26 = vadd.f32 %v2747_v21, %v6141_v33  ;;  %v2748_v27 = vpop.f32.mrb[20].mxu0  ;;  %v76_v33 = vld [vmem:[%s6702_s0 + $0x1f0] sm:$0xff]  ;;  %v205_v16 = vld [vmem:[%s6702_s0 + $0x5f8] sm:$0xff] }
 0x120   :  { %v2749_v29 = vpop.f32.mrb[21].mxu0  ;;  %2426 = vmatmul.mubr.f32.vlgmr.msra.gmra.mrb[126].mxu0 %v42_v23 }
 0x121   :  { %v2807_v31 = vpop.f32.mrb[20].mxu1  ;;  %v6414_v32 = vadd.f32 %v2806_v5, %v1108_v26  ;;  %v2750_v34 = vadd.f32 %v2749_v29, %v2748_v27  ;;  %2430 = vmatprep.mubr.f32.mxu0 %v75_v25  ;;  %v202_v5 = vld [vmem:[%s6702_s0 + $0x5e0] sm:$0xff]  ;;  %v235_v25 = vld [vmem:[%s6702_s0 + $0x6e8] sm:$0xff] }
 0x122   :  { %v2808_v35 = vpop.f32.mrb[21].mxu1  ;;  %2536 = vmatmul.mubr.f32.vlgmr.msra.gmra.mrb[126].mxu1 %v44_v24 }
 0x123   :  { %v2809_v37 = vadd.f32 %v2808_v35, %v2807_v31  ;;  %2540 = vmatprep.mubr.f32.mxu1 %v77_v28  ;;  %v1113_v39 = vadd.f32 %v2750_v34, %v6180_v57  ;;  %v2751_v40 = vpop.f32.mrb[22].mxu0  ;;  %v108_v57 = vld [vmem:[%s6702_s0 + $0x2f0] sm:$0xff]  ;;  %v237_v28 = vld [vmem:[%s6702_s0 + $0x6f8] sm:$0xff] }
 0x124   :  { %v2752_v42 = vpop.f32.mrb[23].mxu0  ;;  %2431 = vmatmul.mubr.f32.gmra.mrb[128].mxu0 %v74_v36 }
 0x125   :  { %v2810_v44 = vpop.f32.mrb[22].mxu1  ;;  %v6429_v45 = vadd.f32 %v2809_v37, %v1113_v39  ;;  %v2753_v46 = vadd.f32 %v2752_v42, %v2751_v40  ;;  %2435 = vmatprep.mubr.f32.mxu0 %v107_v38  ;;  %v234_v37 = vld [vmem:[%s6702_s0 + $0x6e0] sm:$0xff]  ;;  %v267_v38 = vld [vmem:[%s6702_s0 + $0x7e8] sm:$0xff] }
 0x126   :  { %v2811_v47 = vpop.f32.mrb[23].mxu1  ;;  %2541 = vmatmul.mubr.f32.gmra.mrb[128].mxu1 %v76_v33 }
 0x127   :  { %v2812_v49 = vadd.f32 %v2811_v47, %v2810_v44  ;;  %2545 = vmatprep.mubr.f32.mxu1 %v109_v41  ;;  %v1118_v51 = vadd.f32 %v2753_v46, %v6219_v18  ;;  %v2754_v52 = vpop.f32.mrb[24].mxu0  ;;  %v140_v18 = vld [vmem:[%s6702_s0 + $0x3f0] sm:$0xff]  ;;  %v269_v41 = vld [vmem:[%s6702_s0 + $0x7f8] sm:$0xff] }
 0x128   :  { %v2755_v55 = vpop.f32.mrb[25].mxu0  ;;  %2436 = vmatmul.mubr.f32.gmra.mrb[130].mxu0 %v106_v48 }
 0x129   :  { %v2813_v56 = vpop.f32.mrb[24].mxu1  ;;  %v6444_v58 = vadd.f32 %v2812_v49, %v1118_v51  ;;  %v2756_v59 = vadd.f32 %v2755_v55, %v2754_v52  ;;  %2440 = vmatprep.mubr.f32.mxu0 %v139_v50  ;;  %v266_v49 = vld [vmem:[%s6702_s0 + $0x7e0] sm:$0xff]  ;;  %v299_v50 = vld [vmem:[%s6702_s0 + $0x8e8] sm:$0xff] }
 0x12a   :  { %v2814_v60 = vpop.f32.mrb[25].mxu1  ;;  %2546 = vmatmul.mubr.f32.gmra.mrb[130].mxu1 %v108_v57 }
 0x12b   :  { %v2815_v62 = vadd.f32 %v2814_v60, %v2813_v56  ;;  %2550 = vmatprep.mubr.f32.mxu1 %v141_v53  ;;  %v1123_v0 = vadd.f32 %v2756_v59, %v6258_v43  ;;  %v2757_v1 = vpop.f32.mrb[26].mxu0  ;;  %v172_v43 = vld [vmem:[%s6702_s0 + $0x4f0] sm:$0xff]  ;;  %v301_v53 = vld [vmem:[%s6702_s0 + $0x8f8] sm:$0xff] }
 0x12c   :  { %v2758_v3 = vpop.f32.mrb[27].mxu0  ;;  %2441 = vmatmul.mubr.f32.gmra.mrb[132].mxu0 %v138_v61 }
 0x12d   :  { %v2816_v6 = vpop.f32.mrb[26].mxu1  ;;  %v6459_v8 = vadd.f32 %v2815_v62, %v1123_v0  ;;  %v2759_v9 = vadd.f32 %v2758_v3, %v2757_v1  ;;  %2445 = vmatprep.mubr.f32.mxu0 %v171_v63  ;;  %v298_v62 = vld [vmem:[%s6702_s0 + $0x8e0] sm:$0xff] }
 0x12e   :  { %v2817_v10 = vpop.f32.mrb[27].mxu1  ;;  %2551 = vmatmul.mubr.f32.gmra.mrb[132].mxu1 %v140_v18 }
 0x12f   :  { %v2818_v12 = vadd.f32 %v2817_v10, %v2816_v6  ;;  %2555 = vmatprep.mubr.f32.mxu1 %v173_v2  ;;  %v1128_v14 = vadd.f32 %v2759_v9, %v6297_v4  ;;  %v2760_v15 = vpop.f32.mrb[28].mxu0  ;;  %v204_v4 = vld [vmem:[%s6702_s0 + $0x5f0] sm:$0xff] }
 0x130   :  { %v2761_v17 = vpop.f32.mrb[29].mxu0  ;;  %2446 = vmatmul.mubr.f32.gmra.mrb[134].mxu0 %v170_v11 }
 0x131   :  { %v2819_v19 = vpop.f32.mrb[28].mxu1  ;;  %v6474_v21 = vadd.f32 %v2818_v12, %v1128_v14  ;;  %v2762_v22 = vadd.f32 %v2761_v17, %v2760_v15  ;;  %2450 = vmatprep.mubr.f32.mxu0 %v203_v13 }
 0x132   :  { %v2820_v23 = vpop.f32.mrb[29].mxu1  ;;  %2556 = vmatmul.mubr.f32.gmra.mrb[134].mxu1 %v172_v43 }
 0x133   :  { %v2821_v24 = vadd.f32 %v2820_v23, %v2819_v19  ;;  %2560 = vmatprep.mubr.f32.mxu1 %v205_v16  ;;  %v1133_v26 = vadd.f32 %v2762_v22, %v6336_v30  ;;  %v2763_v27 = vpop.f32.mrb[30].mxu0  ;;  %v236_v30 = vld [vmem:[%s6702_s0 + $0x6f0] sm:$0xff] }
 0x134   :  { %v2764_v29 = vpop.f32.mrb[31].mxu0  ;;  %2451 = vmatmul.mubr.f32.gmra.mrb[136].mxu0 %v202_v5 }
 0x135   :  { %v2822_v31 = vpop.f32.mrb[30].mxu1  ;;  %v6489_v34 = vadd.f32 %v2821_v24, %v1133_v26  ;;  %v2765_v35 = vadd.f32 %v2764_v29, %v2763_v27  ;;  %2455 = vmatprep.mubr.f32.mxu0 %v235_v25 }
 0x136   :  { %v2823_v36 = vpop.f32.mrb[31].mxu1  ;;  %2561 = vmatmul.mubr.f32.gmra.mrb[136].mxu1 %v204_v4 }
 0x137   :  { %v2824_v33 = vadd.f32 %v2823_v36, %v2822_v31  ;;  %2565 = vmatprep.mubr.f32.mxu1 %v237_v28  ;;  %v1138_v39 = vadd.f32 %v2765_v35, %v6369_v54  ;;  %v2766_v40 = vpop.f32.mrb[32].mxu0  ;;  %v268_v54 = vld [vmem:[%s6702_s0 + $0x7f0] sm:$0xff] }
 0x138   :  { %v2767_v42 = vpop.f32.mrb[33].mxu0  ;;  %2456 = vmatmul.mubr.f32.gmra.mrb[138].mxu0 %v234_v37 }
 0x139   :  { %v2825_v44 = vpop.f32.mrb[32].mxu1  ;;  %v6504_v46 = vadd.f32 %v2824_v33, %v1138_v39  ;;  %v2768_v47 = vadd.f32 %v2767_v42, %v2766_v40  ;;  %2460 = vmatprep.mubr.f32.mxu0 %v267_v38 }
 0x13a   :  { %v2826_v48 = vpop.f32.mrb[33].mxu1  ;;  %2566 = vmatmul.mubr.f32.gmra.mrb[138].mxu1 %v236_v30 }
 0x13b   :  { %v2827_v57 = vadd.f32 %v2826_v48, %v2825_v44  ;;  %2570 = vmatprep.mubr.f32.mxu1 %v269_v41  ;;  %v1143_v51 = vadd.f32 %v2768_v47, %v6384_v7  ;;  %v2769_v52 = vpop.f32.mrb[34].mxu0  ;;  %v300_v7 = vld [vmem:[%s6702_s0 + $0x8f0] sm:$0xff] }
 0x13c   :  { %v2770_v55 = vpop.f32.mrb[35].mxu0  ;;  %2461 = vmatmul.mubr.f32.gmra.mrb[140].mxu0 %v266_v49 }
 0x13d   :  { %v2828_v56 = vpop.f32.mrb[34].mxu1  ;;  %v6519_v59 = vadd.f32 %v2827_v57, %v1143_v51  ;;  %v2771_v60 = vadd.f32 %v2770_v55, %v2769_v52  ;;  %2465 = vmatprep.mubr.f32.mxu0 %v299_v50 }
 0x13e   :  { %v2829_v61 = vpop.f32.mrb[35].mxu1  ;;  %2571 = vmatmul.mubr.f32.gmra.mrb[140].mxu1 %v268_v54 }
 0x13f   :  { %v2830_v18 = vadd.f32 %v2829_v61, %v2828_v56  ;;  %2575 = vmatprep.mubr.f32.mxu1 %v301_v53  ;;  %v1148_v63 = vadd.f32 %v2771_v60, %v6399_v20  ;;  %v2863_v0 = vpop.f32.mrb[36].mxu0 }
 0x140   :  { %v2864_v1 = vpop.f32.mrb[37].mxu0  ;;  %2466 = vmatmul.mubr.f32.gmra.mrb[142].mxu0 %v298_v62 }
 0x141   :  { %v2922_v2 = vpop.f32.mrb[36].mxu1  ;;  %v6528_v3 = vadd.f32 %v2830_v18, %v1148_v63  ;;  %v2865_v6 = vadd.f32 %v2864_v1, %v2863_v0 }
 0x142   :  { %v2923_v9 = vpop.f32.mrb[37].mxu1  ;;  %2576 = vmatmul.mubr.f32.gmra.mrb[142].mxu1 %v300_v7 }
 0x143   :  { %v2924_v10 = vadd.f32 %v2923_v9, %v2922_v2  ;;  %v1328_v11 = vadd.f32 %v2865_v6, %v6414_v32  ;;  %v2866_v12 = vpop.f32.mrb[38].mxu0 }
 0x144   :  { %v2867_v43 = vpop.f32.mrb[39].mxu0 }
 0x145   :  { %v2925_v13 = vpop.f32.mrb[38].mxu1  ;;  %v6531_v14 = vadd.f32 %v2924_v10, %v1328_v11  ;;  %v2868_v15 = vadd.f32 %v2867_v43, %v2866_v12 }
 0x146   :  { %v2926_v16 = vpop.f32.mrb[39].mxu1 }
 0x147   :  { %v2927_v20 = vadd.f32 %v2926_v16, %v2925_v13  ;;  %v1333_v17 = vadd.f32 %v2868_v15, %v6429_v45  ;;  %v2869_v19 = vpop.f32.mrb[40].mxu0 }
 0x148   :  { %v2870_v22 = vpop.f32.mrb[41].mxu0 }
 0x149   :  { %v2928_v23 = vpop.f32.mrb[40].mxu1  ;;  %v6534_v5 = vadd.f32 %v2927_v20, %v1333_v17  ;;  %v2871_v24 = vadd.f32 %v2870_v22, %v2869_v19 }
 0x14a   :  { %v2929_v4 = vpop.f32.mrb[41].mxu1 }
 0x14b   :  { %v2930_v25 = vadd.f32 %v2929_v4, %v2928_v23  ;;  %v1338_v32 = vadd.f32 %v2871_v24, %v6444_v58  ;;  %v2872_v26 = vpop.f32.mrb[42].mxu0 }
 0x14c   :  { %v2873_v27 = vpop.f32.mrb[43].mxu0 }
 0x14d   :  { %v2931_v28 = vpop.f32.mrb[42].mxu1  ;;  %v6537_v29 = vadd.f32 %v2930_v25, %v1338_v32  ;;  %v2874_v31 = vadd.f32 %v2873_v27, %v2872_v26 }
 0x14e   :  { %v2932_v35 = vpop.f32.mrb[43].mxu1 }
 0x14f   :  { %v2933_v36 = vadd.f32 %v2932_v35, %v2931_v28  ;;  %v1343_v45 = vadd.f32 %v2874_v31, %v6459_v8  ;;  %v2875_v37 = vpop.f32.mrb[44].mxu0 }
 0x150   :  { %v2876_v33 = vpop.f32.mrb[45].mxu0 }
 0x151   :  { %v2934_v30 = vpop.f32.mrb[44].mxu1  ;;  %v6540_v38 = vadd.f32 %v2933_v36, %v1343_v45  ;;  %v2877_v39 = vadd.f32 %v2876_v33, %v2875_v37 }
 0x152   :  { %v2935_v40 = vpop.f32.mrb[45].mxu1 }
 0x153   :  { %v2936_v41 = vadd.f32 %v2935_v40, %v2934_v30  ;;  %v1348_v58 = vadd.f32 %v2877_v39, %v6474_v21  ;;  %v2878_v42 = vpop.f32.mrb[46].mxu0 }
 0x154   :  { %v2879_v44 = vpop.f32.mrb[47].mxu0 }
 0x155   :  { %v2937_v47 = vpop.f32.mrb[46].mxu1  ;;  %v6543_v48 = vadd.f32 %v2936_v41, %v1348_v58  ;;  %v2880_v49 = vadd.f32 %v2879_v44, %v2878_v42 }
 0x156   :  { %v2938_v57 = vpop.f32.mrb[47].mxu1 }
 0x157   :  { %v2939_v54 = vadd.f32 %v2938_v57, %v2937_v47  ;;  %v1353_v8 = vadd.f32 %v2880_v49, %v6489_v34  ;;  %v2881_v50 = vpop.f32.mrb[48].mxu0 }
 0x158   :  { %v2882_v51 = vpop.f32.mrb[49].mxu0 }
 0x159   :  { %v2940_v52 = vpop.f32.mrb[48].mxu1  ;;  %v6546_v53 = vadd.f32 %v2939_v54, %v1353_v8  ;;  %v2883_v55 = vadd.f32 %v2882_v51, %v2881_v50 }
 0x15a   :  { %v2941_v56 = vpop.f32.mrb[49].mxu1 }
 0x15b   :  { %v2942_v60 = vadd.f32 %v2941_v56, %v2940_v52  ;;  %v1358_v21 = vadd.f32 %v2883_v55, %v6504_v46  ;;  %v2884_v61 = vpop.f32.mrb[50].mxu0 }
 0x15c   :  { %v2885_v62 = vpop.f32.mrb[51].mxu0 }
 0x15d   :  { %v2943_v18 = vpop.f32.mrb[50].mxu1  ;;  %v6549_v7 = vadd.f32 %v2942_v60, %v1358_v21  ;;  %v2886_v63 = vadd.f32 %v2885_v62, %v2884_v61 }
 0x15e   :  { %v2944_v0 = vpop.f32.mrb[51].mxu1 }
 0x15f   :  { %v2945_v1 = vadd.f32 %v2944_v0, %v2943_v18  ;;  %v1363_v34 = vadd.f32 %v2886_v63, %v6519_v59  ;;  %v2887_v2 = vpop.f32.mrb[52].mxu0 }
 0x160   :  { %v2888_v6 = vpop.f32.mrb[53].mxu0 }
 0x161   :  { %v2946_v9 = vpop.f32.mrb[52].mxu1  ;;  %v6552_v10 = vadd.f32 %v2945_v1, %v1363_v34  ;;  %v2889_v11 = vadd.f32 %v2888_v6, %v2887_v2 }
 0x162   :  { %v2947_v12 = vpop.f32.mrb[53].mxu1 }
 0x163   :  { %v2948_v43 = vadd.f32 %v2947_v12, %v2946_v9  ;;  %v1368_v46 = vadd.f32 %v2889_v11, %v6528_v3  ;;  %v2981_v13 = vpop.f32.mrb[54].mxu0 }
 0x164   :  { %v2982_v15 = vpop.f32.mrb[55].mxu0 }
 0x165   :  { %v3040_v16 = vpop.f32.mrb[54].mxu1  ;;  %v6555_v20 = vadd.f32 %v2948_v43, %v1368_v46  ;;  %v2983_v17 = vadd.f32 %v2982_v15, %v2981_v13 }
 0x166   :  { %v3041_v19 = vpop.f32.mrb[55].mxu1 }
 0x167   :  { %v3042_v22 = vadd.f32 %v3041_v19, %v3040_v16  ;;  %v1548_v59 = vadd.f32 %v2983_v17, %v6531_v14  ;;  %v2984_v23 = vpop.f32.mrb[56].mxu0 }
 0x168   :  { %v2985_v24 = vpop.f32.mrb[57].mxu0 }
 0x169   :  { %v3043_v4 = vpop.f32.mrb[56].mxu1  ;;  %v6558_v25 = vadd.f32 %v3042_v22, %v1548_v59  ;;  %v2986_v32 = vadd.f32 %v2985_v24, %v2984_v23 }
 0x16a   :  { %v3044_v26 = vpop.f32.mrb[57].mxu1 }
 0x16b   :  { %v3045_v27 = vadd.f32 %v3044_v26, %v3043_v4  ;;  %v1553_v3 = vadd.f32 %v2986_v32, %v6534_v5  ;;  %v2987_v28 = vpop.f32.mrb[58].mxu0 }
 0x16c   :  { %v2988_v31 = vpop.f32.mrb[59].mxu0 }
 0x16d   :  { %v3046_v35 = vpop.f32.mrb[58].mxu1  ;;  %v6561_v36 = vadd.f32 %v3045_v27, %v1553_v3  ;;  %v2989_v45 = vadd.f32 %v2988_v31, %v2987_v28 }
 0x16e   :  { %v3047_v37 = vpop.f32.mrb[59].mxu1 }
 0x16f   :  { %v3048_v33 = vadd.f32 %v3047_v37, %v3046_v35  ;;  %v1558_v14 = vadd.f32 %v2989_v45, %v6537_v29  ;;  %v2990_v30 = vpop.f32.mrb[60].mxu0 }
 0x170   :  { %v2991_v39 = vpop.f32.mrb[61].mxu0 }
 0x171   :  { %v3049_v40 = vpop.f32.mrb[60].mxu1  ;;  %v6564_v41 = vadd.f32 %v3048_v33, %v1558_v14  ;;  %v2992_v58 = vadd.f32 %v2991_v39, %v2990_v30 }
 0x172   :  { %v3050_v42 = vpop.f32.mrb[61].mxu1 }
 0x173   :  { %v3051_v44 = vadd.f32 %v3050_v42, %v3049_v40  ;;  %v1563_v5 = vadd.f32 %v2992_v58, %v6540_v38  ;;  %v2993_v47 = vpop.f32.mrb[62].mxu0 }
 0x174   :  { %v2994_v49 = vpop.f32.mrb[63].mxu0 }
 0x175   :  { %v3052_v57 = vpop.f32.mrb[62].mxu1  ;;  %v6567_v54 = vadd.f32 %v3051_v44, %v1563_v5  ;;  %v2995_v8 = vadd.f32 %v2994_v49, %v2993_v47 }
 0x176   :  { %v3053_v50 = vpop.f32.mrb[63].mxu1 }
 0x177   :  { %v3054_v51 = vadd.f32 %v3053_v50, %v3052_v57  ;;  %v1568_v29 = vadd.f32 %v2995_v8, %v6543_v48  ;;  %v2996_v52 = vpop.f32.mrb[64].mxu0 }
 0x178   :  { %v2997_v55 = vpop.f32.mrb[65].mxu0 }
 0x179   :  { %v3055_v56 = vpop.f32.mrb[64].mxu1  ;;  %v6570_v60 = vadd.f32 %v3054_v51, %v1568_v29  ;;  %v2998_v21 = vadd.f32 %v2997_v55, %v2996_v52 }
 0x17a   :  { %v3056_v61 = vpop.f32.mrb[65].mxu1 }
 0x17b   :  { %v3057_v62 = vadd.f32 %v3056_v61, %v3055_v56  ;;  %v1573_v38 = vadd.f32 %v2998_v21, %v6546_v53  ;;  %v2999_v18 = vpop.f32.mrb[66].mxu0 }
 0x17c   :  { %v3000_v63 = vpop.f32.mrb[67].mxu0 }
 0x17d   :  { %v3058_v0 = vpop.f32.mrb[66].mxu1  ;;  %v6573_v1 = vadd.f32 %v3057_v62, %v1573_v38  ;;  %v3001_v34 = vadd.f32 %v3000_v63, %v2999_v18 }
 0x17e   :  { %v3059_v2 = vpop.f32.mrb[67].mxu1 }
 0x17f   :  { %v3060_v6 = vadd.f32 %v3059_v2, %v3058_v0  ;;  %v1578_v48 = vadd.f32 %v3001_v34, %v6549_v7  ;;  %v3002_v9 = vpop.f32.mrb[68].mxu0 }
 0x180   :  { %v3003_v11 = vpop.f32.mrb[69].mxu0 }
 0x181   :  { %v3061_v12 = vpop.f32.mrb[68].mxu1  ;;  %v6576_v43 = vadd.f32 %v3060_v6, %v1578_v48  ;;  %v3004_v46 = vadd.f32 %v3003_v11, %v3002_v9 }
 0x182   :  { %v3062_v13 = vpop.f32.mrb[69].mxu1 }
 0x183   :  { %v3063_v15 = vadd.f32 %v3062_v13, %v3061_v12  ;;  %v1583_v53 = vadd.f32 %v3004_v46, %v6552_v10  ;;  %v3005_v16 = vpop.f32.mrb[70].mxu0 }
 0x184   :  { %v3006_v17 = vpop.f32.mrb[71].mxu0 }
 0x185   :  { %v3064_v19 = vpop.f32.mrb[70].mxu1  ;;  %v6579_v22 = vadd.f32 %v3063_v15, %v1583_v53  ;;  %v3007_v59 = vadd.f32 %v3006_v17, %v3005_v16 }
 0x186   :  { %v3065_v23 = vpop.f32.mrb[71].mxu1 }
 0x187   :  { %v3066_v24 = vadd.f32 %v3065_v23, %v3064_v19  ;;  %v1588_v7 = vadd.f32 %v3007_v59, %v6555_v20  ;;  %v3099_v4 = vpop.f32.mrb[72].mxu0 }
 0x188   :  { %v3100_v32 = vpop.f32.mrb[73].mxu0 }
 0x189   :  { %v3158_v26 = vpop.f32.mrb[72].mxu1  ;;  %v6582_v27 = vadd.f32 %v3066_v24, %v1588_v7  ;;  %v3101_v3 = vadd.f32 %v3100_v32, %v3099_v4 }
 0x18a   :  { %v3159_v28 = vpop.f32.mrb[73].mxu1 }
 0x18b   :  { %v3160_v31 = vadd.f32 %v3159_v28, %v3158_v26  ;;  %v1768_v10 = vadd.f32 %v3101_v3, %v6558_v25  ;;  %v3102_v35 = vpop.f32.mrb[74].mxu0 }
 0x18c   :  { %v3103_v45 = vpop.f32.mrb[75].mxu0 }
 0x18d   :  { %v3161_v37 = vpop.f32.mrb[74].mxu1  ;;  %v6585_v33 = vadd.f32 %v3160_v31, %v1768_v10  ;;  %v3104_v14 = vadd.f32 %v3103_v45, %v3102_v35 }
 0x18e   :  { %v3162_v30 = vpop.f32.mrb[75].mxu1 }
 0x18f   :  { %v3163_v39 = vadd.f32 %v3162_v30, %v3161_v37  ;;  %v1773_v20 = vadd.f32 %v3104_v14, %v6561_v36  ;;  %v3105_v40 = vpop.f32.mrb[76].mxu0 }
 0x190   :  { %v3106_v58 = vpop.f32.mrb[77].mxu0 }
 0x191   :  { %v3164_v42 = vpop.f32.mrb[76].mxu1  ;;  %v6588_v44 = vadd.f32 %v3163_v39, %v1773_v20  ;;  %v3107_v5 = vadd.f32 %v3106_v58, %v3105_v40 }
 0x192   :  { %v3165_v47 = vpop.f32.mrb[77].mxu1 }
 0x193   :  { %v3166_v49 = vadd.f32 %v3165_v47, %v3164_v42  ;;  %v1778_v25 = vadd.f32 %v3107_v5, %v6564_v41  ;;  %v3108_v57 = vpop.f32.mrb[78].mxu0 }
 0x194   :  { %v3109_v8 = vpop.f32.mrb[79].mxu0 }
 0x195   :  { %v3167_v50 = vpop.f32.mrb[78].mxu1  ;;  %v6591_v51 = vadd.f32 %v3166_v49, %v1778_v25  ;;  %v3110_v29 = vadd.f32 %v3109_v8, %v3108_v57 }
 0x196   :  { %v3168_v52 = vpop.f32.mrb[79].mxu1 }
 0x197   :  { %v3169_v55 = vadd.f32 %v3168_v52, %v3167_v50  ;;  %v1783_v36 = vadd.f32 %v3110_v29, %v6567_v54  ;;  %v3111_v56 = vpop.f32.mrb[80].mxu0 }
 0x198   :  { %v3112_v21 = vpop.f32.mrb[81].mxu0 }
 0x199   :  { %v3170_v61 = vpop.f32.mrb[80].mxu1  ;;  %v6594_v62 = vadd.f32 %v3169_v55, %v1783_v36  ;;  %v3113_v38 = vadd.f32 %v3112_v21, %v3111_v56 }
 0x19a   :  { %v3171_v18 = vpop.f32.mrb[81].mxu1 }
 0x19b   :  { %v3172_v63 = vadd.f32 %v3171_v18, %v3170_v61  ;;  %v1788_v41 = vadd.f32 %v3113_v38, %v6570_v60  ;;  %v3114_v0 = vpop.f32.mrb[82].mxu0 }
 0x19c   :  { %v3115_v34 = vpop.f32.mrb[83].mxu0 }
 0x19d   :  { %v3173_v2 = vpop.f32.mrb[82].mxu1  ;;  %v6597_v6 = vadd.f32 %v3172_v63, %v1788_v41  ;;  %v3116_v48 = vadd.f32 %v3115_v34, %v3114_v0 }
 0x19e   :  { %v3174_v9 = vpop.f32.mrb[83].mxu1 }
 0x19f   :  { %v3175_v11 = vadd.f32 %v3174_v9, %v3173_v2  ;;  %v1793_v54 = vadd.f32 %v3116_v48, %v6573_v1  ;;  %v3117_v12 = vpop.f32.mrb[84].mxu0 }
 0x1a0   :  { %v3118_v46 = vpop.f32.mrb[85].mxu0 }
 0x1a1   :  { %v3176_v13 = vpop.f32.mrb[84].mxu1  ;;  %v6600_v15 = vadd.f32 %v3175_v11, %v1793_v54  ;;  %v3119_v53 = vadd.f32 %v3118_v46, %v3117_v12 }
 0x1a2   :  { %v3177_v16 = vpop.f32.mrb[85].mxu1 }
 0x1a3   :  { %v3178_v17 = vadd.f32 %v3177_v16, %v3176_v13  ;;  %v1798_v60 = vadd.f32 %v3119_v53, %v6576_v43  ;;  %v3120_v19 = vpop.f32.mrb[86].mxu0 }
 0x1a4   :  { %v3121_v59 = vpop.f32.mrb[87].mxu0 }
 0x1a5   :  { %v3179_v23 = vpop.f32.mrb[86].mxu1  ;;  %v6603_v24 = vadd.f32 %v3178_v17, %v1798_v60  ;;  %v3122_v7 = vadd.f32 %v3121_v59, %v3120_v19 }
 0x1a6   :  { %v3180_v4 = vpop.f32.mrb[87].mxu1 }
 0x1a7   :  { %v3181_v32 = vadd.f32 %v3180_v4, %v3179_v23  ;;  %v1803_v1 = vadd.f32 %v3122_v7, %v6579_v22  ;;  %v3123_v26 = vpop.f32.mrb[88].mxu0 }
 0x1a8   :  { %v3124_v3 = vpop.f32.mrb[89].mxu0 }
 0x1a9   :  { %v3182_v28 = vpop.f32.mrb[88].mxu1  ;;  %v6606_v31 = vadd.f32 %v3181_v32, %v1803_v1  ;;  %v3125_v10 = vadd.f32 %v3124_v3, %v3123_v26 }
 0x1aa   :  { %v3183_v35 = vpop.f32.mrb[89].mxu1 }
 0x1ab   :  { %v3184_v45 = vadd.f32 %v3183_v35, %v3182_v28  ;;  %v1808_v43 = vadd.f32 %v3125_v10, %v6582_v27  ;;  %v3217_v37 = vpop.f32.mrb[90].mxu0 }
 0x1ac   :  { %v3218_v14 = vpop.f32.mrb[91].mxu0 }
 0x1ad   :  { %v3276_v30 = vpop.f32.mrb[90].mxu1  ;;  %v6609_v39 = vadd.f32 %v3184_v45, %v1808_v43  ;;  %v3219_v20 = vadd.f32 %v3218_v14, %v3217_v37 }
 0x1ae   :  { %v3277_v40 = vpop.f32.mrb[91].mxu1 }
 0x1af   :  { %v3278_v58 = vadd.f32 %v3277_v40, %v3276_v30  ;;  %v1988_v22 = vadd.f32 %v3219_v20, %v6585_v33  ;;  %v3220_v42 = vpop.f32.mrb[92].mxu0 }
 0x1b0   :  { %v3221_v5 = vpop.f32.mrb[93].mxu0 }
 0x1b1   :  { %v3279_v47 = vpop.f32.mrb[92].mxu1  ;;  %v6612_v49 = vadd.f32 %v3278_v58, %v1988_v22  ;;  %v3222_v25 = vadd.f32 %v3221_v5, %v3220_v42 }
 0x1b2   :  { %v3280_v57 = vpop.f32.mrb[93].mxu1 }
 0x1b3   :  { %v3281_v8 = vadd.f32 %v3280_v57, %v3279_v47  ;;  %v1993_v27 = vadd.f32 %v3222_v25, %v6588_v44  ;;  %v3223_v50 = vpop.f32.mrb[94].mxu0 }
 0x1b4   :  { %v3224_v29 = vpop.f32.mrb[95].mxu0 }
 0x1b5   :  { %v3282_v52 = vpop.f32.mrb[94].mxu1  ;;  %v6615_v55 = vadd.f32 %v3281_v8, %v1993_v27  ;;  %v3225_v36 = vadd.f32 %v3224_v29, %v3223_v50 }
 0x1b6   :  { %v3283_v56 = vpop.f32.mrb[95].mxu1 }
 0x1b7   :  { %v3284_v21 = vadd.f32 %v3283_v56, %v3282_v52  ;;  %v1998_v33 = vadd.f32 %v3225_v36, %v6591_v51  ;;  %v3226_v61 = vpop.f32.mrb[96].mxu0 }
 0x1b8   :  { %v3227_v38 = vpop.f32.mrb[97].mxu0 }
 0x1b9   :  { %v3285_v18 = vpop.f32.mrb[96].mxu1  ;;  %v6618_v63 = vadd.f32 %v3284_v21, %v1998_v33  ;;  %v3228_v41 = vadd.f32 %v3227_v38, %v3226_v61 }
 0x1ba   :  { %v3286_v0 = vpop.f32.mrb[97].mxu1 }
 0x1bb   :  { %v3287_v34 = vadd.f32 %v3286_v0, %v3285_v18  ;;  %v2003_v44 = vadd.f32 %v3228_v41, %v6594_v62  ;;  %v3229_v2 = vpop.f32.mrb[98].mxu0 }
 0x1bc   :  { %v3230_v48 = vpop.f32.mrb[99].mxu0 }
 0x1bd   :  { %v3288_v9 = vpop.f32.mrb[98].mxu1  ;;  %v6621_v11 = vadd.f32 %v3287_v34, %v2003_v44  ;;  %v3231_v54 = vadd.f32 %v3230_v48, %v3229_v2 }
 0x1be   :  { %v3289_v12 = vpop.f32.mrb[99].mxu1 }
 0x1bf   :  { %v3290_v46 = vadd.f32 %v3289_v12, %v3288_v9  ;;  %v2008_v51 = vadd.f32 %v3231_v54, %v6597_v6  ;;  %v3232_v13 = vpop.f32.mrb[100].mxu0 }
 0x1c0   :  { %v3233_v53 = vpop.f32.mrb[101].mxu0 }
 0x1c1   :  { %v3291_v16 = vpop.f32.mrb[100].mxu1  ;;  %v6624_v17 = vadd.f32 %v3290_v46, %v2008_v51  ;;  %v3234_v60 = vadd.f32 %v3233_v53, %v3232_v13 }
 0x1c2   :  { %v3292_v19 = vpop.f32.mrb[101].mxu1 }
 0x1c3   :  { %v3293_v59 = vadd.f32 %v3292_v19, %v3291_v16  ;;  %v2013_v62 = vadd.f32 %v3234_v60, %v6600_v15  ;;  %v3235_v23 = vpop.f32.mrb[102].mxu0 }
 0x1c4   :  { %v3236_v7 = vpop.f32.mrb[103].mxu0 }
 0x1c5   :  { %v3294_v4 = vpop.f32.mrb[102].mxu1  ;;  %v6627_v32 = vadd.f32 %v3293_v59, %v2013_v62  ;;  %v3237_v1 = vadd.f32 %v3236_v7, %v3235_v23 }
 0x1c6   :  { %v3295_v26 = vpop.f32.mrb[103].mxu1 }
 0x1c7   :  { %v3296_v3 = vadd.f32 %v3295_v26, %v3294_v4  ;;  %v2018_v6 = vadd.f32 %v3237_v1, %v6603_v24  ;;  %v3238_v28 = vpop.f32.mrb[104].mxu0 }
 0x1c8   :  { %v3239_v10 = vpop.f32.mrb[105].mxu0 }
 0x1c9   :  { %v3297_v35 = vpop.f32.mrb[104].mxu1  ;;  %v6630_v45 = vadd.f32 %v3296_v3, %v2018_v6  ;;  %v3240_v43 = vadd.f32 %v3239_v10, %v3238_v28 }
 0x1ca   :  { %v3298_v37 = vpop.f32.mrb[105].mxu1 }
 0x1cb   :  { %v3299_v14 = vadd.f32 %v3298_v37, %v3297_v35  ;;  %v2023_v15 = vadd.f32 %v3240_v43, %v6606_v31  ;;  %v3241_v30 = vpop.f32.mrb[106].mxu0 }
 0x1cc   :  { %v3242_v20 = vpop.f32.mrb[107].mxu0 }
 0x1cd   :  { %v3300_v40 = vpop.f32.mrb[106].mxu1  ;;  %v6633_v58 = vadd.f32 %v3299_v14, %v2023_v15  ;;  %v3243_v22 = vadd.f32 %v3242_v20, %v3241_v30 }
 0x1ce   :  { %v3301_v42 = vpop.f32.mrb[107].mxu1 }
 0x1cf   :  { %v3302_v5 = vadd.f32 %v3301_v42, %v3300_v40  ;;  %v2028_v24 = vadd.f32 %v3243_v22, %v6609_v39  ;;  %v3335_v47 = vpop.f32.mrb[108].mxu0 }
 0x1d0   :  { %v3336_v25 = vpop.f32.mrb[109].mxu0 }
 0x1d1   :  { %v3394_v57 = vpop.f32.mrb[108].mxu1  ;;  %v6636_v8 = vadd.f32 %v3302_v5, %v2028_v24  ;;  %v3337_v27 = vadd.f32 %v3336_v25, %v3335_v47 }
 0x1d2   :  { %v3395_v50 = vpop.f32.mrb[109].mxu1 }
 0x1d3   :  { %v3396_v29 = vadd.f32 %v3395_v50, %v3394_v57  ;;  %v2208_v31 = vadd.f32 %v3337_v27, %v6612_v49  ;;  %v3338_v52 = vpop.f32.mrb[110].mxu0 }
 0x1d4   :  { %v3339_v36 = vpop.f32.mrb[111].mxu0 }
 0x1d5   :  { %v3397_v56 = vpop.f32.mrb[110].mxu1  ;;  %v6639_v21 = vadd.f32 %v3396_v29, %v2208_v31  ;;  %v3340_v33 = vadd.f32 %v3339_v36, %v3338_v52 }
 0x1d6   :  { %v3398_v61 = vpop.f32.mrb[111].mxu1 }
 0x1d7   :  { %v3399_v38 = vadd.f32 %v3398_v61, %v3397_v56  ;;  %v2213_v39 = vadd.f32 %v3340_v33, %v6615_v55  ;;  %v3341_v18 = vpop.f32.mrb[112].mxu0 }
 0x1d8   :  { %v3342_v41 = vpop.f32.mrb[113].mxu0 }
 0x1d9   :  { %v3400_v0 = vpop.f32.mrb[112].mxu1  ;;  %v6642_v34 = vadd.f32 %v3399_v38, %v2213_v39  ;;  %v3343_v44 = vadd.f32 %v3342_v41, %v3341_v18 }
 0x1da   :  { %v3401_v2 = vpop.f32.mrb[113].mxu1 }
 0x1db   :  { %v3402_v48 = vadd.f32 %v3401_v2, %v3400_v0  ;;  %v2218_v49 = vadd.f32 %v3343_v44, %v6618_v63  ;;  %v3344_v9 = vpop.f32.mrb[114].mxu0 }
 0x1dc   :  { %v3345_v54 = vpop.f32.mrb[115].mxu0 }
 0x1dd   :  { %v3403_v12 = vpop.f32.mrb[114].mxu1  ;;  %v6645_v46 = vadd.f32 %v3402_v48, %v2218_v49  ;;  %v3346_v51 = vadd.f32 %v3345_v54, %v3344_v9 }
 0x1de   :  { %v3404_v13 = vpop.f32.mrb[115].mxu1 }
 0x1df   :  { %v3405_v53 = vadd.f32 %v3404_v13, %v3403_v12  ;;  %v2223_v55 = vadd.f32 %v3346_v51, %v6621_v11  ;;  %v3347_v16 = vpop.f32.mrb[116].mxu0 }
 0x1e0   :  { %v3348_v60 = vpop.f32.mrb[117].mxu0 }
 0x1e1   :  { %v3406_v19 = vpop.f32.mrb[116].mxu1  ;;  %v6648_v59 = vadd.f32 %v3405_v53, %v2223_v55  ;;  %v3349_v62 = vadd.f32 %v3348_v60, %v3347_v16 }
 0x1e2   :  { %v3407_v23 = vpop.f32.mrb[117].mxu1 }
 0x1e3   :  { %v3408_v7 = vadd.f32 %v3407_v23, %v3406_v19  ;;  %v2228_v63 = vadd.f32 %v3349_v62, %v6624_v17  ;;  %v3350_v4 = vpop.f32.mrb[118].mxu0 }
 0x1e4   :  { %v3351_v1 = vpop.f32.mrb[119].mxu0 }
 0x1e5   :  { %v3409_v26 = vpop.f32.mrb[118].mxu1  ;;  %v6651_v3 = vadd.f32 %v3408_v7, %v2228_v63  ;;  %v3352_v6 = vadd.f32 %v3351_v1, %v3350_v4 }
 0x1e6   :  { %v3410_v28 = vpop.f32.mrb[119].mxu1 }
 0x1e7   :  { %v3411_v10 = vadd.f32 %v3410_v28, %v3409_v26  ;;  %v2233_v11 = vadd.f32 %v3352_v6, %v6627_v32  ;;  %v3353_v35 = vpop.f32.mrb[120].mxu0 }
 0x1e8   :  { %v3354_v43 = vpop.f32.mrb[121].mxu0 }
 0x1e9   :  { %v3412_v37 = vpop.f32.mrb[120].mxu1  ;;  %v6654_v14 = vadd.f32 %v3411_v10, %v2233_v11  ;;  %v3355_v15 = vadd.f32 %v3354_v43, %v3353_v35 }
 0x1ea   :  { %v3413_v30 = vpop.f32.mrb[121].mxu1 }
 0x1eb   :  { %v3414_v20 = vadd.f32 %v3413_v30, %v3412_v37  ;;  %v2238_v17 = vadd.f32 %v3355_v15, %v6630_v45  ;;  %v3356_v40 = vpop.f32.mrb[122].mxu0 }
 0x1ec   :  { %v3357_v22 = vpop.f32.mrb[123].mxu0 }
 0x1ed   :  { %v3415_v42 = vpop.f32.mrb[122].mxu1  ;;  %v6657_v5 = vadd.f32 %v3414_v20, %v2238_v17  ;;  %v3358_v24 = vadd.f32 %v3357_v22, %v3356_v40 }
 0x1ee   :  { %v3416_v47 = vpop.f32.mrb[123].mxu1 }
 0x1ef   :  { %v3417_v25 = vadd.f32 %v3416_v47, %v3415_v42  ;;  %v2243_v32 = vadd.f32 %v3358_v24, %v6633_v58  ;;  %v3359_v57 = vpop.f32.mrb[124].mxu0 }
 0x1f0   :  { %v3360_v27 = vpop.f32.mrb[125].mxu0 }
 0x1f1   :  { %v3418_v50 = vpop.f32.mrb[124].mxu1  ;;  %v6660_v29 = vadd.f32 %v3417_v25, %v2243_v32  ;;  %v3361_v31 = vadd.f32 %v3360_v27, %v3359_v57 }
 0x1f2   :  { %v3419_v52 = vpop.f32.mrb[125].mxu1 }
 0x1f3   :  { %v3420_v36 = vadd.f32 %v3419_v52, %v3418_v50  ;;  %v2248_v45 = vadd.f32 %v3361_v31, %v6636_v8  ;;  %v3453_v56 = vpop.f32.mrb[126].mxu0 }
 0x1f4   :  { %v3454_v33 = vpop.f32.mrb[127].mxu0 }
 0x1f5   :  { %v3512_v61 = vpop.f32.mrb[126].mxu1  ;;  %v6663_v38 = vadd.f32 %v3420_v36, %v2248_v45  ;;  %v3455_v39 = vadd.f32 %v3454_v33, %v3453_v56 }
 0x1f6   :  { %v3513_v18 = vpop.f32.mrb[127].mxu1 }
 0x1f7   :  { %v3514_v41 = vadd.f32 %v3513_v18, %v3512_v61  ;;  %v2428_v58 = vadd.f32 %v3455_v39, %v6639_v21  ;;  %v3456_v0 = vpop.f32.mrb[128].mxu0 }
 0x1f8   :  { %v3457_v44 = vpop.f32.mrb[129].mxu0 }
 0x1f9   :  { %v3515_v2 = vpop.f32.mrb[128].mxu1  ;;  %v2538_v48 = vadd.f32 %v3514_v41, %v2428_v58  ;;  %v3458_v49 = vadd.f32 %v3457_v44, %v3456_v0 }
 0x1fa   :  { %v3516_v9 = vpop.f32.mrb[129].mxu1 }
 0x1fb   :  { %v3517_v54 = vadd.f32 %v3516_v9, %v3515_v2  ;;  %2581 = vst [vmem:[%s6704_s3] sm:$0xff] %v2538_v48  ;;  %v2433_v8 = vadd.f32 %v3458_v49, %v6642_v34  ;;  %v3459_v12 = vpop.f32.mrb[130].mxu0 }
 0x1fc   :  { %v3460_v51 = vpop.f32.mrb[131].mxu0 }
 0x1fd   :  { %v3518_v13 = vpop.f32.mrb[130].mxu1  ;;  %v2543_v53 = vadd.f32 %v3517_v54, %v2433_v8  ;;  %v3461_v55 = vadd.f32 %v3460_v51, %v3459_v12 }
 0x1fe   :  { %v3519_v16 = vpop.f32.mrb[131].mxu1 }
 0x1ff   :  { %v3520_v21 = vadd.f32 %v3519_v16, %v3518_v13  ;;  %2582 = vst [vmem:[%s6704_s3 + $0x8] sm:$0xff] %v2543_v53  ;;  %v2438_v60 = vadd.f32 %v3461_v55, %v6645_v46  ;;  %v3462_v19 = vpop.f32.mrb[132].mxu0 }
 0x200   :  { %v3463_v62 = vpop.f32.mrb[133].mxu0 }
 0x201   :  { %v3521_v23 = vpop.f32.mrb[132].mxu1  ;;  %v2548_v7 = vadd.f32 %v3520_v21, %v2438_v60  ;;  %v3464_v63 = vadd.f32 %v3463_v62, %v3462_v19 }
 0x202   :  { %v3522_v4 = vpop.f32.mrb[133].mxu1 }
 0x203   :  { %v3523_v34 = vadd.f32 %v3522_v4, %v3521_v23  ;;  %2583 = vst [vmem:[%s6704_s3 + $0x10] sm:$0xff] %v2548_v7  ;;  %v2443_v1 = vadd.f32 %v3464_v63, %v6648_v59  ;;  %v3465_v26 = vpop.f32.mrb[134].mxu0 }
 0x204   :  { %v3466_v6 = vpop.f32.mrb[135].mxu0 }
 0x205   :  { %v3524_v28 = vpop.f32.mrb[134].mxu1  ;;  %v2553_v10 = vadd.f32 %v3523_v34, %v2443_v1  ;;  %v3467_v11 = vadd.f32 %v3466_v6, %v3465_v26 }
 0x206   :  { %v3525_v35 = vpop.f32.mrb[135].mxu1 }
 0x207   :  { %v3526_v46 = vadd.f32 %v3525_v35, %v3524_v28  ;;  %2584 = vst [vmem:[%s6704_s3 + $0x18] sm:$0xff] %v2553_v10  ;;  %v2448_v43 = vadd.f32 %v3467_v11, %v6651_v3  ;;  %v3468_v37 = vpop.f32.mrb[136].mxu0 }
 0x208   :  { %v3469_v15 = vpop.f32.mrb[137].mxu0 }
 0x209   :  { %v3527_v30 = vpop.f32.mrb[136].mxu1  ;;  %v2558_v20 = vadd.f32 %v3526_v46, %v2448_v43  ;;  %v3470_v17 = vadd.f32 %v3469_v15, %v3468_v37 }
 0x20a   :  { %v3528_v40 = vpop.f32.mrb[137].mxu1 }
 0x20b   :  { %v3529_v59 = vadd.f32 %v3528_v40, %v3527_v30  ;;  %2585 = vst [vmem:[%s6704_s3 + $0x20] sm:$0xff] %v2558_v20  ;;  %v2453_v22 = vadd.f32 %v3470_v17, %v6654_v14  ;;  %v3471_v42 = vpop.f32.mrb[138].mxu0 }
 0x20c   :  { %v3472_v24 = vpop.f32.mrb[139].mxu0 }
 0x20d   :  { %v3530_v47 = vpop.f32.mrb[138].mxu1  ;;  %v2563_v25 = vadd.f32 %v3529_v59, %v2453_v22  ;;  %v3473_v32 = vadd.f32 %v3472_v24, %v3471_v42 }
 0x20e   :  { %v3531_v57 = vpop.f32.mrb[139].mxu1 }
 0x20f   :  { %v3532_v3 = vadd.f32 %v3531_v57, %v3530_v47  ;;  %2586 = vst [vmem:[%s6704_s3 + $0x28] sm:$0xff] %v2563_v25  ;;  %v2458_v27 = vadd.f32 %v3473_v32, %v6657_v5  ;;  %v3474_v50 = vpop.f32.mrb[140].mxu0 }
 0x210   :  { %v3475_v31 = vpop.f32.mrb[141].mxu0 }
 0x211   :  { %v3533_v52 = vpop.f32.mrb[140].mxu1  ;;  %v2568_v36 = vadd.f32 %v3532_v3, %v2458_v27  ;;  %v3476_v45 = vadd.f32 %v3475_v31, %v3474_v50 }
 0x212   :  { %v3534_v56 = vpop.f32.mrb[141].mxu1 }
 0x213   :  { %v3535_v14 = vadd.f32 %v3534_v56, %v3533_v52  ;;  %2587 = vst [vmem:[%s6704_s3 + $0x30] sm:$0xff] %v2568_v36  ;;  %v2463_v33 = vadd.f32 %v3476_v45, %v6660_v29  ;;  %v3477_v61 = vpop.f32.mrb[142].mxu0 }
 0x214   :  { %v3478_v39 = vpop.f32.mrb[143].mxu0 }
 0x215   :  { %v3536_v18 = vpop.f32.mrb[142].mxu1  ;;  %v2573_v41 = vadd.f32 %v3535_v14, %v2463_v33  ;;  %v3479_v58 = vadd.f32 %v3478_v39, %v3477_v61 }
 0x216   :  { %v3537_v0 = vpop.f32.mrb[143].mxu1 }
 0x217   :  { %v3538_v5 = vadd.f32 %v3537_v0, %v3536_v18  ;;  %2588 = vst [vmem:[%s6704_s3 + $0x38] sm:$0xff] %v2573_v41  ;;  %v2468_v44 = vadd.f32 %v3479_v58, %v6663_v38 }
 0x219   :  { %v2578_v2 = vadd.f32 %v3538_v5, %v2468_v44 }
 0x21b   :  { %2589 = vst [vmem:[%s6704_s3 + $0x40] sm:$0xff] %v2578_v2 }

</bundles_post_ra>
